<compile_context>
chip_gen: v6e
topology: v6e:2x2x1
jax: 0.10.0
libtpu: 0.0.40
codegen_flags: <defaults>
</compile_context>

<pallas_src>
import math

import numpy as np
import jax
import jax.numpy as jnp
from jax.experimental import pallas as pl
from jax.experimental.pallas import tpu as pltpu


# ----------------------------------------------------------------------------
# Host-side constant tables (upsample/pad scatter matrices, validity masks)
# ----------------------------------------------------------------------------
def _upsample_pad_matrix(src_h, src_w, src_row_len, src_col_off):
    """0/1 matrix mapping a flat source image to the flat, zero-padded, 2x
    nearest-upsampled buffer.

    Source pixel (i, j) lives at flat index  i*src_row_len + j + src_col_off.
    Output buffer: rows of width Wp = 2*src_w+2, (2*src_h+2) rows, plus 1 safety
    element at each end (so every 3x3 tap slice stays in-bounds).
    """
    Hp, Wp = 2 * src_h + 2, 2 * src_w + 2
    P = np.zeros((src_h * src_row_len, Hp * Wp + 2), np.float32)
    for y in range(1, 2 * src_h + 1):
        for x in range(1, 2 * src_w + 1):
            q = ((y - 1) // 2) * src_row_len + ((x - 1) // 2) + src_col_off
            P[q, 1 + y * Wp + x] = 1.0
    return P


def _valid_col_mask(img_h, img_w, Wp):
    """1.0 on valid image columns, 0.0 on the two pad columns of each flat row."""
    m = np.zeros((img_h * Wp,), np.float32)
    for i in range(img_h):
        m[i * Wp + 1: i * Wp + 1 + img_w] = 1.0
    return m


# ----------------------------------------------------------------------------
# Fused decoder kernel
# ----------------------------------------------------------------------------
def _make_decoder_kernel(h, w):
    Wp1, Wp2 = 2 * w + 2, 4 * w + 2          # padded row widths, stage 1 / stage 2
    Np1, Np2 = 2 * h * Wp1, 4 * h * Wp2      # flat "computed" lengths per stage

    def kernel(x_ref, w0_ref, w1_ref, w2_ref, w3_ref, p1_ref, p2_ref,
               masks_ref, aff_ref, out_ref,
               b1_ref, b1b_ref, b2_ref, b2b_ref, col_ref):

        def conv3x3(src_ref, w_ref, scale, shift, Wp, Np):
            """3x3 conv on a flat padded buffer via im2col + one MXU matmul,
            then folded-BN scale/shift + ReLU (f32)."""
            cin = src_ref.shape[0]
            for dy in range(3):
                for dx in range(3):
                    t = dy * 3 + dx
                    off = dy * Wp + dx
                    col_ref[t * cin:(t + 1) * cin, :Np] = src_ref[:, off:off + Np]
            acc = jnp.dot(w_ref[...], col_ref[:9 * cin, :Np],
                          preferred_element_type=jnp.float32)
            return jnp.maximum(acc * scale + shift, 0.0)

        # Packed per-channel affine params (scale/shift per conv, 1x1 weight/bias).
        s0, t0 = aff_ref[:, 0:1], aff_ref[:, 1:2]          # (32,1)
        s1, t1 = aff_ref[:, 2:3], aff_ref[:, 3:4]          # (32,1)
        s2, t2 = aff_ref[0:16, 4:5], aff_ref[0:16, 5:6]    # (16,1)
        s3, t3 = aff_ref[0:16, 6:7], aff_ref[0:16, 7:8]    # (16,1)
        wo, bo = aff_ref[0:16, 8:9], aff_ref[0:1, 9:10]    # 1x1 conv weight / bias
        m1 = masks_ref[0:1, 0:Np1]                         # (1, Np1)
        m2 = masks_ref[1:2, :]                             # (1, Np2)

        # ---- Up1: 2x nearest upsample + zero pad as one matmul ----------------
        x = x_ref[0].astype(jnp.bfloat16)                  # (64, h*w)
        b1_ref[...] = jnp.dot(x, p1_ref[...],
                              preferred_element_type=jnp.float32
                              ).astype(jnp.bfloat16)       # (64, (2h+2)(2w+2)+2)

        # conv0: 64 -> 32, then re-pad (mask pad columns, zero border rows)
        a1 = conv3x3(b1_ref, w0_ref, s0, t0, Wp1, Np1)     # (32, Np1) f32
        b1b_ref[...] = jnp.zeros(b1b_ref.shape, jnp.bfloat16)
        b1b_ref[:, Wp1 + 1:Wp1 + 1 + Np1] = (a1 * m1).astype(jnp.bfloat16)

        # conv1: 32 -> 32
        a2 = conv3x3(b1b_ref, w1_ref, s1, t1, Wp1, Np1)    # (32, Np1) f32

        # ---- Up2: 2x nearest upsample + zero pad as one matmul ----------------
        b2_ref[...] = jnp.dot(a2.astype(jnp.bfloat16), p2_ref[...],
                              preferred_element_type=jnp.float32
                              ).astype(jnp.bfloat16)       # (32, (4h+2)(4w+2)+2)

        # conv2: 32 -> 16, then re-pad
        a3 = conv3x3(b2_ref, w2_ref, s2, t2, Wp2, Np2)     # (16, Np2) f32
        b2b_ref[...] = jnp.zeros(b2b_ref.shape, jnp.bfloat16)
        b2b_ref[:, Wp2 + 1:Wp2 + 1 + Np2] = (a3 * m2).astype(jnp.bfloat16)

        # conv3: 16 -> 16
        a4 = conv3x3(b2b_ref, w3_ref, s3, t3, Wp2, Np2)    # (16, Np2) f32

        # ---- OutConv 1x1 + sigmoid: VPU weighted sum, lane-dense output row ---
        logits = jnp.sum(a4 * wo, axis=0, keepdims=True) + bo   # (1, Np2)
        out_ref[0] = jax.nn.sigmoid(logits)

    return kernel


def decode_net2_forward(x_nchw, kp):
    """x_nchw: (N, 64, h, w) -> (N, 1, 4h, 4w). Single fused pallas_call."""
    N, C, h, w = x_nchw.shape
    Wp1, Wp2 = 2 * w + 2, 4 * w + 2
    L1, L2 = (2 * h + 2) * Wp1, (4 * h + 2) * Wp2
    Np2 = 4 * h * Wp2

    x_flat = x_nchw.reshape(N, C, h * w).astype(jnp.float32)

    def _resident(arr):  # full-array block, constant index -> fetched once
        nd = arr.ndim
        return pl.BlockSpec(arr.shape, lambda n, _nd=nd: (0,) * _nd)

    grid_spec = pltpu.PrefetchScalarGridSpec(
        num_scalar_prefetch=0,
        grid=(N,),
        in_specs=[
            pl.BlockSpec((1, C, h * w), lambda n: (n, 0, 0)),
            _resident(kp["w0"]), _resident(kp["w1"]),
            _resident(kp["w2"]), _resident(kp["w3"]),
            _resident(kp["p1"]), _resident(kp["p2"]),
            _resident(kp["masks"]), _resident(kp["aff"]),
        ],
        out_specs=pl.BlockSpec((1, 1, Np2), lambda n: (n, 0, 0)),
        scratch_shapes=[
            pltpu.VMEM((C, L1 + 2), jnp.bfloat16),    # Up1 padded buffer
            pltpu.VMEM((32, L1 + 2), jnp.bfloat16),   # conv0 -> conv1 padded buffer
            pltpu.VMEM((32, L2 + 2), jnp.bfloat16),   # Up2 padded buffer
            pltpu.VMEM((16, L2 + 2), jnp.bfloat16),   # conv2 -> conv3 padded buffer
            pltpu.VMEM((9 * C, Np2), jnp.bfloat16),   # shared im2col scratch
        ],
    )

    out = pl.pallas_call(
        _make_decoder_kernel(h, w),
        out_shape=jax.ShapeDtypeStruct((N, 1, Np2), jnp.float32),
        grid_spec=grid_spec,
        compiler_params=pltpu.CompilerParams(
            dimension_semantics=("parallel",),        # v7x: 2 TCs split the batch
            vmem_limit_bytes=32 * 1024 * 1024,        # loud failure if scaled way up
        ),
    )(x_flat, kp["w0"], kp["w1"], kp["w2"], kp["w3"],
      kp["p1"], kp["p2"], kp["masks"], kp["aff"])

    # Strip the flat-layout pad columns: (N, 1, 4h*Wp2) -> (N, 1, 4h, 4w).
    out = out.reshape(N, 4 * h, Wp2)[:, :, 1:1 + 4 * w]
    return out[:, None, :, :]


# ----------------------------------------------------------------------------
# Deterministic parameters (PyTorch default-init style) + kernel-side packing
# ----------------------------------------------------------------------------
def _conv_params(key, cin, cout, k):
    kw, kb = jax.random.split(key)
    bound = 1.0 / math.sqrt(cin * k * k)
    w = jax.random.uniform(kw, (cout, cin, k, k), jnp.float32, -bound, bound)  # OIHW
    b = jax.random.uniform(kb, (cout,), jnp.float32, -bound, bound)
    return w, b


def _bn_params(key, c):
    k1, k2, k3, k4 = jax.random.split(key, 4)
    gamma = jax.random.uniform(k1, (c,), jnp.float32, 0.5, 1.5)
    beta = jax.random.uniform(k2, (c,), jnp.float32, -0.1, 0.1)
    rmean = jax.random.uniform(k3, (c,), jnp.float32, -0.1, 0.1)
    rvar = jax.random.uniform(k4, (c,), jnp.float32, 0.5, 1.5)
    return gamma, beta, rmean, rvar


def _fold_bn(conv_bias, gamma, beta, rmean, rvar, eps=1e-5):
    scale = gamma / jnp.sqrt(rvar + eps)
    shift = (conv_bias - rmean) * scale + beta
    return scale, shift


def make_decode_net2_params(seed=0):
    key = jax.random.PRNGKey(seed)
    keys = jax.random.split(key, 10)
    raw = {}
    for i, (cin, cout) in enumerate([(64, 32), (32, 32), (32, 16), (16, 16)]):
        w, b = _conv_params(keys[2 * i], cin, cout, 3)
        bn = _bn_params(keys[2 * i + 1], cout)
        raw[f"conv{i}"] = (w, b, bn)
    raw["out"] = _conv_params(keys[8], 16, 1, 1)   # 1x1 conv
    return raw


def prepare_kernel_params(raw, h, w):
    Wp1, Wp2 = 2 * w + 2, 4 * w + 2
    Np1, Np2 = 2 * h * Wp1, 4 * h * Wp2

    kp = {}
    scales, shifts = [], []
    for i in range(4):
        w_oihw, b, (gamma, beta, mean, var) = raw[f"conv{i}"]
        cout = w_oihw.shape[0]
        s, t = _fold_bn(b, gamma, beta, mean, var)
        # (Cout, Cin, 3, 3) -> (Cout, 9*Cin) with K index = (dy*3+dx)*Cin + ci
        kp[f"w{i}"] = (jnp.transpose(w_oihw, (0, 2, 3, 1))
                       .reshape(cout, -1).astype(jnp.bfloat16))
        scales.append(np.asarray(s))
        shifts.append(np.asarray(t))

    w_out, b_out = raw["out"]
    # One resident affine table: [s0 t0 s1 t1 s2 t2 s3 t3 w_out b_out]
    aff = np.zeros((32, 10), np.float32)
    for i in range(4):
        c = scales[i].shape[0]
        aff[:c, 2 * i] = scales[i]
        aff[:c, 2 * i + 1] = shifts[i]
    aff[:16, 8] = np.asarray(w_out).reshape(-1)
    aff[0, 9] = float(np.asarray(b_out).reshape(-1)[0])
    kp["aff"] = jnp.asarray(aff)

    kp["p1"] = jnp.asarray(_upsample_pad_matrix(h, w, w, 0), jnp.bfloat16)
    kp["p2"] = jnp.asarray(_upsample_pad_matrix(2 * h, 2 * w, Wp1, 1), jnp.bfloat16)

    masks = np.zeros((2, Np2), np.float32)
    masks[0, :Np1] = _valid_col_mask(2 * h, 2 * w, Wp1)
    masks[1, :] = _valid_col_mask(4 * h, 4 * w, Wp2)
    kp["masks"] = jnp.asarray(masks)
    return kp


# ----------------------------------------------------------------------------
# Pure-JAX (XLA) reference for a numerical sanity check
# ----------------------------------------------------------------------------
def _conv_bn_relu_ref(x, w, b, gamma, beta, mean, var, eps=1e-5):
    y = jax.lax.conv_general_dilated(
        x, w, window_strides=(1, 1), padding=((1, 1), (1, 1)),
        dimension_numbers=("NCHW", "OIHW", "NCHW"),
        precision=jax.lax.Precision.HIGHEST)
    y = y + b[None, :, None, None]
    y = ((y - mean[None, :, None, None])
         * (gamma / jnp.sqrt(var + eps))[None, :, None, None]
         + beta[None, :, None, None])
    return jnp.maximum(y, 0.0)


def decode_net2_reference(x, raw):
    def up(t):
        return jnp.repeat(jnp.repeat(t, 2, axis=2), 2, axis=3)

    x = up(x)
    x = _conv_bn_relu_ref(x, raw["conv0"][0], raw["conv0"][1], *raw["conv0"][2])
    x = _conv_bn_relu_ref(x, raw["conv1"][0], raw["conv1"][1], *raw["conv1"][2])
    x = up(x)
    x = _conv_bn_relu_ref(x, raw["conv2"][0], raw["conv2"][1], *raw["conv2"][2])
    x = _conv_bn_relu_ref(x, raw["conv3"][0], raw["conv3"][1], *raw["conv3"][2])
    w_out, b_out = raw["out"]
    y = jax.lax.conv_general_dilated(
        x, w_out, (1, 1), ((0, 0), (0, 0)),
        dimension_numbers=("NCHW", "OIHW", "NCHW"),
        precision=jax.lax.Precision.HIGHEST) + b_out[None, :, None, None]
    return jax.nn.sigmoid(y)


if __name__ == "__main__":
    # Decode_Net2 expects 64 input channels; small spatial 8x8 -> output (2,1,32,32).
    key = jax.random.PRNGKey(0)
    x = jax.random.normal(key, (2, 64, 8, 8), dtype=jnp.float32)

    raw = make_decode_net2_params(seed=0)
    kp = prepare_kernel_params(raw, h=8, w=8)

    fwd = jax.jit(decode_net2_forward)
    y = jax.block_until_ready(fwd(x, kp))

    assert y.shape == (2, 1, 32, 32), y.shape
    assert bool(jnp.all(jnp.isfinite(y)))
    assert bool(jnp.all((y >= 0.0) & (y <= 1.0)))   # sigmoid output range

    # Numerical check vs full-precision XLA reference (bf16 MXU operands -> loose tol).
    y_ref = decode_net2_reference(x, raw)
    err = float(jnp.max(jnp.abs(y - y_ref)))
    assert err < 3e-2, f"max abs err vs reference: {err}"

    print("KERNEL_OK")
</pallas_src>

<mosaic_0001>
module attributes {stable_mosaic.version = 11 : i64} {
  func.func @kernel(%arg0: i32, %arg1: memref<1x64x64xf32, #tpu.memory_space<vmem>>, %arg2: memref<32x576xbf16, #tpu.memory_space<vmem>>, %arg3: memref<32x288xbf16, #tpu.memory_space<vmem>>, %arg4: memref<16x288xbf16, #tpu.memory_space<vmem>>, %arg5: memref<16x144xbf16, #tpu.memory_space<vmem>>, %arg6: memref<64x326xbf16, #tpu.memory_space<vmem>>, %arg7: memref<288x1158xbf16, #tpu.memory_space<vmem>>, %arg8: memref<2x1088xf32, #tpu.memory_space<vmem>>, %arg9: memref<32x10xf32, #tpu.memory_space<vmem>>, %arg10: memref<1x1x1088xf32, #tpu.memory_space<vmem>>, %arg11: memref<64x326xbf16, #tpu.memory_space<vmem>>, %arg12: memref<32x326xbf16, #tpu.memory_space<vmem>>, %arg13: memref<32x1158xbf16, #tpu.memory_space<vmem>>, %arg14: memref<16x1158xbf16, #tpu.memory_space<vmem>>, %arg15: memref<576x1088xbf16, #tpu.memory_space<vmem>>) attributes {dimension_semantics = [#tpu.dimension_semantics<parallel>], iteration_bounds = array<i64: 2>, scalar_prefetch = 0 : i64, scratch_operands = 5 : i64, tpu.core_type = #tpu.core_type<tc>, window_params = [{transform_indices = @transform_0, window_bounds = array<i64: 1, 64, 64>}, {pipeline_mode = #tpu.pipeline_mode<synchronous>, transform_indices = @transform_1, window_bounds = array<i64: 32, 576>}, {pipeline_mode = #tpu.pipeline_mode<synchronous>, transform_indices = @transform_2, window_bounds = array<i64: 32, 288>}, {pipeline_mode = #tpu.pipeline_mode<synchronous>, transform_indices = @transform_3, window_bounds = array<i64: 16, 288>}, {pipeline_mode = #tpu.pipeline_mode<synchronous>, transform_indices = @transform_4, window_bounds = array<i64: 16, 144>}, {pipeline_mode = #tpu.pipeline_mode<synchronous>, transform_indices = @transform_5, window_bounds = array<i64: 64, 326>}, {pipeline_mode = #tpu.pipeline_mode<synchronous>, transform_indices = @transform_6, window_bounds = array<i64: 288, 1158>}, {pipeline_mode = #tpu.pipeline_mode<synchronous>, transform_indices = @transform_7, window_bounds = array<i64: 2, 1088>}, {pipeline_mode = #tpu.pipeline_mode<synchronous>, transform_indices = @transform_8, window_bounds = array<i64: 32, 10>}, {transform_indices = @transform_9, window_bounds = array<i64: 1, 1, 1088>}]} {
    %c0 = arith.constant 0 : index
    %c0_0 = arith.constant 0 : index
    %0 = vector.load %arg9[%c0, %c0_0] : memref<32x10xf32, #tpu.memory_space<vmem>>, vector<32x1xf32>
    %c0_1 = arith.constant 0 : index
    %c1 = arith.constant 1 : index
    %1 = vector.load %arg9[%c0_1, %c1] : memref<32x10xf32, #tpu.memory_space<vmem>>, vector<32x1xf32>
    %c0_2 = arith.constant 0 : index
    %c2 = arith.constant 2 : index
    %2 = vector.load %arg9[%c0_2, %c2] : memref<32x10xf32, #tpu.memory_space<vmem>>, vector<32x1xf32>
    %c0_3 = arith.constant 0 : index
    %c3 = arith.constant 3 : index
    %3 = vector.load %arg9[%c0_3, %c3] : memref<32x10xf32, #tpu.memory_space<vmem>>, vector<32x1xf32>
    %c0_4 = arith.constant 0 : index
    %c4 = arith.constant 4 : index
    %4 = vector.load %arg9[%c0_4, %c4] : memref<32x10xf32, #tpu.memory_space<vmem>>, vector<16x1xf32>
    %c0_5 = arith.constant 0 : index
    %c5 = arith.constant 5 : index
    %5 = vector.load %arg9[%c0_5, %c5] : memref<32x10xf32, #tpu.memory_space<vmem>>, vector<16x1xf32>
    %c0_6 = arith.constant 0 : index
    %c6 = arith.constant 6 : index
    %6 = vector.load %arg9[%c0_6, %c6] : memref<32x10xf32, #tpu.memory_space<vmem>>, vector<16x1xf32>
    %c0_7 = arith.constant 0 : index
    %c7 = arith.constant 7 : index
    %7 = vector.load %arg9[%c0_7, %c7] : memref<32x10xf32, #tpu.memory_space<vmem>>, vector<16x1xf32>
    %c0_8 = arith.constant 0 : index
    %c8 = arith.constant 8 : index
    %8 = vector.load %arg9[%c0_8, %c8] : memref<32x10xf32, #tpu.memory_space<vmem>>, vector<16x1xf32>
    %c0_9 = arith.constant 0 : index
    %c9 = arith.constant 9 : index
    %9 = vector.load %arg9[%c0_9, %c9] : memref<32x10xf32, #tpu.memory_space<vmem>>, vector<1x1xf32>
    %c0_10 = arith.constant 0 : index
    %c0_11 = arith.constant 0 : index
    %10 = vector.load %arg8[%c0_10, %c0_11] : memref<2x1088xf32, #tpu.memory_space<vmem>>, vector<1x288xf32>
    %c1_12 = arith.constant 1 : index
    %c0_13 = arith.constant 0 : index
    %11 = vector.load %arg8[%c1_12, %c0_13] : memref<2x1088xf32, #tpu.memory_space<vmem>>, vector<1x1088xf32>
    %c0_14 = arith.constant 0 : index
    %c0_15 = arith.constant 0 : index
    %c0_16 = arith.constant 0 : index
    %12 = vector.load %arg1[%c0_14, %c0_15, %c0_16] : memref<1x64x64xf32, #tpu.memory_space<vmem>>, vector<1x64x64xf32>
    %13 = vector.shape_cast %12 : vector<1x64x64xf32> to vector<64x64xf32>
    %14 = arith.truncf %13 : vector<64x64xf32> to vector<64x64xbf16>
    %c0_17 = arith.constant 0 : index
    %c0_18 = arith.constant 0 : index
    %15 = vector.load %arg6[%c0_17, %c0_18] : memref<64x326xbf16, #tpu.memory_space<vmem>>, vector<64x326xbf16>
    %cst = arith.constant dense<0.000000e+00> : vector<64x326xf32>
    %16 = tpu.matmul %14, %15, %cst {dimension_numbers = #tpu.dot_dimension_numbers<[1], [0], [0], [1], [0, 0, 1, 1], [], []>} : vector<64x64xbf16>, vector<64x326xbf16>, vector<64x326xf32> -> vector<64x326xf32>
    %17 = arith.truncf %16 : vector<64x326xf32> to vector<64x326xbf16>
    %c0_19 = arith.constant 0 : index
    %c0_20 = arith.constant 0 : index
    %18 = vector.load %arg11[%c0_19, %c0_20] : memref<64x326xbf16, #tpu.memory_space<vmem>>, vector<64x326xbf16>
    tpu.vector_store %arg11[%c0_19, %c0_20], %17 {strides = array<i32>} : memref<64x326xbf16, #tpu.memory_space<vmem>>, vector<64x326xbf16>,
    %c0_21 = arith.constant 0 : index
    %c0_22 = arith.constant 0 : index
    %19 = vector.load %arg11[%c0_21, %c0_22] : memref<64x326xbf16, #tpu.memory_space<vmem>>, vector<64x288xbf16>
    %c0_23 = arith.constant 0 : index
    %c0_24 = arith.constant 0 : index
    %20 = vector.load %arg15[%c0_23, %c0_24] : memref<576x1088xbf16, #tpu.memory_space<vmem>>, vector<64x288xbf16>
    tpu.vector_store %arg15[%c0_23, %c0_24], %19 {strides = array<i32>} : memref<576x1088xbf16, #tpu.memory_space<vmem>>, vector<64x288xbf16>,
    %c0_25 = arith.constant 0 : index
    %c1_26 = arith.constant 1 : index
    %21 = vector.load %arg11[%c0_25, %c1_26] : memref<64x326xbf16, #tpu.memory_space<vmem>>, vector<64x288xbf16>
    %c64 = arith.constant 64 : index
    %c0_27 = arith.constant 0 : index
    %22 = vector.load %arg15[%c64, %c0_27] : memref<576x1088xbf16, #tpu.memory_space<vmem>>, vector<64x288xbf16>
    tpu.vector_store %arg15[%c64, %c0_27], %21 {strides = array<i32>} : memref<576x1088xbf16, #tpu.memory_space<vmem>>, vector<64x288xbf16>,
    %c0_28 = arith.constant 0 : index
    %c2_29 = arith.constant 2 : index
    %23 = vector.load %arg11[%c0_28, %c2_29] : memref<64x326xbf16, #tpu.memory_space<vmem>>, vector<64x288xbf16>
    %c128 = arith.constant 128 : index
    %c0_30 = arith.constant 0 : index
    %24 = vector.load %arg15[%c128, %c0_30] : memref<576x1088xbf16, #tpu.memory_space<vmem>>, vector<64x288xbf16>
    tpu.vector_store %arg15[%c128, %c0_30], %23 {strides = array<i32>} : memref<576x1088xbf16, #tpu.memory_space<vmem>>, vector<64x288xbf16>,
    %c0_31 = arith.constant 0 : index
    %c18 = arith.constant 18 : index
    %25 = vector.load %arg11[%c0_31, %c18] : memref<64x326xbf16, #tpu.memory_space<vmem>>, vector<64x288xbf16>
    %c192 = arith.constant 192 : index
    %c0_32 = arith.constant 0 : index
    %26 = vector.load %arg15[%c192, %c0_32] : memref<576x1088xbf16, #tpu.memory_space<vmem>>, vector<64x288xbf16>
    tpu.vector_store %arg15[%c192, %c0_32], %25 {strides = array<i32>} : memref<576x1088xbf16, #tpu.memory_space<vmem>>, vector<64x288xbf16>,
    %c0_33 = arith.constant 0 : index
    %c19 = arith.constant 19 : index
    %27 = vector.load %arg11[%c0_33, %c19] : memref<64x326xbf16, #tpu.memory_space<vmem>>, vector<64x288xbf16>
    %c256 = arith.constant 256 : index
    %c0_34 = arith.constant 0 : index
    %28 = vector.load %arg15[%c256, %c0_34] : memref<576x1088xbf16, #tpu.memory_space<vmem>>, vector<64x288xbf16>
    tpu.vector_store %arg15[%c256, %c0_34], %27 {strides = array<i32>} : memref<576x1088xbf16, #tpu.memory_space<vmem>>, vector<64x288xbf16>,
    %c0_35 = arith.constant 0 : index
    %c20 = arith.constant 20 : index
    %29 = vector.load %arg11[%c0_35, %c20] : memref<64x326xbf16, #tpu.memory_space<vmem>>, vector<64x288xbf16>
    %c320 = arith.constant 320 : index
    %c0_36 = arith.constant 0 : index
    %30 = vector.load %arg15[%c320, %c0_36] : memref<576x1088xbf16, #tpu.memory_space<vmem>>, vector<64x288xbf16>
    tpu.vector_store %arg15[%c320, %c0_36], %29 {strides = array<i32>} : memref<576x1088xbf16, #tpu.memory_space<vmem>>, vector<64x288xbf16>,
    %c0_37 = arith.constant 0 : index
    %c36 = arith.constant 36 : index
    %31 = vector.load %arg11[%c0_37, %c36] : memref<64x326xbf16, #tpu.memory_space<vmem>>, vector<64x288xbf16>
    %c384 = arith.constant 384 : index
    %c0_38 = arith.constant 0 : index
    %32 = vector.load %arg15[%c384, %c0_38] : memref<576x1088xbf16, #tpu.memory_space<vmem>>, vector<64x288xbf16>
    tpu.vector_store %arg15[%c384, %c0_38], %31 {strides = array<i32>} : memref<576x1088xbf16, #tpu.memory_space<vmem>>, vector<64x288xbf16>,
    %c0_39 = arith.constant 0 : index
    %c37 = arith.constant 37 : index
    %33 = vector.load %arg11[%c0_39, %c37] : memref<64x326xbf16, #tpu.memory_space<vmem>>, vector<64x288xbf16>
    %c448 = arith.constant 448 : index
    %c0_40 = arith.constant 0 : index
    %34 = vector.load %arg15[%c448, %c0_40] : memref<576x1088xbf16, #tpu.memory_space<vmem>>, vector<64x288xbf16>
    tpu.vector_store %arg15[%c448, %c0_40], %33 {strides = array<i32>} : memref<576x1088xbf16, #tpu.memory_space<vmem>>, vector<64x288xbf16>,
    %c0_41 = arith.constant 0 : index
    %c38 = arith.constant 38 : index
    %35 = vector.load %arg11[%c0_41, %c38] : memref<64x326xbf16, #tpu.memory_space<vmem>>, vector<64x288xbf16>
    %c512 = arith.constant 512 : index
    %c0_42 = arith.constant 0 : index
    %36 = vector.load %arg15[%c512, %c0_42] : memref<576x1088xbf16, #tpu.memory_space<vmem>>, vector<64x288xbf16>
    tpu.vector_store %arg15[%c512, %c0_42], %35 {strides = array<i32>} : memref<576x1088xbf16, #tpu.memory_space<vmem>>, vector<64x288xbf16>,
    %c0_43 = arith.constant 0 : index
    %c0_44 = arith.constant 0 : index
    %37 = vector.load %arg2[%c0_43, %c0_44] : memref<32x576xbf16, #tpu.memory_space<vmem>>, vector<32x576xbf16>
    %c0_45 = arith.constant 0 : index
    %c0_46 = arith.constant 0 : index
    %38 = vector.load %arg15[%c0_45, %c0_46] : memref<576x1088xbf16, #tpu.memory_space<vmem>>, vector<576x288xbf16>
    %cst_47 = arith.constant dense<0.000000e+00> : vector<32x288xf32>
    %39 = tpu.matmul %37, %38, %cst_47 {dimension_numbers = #tpu.dot_dimension_numbers<[1], [0], [0], [1], [0, 0, 1, 1], [], []>} : vector<32x576xbf16>, vector<576x288xbf16>, vector<32x288xf32> -> vector<32x288xf32>
    %40 = vector.broadcast %0 : vector<32x1xf32> to vector<32x288xf32>
    %41 = arith.mulf %39, %40 : vector<32x288xf32>
    %42 = vector.broadcast %1 : vector<32x1xf32> to vector<32x288xf32>
    %43 = arith.addf %41, %42 : vector<32x288xf32>
    %cst_48 = arith.constant 0.000000e+00 : f32
    %44 = vector.broadcast %cst_48 : f32 to vector<32x288xf32>
    %45 = arith.maximumf %43, %44 : vector<32x288xf32>
    %cst_49 = arith.constant 0.000000e+00 : bf16
    %46 = vector.broadcast %cst_49 : bf16 to vector<32x326xbf16>
    %c0_50 = arith.constant 0 : index
    %c0_51 = arith.constant 0 : index
    %47 = vector.load %arg12[%c0_50, %c0_51] : memref<32x326xbf16, #tpu.memory_space<vmem>>, vector<32x326xbf16>
    tpu.vector_store %arg12[%c0_50, %c0_51], %46 {strides = array<i32>} : memref<32x326xbf16, #tpu.memory_space<vmem>>, vector<32x326xbf16>,
    %48 = vector.broadcast %10 : vector<1x288xf32> to vector<32x288xf32>
    %49 = arith.mulf %45, %48 : vector<32x288xf32>
    %50 = arith.truncf %49 : vector<32x288xf32> to vector<32x288xbf16>
    %c0_52 = arith.constant 0 : index
    %c19_53 = arith.constant 19 : index
    %51 = vector.load %arg12[%c0_52, %c19_53] : memref<32x326xbf16, #tpu.memory_space<vmem>>, vector<32x288xbf16>
    tpu.vector_store %arg12[%c0_52, %c19_53], %50 {strides = array<i32>} : memref<32x326xbf16, #tpu.memory_space<vmem>>, vector<32x288xbf16>,
    %c0_54 = arith.constant 0 : index
    %c0_55 = arith.constant 0 : index
    %52 = vector.load %arg12[%c0_54, %c0_55] : memref<32x326xbf16, #tpu.memory_space<vmem>>, vector<32x288xbf16>
    %c0_56 = arith.constant 0 : index
    %c0_57 = arith.constant 0 : index
    %53 = vector.load %arg15[%c0_56, %c0_57] : memref<576x1088xbf16, #tpu.memory_space<vmem>>, vector<32x288xbf16>
    tpu.vector_store %arg15[%c0_56, %c0_57], %52 {strides = array<i32>} : memref<576x1088xbf16, #tpu.memory_space<vmem>>, vector<32x288xbf16>,
    %c0_58 = arith.constant 0 : index
    %c1_59 = arith.constant 1 : index
    %54 = vector.load %arg12[%c0_58, %c1_59] : memref<32x326xbf16, #tpu.memory_space<vmem>>, vector<32x288xbf16>
    %c32 = arith.constant 32 : index
    %c0_60 = arith.constant 0 : index
    %55 = vector.load %arg15[%c32, %c0_60] : memref<576x1088xbf16, #tpu.memory_space<vmem>>, vector<32x288xbf16>
    tpu.vector_store %arg15[%c32, %c0_60], %54 {strides = array<i32>} : memref<576x1088xbf16, #tpu.memory_space<vmem>>, vector<32x288xbf16>,
    %c0_61 = arith.constant 0 : index
    %c2_62 = arith.constant 2 : index
    %56 = vector.load %arg12[%c0_61, %c2_62] : memref<32x326xbf16, #tpu.memory_space<vmem>>, vector<32x288xbf16>
    %c64_63 = arith.constant 64 : index
    %c0_64 = arith.constant 0 : index
    %57 = vector.load %arg15[%c64_63, %c0_64] : memref<576x1088xbf16, #tpu.memory_space<vmem>>, vector<32x288xbf16>
    tpu.vector_store %arg15[%c64_63, %c0_64], %56 {strides = array<i32>} : memref<576x1088xbf16, #tpu.memory_space<vmem>>, vector<32x288xbf16>,
    %c0_65 = arith.constant 0 : index
    %c18_66 = arith.constant 18 : index
    %58 = vector.load %arg12[%c0_65, %c18_66] : memref<32x326xbf16, #tpu.memory_space<vmem>>, vector<32x288xbf16>
    %c96 = arith.constant 96 : index
    %c0_67 = arith.constant 0 : index
    %59 = vector.load %arg15[%c96, %c0_67] : memref<576x1088xbf16, #tpu.memory_space<vmem>>, vector<32x288xbf16>
    tpu.vector_store %arg15[%c96, %c0_67], %58 {strides = array<i32>} : memref<576x1088xbf16, #tpu.memory_space<vmem>>, vector<32x288xbf16>,
    %c0_68 = arith.constant 0 : index
    %c19_69 = arith.constant 19 : index
    %60 = vector.load %arg12[%c0_68, %c19_69] : memref<32x326xbf16, #tpu.memory_space<vmem>>, vector<32x288xbf16>
    %c128_70 = arith.constant 128 : index
    %c0_71 = arith.constant 0 : index
    %61 = vector.load %arg15[%c128_70, %c0_71] : memref<576x1088xbf16, #tpu.memory_space<vmem>>, vector<32x288xbf16>
    tpu.vector_store %arg15[%c128_70, %c0_71], %60 {strides = array<i32>} : memref<576x1088xbf16, #tpu.memory_space<vmem>>, vector<32x288xbf16>,
    %c0_72 = arith.constant 0 : index
    %c20_73 = arith.constant 20 : index
    %62 = vector.load %arg12[%c0_72, %c20_73] : memref<32x326xbf16, #tpu.memory_space<vmem>>, vector<32x288xbf16>
    %c160 = arith.constant 160 : index
    %c0_74 = arith.constant 0 : index
    %63 = vector.load %arg15[%c160, %c0_74] : memref<576x1088xbf16, #tpu.memory_space<vmem>>, vector<32x288xbf16>
    tpu.vector_store %arg15[%c160, %c0_74], %62 {strides = array<i32>} : memref<576x1088xbf16, #tpu.memory_space<vmem>>, vector<32x288xbf16>,
    %c0_75 = arith.constant 0 : index
    %c36_76 = arith.constant 36 : index
    %64 = vector.load %arg12[%c0_75, %c36_76] : memref<32x326xbf16, #tpu.memory_space<vmem>>, vector<32x288xbf16>
    %c192_77 = arith.constant 192 : index
    %c0_78 = arith.constant 0 : index
    %65 = vector.load %arg15[%c192_77, %c0_78] : memref<576x1088xbf16, #tpu.memory_space<vmem>>, vector<32x288xbf16>
    tpu.vector_store %arg15[%c192_77, %c0_78], %64 {strides = array<i32>} : memref<576x1088xbf16, #tpu.memory_space<vmem>>, vector<32x288xbf16>,
    %c0_79 = arith.constant 0 : index
    %c37_80 = arith.constant 37 : index
    %66 = vector.load %arg12[%c0_79, %c37_80] : memref<32x326xbf16, #tpu.memory_space<vmem>>, vector<32x288xbf16>
    %c224 = arith.constant 224 : index
    %c0_81 = arith.constant 0 : index
    %67 = vector.load %arg15[%c224, %c0_81] : memref<576x1088xbf16, #tpu.memory_space<vmem>>, vector<32x288xbf16>
    tpu.vector_store %arg15[%c224, %c0_81], %66 {strides = array<i32>} : memref<576x1088xbf16, #tpu.memory_space<vmem>>, vector<32x288xbf16>,
    %c0_82 = arith.constant 0 : index
    %c38_83 = arith.constant 38 : index
    %68 = vector.load %arg12[%c0_82, %c38_83] : memref<32x326xbf16, #tpu.memory_space<vmem>>, vector<32x288xbf16>
    %c256_84 = arith.constant 256 : index
    %c0_85 = arith.constant 0 : index
    %69 = vector.load %arg15[%c256_84, %c0_85] : memref<576x1088xbf16, #tpu.memory_space<vmem>>, vector<32x288xbf16>
    tpu.vector_store %arg15[%c256_84, %c0_85], %68 {strides = array<i32>} : memref<576x1088xbf16, #tpu.memory_space<vmem>>, vector<32x288xbf16>,
    %c0_86 = arith.constant 0 : index
    %c0_87 = arith.constant 0 : index
    %70 = vector.load %arg3[%c0_86, %c0_87] : memref<32x288xbf16, #tpu.memory_space<vmem>>, vector<32x288xbf16>
    %c0_88 = arith.constant 0 : index
    %c0_89 = arith.constant 0 : index
    %71 = vector.load %arg15[%c0_88, %c0_89] : memref<576x1088xbf16, #tpu.memory_space<vmem>>, vector<288x288xbf16>
    %cst_90 = arith.constant dense<0.000000e+00> : vector<32x288xf32>
    %72 = tpu.matmul %70, %71, %cst_90 {dimension_numbers = #tpu.dot_dimension_numbers<[1], [0], [0], [1], [0, 0, 1, 1], [], []>} : vector<32x288xbf16>, vector<288x288xbf16>, vector<32x288xf32> -> vector<32x288xf32>
    %73 = vector.broadcast %2 : vector<32x1xf32> to vector<32x288xf32>
    %74 = arith.mulf %72, %73 : vector<32x288xf32>
    %75 = vector.broadcast %3 : vector<32x1xf32> to vector<32x288xf32>
    %76 = arith.addf %74, %75 : vector<32x288xf32>
    %cst_91 = arith.constant 0.000000e+00 : f32
    %77 = vector.broadcast %cst_91 : f32 to vector<32x288xf32>
    %78 = arith.maximumf %76, %77 : vector<32x288xf32>
    %79 = arith.truncf %78 : vector<32x288xf32> to vector<32x288xbf16>
    %c0_92 = arith.constant 0 : index
    %c0_93 = arith.constant 0 : index
    %80 = vector.load %arg7[%c0_92, %c0_93] : memref<288x1158xbf16, #tpu.memory_space<vmem>>, vector<288x1158xbf16>
    %cst_94 = arith.constant dense<0.000000e+00> : vector<32x1158xf32>
    %81 = tpu.matmul %79, %80, %cst_94 {dimension_numbers = #tpu.dot_dimension_numbers<[1], [0], [0], [1], [0, 0, 1, 1], [], []>} : vector<32x288xbf16>, vector<288x1158xbf16>, vector<32x1158xf32> -> vector<32x1158xf32>
    %82 = arith.truncf %81 : vector<32x1158xf32> to vector<32x1158xbf16>
    %c0_95 = arith.constant 0 : index
    %c0_96 = arith.constant 0 : index
    %83 = vector.load %arg13[%c0_95, %c0_96] : memref<32x1158xbf16, #tpu.memory_space<vmem>>, vector<32x1158xbf16>
    tpu.vector_store %arg13[%c0_95, %c0_96], %82 {strides = array<i32>} : memref<32x1158xbf16, #tpu.memory_space<vmem>>, vector<32x1158xbf16>,
    %c0_97 = arith.constant 0 : index
    %c0_98 = arith.constant 0 : index
    %84 = vector.load %arg13[%c0_97, %c0_98] : memref<32x1158xbf16, #tpu.memory_space<vmem>>, vector<32x1088xbf16>
    %c0_99 = arith.constant 0 : index
    %c0_100 = arith.constant 0 : index
    %85 = vector.load %arg15[%c0_99, %c0_100] : memref<576x1088xbf16, #tpu.memory_space<vmem>>, vector<32x1088xbf16>
    tpu.vector_store %arg15[%c0_99, %c0_100], %84 {strides = array<i32>} : memref<576x1088xbf16, #tpu.memory_space<vmem>>, vector<32x1088xbf16>,
    %c0_101 = arith.constant 0 : index
    %c1_102 = arith.constant 1 : index
    %86 = vector.load %arg13[%c0_101, %c1_102] : memref<32x1158xbf16, #tpu.memory_space<vmem>>, vector<32x1088xbf16>
    %c32_103 = arith.constant 32 : index
    %c0_104 = arith.constant 0 : index
    %87 = vector.load %arg15[%c32_103, %c0_104] : memref<576x1088xbf16, #tpu.memory_space<vmem>>, vector<32x1088xbf16>
    tpu.vector_store %arg15[%c32_103, %c0_104], %86 {strides = array<i32>} : memref<576x1088xbf16, #tpu.memory_space<vmem>>, vector<32x1088xbf16>,
    %c0_105 = arith.constant 0 : index
    %c2_106 = arith.constant 2 : index
    %88 = vector.load %arg13[%c0_105, %c2_106] : memref<32x1158xbf16, #tpu.memory_space<vmem>>, vector<32x1088xbf16>
    %c64_107 = arith.constant 64 : index
    %c0_108 = arith.constant 0 : index
    %89 = vector.load %arg15[%c64_107, %c0_108] : memref<576x1088xbf16, #tpu.memory_space<vmem>>, vector<32x1088xbf16>
    tpu.vector_store %arg15[%c64_107, %c0_108], %88 {strides = array<i32>} : memref<576x1088xbf16, #tpu.memory_space<vmem>>, vector<32x1088xbf16>,
    %c0_109 = arith.constant 0 : index
    %c34 = arith.constant 34 : index
    %90 = vector.load %arg13[%c0_109, %c34] : memref<32x1158xbf16, #tpu.memory_space<vmem>>, vector<32x1088xbf16>
    %c96_110 = arith.constant 96 : index
    %c0_111 = arith.constant 0 : index
    %91 = vector.load %arg15[%c96_110, %c0_111] : memref<576x1088xbf16, #tpu.memory_space<vmem>>, vector<32x1088xbf16>
    tpu.vector_store %arg15[%c96_110, %c0_111], %90 {strides = array<i32>} : memref<576x1088xbf16, #tpu.memory_space<vmem>>, vector<32x1088xbf16>,
    %c0_112 = arith.constant 0 : index
    %c35 = arith.constant 35 : index
    %92 = vector.load %arg13[%c0_112, %c35] : memref<32x1158xbf16, #tpu.memory_space<vmem>>, vector<32x1088xbf16>
    %c128_113 = arith.constant 128 : index
    %c0_114 = arith.constant 0 : index
    %93 = vector.load %arg15[%c128_113, %c0_114] : memref<576x1088xbf16, #tpu.memory_space<vmem>>, vector<32x1088xbf16>
    tpu.vector_store %arg15[%c128_113, %c0_114], %92 {strides = array<i32>} : memref<576x1088xbf16, #tpu.memory_space<vmem>>, vector<32x1088xbf16>,
    %c0_115 = arith.constant 0 : index
    %c36_116 = arith.constant 36 : index
    %94 = vector.load %arg13[%c0_115, %c36_116] : memref<32x1158xbf16, #tpu.memory_space<vmem>>, vector<32x1088xbf16>
    %c160_117 = arith.constant 160 : index
    %c0_118 = arith.constant 0 : index
    %95 = vector.load %arg15[%c160_117, %c0_118] : memref<576x1088xbf16, #tpu.memory_space<vmem>>, vector<32x1088xbf16>
    tpu.vector_store %arg15[%c160_117, %c0_118], %94 {strides = array<i32>} : memref<576x1088xbf16, #tpu.memory_space<vmem>>, vector<32x1088xbf16>,
    %c0_119 = arith.constant 0 : index
    %c68 = arith.constant 68 : index
    %96 = vector.load %arg13[%c0_119, %c68] : memref<32x1158xbf16, #tpu.memory_space<vmem>>, vector<32x1088xbf16>
    %c192_120 = arith.constant 192 : index
    %c0_121 = arith.constant 0 : index
    %97 = vector.load %arg15[%c192_120, %c0_121] : memref<576x1088xbf16, #tpu.memory_space<vmem>>, vector<32x1088xbf16>
    tpu.vector_store %arg15[%c192_120, %c0_121], %96 {strides = array<i32>} : memref<576x1088xbf16, #tpu.memory_space<vmem>>, vector<32x1088xbf16>,
    %c0_122 = arith.constant 0 : index
    %c69 = arith.constant 69 : index
    %98 = vector.load %arg13[%c0_122, %c69] : memref<32x1158xbf16, #tpu.memory_space<vmem>>, vector<32x1088xbf16>
    %c224_123 = arith.constant 224 : index
    %c0_124 = arith.constant 0 : index
    %99 = vector.load %arg15[%c224_123, %c0_124] : memref<576x1088xbf16, #tpu.memory_space<vmem>>, vector<32x1088xbf16>
    tpu.vector_store %arg15[%c224_123, %c0_124], %98 {strides = array<i32>} : memref<576x1088xbf16, #tpu.memory_space<vmem>>, vector<32x1088xbf16>,
    %c0_125 = arith.constant 0 : index
    %c70 = arith.constant 70 : index
    %100 = vector.load %arg13[%c0_125, %c70] : memref<32x1158xbf16, #tpu.memory_space<vmem>>, vector<32x1088xbf16>
    %c256_126 = arith.constant 256 : index
    %c0_127 = arith.constant 0 : index
    %101 = vector.load %arg15[%c256_126, %c0_127] : memref<576x1088xbf16, #tpu.memory_space<vmem>>, vector<32x1088xbf16>
    tpu.vector_store %arg15[%c256_126, %c0_127], %100 {strides = array<i32>} : memref<576x1088xbf16, #tpu.memory_space<vmem>>, vector<32x1088xbf16>,
    %c0_128 = arith.constant 0 : index
    %c0_129 = arith.constant 0 : index
    %102 = vector.load %arg4[%c0_128, %c0_129] : memref<16x288xbf16, #tpu.memory_space<vmem>>, vector<16x288xbf16>
    %c0_130 = arith.constant 0 : index
    %c0_131 = arith.constant 0 : index
    %103 = vector.load %arg15[%c0_130, %c0_131] : memref<576x1088xbf16, #tpu.memory_space<vmem>>, vector<288x1088xbf16>
    %cst_132 = arith.constant dense<0.000000e+00> : vector<16x1088xf32>
    %104 = tpu.matmul %102, %103, %cst_132 {dimension_numbers = #tpu.dot_dimension_numbers<[1], [0], [0], [1], [0, 0, 1, 1], [], []>} : vector<16x288xbf16>, vector<288x1088xbf16>, vector<16x1088xf32> -> vector<16x1088xf32>
    %105 = vector.broadcast %4 : vector<16x1xf32> to vector<16x1088xf32>
    %106 = arith.mulf %104, %105 : vector<16x1088xf32>
    %107 = vector.broadcast %5 : vector<16x1xf32> to vector<16x1088xf32>
    %108 = arith.addf %106, %107 : vector<16x1088xf32>
    %cst_133 = arith.constant 0.000000e+00 : f32
    %109 = vector.broadcast %cst_133 : f32 to vector<16x1088xf32>
    %110 = arith.maximumf %108, %109 : vector<16x1088xf32>
    %cst_134 = arith.constant 0.000000e+00 : bf16
    %111 = vector.broadcast %cst_134 : bf16 to vector<16x1158xbf16>
    %c0_135 = arith.constant 0 : index
    %c0_136 = arith.constant 0 : index
    %112 = vector.load %arg14[%c0_135, %c0_136] : memref<16x1158xbf16, #tpu.memory_space<vmem>>, vector<16x1158xbf16>
    tpu.vector_store %arg14[%c0_135, %c0_136], %111 {strides = array<i32>} : memref<16x1158xbf16, #tpu.memory_space<vmem>>, vector<16x1158xbf16>,
    %113 = vector.broadcast %11 : vector<1x1088xf32> to vector<16x1088xf32>
    %114 = arith.mulf %110, %113 : vector<16x1088xf32>
    %115 = arith.truncf %114 : vector<16x1088xf32> to vector<16x1088xbf16>
    %c0_137 = arith.constant 0 : index
    %c35_138 = arith.constant 35 : index
    %116 = vector.load %arg14[%c0_137, %c35_138] : memref<16x1158xbf16, #tpu.memory_space<vmem>>, vector<16x1088xbf16>
    tpu.vector_store %arg14[%c0_137, %c35_138], %115 {strides = array<i32>} : memref<16x1158xbf16, #tpu.memory_space<vmem>>, vector<16x1088xbf16>,
    %c0_139 = arith.constant 0 : index
    %c0_140 = arith.constant 0 : index
    %117 = vector.load %arg14[%c0_139, %c0_140] : memref<16x1158xbf16, #tpu.memory_space<vmem>>, vector<16x1088xbf16>
    %c0_141 = arith.constant 0 : index
    %c0_142 = arith.constant 0 : index
    %118 = vector.load %arg15[%c0_141, %c0_142] : memref<576x1088xbf16, #tpu.memory_space<vmem>>, vector<16x1088xbf16>
    tpu.vector_store %arg15[%c0_141, %c0_142], %117 {strides = array<i32>} : memref<576x1088xbf16, #tpu.memory_space<vmem>>, vector<16x1088xbf16>,
    %c0_143 = arith.constant 0 : index
    %c1_144 = arith.constant 1 : index
    %119 = vector.load %arg14[%c0_143, %c1_144] : memref<16x1158xbf16, #tpu.memory_space<vmem>>, vector<16x1088xbf16>
    %c16 = arith.constant 16 : index
    %c0_145 = arith.constant 0 : index
    %120 = vector.load %arg15[%c16, %c0_145] : memref<576x1088xbf16, #tpu.memory_space<vmem>>, vector<16x1088xbf16>
    tpu.vector_store %arg15[%c16, %c0_145], %119 {strides = array<i32>} : memref<576x1088xbf16, #tpu.memory_space<vmem>>, vector<16x1088xbf16>,
    %c0_146 = arith.constant 0 : index
    %c2_147 = arith.constant 2 : index
    %121 = vector.load %arg14[%c0_146, %c2_147] : memref<16x1158xbf16, #tpu.memory_space<vmem>>, vector<16x1088xbf16>
    %c32_148 = arith.constant 32 : index
    %c0_149 = arith.constant 0 : index
    %122 = vector.load %arg15[%c32_148, %c0_149] : memref<576x1088xbf16, #tpu.memory_space<vmem>>, vector<16x1088xbf16>
    tpu.vector_store %arg15[%c32_148, %c0_149], %121 {strides = array<i32>} : memref<576x1088xbf16, #tpu.memory_space<vmem>>, vector<16x1088xbf16>,
    %c0_150 = arith.constant 0 : index
    %c34_151 = arith.constant 34 : index
    %123 = vector.load %arg14[%c0_150, %c34_151] : memref<16x1158xbf16, #tpu.memory_space<vmem>>, vector<16x1088xbf16>
    %c48 = arith.constant 48 : index
    %c0_152 = arith.constant 0 : index
    %124 = vector.load %arg15[%c48, %c0_152] : memref<576x1088xbf16, #tpu.memory_space<vmem>>, vector<16x1088xbf16>
    tpu.vector_store %arg15[%c48, %c0_152], %123 {strides = array<i32>} : memref<576x1088xbf16, #tpu.memory_space<vmem>>, vector<16x1088xbf16>,
    %c0_153 = arith.constant 0 : index
    %c35_154 = arith.constant 35 : index
    %125 = vector.load %arg14[%c0_153, %c35_154] : memref<16x1158xbf16, #tpu.memory_space<vmem>>, vector<16x1088xbf16>
    %c64_155 = arith.constant 64 : index
    %c0_156 = arith.constant 0 : index
    %126 = vector.load %arg15[%c64_155, %c0_156] : memref<576x1088xbf16, #tpu.memory_space<vmem>>, vector<16x1088xbf16>
    tpu.vector_store %arg15[%c64_155, %c0_156], %125 {strides = array<i32>} : memref<576x1088xbf16, #tpu.memory_space<vmem>>, vector<16x1088xbf16>,
    %c0_157 = arith.constant 0 : index
    %c36_158 = arith.constant 36 : index
    %127 = vector.load %arg14[%c0_157, %c36_158] : memref<16x1158xbf16, #tpu.memory_space<vmem>>, vector<16x1088xbf16>
    %c80 = arith.constant 80 : index
    %c0_159 = arith.constant 0 : index
    %128 = vector.load %arg15[%c80, %c0_159] : memref<576x1088xbf16, #tpu.memory_space<vmem>>, vector<16x1088xbf16>
    tpu.vector_store %arg15[%c80, %c0_159], %127 {strides = array<i32>} : memref<576x1088xbf16, #tpu.memory_space<vmem>>, vector<16x1088xbf16>,
    %c0_160 = arith.constant 0 : index
    %c68_161 = arith.constant 68 : index
    %129 = vector.load %arg14[%c0_160, %c68_161] : memref<16x1158xbf16, #tpu.memory_space<vmem>>, vector<16x1088xbf16>
    %c96_162 = arith.constant 96 : index
    %c0_163 = arith.constant 0 : index
    %130 = vector.load %arg15[%c96_162, %c0_163] : memref<576x1088xbf16, #tpu.memory_space<vmem>>, vector<16x1088xbf16>
    tpu.vector_store %arg15[%c96_162, %c0_163], %129 {strides = array<i32>} : memref<576x1088xbf16, #tpu.memory_space<vmem>>, vector<16x1088xbf16>,
    %c0_164 = arith.constant 0 : index
    %c69_165 = arith.constant 69 : index
    %131 = vector.load %arg14[%c0_164, %c69_165] : memref<16x1158xbf16, #tpu.memory_space<vmem>>, vector<16x1088xbf16>
    %c112 = arith.constant 112 : index
    %c0_166 = arith.constant 0 : index
    %132 = vector.load %arg15[%c112, %c0_166] : memref<576x1088xbf16, #tpu.memory_space<vmem>>, vector<16x1088xbf16>
    tpu.vector_store %arg15[%c112, %c0_166], %131 {strides = array<i32>} : memref<576x1088xbf16, #tpu.memory_space<vmem>>, vector<16x1088xbf16>,
    %c0_167 = arith.constant 0 : index
    %c70_168 = arith.constant 70 : index
    %133 = vector.load %arg14[%c0_167, %c70_168] : memref<16x1158xbf16, #tpu.memory_space<vmem>>, vector<16x1088xbf16>
    %c128_169 = arith.constant 128 : index
    %c0_170 = arith.constant 0 : index
    %134 = vector.load %arg15[%c128_169, %c0_170] : memref<576x1088xbf16, #tpu.memory_space<vmem>>, vector<16x1088xbf16>
    tpu.vector_store %arg15[%c128_169, %c0_170], %133 {strides = array<i32>} : memref<576x1088xbf16, #tpu.memory_space<vmem>>, vector<16x1088xbf16>,
    %c0_171 = arith.constant 0 : index
    %c0_172 = arith.constant 0 : index
    %135 = vector.load %arg5[%c0_171, %c0_172] : memref<16x144xbf16, #tpu.memory_space<vmem>>, vector<16x144xbf16>
    %c0_173 = arith.constant 0 : index
    %c0_174 = arith.constant 0 : index
    %136 = vector.load %arg15[%c0_173, %c0_174] : memref<576x1088xbf16, #tpu.memory_space<vmem>>, vector<144x1088xbf16>
    %cst_175 = arith.constant dense<0.000000e+00> : vector<16x1088xf32>
    %137 = tpu.matmul %135, %136, %cst_175 {dimension_numbers = #tpu.dot_dimension_numbers<[1], [0], [0], [1], [0, 0, 1, 1], [], []>} : vector<16x144xbf16>, vector<144x1088xbf16>, vector<16x1088xf32> -> vector<16x1088xf32>
    %138 = vector.broadcast %6 : vector<16x1xf32> to vector<16x1088xf32>
    %139 = arith.mulf %137, %138 : vector<16x1088xf32>
    %140 = vector.broadcast %7 : vector<16x1xf32> to vector<16x1088xf32>
    %141 = arith.addf %139, %140 : vector<16x1088xf32>
    %cst_176 = arith.constant 0.000000e+00 : f32
    %142 = vector.broadcast %cst_176 : f32 to vector<16x1088xf32>
    %143 = arith.maximumf %141, %142 : vector<16x1088xf32>
    %144 = vector.broadcast %8 : vector<16x1xf32> to vector<16x1088xf32>
    %145 = arith.mulf %143, %144 : vector<16x1088xf32>
    %cst_177 = arith.constant dense<0.000000e+00> : vector<1088xf32>
    %146 = vector.multi_reduction <add>, %145, %cst_177 [0] : vector<16x1088xf32> to vector<1088xf32>
    %147 = vector.shape_cast %146 : vector<1088xf32> to vector<1x1088xf32>
    %148 = vector.broadcast %9 : vector<1x1xf32> to vector<1x1088xf32>
    %149 = arith.addf %147, %148 : vector<1x1088xf32>
    %150 = arith.negf %149 : vector<1x1088xf32>
    %151 = math.exp %150 : vector<1x1088xf32>
    %cst_178 = arith.constant 1.000000e+00 : f32
    %152 = vector.broadcast %cst_178 : f32 to vector<1x1088xf32>
    %153 = arith.addf %152, %151 : vector<1x1088xf32>
    %154 = arith.divf %152, %153 : vector<1x1088xf32>
    %c0_179 = arith.constant 0 : index
    %c0_180 = arith.constant 0 : index
    %c0_181 = arith.constant 0 : index
    %155 = vector.load %arg10[%c0_179, %c0_180, %c0_181] : memref<1x1x1088xf32, #tpu.memory_space<vmem>>, vector<1x1x1088xf32>
    %156 = vector.shape_cast %155 : vector<1x1x1088xf32> to vector<1x1088xf32>
    %157 = vector.shape_cast %154 : vector<1x1088xf32> to vector<1x1x1088xf32>
    tpu.vector_store %arg10[%c0_179, %c0_180, %c0_181], %157 {strides = array<i32>} : memref<1x1x1088xf32, #tpu.memory_space<vmem>>, vector<1x1x1088xf32>,
    return
  }
  func.func @transform_0(%arg0: i32) -> (i32, i32, i32) {
    %c0_i32 = arith.constant 0 : i32
    %c0_i32_0 = arith.constant 0 : i32
    %c0_i32_1 = arith.constant 0 : i32
    return %arg0, %c0_i32, %c0_i32_0 : i32, i32, i32
  }
  func.func @transform_1(%arg0: i32) -> (i32, i32) {
    %c0_i32 = arith.constant 0 : i32
    %c0_i32_0 = arith.constant 0 : i32
    %c0_i32_1 = arith.constant 0 : i32
    return %c0_i32, %c0_i32_0 : i32, i32
  }
  func.func @transform_2(%arg0: i32) -> (i32, i32) {
    %c0_i32 = arith.constant 0 : i32
    %c0_i32_0 = arith.constant 0 : i32
    %c0_i32_1 = arith.constant 0 : i32
    return %c0_i32, %c0_i32_0 : i32, i32
  }
  func.func @transform_3(%arg0: i32) -> (i32, i32) {
    %c0_i32 = arith.constant 0 : i32
    %c0_i32_0 = arith.constant 0 : i32
    %c0_i32_1 = arith.constant 0 : i32
    return %c0_i32, %c0_i32_0 : i32, i32
  }
  func.func @transform_4(%arg0: i32) -> (i32, i32) {
    %c0_i32 = arith.constant 0 : i32
    %c0_i32_0 = arith.constant 0 : i32
    %c0_i32_1 = arith.constant 0 : i32
    return %c0_i32, %c0_i32_0 : i32, i32
  }
  func.func @transform_5(%arg0: i32) -> (i32, i32) {
    %c0_i32 = arith.constant 0 : i32
    %c0_i32_0 = arith.constant 0 : i32
    %c0_i32_1 = arith.constant 0 : i32
    return %c0_i32, %c0_i32_0 : i32, i32
  }
  func.func @transform_6(%arg0: i32) -> (i32, i32) {
    %c0_i32 = arith.constant 0 : i32
    %c0_i32_0 = arith.constant 0 : i32
    %c0_i32_1 = arith.constant 0 : i32
    return %c0_i32, %c0_i32_0 : i32, i32
  }
  func.func @transform_7(%arg0: i32) -> (i32, i32) {
    %c0_i32 = arith.constant 0 : i32
    %c0_i32_0 = arith.constant 0 : i32
    %c0_i32_1 = arith.constant 0 : i32
    return %c0_i32, %c0_i32_0 : i32, i32
  }
  func.func @transform_8(%arg0: i32) -> (i32, i32) {
    %c0_i32 = arith.constant 0 : i32
    %c0_i32_0 = arith.constant 0 : i32
    %c0_i32_1 = arith.constant 0 : i32
    return %c0_i32, %c0_i32_0 : i32, i32
  }
  func.func @transform_9(%arg0: i32) -> (i32, i32, i32) {
    %c0_i32 = arith.constant 0 : i32
    %c0_i32_0 = arith.constant 0 : i32
    %c0_i32_1 = arith.constant 0 : i32
    return %arg0, %c0_i32, %c0_i32_0 : i32, i32, i32
  }
}

</mosaic_0001>

<bundles_post_ra>
// kernel: decode_net2_forward.1
= control target key start
LH: loop header
LB: loop body
LE: loop exit
PB: predicated region body
PF: predicated region fallthrough
CT: control target
= control target key end

     0   :  { %14 = vsyncpa [#allocation8], 0  ;;  %s12623_s30 = smov 0   ;;  %s17074_s0 = inlined_call_operand.vmem [shape: f32[2,64,64], index: 0, kind: input, shape index: {}]   ;;  %s17075_s1 = inlined_call_operand.vmem [shape: bf16[32,576], index: 1, kind: input, shape index: {}]   ;;  %s17076_s2 = inlined_call_operand.vmem [shape: bf16[32,288], index: 2, kind: input, shape index: {}]   ;;  %s17077_s3 = inlined_call_operand.vmem [shape: bf16[16,288], index: 3, kind: input, shape index: {}]   ;;  %s17078_s4 = inlined_call_operand.vmem [shape: bf16[16,144], index: 4, kind: input, shape index: {}]   ;;  %s17079_s5 = inlined_call_operand.vmem [shape: bf16[64,326], index: 5, kind: input, shape index: {}]   ;;  %s17080_s6 = inlined_call_operand.hbm [shape: bf16[288,1158], index: 6, kind: input, shape index: {}]   ;;  %s17081_s7 = inlined_call_operand.vmem [shape: f32[2,1088], index: 7, kind: input, shape index: {}]   ;;  %s17082_s8 = inlined_call_operand.vmem [shape: f32[32,10], index: 8, kind: input, shape index: {}]   ;;  %s17083_s9 = inlined_call_operand.vmem [shape: f32[2,1,1088], index: 9, kind: output, shape index: {}]  }
   0x1 LB: > { %s12629_s10 = sadd.s32 4294967295, %s12540_s30   ;;  %p10987_p0 = scmp.ge.s32.totalorder %s12540_s30, 1  ;;  %s12540_s30 = sphi %s12623_s30, %s20_s30  }
   0x2   : > { %p245_p1 = scmp.lt.s32.totalorder %s12540_s30, 3  ;;  %s12542_s11 = smov [#allocation7]  }
   0x3   : > { %s272_s12 = sshll.u32 %s12542_s11, 4  ;;  %p11950_p3 = scmp.eq.s32.totalorder %s12629_s10, 0  ;;  %s273_s12 = int_to_ptr.vmem [resolvable:$true] %s272_s12 }
   0x4   : > { %p12633_p2 = pnand %p10987_p0, %p245_p1  ;;  %s12515_s14 = scalar_lea.vmem %s273_s12, 23040 }
   0x5   : > { %p12516_p7 = scmp.ne.s32.totalorder %s273_s12, %s12515_s14  ;;  %p12523_p10 = scmp.lt.s32.totalorder %s273_s12, %s273_s12 }
   0x6   : > { %p11946_p4 = pneg %p12633_p2  ;;  %p12524_p11 = scmp.lt.s32.totalorder %s12515_s14, %s12515_s14 }
   0x8   : > { %p11947_p5 = pnand %p11950_p3, %p11946_p4  ;;  %p12525_p12 = por %p12524_p11, %p12523_p10 }
   0xa   : > { %p12506_p6 = pneg %p11947_p5 }
   0xc   : > { %p12518_p8 = pnand %p12516_p7, %p12506_p6 }
   0xe   : > { %p12519_p9 = pneg %p12518_p8 }
  0x10   : > { %p12526_p13 = pnand %p12525_p12, %p12519_p9 }
  0x12   : > { %12529 = shalt.err (!%p12526_p13)
}
  0x13   : > { %s12543_s15 = smov 640   ;;  %s12544_s16 = smov 40  }
  0x14   : > { %11949 = dma.hbm_to_vmem [thread:$0]  (!%p11947_p5), %s17080_s6, 23040, %s273_s12, [#allocation8], %s12543_s15, %s12543_s15, %s12544_s16  }
  0x15   : > { %302 = sbr.rel (%p12633_p2) target bundleno = 2961 (0xb91), region = 56 }
  0x1a   : > { %12535 = dma.done.wait (%p11950_p3), [#allocation8], 23040  }
  0x1b   : > { %12537 = vsyncadd (%p11950_p3), [#allocation8], 4294944256  ;;  %v12545_v0 = vmov 0   ;;  %p337_p0 = scmp.lt.s32.totalorder %s12629_s10, 1  ;;  %v12013_v1 = vld [vmem:[%s17079_s5 + $0x4c] ss:$12 sps:$4 sm:$0xff]  }
  0x1c   : > { %494 = vmatprep.mubr.bf16.mxu0 %v12545_v0  ;;  %2929 = vst [vmem:[#allocation3] sm:$0xff] %v12545_v0  ;;  %2931 = vst [vmem:[#allocation3 + $0xc] sm:$0xff] %v12545_v0  ;;  %11992 = vset.pattern.permute.xlu1 %v12545_v0  ;;  %v12015_v2 = vld [vmem:[%s17079_s5 + $0x50] ss:$12 sps:$4 sm:$0xff]   ;;  %v12016_v3 = vld [vmem:[%s17079_s5 + $0x48] ss:$12 sps:$4 sm:$0xff]  }
  0x1d   : > { %2933 = vst [vmem:[#allocation3 + $0x18] sm:$0xff] %v12545_v0  ;;  %2935 = vst [vmem:[#allocation3 + $0x24] sm:$0xff] %v12545_v0  ;;  %11991 = vset.pattern.permute.xlu0 %v12545_v0  ;;  %s17419_s10 = smov (!%p337_p0, %s12629_s10), 1  ;;  %470 = vmatprep.subr.bf16.mxu0 %v12013_v1  ;;  %v12017_v4 = vld [vmem:[%s17079_s5 + $0x34] ss:$12 sps:$4 sm:$0xff]   ;;  %vm449_vm0 = vcmask 523264  }
  0x1e   : > { %8976 = vst [vmem:[#allocation5] sm:$0xff] %v12545_v0  ;;  %8981 = vst [vmem:[#allocation5 + $0x28] sm:$0xff] %v12545_v0  ;;  %s11715_s25 = sshll.u32 %s17419_s10, 6  ;;  %11897 = vmatprep.subr.bf16.mxu1 %v12015_v2  ;;  %471 = vmatpush1.bf16.msra.mxu0 %v12016_v3  ;;  %v12019_v5 = vld [vmem:[%s17079_s5 + $0x38] ss:$12 sps:$4 sm:$0xff]   ;;  %vm681_vm1 = vcmask 568320  }
  0x1f   : > { %11898 = vmatpush3.bf16.msra.mxu1 %v12015_v2  ;;  %v12020_v6 = vld [vmem:[%s17079_s5 + $0x30] ss:$12 sps:$4 sm:$0xff]   ;;  %472 = vmatprep.subr.bf16.mxu0 %v12017_v4  ;;  %v12023_v8 = vld [vmem:[%s17079_s5 + $0x20] ss:$12 sps:$4 sm:$0xff]   ;;  %s341_s19 = scalar_lea.vmem %s17074_s0, %s11715_s25  ;;  %v12024_v9 = vld [vmem:[%s17079_s5 + $0x18] ss:$12 sps:$4 sm:$0xff]  }
  0x20   : > { %v12021_v7 = vld [vmem:[%s17079_s5 + $0x1c] ss:$12 sps:$4 sm:$0xff]   ;;  %11899 = vmatprep.subr.bf16.mxu1 %v12019_v5  ;;  %v12025_v10 = vld [vmem:[%s17079_s5 + $0x4] ss:$12 sps:$4 sm:$0xff]   ;;  %v12028_v14 = vld [vmem:[%s17079_s5] ss:$12 sps:$4 sm:$0xff]  }
  0x21   : > { %v12027_v11 = vld [vmem:[%s17079_s5 + $0x8] ss:$12 sps:$4 sm:$0xff]   ;;  %v357_v12 = vld [vmem:[%s341_s19] sm:$0xff]  ;;  %v360_v17 = vld [vmem:[%s341_s19 + $0x18] sm:$0xff]  ;;  %2930 = vst.msk [vmem:[#allocation3 + $0x8] sm:$0xf] %vm681_vm1, %v12545_v0 }
  0x22   : > { %473 = vmatpush1.bf16.msra.mxu0 %v12020_v6  ;;  %v358_v13 = vld [vmem:[%s341_s19 + $0x8] sm:$0xff]  ;;  %v359_v16 = vld [vmem:[%s341_s19 + $0x10] sm:$0xff]  ;;  %v361_v18 = vld [vmem:[%s341_s19 + $0x20] sm:$0xff]  ;;  %2932 = vst.msk [vmem:[#allocation3 + $0x14] sm:$0xf] %vm681_vm1, %v12545_v0  ;;  %s12546_s28 = smov 108  }
  0x23   : > { %11900 = vmatpush3.bf16.msra.mxu1 %v12019_v5  ;;  %474 = vmatprep.subr.bf16.mxu0 %v12021_v7  ;;  %v365_v15 = vpack.c.bf16 %v358_v13, %v357_v12  ;;  %v362_v19 = vld [vmem:[%s341_s19 + $0x28] sm:$0xff]  ;;  %v366_v20 = vpack.c.bf16 %v360_v17, %v359_v16  ;;  %v363_v22 = vld [vmem:[%s341_s19 + $0x30] sm:$0xff]  ;;  %v364_v23 = vld [vmem:[%s341_s19 + $0x38] sm:$0xff]  ;;  %2934 = vst.msk [vmem:[#allocation3 + $0x20] sm:$0xf] %vm681_vm1, %v12545_v0  ;;  %vm714_vm2 = vcmask 257024  }
  0x24   : > { %11901 = vmatprep.subr.bf16.mxu1 %v12023_v8  ;;  %v367_v21 = vpack.c.bf16 %v362_v19, %v361_v18  ;;  %v368_v24 = vpack.c.bf16 %v364_v23, %v363_v22  ;;  %2936 = vst.msk [vmem:[#allocation3 + $0x2c] sm:$0xf] %vm681_vm1, %v12545_v0  ;;  %s12547_s29 = smov 109   ;;  %s12548_s11 = smov 127   ;;  %vm810_vm3 = vcmask 1043456   ;;  %vm1328_vm4 = vcmask 883712  }
  0x25   : > { %11905 = vmatprep.mubr.msk.bf16.mxu1 %vm449_vm0, %v365_v15  ;;  %s12549_s12 = smov 91   ;;  %s12550_s13 = smov 92   ;;  %vm1199_vm5 = vcmask 891904   ;;  %vm812_vm6 = vcmask 1039360   ;;  %vm1586_vm7 = vcmask 744448   ;;  %vm1457_vm8 = vcmask 752640  }
  0x26   : > { %475 = vmatpush1.bf16.msra.mxu0 %v12024_v9  ;;  %s12551_s14 = smov 110   ;;  %s12552_s15 = smov 90   ;;  %vm1070_vm9 = vcmask 900096   ;;  %vm1715_vm10 = vcmask 736256   ;;  %vm941_vm11 = vcmask 1031168   ;;  %vm3034_vm12 = vcmask 1043608  }
  0x27   : > { %11902 = vmatpush3.bf16.msra.mxu1 %v12023_v8  ;;  %476 = vmatprep.subr.bf16.mxu0 %v12025_v10  ;;  %s12553_s16 = smov 126   ;;  %s12555_s18 = smov 19   ;;  %vm3035_vm13 = vcmask 1047556   ;;  %vm3017_vm14 = vcmask 154624  }
  0x28   : > { %11903 = vmatprep.subr.bf16.mxu1 %v12027_v11  ;;  %vm13690_vm15 = vmor %vm3035_vm13, %vm3034_vm12  ;;  %s12559_s19 = smov 58   ;;  %s12560_s20 = smov 59   ;;  %vm7020_vm12 = vcmask 490496  }
  0x29   : > { %s12561_s21 = smov 60   ;;  %s12562_s22 = smov 93  }
  0x2a   : > { %477 = vmatpush1.bf16.msra.mxu0 %v12028_v14  ;;  %s11941_s27 = smul.u32 9, %s17419_s10 }
  0x2b   : > { %11904 = vmatpush3.bf16.msra.mxu1 %v12027_v11 }
  0x2d   : > { %11008 = vmatmul.mubr.msk.bf16.vlgmr.msra.gmra.mxu0 %vm449_vm0, %v365_v15 }
  0x2e   : > { %11906 = vmatmul.mubr.msk.bf16.vlgmr.msra.gmra.mxu1 %vm449_vm0, %v366_v20  ;;  %504 = vmatprep.mubr.bf16.mxu0 %v12545_v0 }
  0x2f   : > { %11909 = vmatprep.mubr.msk.bf16.mxu1 %vm449_vm0, %v367_v21 }
  0x35   : > { %11009 = vmatmul.mubr.msk.bf16.gmra.mxu0 %vm449_vm0, %v366_v20 }
  0x36   : > { %11910 = vmatmul.mubr.msk.bf16.gmra.mxu1 %vm449_vm0, %v368_v24  ;;  %514 = vmatprep.mubr.bf16.mxu0 %v12545_v0 }
  0x3d   : > { %11010 = vmatmul.mubr.msk.bf16.gmra.mxu0 %vm449_vm0, %v367_v21 }
  0x3e   : > { %524 = vmatprep.mubr.bf16.mxu0 %v12545_v0 }
  0x45   : > { %11011 = vmatmul.mubr.msk.bf16.gmra.mxu0 %vm449_vm0, %v368_v24 }
  0xed   : > { %v496_v25 = vpop.f32.mrf.mxu0 }
  0xee   : > { %v11907_v26 = vpop.f32.mrf.mxu1 }
  0xef   : > { %v11721_v27 = vpack.c.bf16 %v11907_v26, %v11907_v26  ;;  %v498_v28 = vpop.f32.mrf.mxu0 }
  0xf0   : > { %v569_v29 = vpop.f32.mrf.mxu1  ;;  %v12724_v30 = vpack.c.bf16 %v498_v28, %v496_v25 }
  0xf1   : > { %686 = vst.msk [vmem:[#allocation2 + $0x20] sm:$0xf] %vm681_vm1, %v11721_v27  ;;  %v11717_v31 = vpack.c.bf16 %v569_v29, %v569_v29  ;;  %v500_v32 = vpop.f32.mrf.mxu0 }
  0xf2   : > { %v11908_v33 = vpop.f32.mrf.mxu1  ;;  %680 = vst [vmem:[#allocation2] sm:$0xff] %v12724_v30  ;;  %713 = vst [vmem:[#allocation6] sm:$0xff] %v12724_v30  ;;  %1279 = vrot.lane.b32.xlu0 %v12724_v30, %s12546_s28 }
  0xf3   : > { %682 = vst.msk [vmem:[#allocation2 + $0x8] sm:$0xf] %vm681_vm1, %v11717_v31  ;;  %v11723_v34 = vpack.c.bf16 %v11908_v33, %v11908_v33  ;;  %v502_v35 = vpop.f32.mrf.mxu0 }
  0xf4   : > { %v572_v36 = vpop.f32.mrf.mxu1  ;;  %v12732_v37 = vpack.c.bf16 %v502_v35, %v500_v32 }
  0xf5   : > { %688 = vst.msk [vmem:[#allocation2 + $0x2c] sm:$0xf] %vm681_vm1, %v11723_v34  ;;  %v11719_v38 = vpack.c.bf16 %v572_v36, %v572_v36  ;;  %v506_v40 = vpop.f32.mrf.mxu0 }
  0xf6   : > { %v11911_v39 = vpop.f32.mrf.mxu1  ;;  %683 = vst [vmem:[#allocation2 + $0xc] sm:$0xff] %v12732_v37  ;;  %716 = vst [vmem:[#allocation6 + $0x24] sm:$0xff] %v12732_v37  ;;  %1150 = vrot.lane.b32.xlu0 %v12724_v30, %s12547_s29 }
  0xf7   : > { %684 = vst.msk [vmem:[#allocation2 + $0x14] sm:$0xf] %vm681_vm1, %v11719_v38  ;;  %v11729_v41 = vpack.c.bf16 %v11911_v39, %v11911_v39  ;;  %v508_v45 = vpop.f32.mrf.mxu0 }
  0xf8   : > { %v702_v42 = vld [vmem:[#allocation2 + $0x20] sm:$0xf]  ;;  %v585_v44 = vpop.f32.mrf.mxu1  ;;  %v12742_v47 = vpack.c.bf16 %v508_v45, %v506_v40 }
  0xf9   : > { %v1252_v43 = vld [vmem:[#allocation2 + $0x20] sm:$0xf]  ;;  %719 = vst.msk [vmem:[#allocation6 + $0x50] sm:$0xf] %vm714_vm2, %v702_v42  ;;  %v11725_v46 = vpack.c.bf16 %v585_v44, %v585_v44  ;;  %v510_v50 = vpop.f32.mrf.mxu0 }
  0xfa   : > { %1289 = vrot.lane.b32.xlu1 %v1252_v43, %s12546_s28  ;;  %694 = vst.msk [vmem:[#allocation2 + $0x50] sm:$0xf] %vm681_vm1, %v11729_v41  ;;  %v698_v48 = vld [vmem:[#allocation2 + $0x8] sm:$0xf]  ;;  %v11912_v49 = vpop.f32.mrf.mxu1  ;;  %762 = vrot.lane.b32.xlu0 %v12724_v30, %s12548_s11  ;;  %718 = vst [vmem:[#allocation6 + $0x48] sm:$0xff] %v12742_v47 }
  0xfb   : > { %715 = vst.msk [vmem:[#allocation6 + $0x8] sm:$0xf] %vm714_vm2, %v698_v48  ;;  %v11731_v51 = vpack.c.bf16 %v11912_v49, %v11912_v49  ;;  %v1123_v53 = vld [vmem:[#allocation2 + $0x20] sm:$0xf]  ;;  %v512_v55 = vpop.f32.mrf.mxu0  ;;  %v1248_v15 = vld [vmem:[#allocation2 + $0x8] sm:$0xf] }
  0xfc   : > { %690 = vst.msk [vmem:[#allocation2 + $0x38] sm:$0xf] %vm681_vm1, %v11725_v46  ;;  %v704_v52 = vld [vmem:[#allocation2 + $0x2c] sm:$0xf]  ;;  %v588_v54 = vpop.f32.mrf.mxu1  ;;  %v12752_v57 = vpack.c.bf16 %v512_v55, %v510_v50  ;;  %v735_v60 = vld [vmem:[#allocation2 + $0x20] sm:$0xf] }
  0xfd   : > { %721 = vst.msk [vmem:[#allocation6 + $0x74] sm:$0xf] %vm714_vm2, %v704_v52  ;;  %v11727_v56 = vpack.c.bf16 %v588_v54, %v588_v54  ;;  %v516_v59 = vpop.f32.mrf.mxu0  ;;  %v1510_v2 = vld [vmem:[#allocation2 + $0x20] sm:$0xf]  ;;  %v1119_v16 = vld [vmem:[#allocation2 + $0x8] sm:$0xf] }
  0xfe   : > { %1160 = vrot.lane.b32.xlu1 %v1123_v53, %s12547_s29  ;;  %696 = vst.msk [vmem:[#allocation2 + $0x5c] sm:$0xf] %vm681_vm1, %v11731_v51  ;;  %v700_v58 = vld [vmem:[#allocation2 + $0x14] sm:$0xf]  ;;  %1537 = vrot.lane.b32.xlu0 %v12724_v30, %s12549_s12  ;;  %720 = vst [vmem:[#allocation6 + $0x6c] sm:$0xff] %v12752_v57 }
  0xff   : > { %717 = vst.msk [vmem:[#allocation6 + $0x2c] sm:$0xf] %vm714_vm2, %v700_v58  ;;  %v518_v62 = vpop.f32.mrf.mxu0  ;;  %v1381_v8 = vld [vmem:[#allocation2 + $0x20] sm:$0xf]  ;;  %v731_v18 = vld [vmem:[#allocation2 + $0x8] sm:$0xf] }
 0x100   : > { %692 = vst.msk [vmem:[#allocation2 + $0x44] sm:$0xf] %vm681_vm1, %v11727_v56  ;;  %v12761_v63 = vpack.c.bf16 %v518_v62, %v516_v59  ;;  %v994_v12 = vld [vmem:[#allocation2 + $0x20] sm:$0xf]  ;;  %v1506_v19 = vld [vmem:[#allocation2 + $0x8] sm:$0xf] }
 0x101   : > { %v710_v61 = vld [vmem:[#allocation2 + $0x50] sm:$0xf]  ;;  %v520_v1 = vpop.f32.mrf.mxu0  ;;  %v1254_v20 = vld [vmem:[#allocation2 + $0x2c] sm:$0xf]  ;;  %v1250_v26 = vld [vmem:[#allocation2 + $0x14] sm:$0xf] }
 0x102   : > { %772 = vrot.lane.b32.xlu1 %v735_v60, %s12548_s11  ;;  %727 = vst.msk [vmem:[#allocation6 + $0xe0] sm:$0xf] %vm714_vm2, %v710_v61  ;;  %1408 = vrot.lane.b32.xlu0 %v12724_v30, %s12550_s13  ;;  %722 = vst [vmem:[#allocation6 + $0x90] sm:$0xff] %v12761_v63  ;;  %v1260_v17 = vld [vmem:[#allocation2 + $0x50] sm:$0xf]  ;;  %vm3038_vm1 = vcmask 412672  }
 0x103   : > { %v706_v0 = vld [vmem:[#allocation2 + $0x38] sm:$0xf]  ;;  %v522_v4 = vpop.f32.mrf.mxu0  ;;  %v1125_v21 = vld [vmem:[#allocation2 + $0x2c] sm:$0xf]  ;;  %v1121_v27 = vld [vmem:[#allocation2 + $0x14] sm:$0xf] }
 0x104   : > { %723 = vst.msk [vmem:[#allocation6 + $0x98] sm:$0xf] %vm714_vm2, %v706_v0  ;;  %v12769_v5 = vpack.c.bf16 %v522_v4, %v520_v1  ;;  %v737_v22 = vld [vmem:[#allocation2 + $0x2c] sm:$0xf]  ;;  %v733_v28 = vld [vmem:[#allocation2 + $0x14] sm:$0xf] }
 0x105   : > { %v712_v3 = vld [vmem:[#allocation2 + $0x5c] sm:$0xf]  ;;  %v526_v7 = vpop.f32.mrf.mxu0  ;;  %v1512_v23 = vld [vmem:[#allocation2 + $0x2c] sm:$0xf]  ;;  %v1508_v29 = vld [vmem:[#allocation2 + $0x14] sm:$0xf] }
 0x106   : > { %1547 = vrot.lane.b32.xlu1 %v1510_v2, %s12549_s12  ;;  %729 = vst.msk [vmem:[#allocation6 + $0x104] sm:$0xf] %vm714_vm2, %v712_v3  ;;  %1283 = vrot.lane.b32.xlu0 %v12732_v37, %s12546_s28  ;;  %724 = vst [vmem:[#allocation6 + $0xb4] sm:$0xff] %v12769_v5  ;;  %v1383_v24 = vld [vmem:[#allocation2 + $0x2c] sm:$0xf] }
 0x107   : > { %v708_v6 = vld [vmem:[#allocation2 + $0x44] sm:$0xf]  ;;  %v528_v9 = vpop.f32.mrf.mxu0  ;;  %v996_v25 = vld [vmem:[#allocation2 + $0x2c] sm:$0xf]  ;;  %v1131_v31 = vld [vmem:[#allocation2 + $0x50] sm:$0xf] }
 0x108   : > { %725 = vst.msk [vmem:[#allocation6 + $0xbc] sm:$0xf] %vm714_vm2, %v708_v6  ;;  %v12776_v10 = vpack.c.bf16 %v528_v9, %v526_v7  ;;  %v743_v32 = vld [vmem:[#allocation2 + $0x50] sm:$0xf]  ;;  %v1256_v36 = vld [vmem:[#allocation2 + $0x38] sm:$0xf] }
 0x109   : > { %v530_v11 = vpop.f32.mrf.mxu0  ;;  %v1518_v33 = vld [vmem:[#allocation2 + $0x50] sm:$0xf]  ;;  %v1127_v38 = vld [vmem:[#allocation2 + $0x38] sm:$0xf]  ;;  %v1262_v51 = vld [vmem:[#allocation2 + $0x5c] sm:$0xf] }
 0x10a   : > { %1418 = vrot.lane.b32.xlu1 %v1381_v8, %s12550_s13  ;;  %1154 = vrot.lane.b32.xlu0 %v12732_v37, %s12547_s29  ;;  %726 = vst [vmem:[#allocation6 + $0xd8] sm:$0xff] %v12776_v10  ;;  %v1389_v34 = vld [vmem:[#allocation2 + $0x50] sm:$0xf]  ;;  %v739_v39 = vld [vmem:[#allocation2 + $0x38] sm:$0xf] }
 0x10b   : > { %v532_v13 = vpop.f32.mrf.mxu0  ;;  %v1002_v35 = vld [vmem:[#allocation2 + $0x50] sm:$0xf]  ;;  %v1514_v41 = vld [vmem:[#allocation2 + $0x38] sm:$0xf]  ;;  %v1133_v54 = vld [vmem:[#allocation2 + $0x5c] sm:$0xf] }
 0x10c   : > { %v12782_v14 = vpack.c.bf16 %v532_v13, %v530_v11  ;;  %v1385_v44 = vld [vmem:[#allocation2 + $0x38] sm:$0xf]  ;;  %v745_v58 = vld [vmem:[#allocation2 + $0x5c] sm:$0xf] }
 0x10d   : > { %v998_v48 = vld [vmem:[#allocation2 + $0x38] sm:$0xf]  ;;  %v1520_v61 = vld [vmem:[#allocation2 + $0x5c] sm:$0xf] }
 0x10e   : > { %1031 = vrot.lane.b32.xlu1 %v994_v12, %s12551_s14  ;;  %766 = vrot.lane.b32.xlu0 %v12732_v37, %s12548_s11  ;;  %728 = vst [vmem:[#allocation6 + $0xfc] sm:$0xff] %v12782_v14  ;;  %v1391_v3 = vld [vmem:[#allocation2 + $0x5c] sm:$0xf] }
 0x10f   : > { %v1004_v12 = vld [vmem:[#allocation2 + $0x5c] sm:$0xf] }
 0x112   : > { %1281 = vrot.lane.b32.xlu1 %v1248_v15, %s12546_s28  ;;  %1541 = vrot.lane.b32.xlu0 %v12732_v37, %s12549_s12 }
 0x116   : > { %1152 = vrot.lane.b32.xlu1 %v1119_v16, %s12547_s29  ;;  %1305 = vrot.lane.b32.xlu0 %v1260_v17, %s12546_s28 }
 0x11a   : > { %764 = vrot.lane.b32.xlu1 %v731_v18, %s12548_s11  ;;  %1287 = vrot.lane.b32.xlu0 %v12742_v47, %s12546_s28 }
 0x11e   : > { %1539 = vrot.lane.b32.xlu1 %v1506_v19, %s12549_s12  ;;  %1158 = vrot.lane.b32.xlu0 %v12742_v47, %s12547_s29 }
 0x122   : > { %1293 = vrot.lane.b32.xlu1 %v1254_v20, %s12546_s28  ;;  %770 = vrot.lane.b32.xlu0 %v12742_v47, %s12548_s11  ;;  %v1258_v20 = vld [vmem:[#allocation2 + $0x44] sm:$0xf] }
 0x126   : > { %1164 = vrot.lane.b32.xlu1 %v1125_v21, %s12547_s29  ;;  %1545 = vrot.lane.b32.xlu0 %v12742_v47, %s12549_s12 }
 0x12a   : > { %776 = vrot.lane.b32.xlu1 %v737_v22, %s12548_s11  ;;  %1416 = vrot.lane.b32.xlu0 %v12742_v47, %s12550_s13 }
 0x12e   : > { %1551 = vrot.lane.b32.xlu1 %v1512_v23, %s12549_s12  ;;  %1029 = vrot.lane.b32.xlu0 %v12742_v47, %s12551_s14 }
 0x132   : > { %1422 = vrot.lane.b32.xlu1 %v1383_v24, %s12550_s13  ;;  %1291 = vrot.lane.b32.xlu0 %v12752_v57, %s12546_s28 }
 0x136   : > { %1035 = vrot.lane.b32.xlu1 %v996_v25, %s12551_s14  ;;  %1162 = vrot.lane.b32.xlu0 %v12752_v57, %s12547_s29 }
 0x13a   : > { %1285 = vrot.lane.b32.xlu1 %v1250_v26, %s12546_s28  ;;  %774 = vrot.lane.b32.xlu0 %v12752_v57, %s12548_s11 }
 0x13e   : > { %1156 = vrot.lane.b32.xlu1 %v1121_v27, %s12547_s29  ;;  %1549 = vrot.lane.b32.xlu0 %v12752_v57, %s12549_s12 }
 0x142   : > { %768 = vrot.lane.b32.xlu1 %v733_v28, %s12548_s11  ;;  %1420 = vrot.lane.b32.xlu0 %v12752_v57, %s12550_s13 }
 0x146   : > { %1543 = vrot.lane.b32.xlu1 %v1508_v29, %s12549_s12  ;;  %1033 = vrot.lane.b32.xlu0 %v12752_v57, %s12551_s14  ;;  %v1129_v29 = vld [vmem:[#allocation2 + $0x44] sm:$0xf] }
 0x14a   : > { %1176 = vrot.lane.b32.xlu1 %v1131_v31, %s12547_s29  ;;  %1295 = vrot.lane.b32.xlu0 %v12761_v63, %s12546_s28 }
 0x14e   : > { %788 = vrot.lane.b32.xlu1 %v743_v32, %s12548_s11  ;;  %1166 = vrot.lane.b32.xlu0 %v12761_v63, %s12547_s29 }
 0x152   : > { %1563 = vrot.lane.b32.xlu1 %v1518_v33, %s12549_s12  ;;  %778 = vrot.lane.b32.xlu0 %v12761_v63, %s12548_s11 }
 0x156   : > { %1434 = vrot.lane.b32.xlu1 %v1389_v34, %s12550_s13  ;;  %1553 = vrot.lane.b32.xlu0 %v12761_v63, %s12549_s12 }
 0x15a   : > { %1047 = vrot.lane.b32.xlu1 %v1002_v35, %s12551_s14  ;;  %1424 = vrot.lane.b32.xlu0 %v12761_v63, %s12550_s13 }
 0x15e   : > { %1297 = vrot.lane.b32.xlu1 %v1256_v36, %s12546_s28  ;;  %1037 = vrot.lane.b32.xlu0 %v12761_v63, %s12551_s14 }
 0x162   : > { %1168 = vrot.lane.b32.xlu1 %v1127_v38, %s12547_s29  ;;  %1299 = vrot.lane.b32.xlu0 %v12769_v5, %s12546_s28  ;;  %v741_v38 = vld [vmem:[#allocation2 + $0x44] sm:$0xf] }
 0x164   : > { %v1280_v40 = vpop.permute.xlu0 %1279 }
 0x165   : > { %v1311_v1 = vrot.slane %v1280_v40, 4 }
 0x166   : > { %780 = vrot.lane.b32.xlu1 %v739_v39, %s12548_s11  ;;  %1170 = vrot.lane.b32.xlu0 %v12769_v5, %s12547_s29 }
 0x168   : > { %v1151_v42 = vpop.permute.xlu0 %1150 }
 0x169   : > { %v1182_v9 = vrot.slane %v1151_v42, 4 }
 0x16a   : > { %1555 = vrot.lane.b32.xlu1 %v1514_v41, %s12549_s12  ;;  %782 = vrot.lane.b32.xlu0 %v12769_v5, %s12548_s11  ;;  %v1516_v41 = vld [vmem:[#allocation2 + $0x44] sm:$0xf] }
 0x16c   : > { %v12853_v43 = vpop.permute.xlu1 %1289  ;;  %v12860_v45 = vpop.permute.xlu0 %762 }
 0x16d   : > { %1365 = vst.msk [vmem:[#allocation6 + $0x5f0] sm:$0xf] %vm714_vm2, %v12853_v43  ;;  %v794_v18 = vrot.slane %v12860_v45, 4  ;;  %v1316_v22 = vrot.slane %v12853_v43, 4 }
 0x16e   : > { %1426 = vrot.lane.b32.xlu1 %v1385_v44, %s12550_s13  ;;  %1557 = vrot.lane.b32.xlu0 %v12769_v5, %s12549_s12 }
 0x170   : > { %v12862_v46 = vpop.permute.xlu1 %1160  ;;  %v12869_v49 = vpop.permute.xlu0 %1537 }
 0x171   : > { %1236 = vst.msk [vmem:[#allocation6 + $0x4d0] sm:$0xf] %vm714_vm2, %v12862_v46  ;;  %v1569_v27 = vrot.slane %v12869_v49, 4 }
 0x172   : > { %1039 = vrot.lane.b32.xlu1 %v998_v48, %s12551_s14  ;;  %1428 = vrot.lane.b32.xlu0 %v12769_v5, %s12550_s13  ;;  %v1387_v48 = vld [vmem:[#allocation2 + $0x44] sm:$0xf] }
 0x174   : > { %v12871_v50 = vpop.permute.xlu1 %772  ;;  %v12878_v52 = vpop.permute.xlu0 %1408 }
 0x175   : > { %849 = vst.msk [vmem:[#allocation6 + $0x170] sm:$0xf] %vm714_vm2, %v12871_v50 }
 0x176   : > { %1309 = vrot.lane.b32.xlu1 %v1262_v51, %s12546_s28  ;;  %1041 = vrot.lane.b32.xlu0 %v12769_v5, %s12551_s14 }
 0x178   : > { %v12880_v53 = vpop.permute.xlu1 %1547  ;;  %v12887_v55 = vpop.permute.xlu0 %1283 }
 0x179   : > { %1623 = vst.msk [vmem:[#allocation6 + $0x830] sm:$0xf] %vm714_vm2, %v12880_v53  ;;  %v1574_v43 = vrot.slane %v12880_v53, 4 }
 0x17a   : > { %1180 = vrot.lane.b32.xlu1 %v1133_v54, %s12547_s29  ;;  %1303 = vrot.lane.b32.xlu0 %v12776_v10, %s12546_s28 }
 0x17c   : > { %v12889_v56 = vpop.permute.xlu1 %1418  ;;  %v12896_v59 = vpop.permute.xlu0 %1154 }
 0x17d   : > { %1494 = vst.msk [vmem:[#allocation6 + $0x710] sm:$0xf] %vm714_vm2, %v12889_v56  ;;  %v1445_v54 = vrot.slane %v12889_v56, 4 }
 0x17e   : > { %792 = vrot.lane.b32.xlu1 %v745_v58, %s12548_s11  ;;  %1174 = vrot.lane.b32.xlu0 %v12776_v10, %s12547_s29 }
 0x180   : > { %v12898_v60 = vpop.permute.xlu1 %1031  ;;  %v12905_v62 = vpop.permute.xlu0 %766 }
 0x181   : > { %1107 = vst.msk [vmem:[#allocation6 + $0x3b0] sm:$0xf] %vm714_vm2, %v12898_v60  ;;  %v1058_v56 = vrot.slane %v12898_v60, 4 }
 0x182   : > { %1567 = vrot.lane.b32.xlu1 %v1520_v61, %s12549_s12  ;;  %786 = vrot.lane.b32.xlu0 %v12776_v10, %s12548_s11 }
 0x184   : > { %v1282_v0 = vpop.permute.xlu1 %1281  ;;  %v12911_v4 = vpop.permute.xlu0 %1541 }
 0x185   : > { %v1312_v2 = vrot.slane %v1282_v0, 4  ;;  %1361 = vst.msk [vmem:[#allocation6 + $0x5a8] sm:$0xf] %vm714_vm2, %v1282_v0 }
 0x186   : > { %1438 = vrot.lane.b32.xlu1 %v1391_v3, %s12550_s13  ;;  %1561 = vrot.lane.b32.xlu0 %v12776_v10, %s12549_s12 }
 0x187   : > { %v1327_v6 = vsel %vm810_vm3, %v1311_v1, %v1312_v2 }
 0x188   : > { %v12915_v7 = vsel %vm1328_vm4, %v1280_v40, %v1327_v6  ;;  %v1153_v8 = vpop.permute.xlu1 %1152  ;;  %v12921_v13 = vpop.permute.xlu0 %1305 }
 0x189   : > { %v1183_v11 = vrot.slane %v1153_v8, 4  ;;  %1232 = vst.msk [vmem:[#allocation6 + $0x488] sm:$0xf] %vm714_vm2, %v1153_v8  ;;  %1373 = vst.msk [vmem:[#allocation6 + $0x680] sm:$0xf] %vm714_vm2, %v12921_v13 }
 0x18a   : > { %1051 = vrot.lane.b32.xlu1 %v1004_v12, %s12551_s14  ;;  %1432 = vrot.lane.b32.xlu0 %v12776_v10, %s12550_s13 }
 0x18b   : > { %v1198_v15 = vsel %vm810_vm3, %v1182_v9, %v1183_v11 }
 0x18c   : > { %v1200_v16 = vsel %vm1199_vm5, %v1151_v42, %v1198_v15  ;;  %v765_v17 = vpop.permute.xlu1 %764  ;;  %v1288_v21 = vpop.permute.xlu0 %1287 }
 0x18d   : > { %1231 = vst [vmem:[#allocation6 + $0x480] sm:$0xff] %v1200_v16  ;;  %v795_v19 = vrot.slane %v765_v17, 4  ;;  %845 = vst.msk [vmem:[#allocation6 + $0x128] sm:$0xf] %vm714_vm2, %v765_v17  ;;  %v1315_v24 = vrot.slane %v1288_v21, 4 }
 0x18e   : > { %1301 = vrot.lane.b32.xlu1 %v1258_v20, %s12546_s28  ;;  %1045 = vrot.lane.b32.xlu0 %v12776_v10, %s12551_s14 }
 0x18f   : > { %v811_v23 = vsel %vm810_vm3, %v794_v18, %v795_v19  ;;  %v1332_v31 = vsel %vm810_vm3, %v1315_v24, %v1316_v22 }
 0x190   : > { %v813_v25 = vsel %vm812_vm6, %v12860_v45, %v811_v23  ;;  %v1540_v26 = vpop.permute.xlu1 %1539  ;;  %v12943_v32 = vsel %vm1328_vm4, %v1288_v21, %v1332_v31  ;;  %v12945_v33 = vpop.permute.xlu0 %1158  ;;  %v1313_v21 = vrot.slane %v12887_v55, 4  ;;  %v1379_v23 = vld [vmem:[#allocation2 + $0x14] sm:$0xf] }
 0x191   : > { %844 = vst [vmem:[#allocation6 + $0x120] sm:$0xff] %v813_v25  ;;  %v1570_v28 = vrot.slane %v1540_v26, 4  ;;  %1619 = vst.msk [vmem:[#allocation6 + $0x7e8] sm:$0xf] %vm714_vm2, %v1540_v26 }
 0x192   : > { %1172 = vrot.lane.b32.xlu1 %v1129_v29, %s12547_s29  ;;  %1412 = vrot.lane.b32.xlu0 %v12732_v37, %s12550_s13 }
 0x193   : > { %v1585_v34 = vsel %vm810_vm3, %v1569_v27, %v1570_v28  ;;  %v990_v28 = vld [vmem:[#allocation2 + $0x8] sm:$0xf] }
 0x194   : > { %v1587_v35 = vsel %vm1586_vm7, %v12869_v49, %v1585_v34  ;;  %v1294_v36 = vpop.permute.xlu1 %1293  ;;  %v12954_v39 = vpop.permute.xlu0 %770 }
 0x195   : > { %1618 = vst [vmem:[#allocation6 + $0x7e0] sm:$0xff] %v1587_v35  ;;  %1367 = vst.msk [vmem:[#allocation6 + $0x614] sm:$0xf] %vm714_vm2, %v1294_v36  ;;  %v1318_v11 = vrot.slane %v1294_v36, 4 }
 0x196   : > { %784 = vrot.lane.b32.xlu1 %v741_v38, %s12548_s11  ;;  %1021 = vrot.lane.b32.xlu0 %v12724_v30, %s12551_s14  ;;  %v992_v38 = vld [vmem:[#allocation2 + $0x14] sm:$0xf] }
 0x198   : > { %v12956_v40 = vpop.permute.xlu1 %1164  ;;  %v1546_v42 = vpop.permute.xlu0 %1545 }
 0x199   : > { %1238 = vst.msk [vmem:[#allocation6 + $0x4f4] sm:$0xf] %vm714_vm2, %v12956_v40  ;;  %v1573_v44 = vrot.slane %v1546_v42, 4 }
 0x19a   : > { %1559 = vrot.lane.b32.xlu1 %v1516_v41, %s12549_s12  ;;  %1025 = vrot.lane.b32.xlu0 %v12732_v37, %s12551_s14  ;;  %v1000_v37 = vld [vmem:[#allocation2 + $0x44] sm:$0xf] }
 0x19b   : > { %v1590_v30 = vsel %vm810_vm3, %v1573_v44, %v1574_v43 }
 0x19c   : > { %v12964_v45 = vpop.permute.xlu1 %776  ;;  %v1591_v49 = vsel %vm1586_vm7, %v1546_v42, %v1590_v30  ;;  %v1417_v51 = vpop.permute.xlu0 %1416 }
 0x19d   : > { %851 = vst.msk [vmem:[#allocation6 + $0x194] sm:$0xf] %vm714_vm2, %v12964_v45  ;;  %1622 = vst [vmem:[#allocation6 + $0x828] sm:$0xff] %v1591_v49  ;;  %v1444_v53 = vrot.slane %v1417_v51, 4  ;;  %v1571_v49 = vrot.slane %v12911_v4, 4 }
 0x19e   : > { %1430 = vrot.lane.b32.xlu1 %v1387_v48, %s12550_s13  ;;  %1690 = vrot.lane.b32.xlu0 %v12776_v10, %s12552_s15 }
 0x19f   : > { %v1461_v61 = vsel %vm810_vm3, %v1444_v53, %v1445_v54  ;;  %v1647_v54 = vld [vmem:[#allocation2 + $0x50] sm:$0xf] }
 0x1a0   : > { %v1552_v58 = vpop.permute.xlu1 %1551  ;;  %v1462_v0 = vsel %vm1457_vm8, %v1417_v51, %v1461_v61  ;;  %v1030_v1 = vpop.permute.xlu0 %1029 }
 0x1a1   : > { %1625 = vst.msk [vmem:[#allocation6 + $0x854] sm:$0xf] %vm714_vm2, %v1552_v58  ;;  %1493 = vst [vmem:[#allocation6 + $0x708] sm:$0xff] %v1462_v0  ;;  %v1057_v2 = vrot.slane %v1030_v1, 4 }
 0x1a2   : > { %1043 = vrot.lane.b32.xlu1 %v1000_v37, %s12551_s14  ;;  %916 = vrot.lane.b32.xlu0 %v12776_v10, %s12553_s16  ;;  %v1377_v10 = vld [vmem:[#allocation2 + $0x8] sm:$0xf] }
 0x1a3   : > { %v1074_v6 = vsel %vm810_vm3, %v1057_v2, %v1058_v56  ;;  %v1649_v2 = vld [vmem:[#allocation2 + $0x5c] sm:$0xf] }
 0x1a4   : > { %v1423_v3 = vpop.permute.xlu1 %1422  ;;  %v1075_v8 = vsel %vm1070_vm9, %v1030_v1, %v1074_v6  ;;  %v1292_v9 = vpop.permute.xlu0 %1291 }
 0x1a5   : > { %1496 = vst.msk [vmem:[#allocation6 + $0x734] sm:$0xf] %vm714_vm2, %v1423_v3  ;;  %1106 = vst [vmem:[#allocation6 + $0x3a8] sm:$0xff] %v1075_v8  ;;  %v1317_v60 = vrot.slane %v1292_v9, 4  ;;  %v1447_v44 = vrot.slane %v1423_v3, 4 }
 0x1a6   : > { %1307 = vrot.lane.b32.xlu1 %v12782_v14, %s12546_s28  ;;  %1682 = vrot.lane.b32.xlu0 %v12761_v63, %s12552_s15 }
 0x1a7   : > { %v1334_v15 = vsel %vm810_vm3, %v1317_v60, %v1318_v11  ;;  %v875_v60 = vld [vmem:[#allocation2 + $0x5c] sm:$0xf] }
 0x1a8   : > { %v1036_v12 = vpop.permute.xlu1 %1035  ;;  %v12994_v16 = vsel %vm1328_vm4, %v1292_v9, %v1334_v15  ;;  %v12996_v17 = vpop.permute.xlu0 %1162  ;;  %v1643_v15 = vld [vmem:[#allocation2 + $0x38] sm:$0xf] }
 0x1a9   : > { %1109 = vst.msk [vmem:[#allocation6 + $0x3d4] sm:$0xf] %vm714_vm2, %v1036_v12  ;;  %v1060_v61 = vrot.slane %v1036_v12, 4 }
 0x1aa   : > { %1410 = vrot.lane.b32.xlu1 %v1377_v10, %s12550_s13  ;;  %1686 = vrot.lane.b32.xlu0 %v12769_v5, %s12552_s15 }
 0x1ac   : > { %v1286_v20 = vpop.permute.xlu1 %1285  ;;  %v13007_v24 = vpop.permute.xlu0 %774 }
 0x1ad   : > { %v1314_v22 = vrot.slane %v1286_v20, 4  ;;  %1363 = vst.msk [vmem:[#allocation6 + $0x5cc] sm:$0xf] %vm714_vm2, %v1286_v20 }
 0x1ae   : > { %1414 = vrot.lane.b32.xlu1 %v1379_v23, %s12550_s13  ;;  %1178 = vrot.lane.b32.xlu0 %v12782_v14, %s12547_s29 }
 0x1af   : > { %v1330_v25 = vsel %vm810_vm3, %v1313_v21, %v1314_v22  ;;  %v1645_v22 = vld [vmem:[#allocation2 + $0x44] sm:$0xf] }
 0x1b0   : > { %v13012_v26 = vsel %vm1328_vm4, %v12887_v55, %v1330_v25  ;;  %v13014_v27 = vpop.permute.xlu1 %1156  ;;  %v1550_v34 = vpop.permute.xlu0 %1549  ;;  %v1576_v55 = vrot.slane %v1552_v58, 4 }
 0x1b1   : > { %1234 = vst.msk [vmem:[#allocation6 + $0x4ac] sm:$0xf] %vm714_vm2, %v13014_v27  ;;  %v1575_v35 = vrot.slane %v1550_v34, 4 }
 0x1b2   : > { %1023 = vrot.lane.b32.xlu1 %v990_v28, %s12551_s14  ;;  %790 = vrot.lane.b32.xlu0 %v12782_v14, %s12548_s11 }
 0x1b3   : > { %v1592_v41 = vsel %vm810_vm3, %v1575_v35, %v1576_v55  ;;  %v869_v55 = vld [vmem:[#allocation2 + $0x38] sm:$0xf] }
 0x1b4   : > { %v13025_v36 = vpop.permute.xlu1 %768  ;;  %v13034_v42 = vsel %vm1586_vm7, %v1550_v34, %v1592_v41  ;;  %v1421_v43 = vpop.permute.xlu0 %1420 }
 0x1b5   : > { %847 = vst.msk [vmem:[#allocation6 + $0x14c] sm:$0xf] %vm714_vm2, %v13025_v36  ;;  %v1446_v48 = vrot.slane %v1421_v43, 4 }
 0x1b6   : > { %1027 = vrot.lane.b32.xlu1 %v992_v38, %s12551_s14  ;;  %908 = vrot.lane.b32.xlu0 %v12761_v63, %s12553_s16 }
 0x1b7   : > { %v1463_v53 = vsel %vm810_vm3, %v1446_v48, %v1447_v44  ;;  %v871_v48 = vld [vmem:[#allocation2 + $0x44] sm:$0xf] }
 0x1b8   : > { %v1544_v30 = vpop.permute.xlu1 %1543  ;;  %v1464_v58 = vsel %vm1457_vm8, %v1421_v43, %v1463_v53  ;;  %v1034_v37 = vpop.permute.xlu0 %1033  ;;  %v1639_v53 = vld [vmem:[#allocation2 + $0x20] sm:$0xf] }
 0x1b9   : > { %v1572_v51 = vrot.slane %v1544_v30, 4  ;;  %1621 = vst.msk [vmem:[#allocation6 + $0x80c] sm:$0xf] %vm714_vm2, %v1544_v30  ;;  %1495 = vst [vmem:[#allocation6 + $0x72c] sm:$0xff] %v1464_v58  ;;  %v1059_v1 = vrot.slane %v1034_v37, 4 }
 0x1ba   : > { %1692 = vrot.lane.b32.xlu1 %v1647_v54, %s12552_s15  ;;  %912 = vrot.lane.b32.xlu0 %v12769_v5, %s12553_s16  ;;  %v873_v5 = vld [vmem:[#allocation2 + $0x50] sm:$0xf] }
 0x1bb   : > { %v1588_v0 = vsel %vm810_vm3, %v1571_v49, %v1572_v51  ;;  %v1076_v3 = vsel %vm810_vm3, %v1059_v1, %v1060_v61 }
 0x1bc   : > { %v13046_v63 = vsel %vm1586_vm7, %v12911_v4, %v1588_v0  ;;  %v13048_v56 = vpop.permute.xlu1 %1176  ;;  %v1077_v6 = vsel %vm1070_vm9, %v1034_v37, %v1076_v3  ;;  %v1296_v8 = vpop.permute.xlu0 %1295  ;;  %v1634_v37 = vld [vmem:[#allocation2] sm:$0xff] }
 0x1bd   : > { %1244 = vst.msk [vmem:[#allocation6 + $0x560] sm:$0xf] %vm714_vm2, %v13048_v56  ;;  %1108 = vst [vmem:[#allocation6 + $0x3cc] sm:$0xff] %v1077_v6  ;;  %v1319_v28 = vrot.slane %v1296_v8, 4 }
 0x1be   : > { %1696 = vrot.lane.b32.xlu1 %v1649_v2, %s12552_s15  ;;  %1565 = vrot.lane.b32.xlu0 %v12782_v14, %s12549_s12  ;;  %v1641_v2 = vld [vmem:[#allocation2 + $0x2c] sm:$0xf] }
 0x1c0   : > { %v13057_v9 = vpop.permute.xlu1 %788  ;;  %v1167_v4 = vpop.permute.xlu0 %1166 }
 0x1c1   : > { %857 = vst.msk [vmem:[#allocation6 + $0x200] sm:$0xf] %vm714_vm2, %v13057_v9  ;;  %v1190_v43 = vrot.slane %v1167_v4, 4 }
 0x1c2   : > { %918 = vrot.lane.b32.xlu1 %v873_v5, %s12553_s16  ;;  %1674 = vrot.lane.b32.xlu0 %v12742_v47, %s12552_s15 }
 0x1c4   : > { %v13064_v11 = vpop.permute.xlu1 %1563  ;;  %v13071_v12 = vpop.permute.xlu0 %778 }
 0x1c5   : > { %1631 = vst.msk [vmem:[#allocation6 + $0x8c0] sm:$0xf] %vm714_vm2, %v13064_v11 }
 0x1c6   : > { %922 = vrot.lane.b32.xlu1 %v875_v60, %s12553_s16  ;;  %1678 = vrot.lane.b32.xlu0 %v12752_v57, %s12552_s15  ;;  %v865_v60 = vld [vmem:[#allocation2 + $0x20] sm:$0xf] }
 0x1c8   : > { %v13073_v10 = vpop.permute.xlu1 %1434  ;;  %v1554_v20 = vpop.permute.xlu0 %1553 }
 0x1c9   : > { %1502 = vst.msk [vmem:[#allocation6 + $0x7a0] sm:$0xf] %vm714_vm2, %v13073_v10  ;;  %v1577_v0 = vrot.slane %v1554_v20, 4 }
 0x1ca   : > { %1684 = vrot.lane.b32.xlu1 %v1643_v15, %s12552_s15  ;;  %900 = vrot.lane.b32.xlu0 %v12742_v47, %s12553_s16 }
 0x1cc   : > { %v13080_v21 = vpop.permute.xlu1 %1047  ;;  %v1425_v23 = vpop.permute.xlu0 %1424 }
 0x1cd   : > { %1115 = vst.msk [vmem:[#allocation6 + $0x440] sm:$0xf] %vm714_vm2, %v13080_v21  ;;  %v1448_v5 = vrot.slane %v1425_v23, 4 }
 0x1ce   : > { %1688 = vrot.lane.b32.xlu1 %v1645_v22, %s12552_s15  ;;  %1436 = vrot.lane.b32.xlu0 %v12782_v14, %s12550_s13 }
 0x1d0   : > { %v1298_v25 = vpop.permute.xlu1 %1297  ;;  %v13091_v35 = vpop.permute.xlu0 %1037 }
 0x1d1   : > { %v1320_v34 = vrot.slane %v1298_v25, 4  ;;  %1369 = vst.msk [vmem:[#allocation6 + $0x638] sm:$0xf] %vm714_vm2, %v1298_v25 }
 0x1d2   : > { %910 = vrot.lane.b32.xlu1 %v869_v55, %s12553_s16  ;;  %1049 = vrot.lane.b32.xlu0 %v12782_v14, %s12551_s14  ;;  %v1636_v55 = vld [vmem:[#allocation2 + $0xc] sm:$0xff] }
 0x1d3   : > { %v1336_v47 = vsel %vm810_vm3, %v1319_v28, %v1320_v34  ;;  %v867_v28 = vld [vmem:[#allocation2 + $0x2c] sm:$0xf] }
 0x1d4   : > { %v13095_v38 = vsel %vm1328_vm4, %v1296_v8, %v1336_v47  ;;  %v1169_v41 = vpop.permute.xlu1 %1168  ;;  %v13101_v30 = vpop.permute.xlu0 %1299 }
 0x1d5   : > { %v1191_v44 = vrot.slane %v1169_v41, 4  ;;  %1240 = vst.msk [vmem:[#allocation6 + $0x518] sm:$0xf] %vm714_vm2, %v1169_v41 }
 0x1d6   : > { %914 = vrot.lane.b32.xlu1 %v871_v48, %s12553_s16  ;;  %904 = vrot.lane.b32.xlu0 %v12752_v57, %s12553_s16 }
 0x1d7   : > { %v1207_v49 = vsel %vm810_vm3, %v1190_v43, %v1191_v44  ;;  %v1637_v44 = vld [vmem:[#allocation2 + $0x14] sm:$0xf] }
 0x1d8   : > { %v13105_v51 = vsel %vm1199_vm5, %v1167_v4, %v1207_v49  ;;  %v13107_v54 = vpop.permute.xlu1 %780  ;;  %v13114_v58 = vpop.permute.xlu0 %1170  ;;  %v1324_v49 = vrot.slane %v12921_v13, 4 }
 0x1d9   : > { %853 = vst.msk [vmem:[#allocation6 + $0x1b8] sm:$0xf] %vm714_vm2, %v13107_v54 }
 0x1da   : > { %1676 = vrot.lane.b32.xlu1 %v1639_v53, %s12552_s15  ;;  %1666 = vrot.lane.b32.xlu0 %v1634_v37, %s12552_s15 }
 0x1dc   : > { %v1556_v61 = vpop.permute.xlu1 %1555  ;;  %v13119_v57 = vpop.permute.xlu0 %782 }
 0x1dd   : > { %v1578_v1 = vrot.slane %v1556_v61, 4  ;;  %1627 = vst.msk [vmem:[#allocation6 + $0x878] sm:$0xf] %vm714_vm2, %v1556_v61 }
 0x1de   : > { %1680 = vrot.lane.b32.xlu1 %v1641_v2, %s12552_s15  ;;  %1694 = vrot.lane.b32.xlu0 %v12782_v14, %s12552_s15 }
 0x1df   : > { %v1594_v3 = vsel %vm810_vm3, %v1577_v0, %v1578_v1  ;;  %v861_v0 = vld [vmem:[#allocation2 + $0x8] sm:$0xf]  ;;  %v12055_v1 = vld [vmem:[%s17075_s1 + $0x4] ss:$20 sps:$4 sm:$0xff]  }
 0x1e0   : > { %v13123_v6 = vsel %vm1586_vm7, %v1554_v20, %v1594_v3  ;;  %v1427_v8 = vpop.permute.xlu1 %1426  ;;  %v13129_v15 = vpop.permute.xlu0 %1557  ;;  %v1195_v3 = vrot.slane %v13048_v56, 4  ;;  %2583 = vmatprep.mubr.bf16.mxu0 %v12055_v1 }
 0x1e1   : > { %v1449_v4 = vrot.slane %v1427_v8, 4  ;;  %1498 = vst.msk [vmem:[#allocation6 + $0x758] sm:$0xf] %vm714_vm2, %v1427_v8 }
 0x1e2   : > { %902 = vrot.lane.b32.xlu1 %v865_v60, %s12553_s16  ;;  %920 = vrot.lane.b32.xlu0 %v12782_v14, %s12553_s16  ;;  %v1635_v14 = vld [vmem:[#allocation2 + $0x8] sm:$0xf] }
 0x1e3   : > { %v1465_v22 = vsel %vm810_vm3, %v1448_v5, %v1449_v4  ;;  %v863_v4 = vld [vmem:[#allocation2 + $0x14] sm:$0xf] }
 0x1e4   : > { %v13133_v25 = vsel %vm1457_vm8, %v1425_v23, %v1465_v22  ;;  %v13135_v20 = vpop.permute.xlu1 %1039  ;;  %v13142_v34 = vpop.permute.xlu0 %1428  ;;  %v12044_v23 = vld [vmem:[%s17075_s1 + $0xc] ss:$20 sps:$4 sm:$0xff]  }
 0x1e5   : > { %17224 = vst [vmem:[#allocation10_spill] sm:$0xff] %v13133_v25  ;;  %1111 = vst.msk [vmem:[#allocation6 + $0x3f8] sm:$0xf] %vm714_vm2, %v13135_v20  ;;  %2636 = vmatprep.mubr.bf16.mxu1 %v12044_v23  ;;  %v1582_v23 = vrot.slane %v13064_v11, 4 }
 0x1e6   : > { %906 = vrot.lane.b32.xlu1 %v867_v28, %s12553_s16  ;;  %1670 = vrot.lane.b32.xlu0 %v1636_v55, %s12552_s15 }
 0x1e8   : > { %v13144_v47 = vpop.permute.xlu1 %1309  ;;  %v13153_v41 = vpop.permute.xlu0 %1041 }
 0x1e9   : > { %1375 = vst.msk [vmem:[#allocation6 + $0x6a4] sm:$0xf] %vm714_vm2, %v13144_v47 }
 0x1ea   : > { %1668 = vrot.lane.b32.xlu1 %v1635_v14, %s12552_s15  ;;  %892 = vrot.lane.b32.xlu0 %v1634_v37, %s12553_s16 }
 0x1ec   : > { %v13155_v43 = vpop.permute.xlu1 %1180  ;;  %v1304_v48 = vpop.permute.xlu0 %1303 }
 0x1ed   : > { %1246 = vst.msk [vmem:[#allocation6 + $0x584] sm:$0xf] %vm714_vm2, %v13155_v43  ;;  %v1323_v53 = vrot.slane %v1304_v48, 4 }
 0x1ee   : > { %1672 = vrot.lane.b32.xlu1 %v1637_v44, %s12552_s15  ;;  %896 = vrot.lane.b32.xlu0 %v1636_v55, %s12553_s16 }
 0x1ef   : > { %v1340_v37 = vsel %vm810_vm3, %v1323_v53, %v1324_v49 }
 0x1f0   : > { %v13162_v61 = vpop.permute.xlu1 %792  ;;  %v13173_v2 = vsel %vm1328_vm4, %v1304_v48, %v1340_v37  ;;  %v1175_v13 = vpop.permute.xlu0 %1174 }
 0x1f1   : > { %859 = vst.msk [vmem:[#allocation6 + $0x224] sm:$0xf] %vm714_vm2, %v13162_v61  ;;  %v1194_v8 = vrot.slane %v1175_v13, 4 }
 0x1f2   : > { %894 = vrot.lane.b32.xlu1 %v861_v0, %s12553_s16  ;;  %v1453_v0 = vrot.slane %v13073_v10, 4 }
 0x1f3   : > { %v1211_v60 = vsel %vm810_vm3, %v1194_v8, %v1195_v3 }
 0x1f4   : > { %v13176_v5 = vpop.permute.xlu1 %1567  ;;  %v13183_v22 = vsel %vm1199_vm5, %v1175_v13, %v1211_v60  ;;  %v13185_v28 = vpop.permute.xlu0 %786  ;;  %v1321_v13 = vrot.slane %v13101_v30, 4 }
 0x1f5   : > { %1633 = vst.msk [vmem:[#allocation6 + $0x8e4] sm:$0xf] %vm714_vm2, %v13176_v5 }
 0x1f6   : > { %898 = vrot.lane.b32.xlu1 %v863_v4, %s12553_s16 }
 0x1f8   : > { %v13187_v55 = vpop.permute.xlu1 %1438  ;;  %v1562_v56 = vpop.permute.xlu0 %1561 }
 0x1f9   : > { %1504 = vst.msk [vmem:[#allocation6 + $0x7c4] sm:$0xf] %vm714_vm2, %v13187_v55  ;;  %v1581_v14 = vrot.slane %v1562_v56, 4 }
 0x1fb   : > { %v1598_v48 = vsel %vm810_vm3, %v1581_v14, %v1582_v23  ;;  %v1192_v23 = vrot.slane %v13114_v58, 4 }
 0x1fc   : > { %v13192_v44 = vpop.permute.xlu1 %1051  ;;  %v13198_v49 = vsel %vm1586_vm7, %v1562_v56, %v1598_v48  ;;  %v1433_v53 = vpop.permute.xlu0 %1432 }
 0x1fd   : > { %1117 = vst.msk [vmem:[#allocation6 + $0x464] sm:$0xf] %vm714_vm2, %v13192_v44  ;;  %v1452_v37 = vrot.slane %v1433_v53, 4 }
 0x1ff   : > { %v1469_v11 = vsel %vm810_vm3, %v1452_v37, %v1453_v0 }
 0x200   : > { %v1302_v1 = vpop.permute.xlu1 %1301  ;;  %v13205_v8 = vsel %vm1457_vm8, %v1433_v53, %v1469_v11  ;;  %v13207_v4 = vpop.permute.xlu0 %1045 }
 0x201   : > { %v1322_v3 = vrot.slane %v1302_v1, 4  ;;  %1371 = vst.msk [vmem:[#allocation6 + $0x65c] sm:$0xf] %vm714_vm2, %v1302_v1 }
 0x203   : > { %v1338_v60 = vsel %vm810_vm3, %v1321_v13, %v1322_v3  ;;  %v1579_v13 = vrot.slane %v13129_v15, 4 }
 0x204   : > { %v13212_v56 = vsel %vm1328_vm4, %v13101_v30, %v1338_v60  ;;  %v1173_v10 = vpop.permute.xlu1 %1172  ;;  %v1413_v48 = vpop.permute.xlu0 %1412 }
 0x205   : > { %v1193_v14 = vrot.slane %v1173_v10, 4  ;;  %1242 = vst.msk [vmem:[#allocation6 + $0x53c] sm:$0xf] %vm714_vm2, %v1173_v10 }
 0x207   : > { %v1209_v0 = vsel %vm810_vm3, %v1192_v23, %v1193_v14  ;;  %v1450_v23 = vrot.slane %v13142_v34, 4 }
 0x208   : > { %v13219_v53 = vsel %vm1199_vm5, %v13114_v58, %v1209_v0  ;;  %v13221_v37 = vpop.permute.xlu1 %784  ;;  %v13225_v30 = vpop.permute.xlu0 %1021 }
 0x209   : > { %855 = vst.msk [vmem:[#allocation6 + $0x1dc] sm:$0xf] %vm714_vm2, %v13221_v37  ;;  %17225 = vst [vmem:[#allocation11_spill] sm:$0xff] %v13225_v30 }
 0x20c   : > { %v1560_v1 = vpop.permute.xlu1 %1559  ;;  %v13229_v11 = vpop.permute.xlu0 %1025 }
 0x20d   : > { %v1580_v3 = vrot.slane %v1560_v1, 4  ;;  %1629 = vst.msk [vmem:[#allocation6 + $0x89c] sm:$0xf] %vm714_vm2, %v1560_v1 }
 0x20f   : > { %v1596_v60 = vsel %vm810_vm3, %v1579_v13, %v1580_v3  ;;  %v1326_v3 = vrot.slane %v13144_v47, 4 }
 0x210   : > { %v13234_v58 = vsel %vm1586_vm7, %v13129_v15, %v1596_v60  ;;  %v1431_v10 = vpop.permute.xlu1 %1430  ;;  %v13238_v0 = vpop.permute.xlu0 %1690 }
 0x211   : > { %v1451_v14 = vrot.slane %v1431_v10, 4  ;;  %1500 = vst.msk [vmem:[#allocation6 + $0x77c] sm:$0xf] %vm714_vm2, %v1431_v10 }
 0x213   : > { %v1467_v29 = vsel %vm810_vm3, %v1450_v23, %v1451_v14 }
 0x214   : > { %v13243_v1 = vsel %vm1457_vm8, %v13142_v34, %v1467_v29  ;;  %v13245_v31 = vpop.permute.xlu1 %1043  ;;  %v13249_v15 = vpop.permute.xlu0 %916  ;;  %v1440_v29 = vrot.slane %v12878_v52, 4 }
 0x215   : > { %17226 = vst [vmem:[#allocation12_spill] sm:$0xff] %v13243_v1  ;;  %1113 = vst.msk [vmem:[#allocation6 + $0x41c] sm:$0xf] %vm714_vm2, %v13245_v31  ;;  %v806_v1 = vrot.slane %v13185_v28, 4 }
 0x216   : > { %17227 = vst [vmem:[#allocation13_spill] sm:$0xff] %v13249_v15 }
 0x218   : > { %v1308_v13 = vpop.permute.xlu1 %1307  ;;  %v13252_v10 = vpop.permute.xlu0 %1682 }
 0x219   : > { %v1325_v60 = vrot.slane %v1308_v13, 4 }
 0x21b   : > { %v1342_v18 = vsel %vm810_vm3, %v1325_v60, %v1326_v3  ;;  %v11109_v3 = vcombine.high %v13095_v38, %v13212_v56 }
 0x21c   : > { %v1343_v23 = vsel %vm1328_vm4, %v1308_v13, %v1342_v18  ;;  %v1411_v14 = vpop.permute.xlu1 %1410  ;;  %v13260_v25 = vpop.permute.xlu0 %1686  ;;  %v350_v18 = vld [vmem:[%s17082_s8 + $0x18] sm:$0xff]  ;;  %v349_v13 = vld [vmem:[%s17082_s8 + $0x10] sm:$0xff] }
 0x21d   : > { %v1441_v34 = vrot.slane %v1411_v14, 4  ;;  %1490 = vst.msk [vmem:[#allocation6 + $0x6c8] sm:$0xf] %vm714_vm2, %v1411_v14  ;;  %v11111_v19 = vcombine.low %v13173_v2, %v1343_v23  ;;  %v11112_v15 = vcombine.high %v13173_v2, %v1343_v23  ;;  %2874 = vperm.xlu1 %11992, %v350_v18   ;;  %v1442_v23 = vrot.slane %v1413_v48, 4  ;;  %2869 = vperm.xlu0 %11991, %v349_v13  }
 0x21e   : > { %v1197_v14 = vrot.slane %v13155_v43, 4  ;;  %v17089_v43 = vmov 1  }
 0x21f   : > { %v1456_v47 = vsel %vm810_vm3, %v1440_v29, %v1441_v34  ;;  %2604 = vmatprep.subr.bf16.mxu1 %v11112_v15  ;;  %v11108_v29 = vcombine.low %v13095_v38, %v13212_v56  ;;  %v807_v38 = vrot.slane %v13057_v9, 4  ;;  %v803_v56 = vrot.slane %v13107_v54, 4 }
 0x220   : > { %v13273_v60 = vsel %vm1457_vm8, %v12878_v52, %v1456_v47  ;;  %v1415_v2 = vpop.permute.xlu1 %1414  ;;  %2605 = vmatpush1.bf16.msra.mxu1 %v11111_v19  ;;  %v1179_v34 = vpop.permute.xlu0 %1178  ;;  %v805_v52 = vrot.slane %v13221_v37, 4  ;;  %v804_v37 = vrot.slane %v13119_v57, 4  ;;  %v802_v9 = vrot.slane %v13071_v12, 4 }
 0x221   : > { %17228 = vst [vmem:[#allocation14_spill] sm:$0xff] %v13273_v60  ;;  %v1443_v15 = vrot.slane %v1415_v2, 4  ;;  %1492 = vst.msk [vmem:[#allocation6 + $0x6ec] sm:$0xf] %vm714_vm2, %v1415_v2  ;;  %2606 = vmatprep.subr.bf16.mxu1 %v11109_v3  ;;  %v1196_v19 = vrot.slane %v1179_v34, 4  ;;  %11993 = vset.pattern.permute.xlu1 %v17089_v43 }
 0x222   : > { %2898 = vperm.xlu1 %11993, %v349_v13   ;;  %11994 = vset.pattern.permute.xlu0 %v17089_v43  ;;  %v796_v13 = vrot.slane %v12905_v62, 4  ;;  %v1188_v43 = vrot.slane %v12996_v17, 4 }
 0x223   : > { %v1459_v47 = vsel %vm810_vm3, %v1442_v23, %v1443_v15  ;;  %v1213_v2 = vsel %vm810_vm3, %v1196_v19, %v1197_v14  ;;  %v799_v23 = vrot.slane %v12871_v50, 4  ;;  %v800_v15 = vrot.slane %v13007_v24, 4  ;;  %v347_v50 = vld [vmem:[%s17082_s8] sm:$0xff]  ;;  %2902 = vperm.xlu0 %11994, %v350_v18  }
 0x224   : > { %v13284_v30 = vsel %vm1457_vm8, %v1413_v48, %v1459_v47  ;;  %v13286_v3 = vpop.permute.xlu1 %1023  ;;  %2607 = vmatpush1.bf16.msra.mxu1 %v11108_v29  ;;  %v17229_v48 = vcombine.high %v12943_v32, %v12994_v16  ;;  %v13302_v54 = vsel %vm1199_vm5, %v1179_v34, %v1213_v2  ;;  %v791_v29 = vpop.permute.xlu0 %790  ;;  %v809_v47 = vrot.slane %v13162_v61, 4 }
 0x225   : > { %1103 = vst.msk [vmem:[#allocation6 + $0x368] sm:$0xf] %vm714_vm2, %v13286_v3  ;;  %v824_v14 = vsel %vm810_vm3, %v806_v1, %v807_v38  ;;  %v822_v19 = vsel %vm810_vm3, %v804_v37, %v805_v52  ;;  %v801_v34 = vrot.slane %v12964_v45, 4  ;;  %v798_v2 = vrot.slane %v12954_v39, 4  ;;  %v13329_v37 = vld [vmem:[#allocation3] sm:$0xff] }
 0x226   : > { %2608 = vmatprep.subr.bf16.mxu1 %v17229_v48  ;;  %v808_v48 = vrot.slane %v791_v29, 4  ;;  %v17230_v61 = vcombine.low %v12943_v32, %v12994_v16  ;;  %v1189_v1 = vrot.slane %v12956_v40, 4  ;;  %v1186_v52 = vrot.slane %v12945_v33, 4  ;;  %11995 = vset.pattern.permute.xlu1 %v13329_v37 }
 0x227   : > { %v820_v18 = vsel %vm810_vm3, %v802_v9, %v803_v56  ;;  %v17231_v38 = vcombine.high %v12915_v7, %v13012_v26  ;;  %v818_v32 = vsel %vm810_vm3, %v800_v15, %v801_v34  ;;  %v825_v40 = vsel %vm812_vm6, %v13185_v28, %v824_v14  ;;  %2859 = vperm.xlu1 %11995, %v347_v50   ;;  %v348_v15 = vld [vmem:[%s17082_s8 + $0x8] sm:$0xff] }
 0x228   : > { %v13315_v60 = vpop.permute.xlu1 %1027  ;;  %2609 = vmatpush1.bf16.msra.mxu1 %v17230_v61  ;;  %v826_v45 = vsel %vm810_vm3, %v808_v48, %v809_v47  ;;  %v823_v16 = vsel %vm812_vm6, %v13119_v57, %v822_v19  ;;  %v13338_v9 = vpop.permute.xlu0 %908  ;;  %v797_v47 = vrot.slane %v13025_v36, 4  ;;  %v11100_v48 = vcombine.high %v13183_v22, %v13302_v54  ;;  %2890 = vperm.xlu0 %11994, %v347_v50  }
 0x229   : > { %1105 = vst.msk [vmem:[#allocation6 + $0x38c] sm:$0xf] %vm714_vm2, %v13315_v60  ;;  %2610 = vmatprep.subr.bf16.mxu1 %v17231_v38  ;;  %v827_v56 = vsel %vm812_vm6, %v791_v29, %v826_v45  ;;  %v816_v28 = vsel %vm810_vm3, %v798_v2, %v799_v23  ;;  %v1205_v57 = vsel %vm810_vm3, %v1188_v43, %v1189_v1  ;;  %v1185_v19 = vrot.slane %v13014_v27, 4 }
 0x22a   : > { %v11064_v61 = vcombine.high %v825_v40, %v827_v56  ;;  %v11063_v38 = vcombine.low %v825_v40, %v827_v56  ;;  %v821_v29 = vsel %vm812_vm6, %v13071_v12, %v820_v18  ;;  %v17232_v36 = vcombine.low %v12915_v7, %v13012_v26 }
 0x22b   : > { %v1710_v34 = vrot.slane %v13238_v0, 4  ;;  %v11061_v23 = vcombine.high %v821_v29, %v823_v16  ;;  %v1184_v43 = vrot.slane %v12896_v59, 4  ;;  %v819_v12 = vsel %vm812_vm6, %v13007_v24, %v818_v32  ;;  %2864 = vperm.xlu1 %11995, %v348_v15  }
 0x22c   : > { %v1693_v14 = vpop.permute.xlu1 %1692  ;;  %2611 = vmatpush1.bf16.msra.mxu1 %v17232_v36  ;;  %2551 = vmatprep.subr.bf16.mxu0 %v11064_v61  ;;  %v13359_v50 = vpop.permute.xlu0 %912  ;;  %v11099_v7 = vcombine.low %v13183_v22, %v13302_v54  ;;  %v17233_v26 = vrot.slane %v12862_v46, 4  ;;  %v814_v2 = vsel %vm810_vm3, %v796_v13, %v797_v47  ;;  %v11097_v18 = vcombine.high %v13105_v51, %v13219_v53  ;;  %v1787_v36 = vld [vmem:[#allocation6 + $0xd8] sm:$0xff] }
 0x22d   : > { %v1711_v45 = vrot.slane %v1693_v14, 4  ;;  %1760 = vst.msk [vmem:[#allocation6 + $0x9e0] sm:$0xf] %vm714_vm2, %v1693_v14  ;;  %2612 = vmatprep.subr.bf16.mxu1 %v11100_v48  ;;  %2552 = vmatpush1.bf16.msra.mxu0 %v11063_v38  ;;  %v817_v24 = vsel %vm812_vm6, %v12954_v39, %v816_v28  ;;  %v1206_v22 = vsel %vm1199_vm5, %v12996_v17, %v1205_v57  ;;  %v17234_v56 = vmov 1   ;;  %v1791_v38 = vld [vmem:[#allocation6 + $0x120] sm:$0xff] }
 0x22e   : > { %v1203_v27 = vsel %vm810_vm3, %v1186_v52, %v17233_v26  ;;  %2553 = vmatprep.subr.bf16.mxu0 %v11061_v23  ;;  %v11060_v13 = vcombine.low %v821_v29, %v823_v16  ;;  %v1201_v52 = vsel %vm810_vm3, %v1184_v43, %v1185_v19  ;;  %v11058_v32 = vcombine.high %v817_v24, %v819_v12  ;;  %v1839_v57 = vld [vmem:[#allocation6 + $0x480] sm:$0xff] }
 0x22f   : > { %v1727_v1 = vsel %vm810_vm3, %v1710_v34, %v1711_v45  ;;  %v1204_v39 = vsel %vm1199_vm5, %v12945_v33, %v1203_v27  ;;  %v815_v17 = vsel %vm812_vm6, %v12905_v62, %v814_v2  ;;  %11996 = vset.pattern.permute.xlu1 %v17234_v56  ;;  %v1584_v16 = vrot.slane %v13176_v5, 4  ;;  %v1789_v19 = vld [vmem:[#allocation6 + $0xfc] sm:$0xff]  ;;  %v1783_v2 = vld [vmem:[#allocation6 + $0x90] sm:$0xff] }
 0x230   : > { %v13376_v54 = vsel %vm1715_vm10, %v13238_v0, %v1727_v1  ;;  %v13378_v46 = vpop.permute.xlu1 %1696  ;;  %2613 = vmatpush1.bf16.msra.mxu1 %v11099_v7  ;;  %v1566_v40 = vpop.permute.xlu0 %1565  ;;  %v11096_v0 = vcombine.low %v13105_v51, %v13219_v53  ;;  %v11094_v48 = vcombine.high %v1204_v39, %v1206_v22  ;;  %2894 = vperm.xlu1 %11996, %v348_v15   ;;  %v12029_v34 = vld [vmem:[#allocation6 + $0xdc] ss:$36 sps:$4 sm:$0xff]   ;;  %v1706_v26 = vrot.slane %v13252_v10, 4  ;;  %v1785_v1 = vld [vmem:[#allocation6 + $0xb4] sm:$0xff] }
 0x231   : > { %1762 = vst.msk [vmem:[#allocation6 + $0xa04] sm:$0xf] %vm714_vm2, %v13378_v46  ;;  %2614 = vmatprep.subr.bf16.mxu1 %v11097_v18  ;;  %2554 = vmatpush1.bf16.msra.mxu0 %v11060_v13  ;;  %v1583_v47 = vrot.slane %v1566_v40, 4  ;;  %v1202_v61 = vsel %vm1199_vm5, %v12896_v59, %v1201_v52  ;;  %v11057_v62 = vcombine.low %v817_v24, %v819_v12  ;;  %v12031_v18 = vld [vmem:[#allocation6 + $0x94] ss:$36 sps:$4 sm:$0xff]  }
 0x232   : > { %2555 = vmatprep.subr.bf16.mxu0 %v11058_v32  ;;  %v11055_v53 = vcombine.high %v1791_v38, %v815_v17  ;;  %v11093_v15 = vcombine.low %v1204_v39, %v1206_v22  ;;  %v11091_v59 = vcombine.high %v1839_v57, %v1202_v61  ;;  %v11054_v14 = vcombine.low %v1791_v38, %v815_v17 }
 0x233   : > { %v1600_v51 = vsel %vm810_vm3, %v1583_v47, %v1584_v16  ;;  %v11090_v23 = vcombine.low %v1839_v57, %v1202_v61  ;;  %v11051_v7 = vcombine.low %v1787_v36, %v1789_v19  ;;  %v11133_v52 = vcombine.high %v13123_v6, %v13234_v58  ;;  %v1781_v16 = vld [vmem:[#allocation6 + $0x6c] sm:$0xff]  ;;  %v12035_v19 = vld [vmem:[#allocation6 + $0x4] ss:$36 sps:$4 sm:$0xff]  }
 0x234   : > { %v13393_v33 = vpop.permute.xlu1 %918  ;;  %2615 = vmatpush1.bf16.msra.mxu1 %v11096_v0  ;;  %v1601_v5 = vsel %vm1586_vm7, %v1566_v40, %v1600_v51  ;;  %v13399_v28 = vpop.permute.xlu0 %1674  ;;  %v11048_v17 = vcombine.low %v1783_v2, %v1785_v1  ;;  %v1779_v40 = vld [vmem:[#allocation6 + $0x48] sm:$0xff]  ;;  %v1708_v0 = vrot.slane %v13260_v25, 4  ;;  %v1065_v38 = vrot.slane %v13207_v4, 4 }
 0x235   : > { %986 = vst.msk [vmem:[#allocation6 + $0x320] sm:$0xf] %vm714_vm2, %v13393_v33  ;;  %2616 = vmatprep.subr.bf16.mxu1 %v11094_v48  ;;  %2556 = vmatpush1.bf16.msra.mxu0 %v11057_v62  ;;  %v11136_v43 = vcombine.high %v13198_v49, %v1601_v5  ;;  %v11135_v22 = vcombine.low %v13198_v49, %v1601_v5  ;;  %v1891_v49 = vld [vmem:[#allocation6 + $0x828] sm:$0xff]  ;;  %v1455_v48 = vrot.slane %v13187_v55, 4  ;;  %v1064_v51 = vrot.slane %v13245_v31, 4 }
 0x236   : > { %2557 = vmatprep.subr.bf16.mxu0 %v11055_v53  ;;  %v12033_v47 = vld [vmem:[#allocation6 + $0x4c] ss:$36 sps:$4 sm:$0xff]   ;;  %v11130_v62 = vcombine.high %v1891_v49, %v13034_v42  ;;  %v11045_v57 = vcombine.low %v1779_v40, %v1781_v16  ;;  %v1063_v31 = vrot.slane %v13153_v41, 4 }
 0x238   : > { %v13401_v29 = vpop.permute.xlu1 %922  ;;  %2617 = vmatpush1.bf16.msra.mxu1 %v11093_v15  ;;  %v13405_v45 = vpop.permute.xlu0 %1678 }
 0x239   : > { %988 = vst.msk [vmem:[#allocation6 + $0x344] sm:$0xf] %vm714_vm2, %v13401_v29  ;;  %2618 = vmatprep.subr.bf16.mxu1 %v11091_v59  ;;  %2558 = vmatpush1.bf16.msra.mxu0 %v11054_v14  ;;  %v1066_v59 = vrot.slane %v13080_v21, 4  ;;  %v1062_v14 = vrot.slane %v13135_v20, 4  ;;  %v1068_v20 = vrot.slane %v13192_v44, 4 }
 0x23a   : > { %2559 = vmatprep.subr.bf16.mxu0 %v12029_v34  ;;  %v1061_v34 = vrot.slane %v13091_v35, 4 }
 0x23c   : > { %v1685_v12 = vpop.permute.xlu1 %1684  ;;  %2619 = vmatpush1.bf16.msra.mxu1 %v11090_v23  ;;  %v13410_v24 = vpop.permute.xlu0 %900 }
 0x23d   : > { %v1707_v27 = vrot.slane %v1685_v12, 4  ;;  %1756 = vst.msk [vmem:[#allocation6 + $0x998] sm:$0xf] %vm714_vm2, %v1685_v12  ;;  %2620 = vmatprep.subr.bf16.mxu1 %v11136_v43  ;;  %2560 = vmatpush1.bf16.msra.mxu0 %v11051_v7  ;;  %v11129_v12 = vcombine.low %v1891_v49, %v13034_v42  ;;  %v1082_v7 = vsel %vm810_vm3, %v1065_v38, %v1066_v59 }
 0x23e   : > { %2561 = vmatprep.subr.bf16.mxu0 %v12031_v18  ;;  %v1078_v18 = vsel %vm810_vm3, %v1061_v34, %v1062_v14  ;;  %v1083_v44 = vsel %vm1070_vm9, %v13207_v4, %v1082_v7  ;;  %v1055_v4 = vrot.slane %v13229_v11, 4  ;;  %v1829_v14 = vld [vmem:[#allocation6 + $0x3cc] sm:$0xff]  ;;  %v937_v34 = vrot.slane %v13393_v33, 4 }
 0x23f   : > { %v1723_v13 = vsel %vm810_vm3, %v1706_v26, %v1707_v27  ;;  %v1080_v26 = vsel %vm810_vm3, %v1063_v31, %v1064_v51  ;;  %v1079_v49 = vsel %vm1070_vm9, %v13091_v35, %v1078_v18  ;;  %v17235_v35 = vld [vmem:[#allocation11_spill] sm:$0xff]  ;;  %v17237_v51 = vld [vmem:[#allocation10_spill] sm:$0xff] }
 0x240   : > { %v13418_v32 = vsel %vm1715_vm10, %v13252_v10, %v1723_v13  ;;  %v1689_v39 = vpop.permute.xlu1 %1688  ;;  %2621 = vmatpush2.bf16.msra.mxu1 %v11135_v22  ;;  %v1437_v61 = vpop.permute.xlu0 %1436  ;;  %v11132_v10 = vcombine.low %v13123_v6, %v13234_v58  ;;  %v1775_v6 = vld [vmem:[#allocation6] sm:$0xff]  ;;  %v1081_v22 = vsel %vm1070_vm9, %v13153_v41, %v1080_v26  ;;  %v1054_v41 = vrot.slane %v13286_v3, 4  ;;  %v17236_v3 = vld [vmem:[#allocation12_spill] sm:$0xff] }
 0x241   : > { %v1709_v56 = vrot.slane %v1689_v39, 4  ;;  %1758 = vst.msk [vmem:[#allocation6 + $0x9bc] sm:$0xf] %vm714_vm2, %v1689_v39  ;;  %2622 = vmatprep.subr.bf16.mxu1 %v11133_v52  ;;  %2562 = vmatpush1.bf16.msra.mxu0 %v11048_v17  ;;  %v1454_v5 = vrot.slane %v1437_v61, 4  ;;  %v1777_v58 = vld [vmem:[#allocation6 + $0x24] sm:$0xff]  ;;  %v1056_v17 = vrot.slane %v13315_v60, 4 }
 0x242   : > { %2563 = vmatprep.subr.bf16.mxu0 %v12033_v47  ;;  %v11042_v1 = vcombine.low %v1775_v6, %v1777_v58  ;;  %v1702_v47 = vrot.slane %v13399_v28, 4  ;;  %v11084_v6 = vcombine.low %v1079_v49, %v1081_v22  ;;  %v1704_v58 = vrot.slane %v13405_v45, 4  ;;  %v12040_v31 = vld [vmem:[#allocation6 + $0x3ac] ss:$36 sps:$4 sm:$0xff]  }
 0x243   : > { %v1725_v53 = vsel %vm810_vm3, %v1708_v0, %v1709_v56  ;;  %v1471_v36 = vsel %vm810_vm3, %v1454_v5, %v1455_v48 }
 0x244   : > { %v13431_v15 = vsel %vm1715_vm10, %v13260_v25, %v1725_v53  ;;  %v13433_v55 = vpop.permute.xlu1 %910  ;;  %2623 = vmatpush2.bf16.msra.mxu1 %v11132_v10  ;;  %v1887_v25 = vld [vmem:[#allocation6 + $0x7e0] sm:$0xff]  ;;  %v1472_v23 = vsel %vm1457_vm8, %v1437_v61, %v1471_v36  ;;  %v1050_v43 = vpop.permute.xlu0 %1049  ;;  %v1053_v10 = vrot.slane %v17235_v35, 4  ;;  %v11121_v53 = vcombine.high %v17237_v51, %v17236_v3 }
 0x245   : > { %982 = vst.msk [vmem:[#allocation6 + $0x2d8] sm:$0xf] %vm714_vm2, %v13433_v55  ;;  %2624 = vmatprep.subr.bf16.mxu1 %v11130_v62  ;;  %v11127_v21 = vcombine.high %v1887_v25, %v13046_v63  ;;  %2564 = vmatpush1.bf16.msra.mxu0 %v11045_v57  ;;  %v1067_v27 = vrot.slane %v1050_v43, 4  ;;  %v11126_v39 = vcombine.low %v1887_v25, %v13046_v63  ;;  %v1713_v25 = vrot.slane %v13378_v46, 4 }
 0x246   : > { %2565 = vmatprep.subr.bf16.mxu0 %v12035_v19  ;;  %v11124_v40 = vcombine.high %v13205_v8, %v1472_v23  ;;  %v11085_v63 = vcombine.high %v1079_v49, %v1081_v22  ;;  %v11123_v61 = vcombine.low %v13205_v8, %v1472_v23  ;;  %v1072_v62 = vsel %vm810_vm3, %v1055_v4, %v1056_v17  ;;  %v12037_v22 = vld [vmem:[#allocation6 + $0x708] ss:$36 sps:$4 sm:$0xff]  }
 0x247   : > { %v1084_v42 = vsel %vm810_vm3, %v1067_v27, %v1068_v20  ;;  %v1069_v8 = vsel %vm810_vm3, %v1053_v10, %v1054_v41  ;;  %v1073_v36 = vsel %vm1070_vm9, %v13229_v11, %v1072_v62  ;;  %v11120_v19 = vcombine.low %v17237_v51, %v17236_v3  ;;  %v1827_v20 = vld [vmem:[#allocation6 + $0x3a8] sm:$0xff]  ;;  %v17238_v27 = vld [vmem:[#allocation13_spill] sm:$0xff] }
 0x248   : > { %v13448_v2 = vpop.permute.xlu1 %914  ;;  %2625 = vmatpush2.bf16.msra.mxu1 %v11129_v12  ;;  %v1085_v13 = vsel %vm1070_vm9, %v1050_v43, %v1084_v42  ;;  %v13459_v52 = vpop.permute.xlu0 %904  ;;  %v1071_v11 = vsel %vm1070_vm9, %v17235_v35, %v1069_v8  ;;  %v933_v46 = vrot.slane %v13433_v55, 4  ;;  %v11081_v33 = vcombine.low %v1827_v20, %v1829_v14  ;;  %v13527_v3 = vld [vmem:[%s17075_s1 + $0x8] ss:$20 sps:$4 sm:$0xff]  }
 0x249   : > { %984 = vst.msk [vmem:[#allocation6 + $0x2fc] sm:$0xf] %vm714_vm2, %v13448_v2  ;;  %2626 = vmatprep.subr.bf16.mxu1 %v11127_v21  ;;  %2566 = vmatpush1.bf16.msra.mxu0 %v11042_v1  ;;  %v11088_v0 = vcombine.high %v1083_v44, %v1085_v13  ;;  %v11087_v56 = vcombine.low %v1083_v44, %v1085_v13  ;;  %v935_v23 = vrot.slane %v13448_v2, 4  ;;  %v12039_v21 = vld [vmem:[#allocation6 + $0x70c] ss:$36 sps:$4 sm:$0xff]   ;;  %v936_v2 = vrot.slane %v17238_v27, 4 }
 0x24a   : > { %v934_v1 = vrot.slane %v13359_v50, 4  ;;  %v11079_v42 = vcombine.high %v1071_v11, %v1073_v36  ;;  %v932_v44 = vrot.slane %v13338_v9, 4  ;;  %v17239_v13 = vld [vmem:[#allocation14_spill] sm:$0xff]  ;;  %v11078_v41 = vcombine.low %v1071_v11, %v1073_v36 }
 0x24b   : > { %2567 = vmatprep.subr.bf16.mxu0 %v11088_v0  ;;  %v953_v17 = vsel %vm810_vm3, %v936_v2, %v937_v34  ;;  %v928_v35 = vrot.slane %v13410_v24, 4  ;;  %v11144_v20 = vcombine.low %v13418_v32, %v13431_v15  ;;  %v13561_v11 = vld [vmem:[%s17075_s1 + $0x30] ss:$20 sps:$4 sm:$0xff]  }
 0x24c   : > { %v1677_v16 = vpop.permute.xlu1 %1676  ;;  %2627 = vmatpush2.bf16.msra.mxu1 %v11126_v39  ;;  %v13470_v60 = vpop.permute.xlu0 %1666  ;;  %v11115_v39 = vcombine.high %v17239_v13, %v13284_v30  ;;  %v951_v0 = vsel %vm810_vm3, %v934_v1, %v935_v23  ;;  %v949_v49 = vsel %vm810_vm3, %v932_v44, %v933_v46 }
 0x24d   : > { %v1703_v48 = vrot.slane %v1677_v16, 4  ;;  %1752 = vst.msk [vmem:[#allocation6 + $0x950] sm:$0xf] %vm714_vm2, %v1677_v16  ;;  %2628 = vmatprep.subr.bf16.mxu1 %v11124_v40  ;;  %2568 = vmatpush2.bf16.msra.mxu0 %v11087_v56  ;;  %v939_v40 = vrot.slane %v13401_v29, 4  ;;  %v11114_v16 = vcombine.low %v17239_v13, %v13284_v30  ;;  %v952_v10 = vsel %vm941_vm11, %v13359_v50, %v951_v0  ;;  %v13535_v50 = vld [vmem:[%s17075_s1 + $0x34] ss:$20 sps:$4 sm:$0xff]  }
 0x24e   : > { %2569 = vmatprep.subr.bf16.mxu0 %v11085_v63  ;;  %v12050_v0 = vld [vmem:[#allocation6 + $0x200] ss:$36 sps:$4 sm:$0xff]  }
 0x24f   : > { %v1719_v38 = vsel %vm810_vm3, %v1702_v47, %v1703_v48  ;;  %v930_v47 = vrot.slane %v13459_v52, 4 }
 0x250   : > { %v13480_v5 = vsel %vm1715_vm10, %v13399_v28, %v1719_v38  ;;  %v1681_v57 = vpop.permute.xlu1 %1680  ;;  %2629 = vmatpush2.bf16.msra.mxu1 %v11123_v61  ;;  %v1695_v28 = vpop.permute.xlu0 %1694  ;;  %v954_v61 = vsel %vm941_vm11, %v17238_v27, %v953_v17 }
 0x251   : > { %v1705_v59 = vrot.slane %v1681_v57, 4  ;;  %1754 = vst.msk [vmem:[#allocation6 + $0x974] sm:$0xf] %vm714_vm2, %v1681_v57  ;;  %2630 = vmatprep.subr.bf16.mxu1 %v11121_v53  ;;  %2570 = vmatpush2.bf16.msra.mxu0 %v11084_v6  ;;  %v1712_v12 = vrot.slane %v1695_v28, 4  ;;  %v950_v6 = vsel %vm941_vm11, %v13338_v9, %v949_v49  ;;  %v12052_v49 = vld [vmem:[#allocation6 + $0x8c0] ss:$36 sps:$4 sm:$0xff]  }
 0x252   : > { %2571 = vmatprep.subr.bf16.mxu0 %v12040_v31  ;;  %v11073_v31 = vcombine.high %v950_v6, %v952_v10 }
 0x253   : > { %v1721_v43 = vsel %vm810_vm3, %v1704_v58, %v1705_v59  ;;  %v1729_v18 = vsel %vm810_vm3, %v1712_v12, %v1713_v25  ;;  %v1698_v59 = vrot.slane %v13470_v60, 4 }
 0x254   : > { %v13498_v7 = vsel %vm1715_vm10, %v13405_v45, %v1721_v43  ;;  %v903_v26 = vpop.permute.xlu1 %902  ;;  %2631 = vmatpush2.bf16.msra.mxu1 %v11120_v19  ;;  %v1730_v55 = vsel %vm1715_vm10, %v1695_v28, %v1729_v18  ;;  %v921_v45 = vpop.permute.xlu0 %920  ;;  %v11145_v28 = vcombine.high %v13418_v32, %v13431_v15 }
 0x255   : > { %978 = vst.msk [vmem:[#allocation6 + $0x290] sm:$0xf] %vm714_vm2, %v903_v26  ;;  %2632 = vmatprep.subr.bf16.mxu1 %v12039_v21  ;;  %2572 = vmatpush2.bf16.msra.mxu0 %v11081_v33  ;;  %v938_v56 = vrot.slane %v921_v45, 4  ;;  %v929_v48 = vrot.slane %v903_v26, 4  ;;  %v11148_v51 = vcombine.high %v13376_v54, %v1730_v55  ;;  %v11147_v36 = vcombine.low %v13376_v54, %v1730_v55 }
 0x256   : > { %2573 = vmatprep.subr.bf16.mxu0 %v11079_v42  ;;  %v11072_v54 = vcombine.low %v950_v6, %v952_v10  ;;  %v11141_v15 = vcombine.low %v13480_v5, %v13498_v7  ;;  %v12062_v10 = vld [vmem:[#allocation6 + $0x368] ss:$36 sps:$4 sm:$0xff]  }
 0x257   : > { %v955_v29 = vsel %vm810_vm3, %v938_v56, %v939_v40  ;;  %v945_v58 = vsel %vm810_vm3, %v928_v35, %v929_v48  ;;  %v12051_v56 = vld [vmem:[#allocation6 + $0x3f8] ss:$36 sps:$4 sm:$0xff]   ;;  %v12058_v48 = vld [vmem:[#allocation6 + $0x3b0] ss:$36 sps:$4 sm:$0xff]   ;;  %v12071_v6 = vld [vmem:[#allocation6 + $0x7e8] ss:$36 sps:$4 sm:$0xff]  }
 0x258   : > { %v907_v4 = vpop.permute.xlu1 %906  ;;  %2633 = vmatpush2.bf16.msra.mxu1 %v12037_v22  ;;  %v956_v30 = vsel %vm941_vm11, %v921_v45, %v955_v29  ;;  %v1671_v62 = vpop.permute.xlu0 %1670  ;;  %v946_v19 = vsel %vm941_vm11, %v13410_v24, %v945_v58  ;;  %v13596_v29 = vld [vmem:[%s17075_s1 + $0x38] ss:$20 sps:$4 sm:$0xff]  }
 0x259   : > { %v931_v63 = vrot.slane %v907_v4, 4  ;;  %980 = vst.msk [vmem:[#allocation6 + $0x2b4] sm:$0xf] %vm714_vm2, %v907_v4  ;;  %2634 = vmatprep.subr.bf16.mxu1 %v11115_v39  ;;  %2574 = vmatpush2.bf16.msra.mxu0 %v11078_v41  ;;  %v11076_v53 = vcombine.high %v954_v61, %v956_v30  ;;  %v11075_v57 = vcombine.low %v954_v61, %v956_v30  ;;  %v1700_v12 = vrot.slane %v1671_v62, 4  ;;  %v13584_v4 = vld [vmem:[%s17075_s1] ss:$20 sps:$4 sm:$0xff]  }
 0x25a   : > { %v12057_v41 = vld [vmem:[#allocation6 + $0x680] ss:$36 sps:$4 sm:$0xff]   ;;  %v12060_v61 = vld [vmem:[#allocation6 + $0x170] ss:$36 sps:$4 sm:$0xff]   ;;  %v12061_v35 = vld [vmem:[#allocation6 + $0x638] ss:$36 sps:$4 sm:$0xff]  }
 0x25b   : > { %v947_v38 = vsel %vm810_vm3, %v930_v47, %v931_v63  ;;  %2575 = vmatprep.subr.bf16.mxu0 %v11076_v53  ;;  %v13589_v47 = vld [vmem:[%s17075_s1 + $0x2c] ss:$20 sps:$4 sm:$0xff]   ;;  %v12059_v63 = vld [vmem:[#allocation6 + $0x878] ss:$36 sps:$4 sm:$0xff]   ;;  %v12063_v30 = vld [vmem:[#allocation6 + $0x830] ss:$36 sps:$4 sm:$0xff]  }
 0x25c   : > { %v1669_v8 = vpop.permute.xlu1 %1668  ;;  %2635 = vmatpush2.bf16.msra.mxu1 %v11114_v16  ;;  %v948_v9 = vsel %vm941_vm11, %v13459_v52, %v947_v38  ;;  %v893_v43 = vpop.permute.xlu0 %892  ;;  %v12056_v16 = vld [vmem:[#allocation6 + $0x1b8] ss:$36 sps:$4 sm:$0xff]   ;;  %v12067_v38 = vld [vmem:[#allocation6 + $0x128] ss:$36 sps:$4 sm:$0xff]  }
 0x25d   : > { %v1699_v14 = vrot.slane %v1669_v8, 4  ;;  %1748 = vst.msk [vmem:[#allocation6 + $0x908] sm:$0xf] %vm714_vm2, %v1669_v8  ;;  %2665 = vmatprep.subr.bf16.mxu1 %v11148_v51  ;;  %2576 = vmatpush2.bf16.msra.mxu0 %v11075_v57  ;;  %v11070_v21 = vcombine.high %v946_v19, %v948_v9  ;;  %v11069_v33 = vcombine.low %v946_v19, %v948_v9  ;;  %v924_v2 = vrot.slane %v893_v43, 4  ;;  %v12068_v51 = vld [vmem:[#allocation6 + $0x5f0] ss:$36 sps:$4 sm:$0xff]  }
 0x25e   : > { %2577 = vmatprep.subr.bf16.mxu0 %v11073_v31  ;;  %v12486_v53 = vld [vmem:[%s17075_s1 + $0x4] ss:$20 sps:$4 sm:$0xff]   ;;  %v12073_v58 = vld [vmem:[#allocation6 + $0x5a8] ss:$36 sps:$4 sm:$0xff]   ;;  %v12080_v19 = vld [vmem:[#allocation6 + $0x50] ss:$36 sps:$4 sm:$0xff]  }
 0x25f   : > { %v1714_v25 = vsel %vm810_vm3, %v1698_v59, %v1699_v14  ;;  %2637 = vmatmul.mubr.bf16.vlgmr.msra.gmra.mxu1 %v13527_v3  ;;  %v12070_v57 = vld [vmem:[#allocation6 + $0x320] ss:$36 sps:$4 sm:$0xff]   ;;  %v12074_v14 = vld [vmem:[#allocation6 + $0x2d8] ss:$36 sps:$4 sm:$0xff]  }
 0x260   : > { %v1716_v34 = vsel %vm1715_vm10, %v13470_v60, %v1714_v25  ;;  %v1673_v23 = vpop.permute.xlu1 %1672  ;;  %2666 = vmatpush1.bf16.msra.mxu1 %v11147_v36  ;;  %2646 = vmatprep.mubr.bf16.mxu1 %v13535_v50  ;;  %v11142_v60 = vcombine.high %v13480_v5, %v13498_v7  ;;  %v897_v32 = vpop.permute.xlu0 %896  ;;  %v12048_v5 = vld [vmem:[#allocation6 + $0x440] ss:$36 sps:$4 sm:$0xff]   ;;  %v12076_v9 = vld [vmem:[#allocation6 + $0x98] ss:$36 sps:$4 sm:$0xff]   ;;  %v12078_v25 = vld [vmem:[#allocation6 + $0x290] ss:$36 sps:$4 sm:$0xff]  }
 0x261   : > { %v1701_v52 = vrot.slane %v1673_v23, 4  ;;  %1750 = vst.msk [vmem:[#allocation6 + $0x92c] sm:$0xf] %vm714_vm2, %v1673_v23  ;;  %2667 = vmatprep.subr.bf16.mxu1 %v11145_v28  ;;  %2578 = vmatpush2.bf16.msra.mxu0 %v11072_v54  ;;  %v926_v55 = vrot.slane %v897_v32, 4  ;;  %v13575_v7 = vld [vmem:[%s17075_s1 + $0x10] ss:$20 sps:$4 sm:$0xff]  }
 0x262   : > { %2579 = vmatprep.subr.bf16.mxu0 %v11070_v21  ;;  %v12072_v8 = vld [vmem:[#allocation6 + $0xe0] ss:$36 sps:$4 sm:$0xff]   ;;  %v12079_v28 = vld [vmem:[#allocation6 + $0x758] ss:$36 sps:$4 sm:$0xff]   ;;  %v12084_v54 = vld [vmem:[#allocation6 + $0x8] ss:$36 sps:$4 sm:$0xff]  }
 0x263   : > { %v1717_v24 = vsel %vm810_vm3, %v1700_v12, %v1701_v52  ;;  %v12487_v59 = vld [vmem:[%s17075_s1 + $0xc] ss:$20 sps:$4 sm:$0xff]   ;;  %v12085_v52 = vld [vmem:[#allocation6 + $0x4d0] ss:$36 sps:$4 sm:$0xff]  }
 0x264   : > { %v1718_v46 = vsel %vm1715_vm10, %v1671_v62, %v1717_v24  ;;  %v895_v26 = vpop.permute.xlu1 %894  ;;  %2668 = vmatpush1.bf16.msra.mxu1 %v11144_v20  ;;  %v12066_v62 = vld [vmem:[%s17075_s1 + $0x28] ss:$20 sps:$4 sm:$0xff]   ;;  %v12075_v31 = vld [vmem:[#allocation6 + $0x7a0] ss:$36 sps:$4 sm:$0xff]  }
 0x265   : > { %v925_v27 = vrot.slane %v895_v26, 4  ;;  %974 = vst.msk [vmem:[#allocation6 + $0x248] sm:$0xf] %vm714_vm2, %v895_v26  ;;  %2669 = vmatprep.subr.bf16.mxu1 %v11142_v60  ;;  %2580 = vmatpush2.bf16.msra.mxu0 %v11069_v33  ;;  %v11139_v1 = vcombine.high %v1716_v34, %v1718_v46  ;;  %v11138_v45 = vcombine.low %v1716_v34, %v1718_v46  ;;  %v12077_v36 = vld [vmem:[#allocation6 + $0x560] ss:$36 sps:$4 sm:$0xff]  }
 0x266   : > { %v12081_v34 = vld [vmem:[#allocation6 + $0x518] ss:$36 sps:$4 sm:$0xff]   ;;  %v12086_v12 = vld [vmem:[#allocation6 + $0x6c8] ss:$36 sps:$4 sm:$0xff]   ;;  %v12087_v21 = vld [vmem:[#allocation6 + $0x9e0] ss:$36 sps:$4 sm:$0xff]  }
 0x267   : > { %2647 = vmatmul.mubr.bf16.gmra.mxu1 %v13561_v11  ;;  %v940_v42 = vsel %vm810_vm3, %v924_v2, %v925_v27  ;;  %v12088_v20 = vld [vmem:[#allocation6 + $0x488] ss:$36 sps:$4 sm:$0xff]   ;;  %v12089_v24 = vld [vmem:[#allocation6 + $0x998] ss:$36 sps:$4 sm:$0xff]   ;;  %v12090_v60 = vld [vmem:[#allocation6 + $0x950] ss:$36 sps:$4 sm:$0xff]  }
 0x268   : > { %v899_v18 = vpop.permute.xlu1 %898  ;;  %2670 = vmatpush1.bf16.msra.mxu1 %v11141_v15  ;;  %2689 = vmatprep.mubr.bf16.mxu1 %v13329_v37  ;;  %v942_v13 = vsel %vm941_vm11, %v893_v43, %v940_v42  ;;  %v12083_v43 = vld [vmem:[#allocation6 + $0x710] ss:$36 sps:$4 sm:$0xff]   ;;  %v12091_v46 = vld [vmem:[#allocation6 + $0x908] ss:$36 sps:$4 sm:$0xff]  }
 0x269   : > { %v927_v44 = vrot.slane %v899_v18, 4  ;;  %976 = vst.msk [vmem:[#allocation6 + $0x26c] sm:$0xf] %vm714_vm2, %v899_v18  ;;  %2671 = vmatprep.subr.bf16.mxu1 %v11139_v1 }
 0x26b   : > { %v943_v22 = vsel %vm810_vm3, %v926_v55, %v927_v44 }
 0x26c   : > { %v944_v39 = vsel %vm941_vm11, %v897_v32, %v943_v22  ;;  %2672 = vmatpush1.bf16.msra.mxu1 %v11138_v45  ;;  %v17090_v45 = vlaneseq }
 0x26d   : > { %11778 = vmatprep.subr.bf16.mxu1 %v12048_v5  ;;  %v11067_v17 = vcombine.high %v942_v13, %v944_v39  ;;  %v11066_v40 = vcombine.low %v942_v13, %v944_v39 }
 0x26f   : > { %2581 = vmatprep.subr.bf16.mxu0 %v11067_v17  ;;  %11150 = vmatmul.mubr.msk.bf16.vlgmr.msra.gmra.mxu1 %vm449_vm0, %v13575_v7  ;;  %v13631_v17 = vshrl.u32 %v17090_v45, 7 }
 0x270   : > { %2582 = vmatpush2.bf16.msra.mxu0 %v11066_v40  ;;  %11779 = vmatpush3.bf16.msra.mxu1 %v12050_v0  ;;  %v12082_v23 = vld [vmem:[#allocation6 + $0x248] ss:$36 sps:$4 sm:$0xff]  }
 0x271   : > { %11780 = vmatprep.subr.bf16.mxu1 %v12051_v56  ;;  %11806 = vmatprep.subr.bf16.mxu0 %v12052_v49  ;;  %17240 = vst [vmem:[#allocation11_spill] sm:$0xff] %v13631_v17 }
 0x272   : > { %2699 = vmatprep.mubr.bf16.mxu1 %v13329_v37 }
 0x273   : > { %2584 = vmatmul.mubr.bf16.vlgmr.msra.gmra.mxu0 %v13584_v4 }
 0x274   : > { %11781 = vmatpush3.bf16.msra.mxu1 %v12056_v16  ;;  %11807 = vmatpush3.bf16.msra.mxu0 %v12057_v41 }
 0x275   : > { %11782 = vmatprep.subr.bf16.mxu1 %v12058_v48  ;;  %11808 = vmatprep.subr.bf16.mxu0 %v12059_v63  ;;  %v17092_v63 = vsub.s32 1, %v13631_v17 }
 0x276   : > { %2593 = vmatprep.mubr.bf16.mxu0 %v13589_v47 }
 0x277   : > { %11151 = vmatmul.mubr.msk.bf16.gmra.mxu1 %vm449_vm0, %v13596_v29 }
 0x278   : > { %11783 = vmatpush3.bf16.msra.mxu1 %v12060_v61  ;;  %11809 = vmatpush3.bf16.msra.mxu0 %v12061_v35  ;;  %v13640_v61 = vsub.s32 0, %v13631_v17 }
 0x279   : > { %11784 = vmatprep.subr.bf16.mxu1 %v12062_v10  ;;  %11810 = vmatprep.subr.bf16.mxu0 %v12063_v30 }
 0x27a   : > { %2742 = vmatprep.mubr.bf16.mxu1 %v12486_v53  ;;  %17241 = vst [vmem:[#allocation12_spill] sm:$0xff] %v13640_v61 }
 0x27b   : > { %2594 = vmatmul.mubr.bf16.gmra.mxu0 %v12066_v62 }
 0x27c   : > { %11785 = vmatpush3.bf16.msra.mxu1 %v12067_v38  ;;  %11811 = vmatpush3.bf16.msra.mxu0 %v12068_v51  ;;  %v13646_v38 = vld [vmem:[%s17081_s7] ss:$2 sm:$0x7] }
 0x27d   : > { %11786 = vmatprep.subr.bf16.mxu1 %v12070_v57  ;;  %11812 = vmatprep.subr.bf16.mxu0 %v12071_v6  ;;  %v2945_v6 = vrot.slane %v13646_v38, %v17092_v63 }
 0x27e   : > { %2791 = vmatprep.mubr.bf16.mxu0 %v12487_v59 }
 0x280   : > { %11787 = vmatpush3.bf16.msra.mxu1 %v12072_v8  ;;  %11813 = vmatpush3.bf16.msra.mxu0 %v12073_v58 }
 0x281   : > { %11788 = vmatprep.subr.bf16.mxu1 %v12074_v14  ;;  %11814 = vmatprep.subr.bf16.mxu0 %v12075_v31  ;;  %v2941_v14 = vrot.slane %v13646_v38, %v13640_v61 }
 0x284   : > { %11789 = vmatpush3.bf16.msra.mxu1 %v12076_v9  ;;  %11815 = vmatpush3.bf16.msra.mxu0 %v12077_v36 }
 0x285   : > { %11790 = vmatprep.subr.bf16.mxu1 %v12078_v25  ;;  %11816 = vmatprep.subr.bf16.mxu0 %v12079_v28 }
 0x288   : > { %11791 = vmatpush3.bf16.msra.mxu1 %v12080_v19  ;;  %11817 = vmatpush3.bf16.msra.mxu0 %v12081_v34 }
 0x289   : > { %11792 = vmatprep.subr.bf16.mxu1 %v12082_v23  ;;  %11818 = vmatprep.subr.bf16.mxu0 %v12083_v43 }
 0x28c   : > { %11793 = vmatpush3.bf16.msra.mxu1 %v12084_v54  ;;  %11819 = vmatpush3.bf16.msra.mxu0 %v12085_v52 }
 0x28d   : > { %11820 = vmatprep.subr.bf16.mxu0 %v12086_v12  ;;  %11913 = vmatprep.subr.bf16.mxu1 %v12087_v21 }
 0x28f   : > { %2743 = vmatmul.mubr.bf16.vlgmr.msra.gmra.mxu1 %v13584_v4 }
 0x290   : > { %11821 = vmatpush3.bf16.msra.mxu0 %v12088_v20  ;;  %11914 = vmatpush3.bf16.msra.mxu1 %v12087_v21 }
 0x291   : > { %11915 = vmatprep.subr.bf16.mxu1 %v12089_v24  ;;  %2750 = vmatprep.mubr.bf16.mxu1 %v13589_v47 }
 0x293   : > { %2792 = vmatmul.mubr.bf16.vlgmr.msra.gmra.mxu0 %v13527_v3 }
 0x294   : > { %11916 = vmatpush3.bf16.msra.mxu1 %v12089_v24  ;;  %2799 = vmatprep.mubr.bf16.mxu0 %v13535_v50 }
 0x295   : > { %11917 = vmatprep.subr.bf16.mxu1 %v12090_v60 }
 0x297   : > { %2751 = vmatmul.mubr.bf16.gmra.mxu1 %v12066_v62 }
 0x298   : > { %11918 = vmatpush3.bf16.msra.mxu1 %v12090_v60  ;;  %11921 = vmatprep.mubr.msk.bf16.mxu1 %vm449_vm0, %v13575_v7  ;;  %v13620_v50 = vpop.permute.xlu1 %2874  ;;  %v13624_v1 = vpop.permute.xlu0 %2869 }
 0x299   : > { %11919 = vmatprep.subr.bf16.mxu1 %v12091_v46 }
 0x29b   : > { %2800 = vmatmul.mubr.bf16.gmra.mxu0 %v13561_v11 }
 0x29c   : > { %11920 = vmatpush3.bf16.msra.mxu1 %v12091_v46 }
 0x29d   : > { %v13622_v2 = vpop.permute.xlu1 %2898 }
 0x29e   : > { %v13626_v44 = vpop.permute.xlu0 %2902 }
 0x29f   : > { %11922 = vmatmul.mubr.msk.bf16.vlgmr.msra.gmra.mxu1 %vm449_vm0, %v13596_v29 }
 0x2a0   : > { %4064 = vmatprep.mubr.bf16.mxu1 %v13329_v37 }
 0x2a2   : > { %v13628_v55 = vpop.permute.xlu1 %2859 }
 0x2a3   : > { %v13633_v56 = vpop.permute.xlu0 %2890 }
 0x2a6   : > { %v13635_v49 = vpop.permute.xlu1 %2864 }
 0x2ab   : > { %v13654_v59 = vpop.permute.xlu1 %2894 }
 0x31f   : > { %v2638_v3 = vpop.f32.mrf.mxu1 }
 0x321   : > { %v2640_v26 = vpop.f32.mrf.mxu1 }
 0x323   : > { %v2642_v33 = vpop.f32.mrf.mxu1 }
 0x325   : > { %v2644_v27 = vpop.f32.mrf.mxu1 }
 0x327   : > { %v2648_v32 = vpop.f32.mrf.mxu1 }
 0x329   : > { %v2650_v15 = vpop.f32.mrf.mxu1 }
 0x32b   : > { %v2652_v18 = vpop.f32.mrf.mxu1 }
 0x32d   : > { %v2654_v11 = vpop.f32.mrf.mxu1 }
 0x32f   : > { %v2691_v42 = vpop.f32.mrf.mxu1 }
 0x331   : > { %v2693_v37 = vpop.f32.mrf.mxu1 }
 0x333   : > { %v2585_v22 = vpop.f32.mrf.mxu0  ;;  %v2695_v5 = vpop.f32.mrf.mxu1 }
 0x334   : > { %v2639_v7 = vadd.f32 %v2638_v3, %v2585_v22 }
 0x335   : > { %v2587_v13 = vpop.f32.mrf.mxu0  ;;  %v2697_v39 = vpop.f32.mrf.mxu1 }
 0x336   : > { %v2692_v40 = vadd.f32 %v2691_v42, %v2639_v7  ;;  %v2641_v0 = vadd.f32 %v2640_v26, %v2587_v13 }
 0x337   : > { %v2589_v4 = vpop.f32.mrf.mxu0  ;;  %v2701_v16 = vpop.f32.mrf.mxu1 }
 0x338   : > { %v2694_v41 = vadd.f32 %v2693_v37, %v2641_v0  ;;  %v2877_v47 = vmul.f32 %v13628_v55, %v2692_v40  ;;  %v2643_v48 = vadd.f32 %v2642_v33, %v2589_v4 }
 0x339   : > { %v2591_v29 = vpop.f32.mrf.mxu0  ;;  %v2703_v35 = vpop.f32.mrf.mxu1 }
 0x33a   : > { %v2878_v10 = vmul.f32 %v13628_v55, %v2694_v41  ;;  %v2696_v30 = vadd.f32 %v2695_v5, %v2643_v48  ;;  %v2645_v62 = vadd.f32 %v2644_v27, %v2591_v29  ;;  %v2905_v51 = vadd.f32 %v13633_v56, %v2877_v47 }
 0x33b   : > { %v2595_v53 = vpop.f32.mrf.mxu0  ;;  %v2705_v25 = vpop.f32.mrf.mxu1 }
 0x33c   : > { %v2698_v57 = vadd.f32 %v2697_v39, %v2645_v62  ;;  %v2906_v8 = vadd.f32 %v13633_v56, %v2878_v10  ;;  %v2880_v58 = vmul.f32 %v13635_v49, %v2696_v30  ;;  %v2917_v31 = vmax.f32 %v2905_v51, 0.0 }
 0x33d   : > { %v2649_v9 = vadd.f32 %v2648_v32, %v2595_v53  ;;  %v2597_v36 = vpop.f32.mrf.mxu0  ;;  %v2707_v26 = vpop.f32.mrf.mxu1 }
 0x33e   : > { %v2918_v28 = vmax.f32 %v2906_v8, 0.0  ;;  %v2881_v19 = vmul.f32 %v13635_v49, %v2698_v57  ;;  %v2651_v34 = vadd.f32 %v2650_v15, %v2597_v36  ;;  %v2908_v43 = vadd.f32 %v13654_v59, %v2880_v58 }
 0x33f   : > { %v2702_v23 = vadd.f32 %v2701_v16, %v2649_v9  ;;  %v2599_v54 = vpop.f32.mrf.mxu0  ;;  %v2953_v24 = vmul.f32 %v2941_v14, %v2917_v31 }
 0x340   : > { %v2954_v52 = vmul.f32 %v2945_v6, %v2918_v28  ;;  %v2909_v12 = vadd.f32 %v13654_v59, %v2881_v19  ;;  %v2653_v21 = vadd.f32 %v2652_v18, %v2599_v54  ;;  %v2704_v20 = vadd.f32 %v2703_v35, %v2651_v34 }
 0x341   : > { %v2883_v60 = vmul.f32 %v13624_v1, %v2702_v23  ;;  %v2920_v46 = vmax.f32 %v2908_v43, 0.0  ;;  %v2601_v3 = vpop.f32.mrf.mxu0 }
 0x342   : > { %v2921_v33 = vmax.f32 %v2909_v12, 0.0  ;;  %v2884_v27 = vmul.f32 %v13624_v1, %v2704_v20  ;;  %v2655_v32 = vadd.f32 %v2654_v11, %v2601_v3  ;;  %v2706_v15 = vadd.f32 %v2705_v25, %v2653_v21 }
 0x343   : > { %v2911_v42 = vadd.f32 %v13622_v2, %v2883_v60  ;;  %v2956_v37 = vmul.f32 %v2941_v14, %v2920_v46  ;;  %v11732_v22 = vpack.c.bf16 %v2954_v52, %v2953_v24  ;;  %v17091_v3 = vsub.s32 2, %v13631_v17 }
 0x344   : > { %v2957_v5 = vmul.f32 %v2945_v6, %v2921_v33  ;;  %v2912_v7 = vadd.f32 %v13622_v2, %v2884_v27  ;;  %v2886_v18 = vmul.f32 %v13620_v50, %v2706_v15  ;;  %v2708_v13 = vadd.f32 %v2707_v26, %v2655_v32 }
 0x345   : > { %v2923_v39 = vmax.f32 %v2911_v42, 0.0  ;;  %2997 = vrot.lane.b32.xlu0 %v11732_v22, %s12555_s18 }
 0x346   : > { %v2924_v40 = vmax.f32 %v2912_v7, 0.0  ;;  %v2914_v0 = vadd.f32 %v13626_v44, %v2886_v18  ;;  %v2887_v11 = vmul.f32 %v13620_v50, %v2708_v13  ;;  %v11734_v4 = vpack.c.bf16 %v2957_v5, %v2956_v37 }
 0x347   : > { %v2959_v16 = vmul.f32 %v2941_v14, %v2923_v39  ;;  %v2949_v13 = vrot.slane %v13646_v38, %v17091_v3 }
 0x348   : > { %v2960_v41 = vmul.f32 %v2945_v6, %v2924_v40  ;;  %v2926_v47 = vmax.f32 %v2914_v0, 0.0  ;;  %v2915_v48 = vadd.f32 %v13626_v44, %v2887_v11  ;;  %3001 = vrot.lane.b32.xlu1 %v11734_v4, %s12555_s18 }
 0x34a   : > { %v2927_v29 = vmax.f32 %v2915_v48, 0.0  ;;  %v11736_v35 = vpack.c.bf16 %v2960_v41, %v2959_v16  ;;  %v2962_v10 = vmul.f32 %v2941_v14, %v2926_v47 }
 0x34c   : > { %v2963_v30 = vmul.f32 %v2945_v6, %v2927_v29  ;;  %3005 = vrot.lane.b32.xlu0 %v11736_v35, %s12555_s18 }
 0x34e   : > { %v11738_v62 = vpack.c.bf16 %v2963_v30, %v2962_v10 }
 0x34f   : > { %v11794_v51 = vpop.f32.mrf.mxu1 }
 0x350   : > { %3009 = vrot.lane.b32.xlu1 %v11738_v62, %s12555_s18 }
 0x351   : > { %v11795_v53 = vpop.f32.mrf.mxu1 }
 0x352   : > { %v11796_v43 = vadd.f32 %v11795_v53, %v11794_v51 }
 0x353   : > { %v11797_v57 = vpop.f32.mrf.mxu1  ;;  %v11822_v8 = vpop.f32.mrf.mxu0 }
 0x355   : > { %v11798_v58 = vpop.f32.mrf.mxu1  ;;  %v11823_v31 = vpop.f32.mrf.mxu0 }
 0x356   : > { %v11824_v23 = vadd.f32 %v11823_v31, %v11822_v8  ;;  %v11799_v46 = vadd.f32 %v11798_v58, %v11797_v57 }
 0x357   : > { %v11800_v9 = vpop.f32.mrf.mxu1  ;;  %v11825_v36 = vpop.f32.mrf.mxu0 }
 0x358   : > { %v2794_v60 = vadd.f32 %v11824_v23, %v11796_v43 }
 0x359   : > { %v11801_v25 = vpop.f32.mrf.mxu1  ;;  %v11826_v28 = vpop.f32.mrf.mxu0 }
 0x35a   : > { %v11802_v54 = vadd.f32 %v11801_v25, %v11800_v9  ;;  %v11827_v20 = vadd.f32 %v11826_v28, %v11825_v36 }
 0x35b   : > { %v11803_v19 = vpop.f32.mrf.mxu1  ;;  %v11828_v34 = vpop.f32.mrf.mxu0 }
 0x35c   : > { %v2797_v18 = vadd.f32 %v11827_v20, %v11799_v46 }
 0x35d   : > { %v11804_v14 = vpop.f32.mrf.mxu1  ;;  %v11829_v6 = vpop.f32.mrf.mxu0 }
 0x35e   : > { %v11830_v52 = vadd.f32 %v11829_v6, %v11828_v34  ;;  %v11805_v27 = vadd.f32 %v11804_v14, %v11803_v19 }
 0x35f   : > { %v11831_v12 = vpop.f32.mrf.mxu0  ;;  %v11923_v21 = vpop.f32.mrf.mxu1 }
 0x360   : > { %v2802_v24 = vadd.f32 %v11830_v52, %v11802_v54 }
 0x361   : > { %v11832_v26 = vpop.f32.mrf.mxu0  ;;  %v2842_v33 = vpop.f32.mrf.mxu1 }
 0x362   : > { %v2851_v32 = vadd.f32 %v11923_v21, %v2802_v24  ;;  %v11833_v15 = vadd.f32 %v11832_v26, %v11831_v12  ;;  %v2843_v42 = vadd.f32 %v2842_v33, %v2794_v60 }
 0x363   : > { %v11924_v37 = vpop.f32.mrf.mxu1 }
 0x364   : > { %v2885_v22 = vmul.f32 %v13624_v1, %v2851_v32  ;;  %v2879_v5 = vmul.f32 %v13628_v55, %v2843_v42  ;;  %v2805_v7 = vadd.f32 %v11833_v15, %v11805_v27 }
 0x365   : > { %v2845_v39 = vpop.f32.mrf.mxu1 }
 0x366   : > { %v2913_v40 = vadd.f32 %v13622_v2, %v2885_v22  ;;  %v2907_v0 = vadd.f32 %v13633_v56, %v2879_v5  ;;  %v2854_v11 = vadd.f32 %v11924_v37, %v2805_v7  ;;  %v2846_v4 = vadd.f32 %v2845_v39, %v2797_v18 }
 0x368   : > { %v2925_v16 = vmax.f32 %v2913_v40, 0.0  ;;  %v2919_v41 = vmax.f32 %v2907_v0, 0.0  ;;  %v2888_v47 = vmul.f32 %v13620_v50, %v2854_v11  ;;  %v2882_v1 = vmul.f32 %v13635_v49, %v2846_v4 }
 0x36a   : > { %v2961_v55 = vmul.f32 %v2949_v13, %v2925_v16  ;;  %v2916_v48 = vadd.f32 %v13626_v44, %v2888_v47  ;;  %v2910_v29 = vadd.f32 %v13654_v59, %v2882_v1  ;;  %v2955_v35 = vmul.f32 %v2949_v13, %v2919_v41 }
 0x36c   : > { %v2928_v38 = vmax.f32 %v2916_v48, 0.0  ;;  %v2922_v10 = vmax.f32 %v2910_v29, 0.0  ;;  %v11737_v30 = vpack.c.bf16 %v2961_v55, %v2961_v55  ;;  %v11733_v62 = vpack.c.bf16 %v2955_v35, %v2955_v35 }
 0x36e   : > { %v2964_v2 = vmul.f32 %v2949_v13, %v2928_v38  ;;  %3007 = vrot.lane.b32.xlu0 %v11737_v30, %s12555_s18  ;;  %v2958_v56 = vmul.f32 %v2949_v13, %v2922_v10 }
 0x370   : > { %v11739_v51 = vpack.c.bf16 %v2964_v2, %v2964_v2  ;;  %v11735_v50 = vpack.c.bf16 %v2958_v56, %v2958_v56 }
 0x372   : > { %2999 = vrot.lane.b32.xlu0 %v11733_v62, %s12555_s18  ;;  %3011 = vrot.lane.b32.xlu1 %v11739_v51, %s12555_s18 }
 0x376   : > { %3003 = vrot.lane.b32.xlu1 %v11735_v50, %s12555_s18  ;;  %s345_s18 = scalar_lea.vmem %s17083_s9, %s11941_s27 }
 0x3b7   : > { %v2998_v44 = vpop.permute.xlu0 %2997 }
 0x3b8   : > { %v3013_v59 = vrot.slane %v2998_v44, 4 }
 0x3ba   : > { %v3018_v53 = vsel %vm3017_vm14, %v3013_v59, %v2998_v44  ;;  %v3002_v57 = vpop.permute.xlu1 %3001 }
 0x3bb   : > { %3037 = vst.msk [vmem:[#allocation3] sm:$0xff] %vm13690_vm15, %v3018_v53  ;;  %v3014_v8 = vrot.slane %v3002_v57, 4 }
 0x3bd   : > { %v3020_v58 = vsel %vm3017_vm14, %v3014_v8, %v3002_v57 }
 0x3be   : > { %3040 = vst.msk [vmem:[#allocation3 + $0xc] sm:$0xff] %vm13690_vm15, %v3020_v58  ;;  %v3006_v31 = vpop.permute.xlu0 %3005 }
 0x3bf   : > { %v3015_v9 = vrot.slane %v3006_v31, 4 }
 0x3c1   : > { %v3022_v36 = vsel %vm3017_vm14, %v3015_v9, %v3006_v31 }
 0x3c2   : > { %v13701_v25 = vld [vmem:[#allocation3] sm:$0xff]  ;;  %3042 = vst.msk [vmem:[#allocation3 + $0x18] sm:$0xff] %vm13690_vm15, %v3022_v36  ;;  %v3010_v28 = vpop.permute.xlu1 %3009 }
 0x3c3   : > { %3206 = vrot.lane.b32.xlu0 %v13701_v25, %s12551_s14  ;;  %v3016_v19 = vrot.slane %v3010_v28, 4 }
 0x3c5   : > { %v13707_v34 = vld [vmem:[#allocation3 + $0xc] sm:$0xff]  ;;  %v3024_v23 = vsel %vm3017_vm14, %v3016_v19, %v3010_v28 }
 0x3c6   : > { %3044 = vst.msk [vmem:[#allocation3 + $0x24] sm:$0xff] %vm13690_vm15, %v3024_v23  ;;  %3466 = vrot.lane.b32.xlu1 %v13707_v34, %s12549_s12  ;;  %vm6502_vm15 = vcmask 769024  }
 0x3c7   : > { %3142 = vrot.lane.b32.xlu0 %v13701_v25, %s12553_s16 }
 0x3c9   : > { %v13738_v20 = vld [vmem:[#allocation3 + $0x18] sm:$0xff] }
 0x3cb   : > { %3526 = vrot.lane.b32.xlu0 %v13701_v25, %s12552_s15 }
 0x3cd   : > { %v13718_v14 = vld [vmem:[#allocation3 + $0x24] sm:$0xff] }
 0x3ce   : > { %3474 = vrot.lane.b32.xlu1 %v13718_v14, %s12549_s12 }
 0x3cf   : > { %3078 = vrot.lane.b32.xlu0 %v13701_v25, %s12548_s11 }
 0x3d3   : > { %3462 = vrot.lane.b32.xlu0 %v13701_v25, %s12549_s12 }
 0x3d7   : > { %3210 = vrot.lane.b32.xlu0 %v13707_v34, %s12551_s14 }
 0x3db   : > { %3146 = vrot.lane.b32.xlu0 %v13707_v34, %s12553_s16 }
 0x3df   : > { %3530 = vrot.lane.b32.xlu0 %v13707_v34, %s12552_s15 }
 0x3e0   : > { %v3008_v6 = vpop.permute.xlu0 %3007 }
 0x3e1   : > { %v3023_v43 = vsel %vm3017_vm14, %v3015_v9, %v3008_v6 }
 0x3e2   : > { %3043 = vst.msk [vmem:[#allocation3 + $0x20] sm:$0xf] %vm3038_vm1, %v3023_v43 }
 0x3e3   : > { %3082 = vrot.lane.b32.xlu0 %v13707_v34, %s12548_s11 }
 0x3e4   : > { %v3000_v54 = vpop.permute.xlu0 %2999  ;;  %v3012_v52 = vpop.permute.xlu1 %3011 }
 0x3e5   : > { %v3019_v12 = vsel %vm3017_vm14, %v3013_v59, %v3000_v54  ;;  %v3025_v21 = vsel %vm3017_vm14, %v3016_v19, %v3012_v52  ;;  %v13837_v19 = vld [vmem:[%s17076_s2 + $0x4] ss:$12 sps:$4 sm:$0xff]  }
 0x3e6   : > { %3039 = vst.msk [vmem:[#allocation3 + $0x8] sm:$0xf] %vm3038_vm1, %v3019_v12  ;;  %3045 = vst.msk [vmem:[#allocation3 + $0x2c] sm:$0xf] %vm3038_vm1, %v3025_v21  ;;  %4011 = vmatprep.mubr.bf16.mxu0 %v13837_v19 }
 0x3e7   : > { %3214 = vrot.lane.b32.xlu0 %v13738_v20, %s12551_s14 }
 0x3e8   : > { %v3004_v24 = vpop.permute.xlu1 %3003 }
 0x3e9   : > { %v3051_v60 = vld [vmem:[#allocation3 + $0x20] sm:$0xf]  ;;  %v3021_v46 = vsel %vm3017_vm14, %v3014_v8, %v3004_v24  ;;  %vm6675_vm14 = vcmask 760832  }
 0x3ea   : > { %v3195_v26 = vld [vmem:[#allocation3 + $0x20] sm:$0xf]  ;;  %3059 = vst.msk [vmem:[#allocation6 + $0x50] sm:$0xf] %vm714_vm2, %v3051_v60 }
 0x3eb   : > { %3041 = vst.msk [vmem:[#allocation3 + $0x14] sm:$0xf] %vm3038_vm1, %v3021_v46  ;;  %3216 = vrot.lane.b32.xlu1 %v3195_v26, %s12551_s14  ;;  %3150 = vrot.lane.b32.xlu0 %v13738_v20, %s12553_s16  ;;  %v3131_v32 = vld [vmem:[#allocation3 + $0x20] sm:$0xf]  ;;  %v12556_v46 = vmov 2   ;;  %v12488_v26 = vld [vmem:[%s17082_s8 + $0x8] sm:$0xff] }
 0x3ec   : > { %v3515_v42 = vld [vmem:[#allocation3 + $0x20] sm:$0xf]  ;;  %11998 = vset.pattern.permute.xlu1 %v12556_v46  ;;  %11997 = vset.pattern.permute.xlu0 %v12556_v46  ;;  %vm12566_vm1 = vmmov 0  }
 0x3ed   : > { %v3047_v33 = vld [vmem:[#allocation3 + $0x8] sm:$0xf]  ;;  %v3053_v27 = vld [vmem:[#allocation3 + $0x2c] sm:$0xf]  ;;  %v3067_v37 = vld [vmem:[#allocation3 + $0x20] sm:$0xf] }
 0x3ee   : > { %3055 = vst.msk [vmem:[#allocation6 + $0x8] sm:$0xf] %vm714_vm2, %v3047_v33  ;;  %3061 = vst.msk [vmem:[#allocation6 + $0x74] sm:$0xf] %vm714_vm2, %v3053_v27  ;;  %v3191_v22 = vld [vmem:[#allocation3 + $0x8] sm:$0xf] }
 0x3ef   : > { %3152 = vrot.lane.b32.xlu1 %v3131_v32, %s12553_s16  ;;  %3534 = vrot.lane.b32.xlu0 %v13738_v20, %s12552_s15  ;;  %v3127_v5 = vld [vmem:[#allocation3 + $0x8] sm:$0xf]  ;;  %v3197_v13 = vld [vmem:[#allocation3 + $0x2c] sm:$0xf]  ;;  %v3451_v40 = vld [vmem:[#allocation3 + $0x20] sm:$0xf] }
 0x3f0   : > { %v3511_v7 = vld [vmem:[#allocation3 + $0x8] sm:$0xf]  ;;  %v3133_v39 = vld [vmem:[#allocation3 + $0x2c] sm:$0xf]  ;;  %v3387_v11 = vld [vmem:[#allocation3 + $0x20] sm:$0xf] }
 0x3f1   : > { %v3063_v18 = vld [vmem:[#allocation3 + $0x8] sm:$0xf]  ;;  %v3517_v0 = vld [vmem:[#allocation3 + $0x2c] sm:$0xf]  ;;  %v3323_v16 = vld [vmem:[#allocation3 + $0x20] sm:$0xf] }
 0x3f2   : > { %v3049_v15 = vld [vmem:[#allocation3 + $0x14] sm:$0xf]  ;;  %v3069_v4 = vld [vmem:[#allocation3 + $0x2c] sm:$0xf]  ;;  %v3447_v47 = vld [vmem:[#allocation3 + $0x8] sm:$0xf] }
 0x3f3   : > { %3057 = vst.msk [vmem:[#allocation6 + $0x2c] sm:$0xf] %vm714_vm2, %v3049_v15  ;;  %3536 = vrot.lane.b32.xlu1 %v3515_v42, %s12552_s15  ;;  %3086 = vrot.lane.b32.xlu0 %v13738_v20, %s12548_s11  ;;  %v3453_v41 = vld [vmem:[#allocation3 + $0x2c] sm:$0xf]  ;;  %v3383_v55 = vld [vmem:[#allocation3 + $0x8] sm:$0xf] }
 0x3f4   : > { %v3389_v1 = vld [vmem:[#allocation3 + $0x2c] sm:$0xf]  ;;  %v3319_v29 = vld [vmem:[#allocation3 + $0x8] sm:$0xf]  ;;  %v3193_v35 = vld [vmem:[#allocation3 + $0x14] sm:$0xf] }
 0x3f5   : > { %v3325_v48 = vld [vmem:[#allocation3 + $0x2c] sm:$0xf]  ;;  %v3129_v38 = vld [vmem:[#allocation3 + $0x14] sm:$0xf]  ;;  %v3259_v10 = vld [vmem:[#allocation3 + $0x20] sm:$0xf] }
 0x3f6   : > { %v3513_v30 = vld [vmem:[#allocation3 + $0x14] sm:$0xf]  ;;  %v3255_v2 = vld [vmem:[#allocation3 + $0x8] sm:$0xf]  ;;  %v3261_v57 = vld [vmem:[#allocation3 + $0x2c] sm:$0xf] }
 0x3f7   : > { %3088 = vrot.lane.b32.xlu1 %v3067_v37, %s12548_s11  ;;  %3470 = vrot.lane.b32.xlu0 %v13738_v20, %s12549_s12  ;;  %v3065_v62 = vld [vmem:[#allocation3 + $0x14] sm:$0xf]  ;;  %v12489_v33 = vld [vmem:[%s17082_s8] sm:$0xff]  ;;  %v12557_v15 = vmov 3  }
 0x3f8   : > { %v3449_v50 = vld [vmem:[#allocation3 + $0x14] sm:$0xf] }
 0x3f9   : > { %v3385_v59 = vld [vmem:[#allocation3 + $0x14] sm:$0xf] }
 0x3fa   : > { %v3321_v58 = vld [vmem:[#allocation3 + $0x14] sm:$0xf] }
 0x3fb   : > { %3208 = vrot.lane.b32.xlu1 %v3191_v22, %s12551_s14  ;;  %3406 = vrot.lane.b32.xlu0 %v13738_v20, %s12550_s13  ;;  %v3257_v36 = vld [vmem:[#allocation3 + $0x14] sm:$0xf] }
 0x3fc   : > { %v12490_v22 = vld [vmem:[%s17082_s8 + $0x10] sm:$0xff] }
 0x3ff   : > { %3144 = vrot.lane.b32.xlu1 %v3127_v5, %s12553_s16  ;;  %3218 = vrot.lane.b32.xlu0 %v13718_v14, %s12551_s14 }
 0x403   : > { %3528 = vrot.lane.b32.xlu1 %v3511_v7, %s12552_s15  ;;  %3154 = vrot.lane.b32.xlu0 %v13718_v14, %s12553_s16 }
 0x407   : > { %3080 = vrot.lane.b32.xlu1 %v3063_v18, %s12548_s11  ;;  %3538 = vrot.lane.b32.xlu0 %v13718_v14, %s12552_s15 }
 0x40b   : > { %3220 = vrot.lane.b32.xlu1 %v3197_v13, %s12551_s14  ;;  %3090 = vrot.lane.b32.xlu0 %v13718_v14, %s12548_s11  ;;  %v12491_v13 = vld [vmem:[%s17082_s8 + $0x18] sm:$0xff] }
 0x40f   : > { %3156 = vrot.lane.b32.xlu1 %v3133_v39, %s12553_s16  ;;  %3472 = vrot.lane.b32.xlu0 %v3451_v40, %s12549_s12 }
 0x413   : > { %3540 = vrot.lane.b32.xlu1 %v3517_v0, %s12552_s15  ;;  %3408 = vrot.lane.b32.xlu0 %v3387_v11, %s12550_s13 }
 0x417   : > { %3092 = vrot.lane.b32.xlu1 %v3069_v4, %s12548_s11  ;;  %3344 = vrot.lane.b32.xlu0 %v3323_v16, %s12546_s28 }
 0x41b   : > { %3476 = vrot.lane.b32.xlu1 %v3453_v41, %s12549_s12  ;;  %3464 = vrot.lane.b32.xlu0 %v3447_v47, %s12549_s12 }
 0x41f   : > { %3412 = vrot.lane.b32.xlu1 %v3389_v1, %s12550_s13  ;;  %3400 = vrot.lane.b32.xlu0 %v3383_v55, %s12550_s13 }
 0x423   : > { %3348 = vrot.lane.b32.xlu1 %v3325_v48, %s12546_s28  ;;  %3336 = vrot.lane.b32.xlu0 %v3319_v29, %s12546_s28 }
 0x427   : > { %3212 = vrot.lane.b32.xlu1 %v3193_v35, %s12551_s14  ;;  %3398 = vrot.lane.b32.xlu0 %v13701_v25, %s12550_s13 }
 0x42b   : > { %3148 = vrot.lane.b32.xlu1 %v3129_v38, %s12553_s16  ;;  %3280 = vrot.lane.b32.xlu0 %v3259_v10, %s12547_s29 }
 0x42f   : > { %3532 = vrot.lane.b32.xlu1 %v3513_v30, %s12552_s15  ;;  %3342 = vrot.lane.b32.xlu0 %v13738_v20, %s12546_s28 }
 0x433   : > { %3410 = vrot.lane.b32.xlu1 %v13718_v14, %s12550_s13  ;;  %3272 = vrot.lane.b32.xlu0 %v3255_v2, %s12547_s29 }
 0x435   : > { %v13800_v56 = vpop.permute.xlu0 %3206 }
 0x437   : > { %3084 = vrot.lane.b32.xlu1 %v3065_v62, %s12548_s11  ;;  %3334 = vrot.lane.b32.xlu0 %v13701_v25, %s12546_s28 }
 0x438   : > { %v13832_v28 = vpop.permute.xlu1 %3466 }
 0x439   : > { %v13805_v51 = vpop.permute.xlu0 %3142 }
 0x43b   : > { %3468 = vrot.lane.b32.xlu1 %v3449_v50, %s12549_s12  ;;  %3278 = vrot.lane.b32.xlu0 %v13738_v20, %s12547_s29  ;;  %s12567_s12 = smov 35  }
 0x43d   : > { %v13810_v44 = vpop.permute.xlu0 %3526 }
 0x43f   : > { %3402 = vrot.lane.b32.xlu1 %v13707_v34, %s12550_s13  ;;  %3270 = vrot.lane.b32.xlu0 %v13701_v25, %s12547_s29 }
 0x440   : > { %v13844_v6 = vpop.permute.xlu1 %3474 }
 0x441   : > { %v13816_v49 = vpop.permute.xlu0 %3078 }
 0x443   : > { %3404 = vrot.lane.b32.xlu1 %v3385_v59, %s12550_s13  ;;  %4184 = vperm.xlu0 %11997, %v12489_v33  }
 0x445   : > { %v13819_v53 = vpop.permute.xlu0 %3462 }
 0x447   : > { %3284 = vrot.lane.b32.xlu1 %v3261_v57, %s12547_s29  ;;  %12000 = vset.pattern.permute.xlu0 %v12557_v15 }
 0x448   : > { %4216 = vperm.xlu0 %12000, %v12488_v26  }
 0x449   : > { %v13822_v8 = vpop.permute.xlu0 %3210 }
 0x44b   : > { %3340 = vrot.lane.b32.xlu1 %v3321_v58, %s12546_s28 }
 0x44c   : > { %4220 = vperm.xlu0 %12000, %v12490_v22  }
 0x44d   : > { %v13825_v31 = vpop.permute.xlu0 %3146 }
 0x44f   : > { %3346 = vrot.lane.b32.xlu1 %v13718_v14, %s12546_s28 }
 0x451   : > { %v13829_v9 = vpop.permute.xlu0 %3530 }
 0x453   : > { %3276 = vrot.lane.b32.xlu1 %v3257_v36, %s12547_s29 }
 0x455   : > { %v13839_v23 = vpop.permute.xlu0 %3082 }
 0x457   : > { %3338 = vrot.lane.b32.xlu1 %v13707_v34, %s12546_s28 }
 0x459   : > { %v3215_v43 = vpop.permute.xlu0 %3214 }
 0x45a   : > { %v3226_v4 = vrot.slane %v3215_v43, 4 }
 0x45b   : > { %3282 = vrot.lane.b32.xlu1 %v13718_v14, %s12547_s29 }
 0x45d   : > { %v3217_v54 = vpop.permute.xlu1 %3216  ;;  %v13848_v52 = vpop.permute.xlu0 %3150 }
 0x45e   : > { %3251 = vst.msk [vmem:[#allocation6 + $0x200] sm:$0xf] %vm714_vm2, %v3217_v54  ;;  %v3227_v0 = vrot.slane %v3217_v54, 4 }
 0x45f   : > { %3274 = vrot.lane.b32.xlu1 %v13707_v34, %s12547_s29  ;;  %s12558_s29 = smov 94  }
 0x460   : > { %v3234_v41 = vsel %vm810_vm3, %v3226_v4, %v3227_v0 }
 0x461   : > { %v13853_v12 = vpop.permute.xlu1 %3152  ;;  %v13855_v21 = vpop.permute.xlu0 %3534  ;;  %v3235_v29 = vsel %vm1070_vm9, %v3215_v43, %v3234_v41 }
 0x462   : > { %3187 = vst.msk [vmem:[#allocation6 + $0x170] sm:$0xf] %vm714_vm2, %v13853_v12  ;;  %v3546_v50 = vrot.slane %v13855_v21, 4 }
 0x463   : > { %4188 = vperm.xlu1 %11998, %v12488_v26  }
 0x465   : > { %v3537_v24 = vpop.permute.xlu1 %3536  ;;  %v13859_v60 = vpop.permute.xlu0 %3086 }
 0x466   : > { %3571 = vst.msk [vmem:[#allocation6 + $0x4d0] sm:$0xf] %vm714_vm2, %v3537_v24  ;;  %v3547_v10 = vrot.slane %v3537_v24, 4 }
 0x467   : > { %11999 = vset.pattern.permute.xlu1 %v12557_v15 }
 0x468   : > { %4212 = vperm.xlu1 %11999, %v12489_v33   ;;  %v3554_v57 = vsel %vm810_vm3, %v3546_v50, %v3547_v10  ;;  %v3158_v50 = vrot.slane %v13805_v51, 4 }
 0x469   : > { %v13868_v27 = vpop.permute.xlu1 %3088  ;;  %v13870_v32 = vpop.permute.xlu0 %3470  ;;  %v3555_v24 = vsel %vm1715_vm10, %v13855_v21, %v3554_v57 }
 0x46a   : > { %3123 = vst.msk [vmem:[#allocation6 + $0xe0] sm:$0xf] %vm714_vm2, %v13868_v27 }
 0x46c   : > { %12001 = vset.pattern.permute.xlu1 %v12556_v46 }
 0x46d   : > { %v13874_v42 = vpop.permute.xlu1 %3208  ;;  %v13876_v37 = vpop.permute.xlu0 %3406  ;;  %4192 = vperm.xlu1 %12001, %v12490_v22  }
 0x46e   : > { %3247 = vst.msk [vmem:[#allocation6 + $0x1b8] sm:$0xf] %vm714_vm2, %v13874_v42  ;;  %v3223_v4 = vrot.slane %v13874_v42, 4  ;;  %v3162_v42 = vrot.slane %v13848_v52, 4 }
 0x471   : > { %v13883_v5 = vpop.permute.xlu1 %3144  ;;  %v3219_v7 = vpop.permute.xlu0 %3218  ;;  %4196 = vperm.xlu1 %12001, %v12491_v13  }
 0x472   : > { %3183 = vst.msk [vmem:[#allocation6 + $0x128] sm:$0xf] %vm714_vm2, %v13883_v5  ;;  %v3228_v47 = vrot.slane %v3219_v7, 4  ;;  %v3159_v57 = vrot.slane %v13883_v5, 4 }
 0x475   : > { %v13887_v18 = vpop.permute.xlu1 %3528  ;;  %v13892_v39 = vpop.permute.xlu0 %3154  ;;  %12002 = vset.pattern.permute.xlu1 %v12557_v15 }
 0x476   : > { %3567 = vst.msk [vmem:[#allocation6 + $0x488] sm:$0xf] %vm714_vm2, %v13887_v18  ;;  %4224 = vperm.xlu1 %12002, %v12491_v13  }
 0x479   : > { %v13896_v40 = vpop.permute.xlu1 %3080  ;;  %v3539_v11 = vpop.permute.xlu0 %3538 }
 0x47a   : > { %3119 = vst.msk [vmem:[#allocation6 + $0x98] sm:$0xf] %vm714_vm2, %v13896_v40  ;;  %v3548_v58 = vrot.slane %v3539_v11, 4 }
 0x47d   : > { %v3221_v16 = vpop.permute.xlu1 %3220  ;;  %v13901_v1 = vpop.permute.xlu0 %3090 }
 0x47e   : > { %v3229_v55 = vrot.slane %v3221_v16, 4  ;;  %3253 = vst.msk [vmem:[#allocation6 + $0x224] sm:$0xf] %vm714_vm2, %v3221_v16 }
 0x480   : > { %v3236_v48 = vsel %vm810_vm3, %v3228_v47, %v3229_v55  ;;  %v3222_v47 = vrot.slane %v13800_v56, 4  ;;  %v3163_v55 = vrot.slane %v13853_v12, 4  ;;  %v3160_v12 = vrot.slane %v13825_v31, 4 }
 0x481   : > { %v3237_v35 = vsel %vm1070_vm9, %v3219_v7, %v3236_v48  ;;  %v3157_v38 = vpop.permute.xlu1 %3156  ;;  %v13907_v30 = vpop.permute.xlu0 %3472  ;;  %v3164_v48 = vrot.slane %v13892_v39, 4 }
 0x482   : > { %3189 = vst.msk [vmem:[#allocation6 + $0x194] sm:$0xf] %vm714_vm2, %v3157_v38  ;;  %v11190_v2 = vcombine.high %v3235_v29, %v3237_v35  ;;  %v11189_v62 = vcombine.low %v3235_v29, %v3237_v35  ;;  %3507 = vst.msk [vmem:[#allocation6 + $0x440] sm:$0xf] %vm714_vm2, %v13907_v30  ;;  %v3165_v16 = vrot.slane %v3157_v38, 4  ;;  %v3224_v29 = vrot.slane %v13822_v8, 4 }
 0x483   : > { %v3230_v38 = vsel %vm810_vm3, %v3222_v47, %v3223_v4 }
 0x484   : > { %3979 = vmatprep.subr.bf16.mxu0 %v11190_v2  ;;  %v3172_v10 = vsel %vm810_vm3, %v3164_v48, %v3165_v16 }
 0x485   : > { %v3541_v59 = vpop.permute.xlu1 %3540  ;;  %3980 = vmatpush1.bf16.msra.mxu0 %v11189_v62  ;;  %v13914_v36 = vpop.permute.xlu0 %3408 }
 0x486   : > { %v3549_v43 = vrot.slane %v3541_v59, 4  ;;  %3573 = vst.msk [vmem:[#allocation6 + $0x4f4] sm:$0xf] %vm714_vm2, %v3541_v59  ;;  %3443 = vst.msk [vmem:[#allocation6 + $0x3b0] sm:$0xf] %vm714_vm2, %v13914_v36  ;;  %v3170_v59 = vsel %vm810_vm3, %v3162_v42, %v3163_v55 }
 0x488   : > { %v3556_v54 = vsel %vm810_vm3, %v3548_v58, %v3549_v43  ;;  %v3231_v43 = vsel %vm1070_vm9, %v13800_v56, %v3230_v38  ;;  %v3542_v56 = vrot.slane %v13810_v44, 4 }
 0x489   : > { %v3557_v46 = vsel %vm1715_vm10, %v3539_v11, %v3556_v54  ;;  %v13923_v26 = vpop.permute.xlu1 %3092  ;;  %v13925_v33 = vpop.permute.xlu0 %3344  ;;  %v3543_v54 = vrot.slane %v13887_v18, 4  ;;  %v3171_v18 = vsel %vm941_vm11, %v13848_v52, %v3170_v59  ;;  %v3098_v52 = vrot.slane %v13859_v60, 4 }
 0x48a   : > { %3125 = vst.msk [vmem:[#allocation6 + $0x104] sm:$0xf] %vm714_vm2, %v13923_v26  ;;  %v11220_v15 = vcombine.high %v3555_v24, %v3557_v46  ;;  %v11219_v22 = vcombine.low %v3555_v24, %v3557_v46  ;;  %3379 = vst.msk [vmem:[#allocation6 + $0x320] sm:$0xf] %vm714_vm2, %v13925_v33  ;;  %v3173_v24 = vsel %vm941_vm11, %v13892_v39, %v3172_v10  ;;  %v3099_v39 = vrot.slane %v13868_v27, 4 }
 0x48b   : > { %v11184_v48 = vcombine.high %v3171_v18, %v3173_v24  ;;  %v3550_v27 = vsel %vm810_vm3, %v3542_v56, %v3543_v54 }
 0x48c   : > { %4044 = vmatprep.subr.bf16.mxu1 %v11220_v15 }
 0x48d   : > { %v13931_v7 = vpop.permute.xlu1 %3476  ;;  %4045 = vmatpush1.bf16.msra.mxu1 %v11219_v22  ;;  %v13933_v13 = vpop.permute.xlu0 %3464  ;;  %v3101_v22 = vrot.slane %v13923_v26, 4  ;;  %v3100_v26 = vrot.slane %v13901_v1, 4 }
 0x48e   : > { %3509 = vst.msk [vmem:[#allocation6 + $0x464] sm:$0xf] %vm714_vm2, %v13931_v7  ;;  %3503 = vst.msk [vmem:[#allocation6 + $0x3f8] sm:$0xf] %vm714_vm2, %v13933_v13 }
 0x48f   : > { %v3108_v38 = vsel %vm810_vm3, %v3100_v26, %v3101_v22 }
 0x491   : > { %v13939_v21 = vpop.permute.xlu1 %3412  ;;  %v13941_v0 = vpop.permute.xlu0 %3400 }
 0x492   : > { %3445 = vst.msk [vmem:[#allocation6 + $0x3d4] sm:$0xf] %vm714_vm2, %v13939_v21  ;;  %3439 = vst.msk [vmem:[#allocation6 + $0x368] sm:$0xf] %vm714_vm2, %v13941_v0 }
 0x495   : > { %v13947_v11 = vpop.permute.xlu1 %3348  ;;  %v13950_v41 = vpop.permute.xlu0 %3336 }
 0x496   : > { %3381 = vst.msk [vmem:[#allocation6 + $0x344] sm:$0xf] %vm714_vm2, %v13947_v11  ;;  %3375 = vst.msk [vmem:[#allocation6 + $0x2d8] sm:$0xf] %vm714_vm2, %v13950_v41 }
 0x499   : > { %v3213_v35 = vpop.permute.xlu1 %3212  ;;  %v13963_v2 = vpop.permute.xlu0 %3398 }
 0x49a   : > { %v3225_v62 = vrot.slane %v3213_v35, 4  ;;  %3249 = vst.msk [vmem:[#allocation6 + $0x1dc] sm:$0xf] %vm714_vm2, %v3213_v35 }
 0x49c   : > { %v3232_v58 = vsel %vm810_vm3, %v3224_v29, %v3225_v62  ;;  %v3544_v29 = vrot.slane %v13829_v9, 4 }
 0x49d   : > { %v3233_v46 = vsel %vm1070_vm9, %v13822_v8, %v3232_v58  ;;  %v3149_v15 = vpop.permute.xlu1 %3148  ;;  %v13979_v4 = vpop.permute.xlu0 %3280  ;;  %v3166_v8 = vsel %vm810_vm3, %v3158_v50, %v3159_v57  ;;  %v3551_v58 = vsel %vm1715_vm10, %v13810_v44, %v3550_v27  ;;  %vm3972_vm9 = vcmask 261120   ;;  %v14037_v27 = vld [vmem:[#allocation5] sm:$0xff] }
 0x49e   : > { %v3161_v16 = vrot.slane %v3149_v15, 4  ;;  %3185 = vst.msk [vmem:[#allocation6 + $0x14c] sm:$0xf] %vm714_vm2, %v3149_v15  ;;  %v11187_v5 = vcombine.high %v3231_v43, %v3233_v46  ;;  %v11186_v47 = vcombine.low %v3231_v43, %v3233_v46  ;;  %3315 = vst.msk [vmem:[#allocation6 + $0x290] sm:$0xf] %vm714_vm2, %v13979_v4  ;;  %v3167_v50 = vsel %vm941_vm11, %v13805_v51, %v3166_v8 }
 0x49f   : > { %v3109_v43 = vsel %vm812_vm6, %v13901_v1, %v3108_v38  ;;  %v3095_v51 = vrot.slane %v13896_v40, 4  ;;  %v3094_v1 = vrot.slane %v13816_v49, 4  ;;  %v14023_v40 = vld [vmem:[%s17076_s2 + $0x8] ss:$12 sps:$4 sm:$0xff]   ;;  %v12094_v8 = vld [vmem:[#allocation6 + $0x200] ss:$36 sps:$4 sm:$0xff]  }
 0x4a0   : > { %v3168_v55 = vsel %vm810_vm3, %v3160_v12, %v3161_v16  ;;  %3981 = vmatprep.subr.bf16.mxu0 %v11187_v5  ;;  %v11183_v12 = vcombine.low %v3171_v18, %v3173_v24  ;;  %v12092_v5 = vld [vmem:[#allocation6 + $0x440] ss:$36 sps:$4 sm:$0xff]   ;;  %v3484_v38 = vrot.slane %v13844_v6, 4 }
 0x4a1   : > { %v3169_v35 = vsel %vm941_vm11, %v13825_v31, %v3168_v55  ;;  %v3533_v42 = vpop.permute.xlu1 %3532  ;;  %3982 = vmatpush1.bf16.msra.mxu0 %v11186_v47  ;;  %v13997_v10 = vpop.permute.xlu0 %3342  ;;  %v3106_v31 = vsel %vm810_vm3, %v3098_v52, %v3099_v39  ;;  %v3102_v56 = vsel %vm810_vm3, %v3094_v1, %v3095_v51 }
 0x4a2   : > { %v3545_v62 = vrot.slane %v3533_v42, 4  ;;  %3569 = vst.msk [vmem:[#allocation6 + $0x4ac] sm:$0xf] %vm714_vm2, %v3533_v42  ;;  %3983 = vmatprep.subr.bf16.mxu0 %v11184_v48  ;;  %v11181_v57 = vcombine.high %v3167_v50, %v3169_v35  ;;  %v3107_v16 = vsel %vm812_vm6, %v13859_v60, %v3106_v31  ;;  %v11180_v44 = vcombine.low %v3167_v50, %v3169_v35 }
 0x4a3   : > { %v3096_v60 = vrot.slane %v13839_v23, 4  ;;  %v11177_v39 = vcombine.low %v3107_v16, %v3109_v43  ;;  %v3103_v55 = vsel %vm812_vm6, %v13816_v49, %v3102_v56  ;;  %v3485_v35 = vrot.slane %v13931_v7, 4  ;;  %v14047_v7 = vld [vmem:[%s17076_s2 + $0x20] ss:$12 sps:$4 sm:$0xff]  }
 0x4a4   : > { %v3552_v59 = vsel %vm810_vm3, %v3544_v29, %v3545_v62  ;;  %v3483_v49 = vrot.slane %v13907_v30, 4  ;;  %v3482_v50 = vrot.slane %v13870_v32, 4  ;;  %v11171_v30 = vcombine.low %v13738_v20, %v13718_v14 }
 0x4a5   : > { %v3553_v54 = vsel %vm1715_vm10, %v13829_v9, %v3552_v59  ;;  %v14010_v46 = vpop.permute.xlu1 %3410  ;;  %3984 = vmatpush1.bf16.msra.mxu0 %v11183_v12  ;;  %v14013_v24 = vpop.permute.xlu0 %3272  ;;  %v11178_v9 = vcombine.high %v3107_v16, %v3109_v43  ;;  %v3492_v12 = vsel %vm810_vm3, %v3484_v38, %v3485_v35  ;;  %v3480_v59 = vrot.slane %v13832_v28, 4  ;;  %v12101_v38 = vld [vmem:[#allocation6 + $0x320] ss:$36 sps:$4 sm:$0xff]  }
 0x4a6   : > { %3985 = vmatprep.subr.bf16.mxu0 %v11181_v57  ;;  %v11217_v15 = vcombine.high %v3551_v58, %v3553_v54  ;;  %v11216_v22 = vcombine.low %v3551_v58, %v3553_v54  ;;  %3311 = vst.msk [vmem:[#allocation6 + $0x248] sm:$0xf] %vm714_vm2, %v14013_v24  ;;  %v3490_v57 = vsel %vm810_vm3, %v3482_v50, %v3483_v49  ;;  %v3479_v58 = vrot.slane %v13933_v13, 4 }
 0x4a7   : > { %v11169_v43 = vcombine.high %v13701_v25, %v13707_v34  ;;  %v3493_v54 = vsel %vm1586_vm7, %v13844_v6, %v3492_v12  ;;  %v3491_v16 = vsel %vm1586_vm7, %v13870_v32, %v3490_v57  ;;  %v12097_v6 = vld [vmem:[#allocation6 + $0x3b0] ss:$36 sps:$4 sm:$0xff]   ;;  %v3418_v32 = vrot.slane %v13876_v37, 4 }
 0x4a8   : > { %4046 = vmatprep.subr.bf16.mxu1 %v11217_v15  ;;  %vm7197_vm10 = vcmask 482304  }
 0x4a9   : > { %v3085_v47 = vpop.permute.xlu1 %3084  ;;  %3986 = vmatpush1.bf16.msra.mxu0 %v11180_v44  ;;  %4047 = vmatpush1.bf16.msra.mxu1 %v11216_v22  ;;  %v12096_v22 = vld [vmem:[#allocation6 + $0x1b8] ss:$36 sps:$4 sm:$0xff]   ;;  %v11168_v44 = vcombine.low %v13701_v25, %v13707_v34  ;;  %v12098_v34 = vld [vmem:[#allocation6 + $0x170] ss:$36 sps:$4 sm:$0xff]   ;;  %v3335_v35 = vpop.permute.xlu0 %3334 }
 0x4aa   : > { %v3097_v18 = vrot.slane %v3085_v47, 4  ;;  %3121 = vst.msk [vmem:[#allocation6 + $0xbc] sm:$0xf] %vm714_vm2, %v3085_v47  ;;  %3987 = vmatprep.subr.bf16.mxu0 %v11178_v9  ;;  %11840 = vmatprep.subr.bf16.mxu1 %v12092_v5  ;;  %v3421_v9 = vrot.slane %v13939_v21, 4  ;;  %v11214_v5 = vcombine.high %v3491_v16, %v3493_v54  ;;  %v11213_v21 = vcombine.low %v3491_v16, %v3493_v54 }
 0x4ab   : > { %v3351_v16 = vrot.slane %v13950_v41, 4 }
 0x4ac   : > { %v3104_v26 = vsel %vm810_vm3, %v3096_v60, %v3097_v18  ;;  %11222 = vmatmul.mubr.msk.bf16.vlgmr.msra.gmra.mxu1 %vm3972_vm9, %v14023_v40  ;;  %v3414_v18 = vrot.slane %v13963_v2, 4 }
 0x4ad   : > { %v3105_v48 = vsel %vm812_vm6, %v13839_v23, %v3104_v26  ;;  %v3469_v29 = vpop.permute.xlu1 %3468  ;;  %3988 = vmatpush1.bf16.msra.mxu0 %v11177_v39  ;;  %11841 = vmatpush3.bf16.msra.mxu1 %v12094_v8  ;;  %v11172_v23 = vcombine.high %v13738_v20, %v13718_v14  ;;  %v3478_v14 = vrot.slane %v13819_v53, 4  ;;  %v3420_v20 = vrot.slane %v14010_v46, 4  ;;  %v3279_v54 = vpop.permute.xlu0 %3278 }
 0x4ae   : > { %3505 = vst.msk [vmem:[#allocation6 + $0x41c] sm:$0xf] %vm714_vm2, %v3469_v29  ;;  %v11175_v42 = vcombine.high %v3103_v55, %v3105_v48  ;;  %v11174_v52 = vcombine.low %v3103_v55, %v3105_v48  ;;  %4074 = vmatprep.mubr.bf16.mxu1 %v14037_v27  ;;  %v3481_v31 = vrot.slane %v3469_v29, 4  ;;  %v3415_v29 = vrot.slane %v13941_v0, 4 }
 0x4af   : > { %v3486_v1 = vsel %vm810_vm3, %v3478_v14, %v3479_v58  ;;  %v3428_v56 = vsel %vm810_vm3, %v3420_v20, %v3421_v9 }
 0x4b0   : > { %3989 = vmatprep.subr.bf16.mxu0 %v11175_v42  ;;  %v3488_v13 = vsel %vm810_vm3, %v3480_v59, %v3481_v31  ;;  %v3429_v26 = vsel %vm1457_vm8, %v14010_v46, %v3428_v56  ;;  %v12100_v42 = vld [vmem:[#allocation6 + $0x128] ss:$36 sps:$4 sm:$0xff]   ;;  %v3422_v46 = vsel %vm810_vm3, %v3414_v18, %v3415_v29  ;;  %v3355_v31 = vrot.slane %v13925_v33, 4  ;;  %v12102_v59 = vld [vmem:[#allocation6 + $0xe0] ss:$36 sps:$4 sm:$0xff]  }
 0x4b1   : > { %v14049_v62 = vpop.permute.xlu1 %3402  ;;  %3990 = vmatpush1.bf16.msra.mxu0 %v11174_v52  ;;  %v3489_v47 = vsel %vm1586_vm7, %v13832_v28, %v3488_v13  ;;  %v3423_v57 = vsel %vm1457_vm8, %v13963_v2, %v3422_v46  ;;  %v12105_v20 = vld [vmem:[#allocation6 + $0x98] ss:$36 sps:$4 sm:$0xff]   ;;  %v3271_v9 = vpop.permute.xlu0 %3270  ;;  %v12110_v29 = vld [vmem:[#allocation6 + $0x4d0] ss:$36 sps:$4 sm:$0xff]  }
 0x4b2   : > { %3991 = vmatprep.subr.bf16.mxu0 %v11172_v23  ;;  %v3416_v39 = vrot.slane %v14049_v62, 4  ;;  %v3354_v23 = vrot.slane %v13997_v10, 4 }
 0x4b4   : > { %11223 = vmatmul.mubr.msk.bf16.gmra.mxu1 %vm3972_vm9, %v14047_v7 }
 0x4b5   : > { %v3405_v51 = vpop.permute.xlu1 %3404  ;;  %v12095_v15 = vld [vmem:[#allocation6 + $0x3f8] ss:$36 sps:$4 sm:$0xff]   ;;  %3992 = vmatpush1.bf16.msra.mxu0 %v11171_v30  ;;  %4117 = vmatprep.mubr.bf16.mxu1 %v13837_v19  ;;  %v3419_v19 = vrot.slane %v13914_v36, 4  ;;  %v3487_v36 = vsel %vm1586_vm7, %v13819_v53, %v3486_v1  ;;  %v3357_v30 = vrot.slane %v13947_v11, 4  ;;  %v3350_v11 = vrot.slane %v3335_v35, 4 }
 0x4b6   : > { %3441 = vst.msk [vmem:[#allocation6 + $0x38c] sm:$0xf] %vm714_vm2, %v3405_v51  ;;  %3993 = vmatprep.subr.bf16.mxu0 %v11169_v43  ;;  %11842 = vmatprep.subr.bf16.mxu1 %v12095_v15  ;;  %v3417_v25 = vrot.slane %v3405_v51, 4  ;;  %v11211_v8 = vcombine.high %v3487_v36, %v3489_v47  ;;  %v11210_v49 = vcombine.low %v3487_v36, %v3489_v47  ;;  %v3286_v36 = vrot.slane %v3271_v9, 4 }
 0x4b7   : > { %11843 = vmatpush3.bf16.msra.mxu1 %v12096_v22  ;;  %v3426_v28 = vsel %vm810_vm3, %v3418_v32, %v3419_v19  ;;  %v3362_v43 = vsel %vm810_vm3, %v3354_v23, %v3355_v31  ;;  %v3358_v1 = vsel %vm810_vm3, %v3350_v11, %v3351_v16  ;;  %v12107_v32 = vld [vmem:[#allocation6 + $0x50] ss:$36 sps:$4 sm:$0xff]   ;;  %v12135_v11 = vld [vmem:[#allocation7 + $0xa4] ss:$40 sps:$4 sm:$0xff]   ;;  %v12139_v16 = vld [vmem:[#allocation7] ss:$40 sps:$4 sm:$0xff]  }
 0x4b8   : > { %11844 = vmatprep.subr.bf16.mxu1 %v12097_v6  ;;  %v3424_v53 = vsel %vm810_vm3, %v3416_v39, %v3417_v25  ;;  %v3427_v52 = vsel %vm1457_vm8, %v13876_v37, %v3426_v28  ;;  %v3363_v2 = vsel %vm1328_vm4, %v13997_v10, %v3362_v43  ;;  %v3291_v10 = vrot.slane %v13979_v4, 4  ;;  %v12120_v43 = vld [vmem:[#allocation7 + $0x234] ss:$40 sps:$4 sm:$0xff]  }
 0x4b9   : > { %v14078_v60 = vpop.permute.xlu1 %3284  ;;  %3994 = vmatpush1.bf16.msra.mxu0 %v11168_v44  ;;  %v11208_v50 = vcombine.high %v3427_v52, %v3429_v26  ;;  %v3425_v0 = vsel %vm1457_vm8, %v14049_v62, %v3424_v53  ;;  %v11207_v58 = vcombine.low %v3427_v52, %v3429_v26  ;;  %v3290_v44 = vrot.slane %v3279_v54, 4  ;;  %v12109_v26 = vld [vmem:[#allocation6 + $0x8] ss:$36 sps:$4 sm:$0xff]  }
 0x4ba   : > { %3317 = vst.msk [vmem:[#allocation6 + $0x2b4] sm:$0xf] %vm714_vm2, %v14078_v60  ;;  %3995 = vmatprep.subr.bf16.mxu0 %v11214_v5  ;;  %v11205_v62 = vcombine.high %v3423_v57, %v3425_v0  ;;  %v11204_v22 = vcombine.low %v3423_v57, %v3425_v0  ;;  %v3359_v41 = vsel %vm1328_vm4, %v3335_v35, %v3358_v1  ;;  %v3293_v39 = vrot.slane %v14078_v60, 4  ;;  %v12111_v35 = vld [vmem:[%s17076_s2] ss:$12 sps:$4 sm:$0xff]  }
 0x4bb   : > { %11845 = vmatpush3.bf16.msra.mxu1 %v12098_v34  ;;  %v3298_v34 = vsel %vm810_vm3, %v3290_v44, %v3291_v10  ;;  %v12115_v60 = vld [vmem:[%s17076_s2 + $0x1c] ss:$12 sps:$4 sm:$0xff]   ;;  %v12117_v57 = vld [vmem:[%s17076_s2 + $0x18] ss:$12 sps:$4 sm:$0xff]   ;;  %vm7374_vm7 = vcmask 474112  }
 0x4bc   : > { %v12114_v0 = vld [vmem:[#allocation6 + $0x488] ss:$36 sps:$4 sm:$0xff]   ;;  %v12144_v44 = vld [vmem:[#allocation7 + $0x4b4] ss:$40 sps:$4 sm:$0xff]   ;;  %v12154_v10 = vld [vmem:[#allocation7 + $0x550] ss:$40 sps:$4 sm:$0xff]  }
 0x4bd   : > { %v3341_v55 = vpop.permute.xlu1 %3340  ;;  %v12099_v48 = vld [vmem:[#allocation6 + $0x368] ss:$36 sps:$4 sm:$0xff]   ;;  %3996 = vmatpush2.bf16.msra.mxu0 %v11213_v21 }
 0x4be   : > { %3377 = vst.msk [vmem:[#allocation6 + $0x2fc] sm:$0xf] %vm714_vm2, %v3341_v55  ;;  %3997 = vmatprep.subr.bf16.mxu0 %v11211_v8  ;;  %11846 = vmatprep.subr.bf16.mxu1 %v12099_v48  ;;  %v3353_v5 = vrot.slane %v3341_v55, 4  ;;  %v3287_v48 = vrot.slane %v14013_v24, 4  ;;  %v12147_v1 = vld [vmem:[#allocation7 + $0x464] ss:$40 sps:$4 sm:$0xff]  }
 0x4bf   : > { %11847 = vmatpush3.bf16.msra.mxu1 %v12100_v42  ;;  %v3299_v42 = vsel %vm1199_vm5, %v3279_v54, %v3298_v34  ;;  %v12121_v54 = vld [vmem:[#allocation7 + $0x1e0] ss:$40 sps:$4 sm:$0xff]  }
 0x4c0   : > { %11848 = vmatprep.subr.bf16.mxu1 %v12101_v38  ;;  %v3294_v52 = vsel %vm810_vm3, %v3286_v36, %v3287_v48  ;;  %v12160_v34 = vld [vmem:[#allocation7 + $0x320] ss:$40 sps:$4 sm:$0xff]   ;;  %v12162_v36 = vld [vmem:[#allocation7 + $0x324] ss:$40 sps:$4 sm:$0xff]  }
 0x4c1   : > { %v3347_v12 = vpop.permute.xlu1 %3346  ;;  %3998 = vmatpush2.bf16.msra.mxu0 %v11210_v49  ;;  %v12106_v13 = vld [vmem:[#allocation6 + $0x290] ss:$36 sps:$4 sm:$0xff]   ;;  %v3295_v31 = vsel %vm1199_vm5, %v3271_v9, %v3294_v52 }
 0x4c2   : > { %v3356_v37 = vrot.slane %v3347_v12, 4  ;;  %3999 = vmatprep.subr.bf16.mxu0 %v11208_v50  ;;  %v12148_v9 = vld [vmem:[#allocation7 + $0x410] ss:$40 sps:$4 sm:$0xff]  }
 0x4c3   : > { %11849 = vmatpush3.bf16.msra.mxu1 %v12102_v59 }
 0x4c4   : > { %v3364_v51 = vsel %vm810_vm3, %v3356_v37, %v3357_v30 }
 0x4c5   : > { %v3365_v15 = vsel %vm1328_vm4, %v3347_v12, %v3364_v51  ;;  %v3277_v14 = vpop.permute.xlu1 %3276  ;;  %v12104_v33 = vld [vmem:[#allocation6 + $0x2d8] ss:$36 sps:$4 sm:$0xff]   ;;  %4000 = vmatpush2.bf16.msra.mxu0 %v11207_v58  ;;  %v12123_v51 = vld [vmem:[#allocation7 + $0x1e4] ss:$40 sps:$4 sm:$0xff]  }
 0x4c6   : > { %3313 = vst.msk [vmem:[#allocation6 + $0x26c] sm:$0xf] %vm714_vm2, %v3277_v14  ;;  %4001 = vmatprep.subr.bf16.mxu0 %v11205_v62  ;;  %11850 = vmatprep.subr.bf16.mxu1 %v12104_v33  ;;  %v11202_v6 = vcombine.high %v3363_v2, %v3365_v15  ;;  %v11201_v56 = vcombine.low %v3363_v2, %v3365_v15  ;;  %v3289_v49 = vrot.slane %v3277_v14, 4  ;;  %v12118_v58 = vld [vmem:[#allocation7 + $0x230] ss:$40 sps:$4 sm:$0xff]   ;;  %vm5998_vm2 = vcmask 48132  }
 0x4c7   : > { %11851 = vmatpush3.bf16.msra.mxu1 %v12105_v20  ;;  %v12126_v62 = vld [vmem:[#allocation7 + $0x194] ss:$40 sps:$4 sm:$0xff]   ;;  %v12124_v15 = vld [vmem:[#allocation7 + $0x190] ss:$40 sps:$4 sm:$0xff]   ;;  %v12127_v14 = vld [vmem:[#allocation7 + $0x140] ss:$40 sps:$4 sm:$0xff]  }
 0x4c8   : > { %11852 = vmatprep.subr.bf16.mxu1 %v12106_v13  ;;  %v12132_v33 = vld [vmem:[#allocation7 + $0xf4] ss:$40 sps:$4 sm:$0xff]   ;;  %v12133_v20 = vld [vmem:[#allocation7 + $0xa0] ss:$40 sps:$4 sm:$0xff]   ;;  %v12136_v13 = vld [vmem:[#allocation7 + $0x50] ss:$40 sps:$4 sm:$0xff]  }
 0x4c9   : > { %v3339_v19 = vpop.permute.xlu1 %3338  ;;  %4002 = vmatpush2.bf16.msra.mxu0 %v11204_v22  ;;  %v12138_v2 = vld [vmem:[#allocation7 + $0x54] ss:$40 sps:$4 sm:$0xff]   ;;  %v12141_v22 = vld [vmem:[#allocation7 + $0x4] ss:$40 sps:$4 sm:$0xff]  }
 0x4ca   : > { %v3352_v47 = vrot.slane %v3339_v19, 4  ;;  %4003 = vmatprep.subr.bf16.mxu0 %v11202_v6  ;;  %v12142_v6 = vld [vmem:[#allocation7 + $0x4b0] ss:$40 sps:$4 sm:$0xff]  }
 0x4cb   : > { %11853 = vmatpush3.bf16.msra.mxu1 %v12107_v32  ;;  %v12153_v32 = vld [vmem:[#allocation7 + $0x3c4] ss:$40 sps:$4 sm:$0xff]  }
 0x4cc   : > { %v3360_v25 = vsel %vm810_vm3, %v3352_v47, %v3353_v5  ;;  %v12150_v5 = vld [vmem:[#allocation7 + $0x414] ss:$40 sps:$4 sm:$0xff]   ;;  %v12151_v47 = vld [vmem:[#allocation7 + $0x3c0] ss:$40 sps:$4 sm:$0xff]  }
 0x4cd   : > { %v3361_v21 = vsel %vm1328_vm4, %v3339_v19, %v3360_v25  ;;  %v3283_v28 = vpop.permute.xlu1 %3282  ;;  %v12108_v18 = vld [vmem:[#allocation6 + $0x248] ss:$36 sps:$4 sm:$0xff]   ;;  %4004 = vmatpush2.bf16.msra.mxu0 %v11201_v56  ;;  %v12156_v56 = vld [vmem:[#allocation7 + $0x554] ss:$40 sps:$4 sm:$0xff]   ;;  %v12157_v25 = vld [vmem:[#allocation7 + $0x370] ss:$40 sps:$4 sm:$0xff]  }
 0x4ce   : > { %v3292_v8 = vrot.slane %v3283_v28, 4  ;;  %v11199_v55 = vcombine.high %v3359_v41, %v3361_v21  ;;  %v11198_v4 = vcombine.low %v3359_v41, %v3361_v21  ;;  %11854 = vmatprep.subr.bf16.mxu1 %v12108_v18  ;;  %v12145_v19 = vld [vmem:[#allocation7 + $0x460] ss:$40 sps:$4 sm:$0xff]   ;;  %v12159_v41 = vld [vmem:[#allocation7 + $0x374] ss:$40 sps:$4 sm:$0xff]   ;;  %vm14219_vm4 = vmor %vm5998_vm2, %vm810_vm3  ;;  %vm9125_vm2 = vcmask 285696  }
 0x4cf   : > { %11855 = vmatpush3.bf16.msra.mxu1 %v12109_v26  ;;  %v12163_v21 = vld [vmem:[#allocation7 + $0x500] ss:$40 sps:$4 sm:$0xff]   ;;  %v12168_v18 = vld [vmem:[#allocation7 + $0x2d4] ss:$40 sps:$4 sm:$0xff]   ;;  %v12171_v26 = vld [vmem:[#allocation7 + $0x284] ss:$40 sps:$4 sm:$0xff]  }
 0x4d0   : > { %v3300_v53 = vsel %vm810_vm3, %v3292_v8, %v3293_v39  ;;  %4005 = vmatprep.subr.bf16.mxu0 %v11199_v55  ;;  %11925 = vmatprep.subr.bf16.mxu1 %v12110_v29  ;;  %v12166_v39 = vld [vmem:[#allocation7 + $0x2d0] ss:$40 sps:$4 sm:$0xff]   ;;  %v12174_v8 = vld [vmem:[#allocation7 + $0x23c] ss:$40 sps:$4 sm:$0xff]   ;;  %v12169_v55 = vld [vmem:[#allocation7 + $0x280] ss:$40 sps:$4 sm:$0xff]  }
 0x4d1   : > { %v3301_v24 = vsel %vm1199_vm5, %v3283_v28, %v3300_v53  ;;  %v3275_v38 = vpop.permute.xlu1 %3274  ;;  %4006 = vmatpush2.bf16.msra.mxu0 %v11198_v4  ;;  %v12165_v28 = vld [vmem:[#allocation7 + $0x504] ss:$40 sps:$4 sm:$0xff]  }
 0x4d2   : > { %v3288_v46 = vrot.slane %v3275_v38, 4  ;;  %v11196_v23 = vcombine.high %v3299_v42, %v3301_v24  ;;  %v11195_v50 = vcombine.low %v3299_v42, %v3301_v24  ;;  %4118 = vmatmul.mubr.bf16.vlgmr.msra.gmra.mxu1 %v12111_v35  ;;  %v12183_v4 = vld [vmem:[#allocation7 + $0x55c] ss:$40 sps:$4 sm:$0xff]  }
 0x4d3   : > { %11926 = vmatpush3.bf16.msra.mxu1 %v12110_v29  ;;  %4125 = vmatprep.mubr.bf16.mxu1 %v12115_v60 }
 0x4d4   : > { %v3296_v12 = vsel %vm810_vm3, %v3288_v46, %v3289_v49  ;;  %11927 = vmatprep.subr.bf16.mxu1 %v12114_v0  ;;  %4007 = vmatprep.subr.bf16.mxu0 %v11196_v23 }
 0x4d5   : > { %v3297_v30 = vsel %vm1199_vm5, %v3275_v38, %v3296_v12  ;;  %4008 = vmatpush2.bf16.msra.mxu0 %v11195_v50  ;;  %vm6040_vm5 = vcmask 519168  }
 0x4d6   : > { %v11193_v37 = vcombine.high %v3295_v31, %v3297_v30  ;;  %v11192_v59 = vcombine.low %v3295_v31, %v3297_v30  ;;  %v4185_v31 = vpop.permute.xlu0 %4184 }
 0x4d7   : > { %11928 = vmatpush3.bf16.msra.mxu1 %v12114_v0 }
 0x4d8   : > { %4009 = vmatprep.subr.bf16.mxu0 %v11193_v37  ;;  %5343 = vmatprep.subr.bf16.mxu1 %v12120_v43 }
 0x4d9   : > { %4010 = vmatpush2.bf16.msra.mxu0 %v11192_v59 }
 0x4da   : > { %4126 = vmatmul.mubr.bf16.gmra.mxu1 %v12117_v57  ;;  %5408 = vmatprep.subr.bf16.mxu0 %v12156_v56 }
 0x4db   : > { %11929 = vmatprep.mubr.msk.bf16.mxu1 %vm3972_vm9, %v14023_v40  ;;  %v12129_v40 = vld [vmem:[#allocation7 + $0x144] ss:$40 sps:$4 sm:$0xff]  }
 0x4dc   : > { %4012 = vmatmul.mubr.bf16.vlgmr.msra.gmra.mxu0 %v12111_v35 }
 0x4dd   : > { %4021 = vmatprep.mubr.bf16.mxu0 %v12115_v60  ;;  %5409 = vmatpush1.bf16.msra.mxu0 %v12154_v10 }
 0x4de   : > { %5410 = vmatprep.subr.bf16.mxu0 %v12165_v28  ;;  %v4189_v49 = vpop.permute.xlu1 %4188 }
 0x4e1   : > { %5411 = vmatpush1.bf16.msra.mxu0 %v12163_v21 }
 0x4e2   : > { %11930 = vmatmul.mubr.msk.bf16.vlgmr.msra.gmra.mxu1 %vm3972_vm9, %v14047_v7  ;;  %v12130_v7 = vld [vmem:[#allocation7 + $0xf0] ss:$40 sps:$4 sm:$0xff]   ;;  %5449 = vmatprep.subr.bf16.mxu0 %v12174_v8 }
 0x4e3   : > { %5344 = vmatpush1.bf16.msra.mxu1 %v12118_v58  ;;  %v4213_v0 = vpop.permute.xlu1 %4212 }
 0x4e4   : > { %4022 = vmatmul.mubr.bf16.gmra.mxu0 %v12117_v57  ;;  %5345 = vmatprep.subr.bf16.mxu1 %v12123_v51 }
 0x4e5   : > { %5428 = vmatprep.mubr.bf16.mxu0 %v14037_v27 }
 0x4e7   : > { %5346 = vmatpush1.bf16.msra.mxu1 %v12121_v54 }
 0x4e8   : > { %5347 = vmatprep.subr.bf16.mxu1 %v12126_v62  ;;  %v4193_v43 = vpop.permute.xlu1 %4192 }
 0x4eb   : > { %5348 = vmatpush1.bf16.msra.mxu1 %v12124_v15  ;;  %v4217_v15 = vpop.permute.xlu0 %4216 }
 0x4ec   : > { %5349 = vmatprep.subr.bf16.mxu1 %v12129_v40 }
 0x4ef   : > { %5350 = vmatpush1.bf16.msra.mxu1 %v12127_v14 }
 0x4f0   : > { %5351 = vmatprep.subr.bf16.mxu1 %v12132_v33 }
 0x4f3   : > { %5352 = vmatpush1.bf16.msra.mxu1 %v12130_v7 }
 0x4f4   : > { %5353 = vmatprep.subr.bf16.mxu1 %v12135_v11 }
 0x4f7   : > { %5354 = vmatpush1.bf16.msra.mxu1 %v12133_v20 }
 0x4f8   : > { %5355 = vmatprep.subr.bf16.mxu1 %v12138_v2 }
 0x4fb   : > { %5356 = vmatpush1.bf16.msra.mxu1 %v12136_v13 }
 0x4fc   : > { %5357 = vmatprep.subr.bf16.mxu1 %v12141_v22 }
 0x4ff   : > { %5358 = vmatpush1.bf16.msra.mxu1 %v12139_v16 }
 0x500   : > { %5359 = vmatprep.subr.bf16.mxu1 %v12144_v44 }
 0x503   : > { %5360 = vmatpush2.bf16.msra.mxu1 %v12142_v6 }
 0x504   : > { %5361 = vmatprep.subr.bf16.mxu1 %v12147_v1  ;;  %v4197_v1 = vpop.permute.xlu1 %4196 }
 0x507   : > { %5362 = vmatpush2.bf16.msra.mxu1 %v12145_v19 }
 0x508   : > { %5363 = vmatprep.subr.bf16.mxu1 %v12150_v5 }
 0x50b   : > { %5364 = vmatpush2.bf16.msra.mxu1 %v12148_v9 }
 0x50c   : > { %5365 = vmatprep.subr.bf16.mxu1 %v12153_v32 }
 0x50f   : > { %5366 = vmatpush2.bf16.msra.mxu1 %v12151_v47 }
 0x510   : > { %5367 = vmatprep.subr.bf16.mxu1 %v12159_v41 }
 0x513   : > { %5368 = vmatpush2.bf16.msra.mxu1 %v12157_v25 }
 0x514   : > { %5369 = vmatprep.subr.bf16.mxu1 %v12162_v36 }
 0x517   : > { %5370 = vmatpush2.bf16.msra.mxu1 %v12160_v34 }
 0x518   : > { %5371 = vmatprep.subr.bf16.mxu1 %v12168_v18 }
 0x51b   : > { %5372 = vmatpush2.bf16.msra.mxu1 %v12166_v39 }
 0x51c   : > { %5373 = vmatprep.subr.bf16.mxu1 %v12171_v26 }
 0x51f   : > { %5374 = vmatpush2.bf16.msra.mxu1 %v12169_v55 }
 0x520   : > { %5514 = vmatprep.subr.bf16.mxu1 %v12183_v4 }
 0x56c   : > { %v4066_v48 = vpop.f32.mrf.mxu1 }
 0x56e   : > { %v4068_v29 = vpop.f32.mrf.mxu1 }
 0x570   : > { %v4070_v35 = vpop.f32.mrf.mxu1 }
 0x572   : > { %v4072_v53 = vpop.f32.mrf.mxu1 }
 0x574   : > { %v4076_v60 = vpop.f32.mrf.mxu1 }
 0x576   : > { %v4078_v42 = vpop.f32.mrf.mxu1 }
 0x578   : > { %v4080_v52 = vpop.f32.mrf.mxu1 }
 0x57a   : > { %v4082_v24 = vpop.f32.mrf.mxu1 }
 0x592   : > { %v11856_v38 = vpop.f32.mrf.mxu1 }
 0x594   : > { %v11857_v46 = vpop.f32.mrf.mxu1 }
 0x595   : > { %v11858_v11 = vadd.f32 %v11857_v46, %v11856_v38 }
 0x596   : > { %v11859_v23 = vpop.f32.mrf.mxu1 }
 0x598   : > { %v11860_v50 = vpop.f32.mrf.mxu1 }
 0x599   : > { %v11861_v32 = vadd.f32 %v11860_v50, %v11859_v23  ;;  %v4221_v50 = vpop.permute.xlu0 %4220 }
 0x59a   : > { %v11862_v12 = vpop.f32.mrf.mxu1 }
 0x59c   : > { %v11863_v30 = vpop.f32.mrf.mxu1  ;;  %v4013_v37 = vpop.f32.mrf.mxu0 }
 0x59d   : > { %v4067_v58 = vadd.f32 %v4066_v48, %v4013_v37  ;;  %v11864_v18 = vadd.f32 %v11863_v30, %v11862_v12 }
 0x59e   : > { %v11865_v59 = vpop.f32.mrf.mxu1  ;;  %v4015_v57 = vpop.f32.mrf.mxu0 }
 0x59f   : > { %v4069_v54 = vadd.f32 %v4068_v29, %v4015_v57  ;;  %v4199_v20 = vmul.f32 %v4185_v31, %v4067_v58 }
 0x5a0   : > { %v11866_v51 = vpop.f32.mrf.mxu1  ;;  %v4017_v62 = vpop.f32.mrf.mxu0 }
 0x5a1   : > { %v4200_v40 = vmul.f32 %v4185_v31, %v4069_v54  ;;  %v4071_v14 = vadd.f32 %v4070_v35, %v4017_v62  ;;  %v4227_v10 = vadd.f32 %v4213_v0, %v4199_v20  ;;  %v11867_v25 = vadd.f32 %v11866_v51, %v11865_v59  ;;  %v12181_v59 = vld [vmem:[#allocation7 + $0x558] ss:$40 sps:$4 sm:$0xff]   ;;  %v12189_v54 = vld [vmem:[#allocation7 + $0x50c] ss:$40 sps:$4 sm:$0xff]  }
 0x5a2   : > { %v11931_v33 = vpop.f32.mrf.mxu1  ;;  %v4019_v7 = vpop.f32.mrf.mxu0 }
 0x5a3   : > { %v4202_v2 = vmul.f32 %v4189_v49, %v4071_v14  ;;  %v4073_v22 = vadd.f32 %v4072_v53, %v4019_v7  ;;  %v4228_v6 = vadd.f32 %v4213_v0, %v4200_v40  ;;  %v4239_v35 = vmax.f32 %v4227_v10, 0.0 }
 0x5a4   : > { %v4168_v13 = vpop.f32.mrf.mxu1  ;;  %v4023_v16 = vpop.f32.mrf.mxu0  ;;  %v4177_v23 = vadd.f32 %v11931_v33, %v11864_v18  ;;  %v12187_v33 = vld [vmem:[#allocation7 + $0x508] ss:$40 sps:$4 sm:$0xff]   ;;  %v12207_v18 = vld [vmem:[#allocation7 + $0x1a4] ss:$40 sps:$4 sm:$0xff]  }
 0x5a5   : > { %v4169_v44 = vadd.f32 %v11858_v11, %v4168_v13  ;;  %v4230_v19 = vadd.f32 %v4217_v15, %v4202_v2  ;;  %v4203_v5 = vmul.f32 %v4189_v49, %v4073_v22  ;;  %v4077_v56 = vadd.f32 %v4076_v60, %v4023_v16  ;;  %v12172_v2 = vld [vmem:[#allocation7 + $0x238] ss:$40 sps:$4 sm:$0xff]   ;;  %v12177_v22 = vld [vmem:[#allocation7 + $0x1ec] ss:$40 sps:$4 sm:$0xff]  }
 0x5a6   : > { %v11932_v9 = vpop.f32.mrf.mxu1  ;;  %v4025_v47 = vpop.f32.mrf.mxu0  ;;  %v4240_v39 = vmax.f32 %v4228_v6, 0.0 }
 0x5a7   : > { %v4201_v41 = vmul.f32 %v4185_v31, %v4169_v44  ;;  %v4231_v34 = vadd.f32 %v4217_v15, %v4203_v5  ;;  %v4079_v21 = vadd.f32 %v4078_v42, %v4025_v47  ;;  %v4242_v8 = vmax.f32 %v4230_v19, 0.0  ;;  %v4225_v42 = vpop.permute.xlu1 %4224  ;;  %v12195_v44 = vld [vmem:[#allocation7 + $0x244] ss:$40 sps:$4 sm:$0xff]  }
 0x5a8   : > { %v4171_v36 = vpop.f32.mrf.mxu1  ;;  %v4027_v28 = vpop.f32.mrf.mxu0  ;;  %v4180_v26 = vadd.f32 %v11932_v9, %v11867_v25  ;;  %v4205_v53 = vmul.f32 %v4193_v43, %v4077_v56  ;;  %v12180_v5 = vld [vmem:[#allocation7 + $0x19c] ss:$40 sps:$4 sm:$0xff]   ;;  %v12186_v56 = vld [vmem:[#allocation7 + $0x14c] ss:$40 sps:$4 sm:$0xff]   ;;  %v12193_v25 = vld [vmem:[#allocation7 + $0x240] ss:$40 sps:$4 sm:$0xff]  }
 0x5a9   : > { %v4243_v55 = vmax.f32 %v4231_v34, 0.0  ;;  %v4172_v4 = vadd.f32 %v11861_v32, %v4171_v36  ;;  %v4206_v48 = vmul.f32 %v4193_v43, %v4079_v21  ;;  %v4081_v38 = vadd.f32 %v4080_v52, %v4027_v28  ;;  %v12178_v32 = vld [vmem:[#allocation7 + $0x198] ss:$40 sps:$4 sm:$0xff]   ;;  %v12201_v34 = vld [vmem:[#allocation7 + $0x1f4] ss:$40 sps:$4 sm:$0xff]  }
 0x5aa   : > { %v4029_v29 = vpop.f32.mrf.mxu0  ;;  %v4229_v60 = vadd.f32 %v4213_v0, %v4201_v41  ;;  %v14142_v12 = vpack.c.bf16 %v4242_v8, %v4239_v35  ;;  %v4210_v51 = vmul.f32 %v4197_v1, %v4180_v26  ;;  %v4233_v52 = vadd.f32 %v4221_v50, %v4205_v53  ;;  %v12184_v41 = vld [vmem:[#allocation7 + $0x148] ss:$40 sps:$4 sm:$0xff]   ;;  %v12192_v36 = vld [vmem:[#allocation7 + $0xfc] ss:$40 sps:$4 sm:$0xff]   ;;  %v12190_v28 = vld [vmem:[#allocation7 + $0xf8] ss:$40 sps:$4 sm:$0xff]  }
 0x5ab   : > { %v4083_v46 = vadd.f32 %v4082_v24, %v4029_v29  ;;  %v14140_v31 = vpack.c.bf16 %v4243_v55, %v4240_v39  ;;  %v4204_v37 = vmul.f32 %v4189_v49, %v4172_v4  ;;  %v4234_v30 = vadd.f32 %v4221_v50, %v4206_v48  ;;  %v12199_v21 = vld [vmem:[#allocation7 + $0x1f0] ss:$40 sps:$4 sm:$0xff]   ;;  %v12198_v39 = vld [vmem:[#allocation7 + $0xac] ss:$40 sps:$4 sm:$0xff]   ;;  %v12205_v8 = vld [vmem:[#allocation7 + $0x1a0] ss:$40 sps:$4 sm:$0xff]  }
 0x5ac   : > { %v4208_v57 = vmul.f32 %v4197_v1, %v4081_v38  ;;  %v4207_v0 = vmul.f32 %v4193_v43, %v4177_v23  ;;  %v4241_v14 = vmax.f32 %v4229_v60, 0.0  ;;  %v4245_v16 = vmax.f32 %v4233_v52, 0.0  ;;  %v12196_v26 = vld [vmem:[#allocation7 + $0xa8] ss:$40 sps:$4 sm:$0xff]   ;;  %v12213_v55 = vld [vmem:[#allocation7 + $0x154] ss:$40 sps:$4 sm:$0xff]  }
 0x5ad   : > { %v4209_v58 = vmul.f32 %v4197_v1, %v4083_v46  ;;  %v4232_v62 = vadd.f32 %v4217_v15, %v4204_v37  ;;  %5375 = vmatprep.mubr.bf16.mxu1 %v14140_v31  ;;  %v4246_v7 = vmax.f32 %v4234_v30, 0.0  ;;  %v4238_v15 = vadd.f32 %v4225_v42, %v4210_v51  ;;  %v12175_v1 = vld [vmem:[#allocation7 + $0x1e8] ss:$40 sps:$4 sm:$0xff]   ;;  %v12204_v4 = vld [vmem:[#allocation7 + $0x5c] ss:$40 sps:$4 sm:$0xff]  }
 0x5ae   : > { %v4236_v24 = vadd.f32 %v4225_v42, %v4208_v57  ;;  %5376 = vmatmul.mubr.bf16.vlgmr.msra.gmra.mxu1 %v14142_v12  ;;  %v4235_v19 = vadd.f32 %v4221_v50, %v4207_v0  ;;  %v12211_v48 = vld [vmem:[#allocation7 + $0x150] ss:$40 sps:$4 sm:$0xff]   ;;  %v12219_v35 = vld [vmem:[#allocation7 + $0x104] ss:$40 sps:$4 sm:$0xff]   ;;  %v12217_v38 = vld [vmem:[#allocation7 + $0x100] ss:$40 sps:$4 sm:$0xff]  }
 0x5af   : > { %v4237_v40 = vadd.f32 %v4225_v42, %v4209_v58  ;;  %v4244_v49 = vmax.f32 %v4232_v62, 0.0  ;;  %5515 = vmatpush1.bf16.msra.mxu1 %v12181_v59  ;;  %v4250_v9 = vmax.f32 %v4238_v15, 0.0  ;;  %v12202_v29 = vld [vmem:[#allocation7 + $0x58] ss:$40 sps:$4 sm:$0xff]   ;;  %v12210_v53 = vld [vmem:[#allocation7 + $0xc] ss:$40 sps:$4 sm:$0xff]  }
 0x5b0   : > { %v4248_v11 = vmax.f32 %v4236_v24, 0.0  ;;  %5516 = vmatprep.subr.bf16.mxu1 %v12189_v54  ;;  %v4247_v47 = vmax.f32 %v4235_v19, 0.0  ;;  %v12208_v46 = vld [vmem:[#allocation7 + $0x8] ss:$40 sps:$4 sm:$0xff]   ;;  %v12225_v23 = vld [vmem:[#allocation7 + $0xb4] ss:$40 sps:$4 sm:$0xff]  }
 0x5b1   : > { %v4249_v20 = vmax.f32 %v4237_v40, 0.0  ;;  %v14146_v13 = vpack.c.bf16 %v4244_v49, %v4241_v14  ;;  %v12216_v60 = vld [vmem:[#allocation7 + $0x4bc] ss:$40 sps:$4 sm:$0xff]   ;;  %v12223_v50 = vld [vmem:[#allocation7 + $0xb0] ss:$40 sps:$4 sm:$0xff]  }
 0x5b2   : > { %v14152_v43 = vpack.c.bf16 %v4248_v11, %v4245_v16  ;;  %v14158_v10 = vpack.c.bf16 %v4250_v9, %v4247_v47  ;;  %v12214_v37 = vld [vmem:[#allocation7 + $0x4b8] ss:$40 sps:$4 sm:$0xff]   ;;  %v12231_v42 = vld [vmem:[#allocation7 + $0x64] ss:$40 sps:$4 sm:$0xff]   ;;  %v12220_v57 = vld [vmem:[#allocation7 + $0x468] ss:$40 sps:$4 sm:$0xff]  }
 0x5b3   : > { %v14148_v6 = vpack.c.bf16 %v4249_v20, %v4246_v7  ;;  %11406 = vmatmul.mubr.msk.bf16.vlgmr.msra.gmra.mxu0 %vm3972_vm9, %v14146_v13  ;;  %5517 = vmatpush1.bf16.msra.mxu1 %v12187_v33  ;;  %v12222_v59 = vld [vmem:[#allocation7 + $0x46c] ss:$40 sps:$4 sm:$0xff]   ;;  %v12229_v30 = vld [vmem:[#allocation7 + $0x60] ss:$40 sps:$4 sm:$0xff]   ;;  %v12228_v54 = vld [vmem:[#allocation7 + $0x41c] ss:$40 sps:$4 sm:$0xff]  }
 0x5b4   : > { %5450 = vmatpush1.bf16.msra.mxu0 %v12172_v2  ;;  %5438 = vmatprep.mubr.bf16.mxu0 %v14037_v27  ;;  %v12237_v58 = vld [vmem:[#allocation7 + $0x14] ss:$40 sps:$4 sm:$0xff]   ;;  %v12235_v51 = vld [vmem:[#allocation7 + $0x10] ss:$40 sps:$4 sm:$0xff]   ;;  %v12243_v52 = vld [vmem:[#allocation7 + $0x4c4] ss:$40 sps:$4 sm:$0xff]  }
 0x5b5   : > { %5451 = vmatprep.subr.bf16.mxu0 %v12177_v22  ;;  %5385 = vmatprep.mubr.bf16.mxu1 %v14148_v6  ;;  %v12226_v62 = vld [vmem:[#allocation7 + $0x418] ss:$40 sps:$4 sm:$0xff]   ;;  %v12234_v24 = vld [vmem:[#allocation7 + $0x3cc] ss:$40 sps:$4 sm:$0xff]   ;;  %v12232_v0 = vld [vmem:[#allocation7 + $0x3c8] ss:$40 sps:$4 sm:$0xff]  }
 0x5b6   : > { %5386 = vmatmul.mubr.bf16.gmra.mxu1 %v14152_v43  ;;  %5555 = vmatprep.subr.bf16.mxu1 %v12195_v44  ;;  %v12241_v40 = vld [vmem:[#allocation7 + $0x4c0] ss:$40 sps:$4 sm:$0xff]   ;;  %v12249_v14 = vld [vmem:[#allocation7 + $0x474] ss:$40 sps:$4 sm:$0xff]   ;;  %v12247_v33 = vld [vmem:[#allocation7 + $0x470] ss:$40 sps:$4 sm:$0xff]  }
 0x5b7   : > { %5534 = vmatprep.mubr.bf16.mxu1 %v14037_v27  ;;  %v12240_v49 = vld [vmem:[#allocation7 + $0x37c] ss:$40 sps:$4 sm:$0xff]   ;;  %v12238_v7 = vld [vmem:[#allocation7 + $0x378] ss:$40 sps:$4 sm:$0xff]   ;;  %v12246_v20 = vld [vmem:[#allocation7 + $0x32c] ss:$40 sps:$4 sm:$0xff]  }
 0x5b8   : > { %5452 = vmatpush1.bf16.msra.mxu0 %v12175_v1  ;;  %v12255_v11 = vld [vmem:[#allocation7 + $0x424] ss:$40 sps:$4 sm:$0xff]   ;;  %v12253_v2 = vld [vmem:[#allocation7 + $0x420] ss:$40 sps:$4 sm:$0xff]   ;;  %v12261_v22 = vld [vmem:[#allocation7 + $0x3d4] ss:$40 sps:$4 sm:$0xff]  }
 0x5b9   : > { %5453 = vmatprep.subr.bf16.mxu0 %v12180_v5  ;;  %v12244_v15 = vld [vmem:[#allocation7 + $0x328] ss:$40 sps:$4 sm:$0xff]   ;;  %v12252_v16 = vld [vmem:[#allocation7 + $0x2dc] ss:$40 sps:$4 sm:$0xff]   ;;  %v12250_v19 = vld [vmem:[#allocation7 + $0x2d8] ss:$40 sps:$4 sm:$0xff]  }
 0x5ba   : > { %v12259_v44 = vld [vmem:[#allocation7 + $0x3d0] ss:$40 sps:$4 sm:$0xff]   ;;  %v12264_v1 = vld [vmem:[#allocation7 + $0x384] ss:$40 sps:$4 sm:$0xff]   ;;  %v12262_v5 = vld [vmem:[#allocation7 + $0x380] ss:$40 sps:$4 sm:$0xff]  }
 0x5bb   : > { %11407 = vmatmul.mubr.msk.bf16.gmra.mxu0 %vm3972_vm9, %v14158_v10  ;;  %v12258_v9 = vld [vmem:[#allocation7 + $0x28c] ss:$40 sps:$4 sm:$0xff]   ;;  %v12256_v47 = vld [vmem:[#allocation7 + $0x288] ss:$40 sps:$4 sm:$0xff]  }
 0x5bc   : > { %5454 = vmatpush1.bf16.msra.mxu0 %v12178_v32  ;;  %5481 = vmatprep.mubr.bf16.mxu0 %v14140_v31  ;;  %v12267_v32 = vld [vmem:[#allocation7 + $0x334] ss:$40 sps:$4 sm:$0xff]  }
 0x5bd   : > { %5455 = vmatprep.subr.bf16.mxu0 %v12186_v56  ;;  %v12270_v56 = vld [vmem:[#allocation7 + $0x564] ss:$40 sps:$4 sm:$0xff]  }
 0x5be   : > { %11408 = vmatmul.mubr.msk.bf16.vlgmr.msra.gmra.mxu1 %vm3972_vm9, %v14146_v13 }
 0x5bf   : > { %5556 = vmatpush1.bf16.msra.mxu1 %v12193_v25  ;;  %5544 = vmatprep.mubr.bf16.mxu1 %v14037_v27  ;;  %v12265_v25 = vld [vmem:[#allocation7 + $0x330] ss:$40 sps:$4 sm:$0xff]  }
 0x5c0   : > { %5456 = vmatpush1.bf16.msra.mxu0 %v12184_v41  ;;  %5557 = vmatprep.subr.bf16.mxu1 %v12201_v34  ;;  %v12268_v41 = vld [vmem:[#allocation7 + $0x560] ss:$40 sps:$4 sm:$0xff]   ;;  %v12273_v34 = vld [vmem:[#allocation7 + $0x2e4] ss:$40 sps:$4 sm:$0xff]  }
 0x5c1   : > { %5457 = vmatprep.subr.bf16.mxu0 %v12192_v36  ;;  %v12276_v36 = vld [vmem:[#allocation7 + $0x514] ss:$40 sps:$4 sm:$0xff]  }
 0x5c3   : > { %5558 = vmatpush1.bf16.msra.mxu1 %v12199_v21  ;;  %v12271_v21 = vld [vmem:[#allocation7 + $0x2e0] ss:$40 sps:$4 sm:$0xff]  }
 0x5c4   : > { %5458 = vmatpush1.bf16.msra.mxu0 %v12190_v28  ;;  %5559 = vmatprep.subr.bf16.mxu1 %v12207_v18  ;;  %v12274_v28 = vld [vmem:[#allocation7 + $0x510] ss:$40 sps:$4 sm:$0xff]   ;;  %v12279_v18 = vld [vmem:[#allocation7 + $0x294] ss:$40 sps:$4 sm:$0xff]  }
 0x5c5   : > { %5459 = vmatprep.subr.bf16.mxu0 %v12198_v39  ;;  %v12282_v39 = vld [vmem:[#allocation7 + $0x24c] ss:$40 sps:$4 sm:$0xff]  }
 0x5c6   : > { %11409 = vmatmul.mubr.msk.bf16.gmra.mxu1 %vm3972_vm9, %v14158_v10 }
 0x5c7   : > { %5560 = vmatpush1.bf16.msra.mxu1 %v12205_v8  ;;  %5587 = vmatprep.mubr.bf16.mxu1 %v14140_v31  ;;  %v12277_v8 = vld [vmem:[#allocation7 + $0x290] ss:$40 sps:$4 sm:$0xff]  }
 0x5c8   : > { %5460 = vmatpush1.bf16.msra.mxu0 %v12196_v26  ;;  %5561 = vmatprep.subr.bf16.mxu1 %v12213_v55  ;;  %v12291_v26 = vld [vmem:[#allocation7 + $0x56c] ss:$40 sps:$4 sm:$0xff]   ;;  %v12289_v55 = vld [vmem:[#allocation7 + $0x568] ss:$40 sps:$4 sm:$0xff]  }
 0x5c9   : > { %5461 = vmatprep.subr.bf16.mxu0 %v12204_v4  ;;  %v12297_v4 = vld [vmem:[#allocation7 + $0x51c] ss:$40 sps:$4 sm:$0xff]  }
 0x5cb   : > { %5562 = vmatpush1.bf16.msra.mxu1 %v12211_v48  ;;  %v12295_v48 = vld [vmem:[#allocation7 + $0x518] ss:$40 sps:$4 sm:$0xff]  }
 0x5cc   : > { %5462 = vmatpush1.bf16.msra.mxu0 %v12202_v29  ;;  %5563 = vmatprep.subr.bf16.mxu1 %v12219_v35  ;;  %v12280_v29 = vld [vmem:[#allocation7 + $0x248] ss:$40 sps:$4 sm:$0xff]   ;;  %v12285_v35 = vld [vmem:[#allocation7 + $0x1fc] ss:$40 sps:$4 sm:$0xff]  }
 0x5cd   : > { %5463 = vmatprep.subr.bf16.mxu0 %v12210_v53  ;;  %v12303_v53 = vld [vmem:[#allocation7 + $0x254] ss:$40 sps:$4 sm:$0xff]  }
 0x5cf   : > { %5564 = vmatpush1.bf16.msra.mxu1 %v12217_v38  ;;  %v12283_v38 = vld [vmem:[#allocation7 + $0x1f8] ss:$40 sps:$4 sm:$0xff]  }
 0x5d0   : > { %5464 = vmatpush1.bf16.msra.mxu0 %v12208_v46  ;;  %5565 = vmatprep.subr.bf16.mxu1 %v12225_v23  ;;  %v14177_v46 = vld [vmem:[#allocation5] sm:$0xff] }
 0x5d1   : > { %5465 = vmatprep.subr.bf16.mxu0 %v12216_v60  ;;  %v12286_v23 = vld [vmem:[#allocation7 + $0x1a8] ss:$40 sps:$4 sm:$0xff]   ;;  %v12294_v60 = vld [vmem:[#allocation7 + $0x15c] ss:$40 sps:$4 sm:$0xff]   ;;  %8980 = vst.msk [vmem:[#allocation5 + $0x20] sm:$0xff] %vm14219_vm4, %v14177_v46  ;;  %8985 = vst.msk [vmem:[#allocation5 + $0x48] sm:$0xff] %vm14219_vm4, %v14177_v46 }
 0x5d3   : > { %5566 = vmatpush1.bf16.msra.mxu1 %v12223_v50  ;;  %v12301_v50 = vld [vmem:[#allocation7 + $0x250] ss:$40 sps:$4 sm:$0xff]  }
 0x5d4   : > { %5466 = vmatpush2.bf16.msra.mxu0 %v12214_v37  ;;  %5567 = vmatprep.subr.bf16.mxu1 %v12231_v42  ;;  %v12292_v37 = vld [vmem:[#allocation7 + $0x158] ss:$40 sps:$4 sm:$0xff]   ;;  %v12309_v42 = vld [vmem:[#allocation7 + $0x204] ss:$40 sps:$4 sm:$0xff]  }
 0x5d5   : > { %5467 = vmatprep.subr.bf16.mxu0 %v12222_v59  ;;  %v12300_v59 = vld [vmem:[#allocation7 + $0x10c] ss:$40 sps:$4 sm:$0xff]  }
 0x5d7   : > { %5568 = vmatpush1.bf16.msra.mxu1 %v12229_v30  ;;  %v12307_v30 = vld [vmem:[#allocation7 + $0x200] ss:$40 sps:$4 sm:$0xff]  }
 0x5d8   : > { %5468 = vmatpush2.bf16.msra.mxu0 %v12220_v57  ;;  %5569 = vmatprep.subr.bf16.mxu1 %v12237_v58  ;;  %v12298_v57 = vld [vmem:[#allocation7 + $0x108] ss:$40 sps:$4 sm:$0xff]   ;;  %v12315_v58 = vld [vmem:[#allocation7 + $0x1b4] ss:$40 sps:$4 sm:$0xff]  }
 0x5d9   : > { %5469 = vmatprep.subr.bf16.mxu0 %v12228_v54  ;;  %v12306_v54 = vld [vmem:[#allocation7 + $0xbc] ss:$40 sps:$4 sm:$0xff]  }
 0x5db   : > { %5570 = vmatpush1.bf16.msra.mxu1 %v12235_v51  ;;  %v12313_v51 = vld [vmem:[#allocation7 + $0x1b0] ss:$40 sps:$4 sm:$0xff]  }
 0x5dc   : > { %5470 = vmatpush2.bf16.msra.mxu0 %v12226_v62  ;;  %5571 = vmatprep.subr.bf16.mxu1 %v12243_v52  ;;  %v12304_v62 = vld [vmem:[#allocation7 + $0xb8] ss:$40 sps:$4 sm:$0xff]   ;;  %v12321_v52 = vld [vmem:[#allocation7 + $0x164] ss:$40 sps:$4 sm:$0xff]  }
 0x5dd   : > { %5471 = vmatprep.subr.bf16.mxu0 %v12234_v24  ;;  %v12312_v24 = vld [vmem:[#allocation7 + $0x6c] ss:$40 sps:$4 sm:$0xff]  }
 0x5df   : > { %5572 = vmatpush2.bf16.msra.mxu1 %v12241_v40  ;;  %v12319_v40 = vld [vmem:[#allocation7 + $0x160] ss:$40 sps:$4 sm:$0xff]  }
 0x5e0   : > { %5472 = vmatpush2.bf16.msra.mxu0 %v12232_v0  ;;  %5573 = vmatprep.subr.bf16.mxu1 %v12249_v14  ;;  %v12310_v0 = vld [vmem:[#allocation7 + $0x68] ss:$40 sps:$4 sm:$0xff]   ;;  %v12327_v14 = vld [vmem:[#allocation7 + $0x114] ss:$40 sps:$4 sm:$0xff]  }
 0x5e1   : > { %5473 = vmatprep.subr.bf16.mxu0 %v12240_v49  ;;  %v12318_v49 = vld [vmem:[#allocation7 + $0x1c] ss:$40 sps:$4 sm:$0xff]  }
 0x5e3   : > { %5574 = vmatpush2.bf16.msra.mxu1 %v12247_v33  ;;  %v12325_v33 = vld [vmem:[#allocation7 + $0x110] ss:$40 sps:$4 sm:$0xff]  }
 0x5e4   : > { %5474 = vmatpush2.bf16.msra.mxu0 %v12238_v7  ;;  %5575 = vmatprep.subr.bf16.mxu1 %v12255_v11  ;;  %v12316_v7 = vld [vmem:[#allocation7 + $0x18] ss:$40 sps:$4 sm:$0xff]   ;;  %v12333_v11 = vld [vmem:[#allocation7 + $0xc4] ss:$40 sps:$4 sm:$0xff]  }
 0x5e5   : > { %5475 = vmatprep.subr.bf16.mxu0 %v12246_v20  ;;  %v12324_v20 = vld [vmem:[#allocation7 + $0x4cc] ss:$40 sps:$4 sm:$0xff]  }
 0x5e7   : > { %5576 = vmatpush2.bf16.msra.mxu1 %v12253_v2  ;;  %v12331_v2 = vld [vmem:[#allocation7 + $0xc0] ss:$40 sps:$4 sm:$0xff]  }
 0x5e8   : > { %5476 = vmatpush2.bf16.msra.mxu0 %v12244_v15  ;;  %5577 = vmatprep.subr.bf16.mxu1 %v12261_v22  ;;  %v12322_v15 = vld [vmem:[#allocation7 + $0x4c8] ss:$40 sps:$4 sm:$0xff]   ;;  %v12330_v22 = vld [vmem:[#allocation7 + $0x47c] ss:$40 sps:$4 sm:$0xff]  }
 0x5e9   : > { %5477 = vmatprep.subr.bf16.mxu0 %v12252_v16  ;;  %v12337_v16 = vld [vmem:[#allocation7 + $0x70] ss:$40 sps:$4 sm:$0xff]  }
 0x5eb   : > { %5578 = vmatpush2.bf16.msra.mxu1 %v12259_v44  ;;  %v12328_v44 = vld [vmem:[#allocation7 + $0x478] ss:$40 sps:$4 sm:$0xff]  }
 0x5ec   : > { %5478 = vmatpush2.bf16.msra.mxu0 %v12250_v19  ;;  %5579 = vmatprep.subr.bf16.mxu1 %v12264_v1  ;;  %v12345_v19 = vld [vmem:[#allocation7 + $0x24] ss:$40 sps:$4 sm:$0xff]  }
 0x5ed   : > { %5479 = vmatprep.subr.bf16.mxu0 %v12258_v9  ;;  %v12336_v1 = vld [vmem:[#allocation7 + $0x42c] ss:$40 sps:$4 sm:$0xff]   ;;  %v12343_v9 = vld [vmem:[#allocation7 + $0x20] ss:$40 sps:$4 sm:$0xff]  }
 0x5ef   : > { %5580 = vmatpush2.bf16.msra.mxu1 %v12262_v5  ;;  %v12334_v5 = vld [vmem:[#allocation7 + $0x428] ss:$40 sps:$4 sm:$0xff]  }
 0x5f0   : > { %5480 = vmatpush2.bf16.msra.mxu0 %v12256_v47  ;;  %5581 = vmatprep.subr.bf16.mxu1 %v12267_v32  ;;  %v12351_v47 = vld [vmem:[#allocation7 + $0x4d4] ss:$40 sps:$4 sm:$0xff]  }
 0x5f1   : > { %5620 = vmatprep.subr.bf16.mxu0 %v12270_v56  ;;  %v12342_v32 = vld [vmem:[#allocation7 + $0x3dc] ss:$40 sps:$4 sm:$0xff]   ;;  %v12349_v56 = vld [vmem:[#allocation7 + $0x4d0] ss:$40 sps:$4 sm:$0xff]  }
 0x5f3   : > { %5482 = vmatmul.mubr.bf16.vlgmr.msra.gmra.mxu0 %v14142_v12  ;;  %5582 = vmatpush2.bf16.msra.mxu1 %v12265_v25  ;;  %v12340_v25 = vld [vmem:[#allocation7 + $0x3d8] ss:$40 sps:$4 sm:$0xff]  }
 0x5f4   : > { %5491 = vmatprep.mubr.bf16.mxu0 %v14148_v6  ;;  %5621 = vmatpush1.bf16.msra.mxu0 %v12268_v41  ;;  %v12357_v41 = vld [vmem:[#allocation7 + $0x484] ss:$40 sps:$4 sm:$0xff]  }
 0x5f5   : > { %5583 = vmatprep.subr.bf16.mxu1 %v12273_v34  ;;  %5622 = vmatprep.subr.bf16.mxu0 %v12276_v36  ;;  %v12348_v34 = vld [vmem:[#allocation7 + $0x38c] ss:$40 sps:$4 sm:$0xff]   ;;  %v12355_v36 = vld [vmem:[#allocation7 + $0x480] ss:$40 sps:$4 sm:$0xff]  }
 0x5f7   : > { %5584 = vmatpush2.bf16.msra.mxu1 %v12271_v21  ;;  %v12346_v21 = vld [vmem:[#allocation7 + $0x388] ss:$40 sps:$4 sm:$0xff]  }
 0x5f8   : > { %5623 = vmatpush1.bf16.msra.mxu0 %v12274_v28  ;;  %5585 = vmatprep.subr.bf16.mxu1 %v12279_v18  ;;  %v12363_v28 = vld [vmem:[#allocation7 + $0x434] ss:$40 sps:$4 sm:$0xff]  }
 0x5f9   : > { %5661 = vmatprep.subr.bf16.mxu0 %v12282_v39  ;;  %v12354_v18 = vld [vmem:[#allocation7 + $0x33c] ss:$40 sps:$4 sm:$0xff]   ;;  %v12361_v39 = vld [vmem:[#allocation7 + $0x430] ss:$40 sps:$4 sm:$0xff]  }
 0x5fb   : > { %5492 = vmatmul.mubr.bf16.gmra.mxu0 %v14152_v43  ;;  %5586 = vmatpush2.bf16.msra.mxu1 %v12277_v8  ;;  %v12352_v8 = vld [vmem:[#allocation7 + $0x338] ss:$40 sps:$4 sm:$0xff]  }
 0x5fc   : > { %5640 = vmatprep.mubr.bf16.mxu0 %v14037_v27  ;;  %5726 = vmatprep.subr.bf16.mxu1 %v12291_v26  ;;  %v12288_v27 = vld [vmem:[#allocation7 + $0x1ac] ss:$40 sps:$4 sm:$0xff]  }
 0x5fd   : > { %v12369_v26 = vld [vmem:[#allocation7 + $0x3e4] ss:$40 sps:$4 sm:$0xff]  }
 0x5fe   : > { %5588 = vmatmul.mubr.bf16.vlgmr.msra.gmra.mxu1 %v14142_v12 }
 0x5ff   : > { %5597 = vmatprep.mubr.bf16.mxu1 %v14148_v6  ;;  %5727 = vmatpush1.bf16.msra.mxu1 %v12289_v55  ;;  %v12360_v55 = vld [vmem:[#allocation7 + $0x2ec] ss:$40 sps:$4 sm:$0xff]  }
 0x600   : > { %5728 = vmatprep.subr.bf16.mxu1 %v12297_v4  ;;  %v12367_v4 = vld [vmem:[#allocation7 + $0x3e0] ss:$40 sps:$4 sm:$0xff]  }
 0x603   : > { %11410 = vmatmul.mubr.msk.bf16.vlgmr.msra.gmra.mxu0 %vm3972_vm9, %v14146_v13  ;;  %5729 = vmatpush1.bf16.msra.mxu1 %v12295_v48  ;;  %v12358_v48 = vld [vmem:[#allocation7 + $0x2e8] ss:$40 sps:$4 sm:$0xff]  }
 0x604   : > { %5662 = vmatpush1.bf16.msra.mxu0 %v12280_v29  ;;  %5650 = vmatprep.mubr.bf16.mxu0 %v14177_v46  ;;  %v12372_v29 = vld [vmem:[#allocation7 + $0x394] ss:$40 sps:$4 sm:$0xff]  }
 0x605   : > { %5663 = vmatprep.subr.bf16.mxu0 %v12285_v35  ;;  %5767 = vmatprep.subr.bf16.mxu1 %v12303_v53  ;;  %v12366_v35 = vld [vmem:[#allocation7 + $0x29c] ss:$40 sps:$4 sm:$0xff]   ;;  %v12370_v53 = vld [vmem:[#allocation7 + $0x390] ss:$40 sps:$4 sm:$0xff]  }
 0x606   : > { %5598 = vmatmul.mubr.bf16.gmra.mxu1 %v14152_v43 }
 0x607   : > { %5746 = vmatprep.mubr.bf16.mxu1 %v14177_v46 }
 0x608   : > { %5664 = vmatpush1.bf16.msra.mxu0 %v12283_v38  ;;  %v12364_v38 = vld [vmem:[#allocation7 + $0x298] ss:$40 sps:$4 sm:$0xff]  }
 0x609   : > { %5665 = vmatprep.subr.bf16.mxu0 %v12288_v27  ;;  %v12375_v27 = vld [vmem:[#allocation7 + $0x344] ss:$40 sps:$4 sm:$0xff]  }
 0x60b   : > { %11411 = vmatmul.mubr.msk.bf16.gmra.mxu0 %vm3972_vm9, %v14158_v10 }
 0x60c   : > { %5666 = vmatpush1.bf16.msra.mxu0 %v12286_v23  ;;  %5693 = vmatprep.mubr.bf16.mxu0 %v14140_v31  ;;  %v12378_v23 = vld [vmem:[#allocation7 + $0x574] ss:$40 sps:$4 sm:$0xff]  }
 0x60d   : > { %5667 = vmatprep.subr.bf16.mxu0 %v12294_v60  ;;  %v12373_v60 = vld [vmem:[#allocation7 + $0x340] ss:$40 sps:$4 sm:$0xff]  }
 0x60e   : > { %11412 = vmatmul.mubr.msk.bf16.vlgmr.msra.gmra.mxu1 %vm3972_vm9, %v14146_v13 }
 0x60f   : > { %5768 = vmatpush1.bf16.msra.mxu1 %v12301_v50  ;;  %5756 = vmatprep.mubr.bf16.mxu1 %v14177_v46  ;;  %v12381_v50 = vld [vmem:[#allocation7 + $0x2f4] ss:$40 sps:$4 sm:$0xff]  }
 0x610   : > { %5668 = vmatpush1.bf16.msra.mxu0 %v12292_v37  ;;  %5769 = vmatprep.subr.bf16.mxu1 %v12309_v42  ;;  %v12376_v37 = vld [vmem:[#allocation7 + $0x570] ss:$40 sps:$4 sm:$0xff]   ;;  %v12384_v42 = vld [vmem:[#allocation7 + $0x524] ss:$40 sps:$4 sm:$0xff]  }
 0x611   : > { %5669 = vmatprep.subr.bf16.mxu0 %v12300_v59  ;;  %v12379_v59 = vld [vmem:[#allocation7 + $0x2f0] ss:$40 sps:$4 sm:$0xff]  }
 0x613   : > { %5770 = vmatpush1.bf16.msra.mxu1 %v12307_v30  ;;  %v12387_v30 = vld [vmem:[#allocation7 + $0x2a4] ss:$40 sps:$4 sm:$0xff]  }
 0x614   : > { %5670 = vmatpush1.bf16.msra.mxu0 %v12298_v57  ;;  %5771 = vmatprep.subr.bf16.mxu1 %v12315_v58  ;;  %v12382_v57 = vld [vmem:[#allocation7 + $0x520] ss:$40 sps:$4 sm:$0xff]  }
 0x615   : > { %5671 = vmatprep.subr.bf16.mxu0 %v12306_v54  ;;  %v12385_v58 = vld [vmem:[#allocation7 + $0x2a0] ss:$40 sps:$4 sm:$0xff]  }
 0x616   : > { %11413 = vmatmul.mubr.msk.bf16.gmra.mxu1 %vm3972_vm9, %v14158_v10 }
 0x617   : > { %5772 = vmatpush1.bf16.msra.mxu1 %v12313_v51  ;;  %5799 = vmatprep.mubr.bf16.mxu1 %v14140_v31  ;;  %v12339_v31 = vld [vmem:[#allocation7 + $0x74] ss:$40 sps:$4 sm:$0xff]  }
 0x618   : > { %5672 = vmatpush1.bf16.msra.mxu0 %v12304_v62  ;;  %5773 = vmatprep.subr.bf16.mxu1 %v12321_v52 }
 0x619   : > { %5673 = vmatprep.subr.bf16.mxu0 %v12312_v24 }
 0x61b   : > { %5774 = vmatpush1.bf16.msra.mxu1 %v12319_v40 }
 0x61c   : > { %5674 = vmatpush1.bf16.msra.mxu0 %v12310_v0  ;;  %5775 = vmatprep.subr.bf16.mxu1 %v12327_v14 }
 0x61d   : > { %5675 = vmatprep.subr.bf16.mxu0 %v12318_v49 }
 0x61f   : > { %5776 = vmatpush1.bf16.msra.mxu1 %v12325_v33 }
 0x620   : > { %5676 = vmatpush1.bf16.msra.mxu0 %v12316_v7  ;;  %5777 = vmatprep.subr.bf16.mxu1 %v12333_v11 }
 0x621   : > { %5677 = vmatprep.subr.bf16.mxu0 %v12324_v20 }
 0x623   : > { %5778 = vmatpush1.bf16.msra.mxu1 %v12331_v2 }
 0x624   : > { %5678 = vmatpush2.bf16.msra.mxu0 %v12322_v15  ;;  %5779 = vmatprep.subr.bf16.mxu1 %v12339_v31 }
 0x625   : > { %5679 = vmatprep.subr.bf16.mxu0 %v12330_v22 }
 0x627   : > { %5780 = vmatpush1.bf16.msra.mxu1 %v12337_v16 }
 0x628   : > { %5680 = vmatpush2.bf16.msra.mxu0 %v12328_v44  ;;  %5781 = vmatprep.subr.bf16.mxu1 %v12345_v19 }
 0x629   : > { %5681 = vmatprep.subr.bf16.mxu0 %v12336_v1 }
 0x62b   : > { %5782 = vmatpush1.bf16.msra.mxu1 %v12343_v9 }
 0x62c   : > { %5682 = vmatpush2.bf16.msra.mxu0 %v12334_v5  ;;  %5783 = vmatprep.subr.bf16.mxu1 %v12351_v47 }
 0x62d   : > { %5683 = vmatprep.subr.bf16.mxu0 %v12342_v32 }
 0x62f   : > { %5784 = vmatpush2.bf16.msra.mxu1 %v12349_v56 }
 0x630   : > { %5684 = vmatpush2.bf16.msra.mxu0 %v12340_v25  ;;  %5785 = vmatprep.subr.bf16.mxu1 %v12357_v41 }
 0x631   : > { %5685 = vmatprep.subr.bf16.mxu0 %v12348_v34 }
 0x633   : > { %5786 = vmatpush2.bf16.msra.mxu1 %v12355_v36 }
 0x634   : > { %5686 = vmatpush2.bf16.msra.mxu0 %v12346_v21  ;;  %5787 = vmatprep.subr.bf16.mxu1 %v12363_v28 }
 0x635   : > { %5687 = vmatprep.subr.bf16.mxu0 %v12354_v18 }
 0x637   : > { %5788 = vmatpush2.bf16.msra.mxu1 %v12361_v39 }
 0x638   : > { %5688 = vmatpush2.bf16.msra.mxu0 %v12352_v8  ;;  %5789 = vmatprep.subr.bf16.mxu1 %v12369_v26 }
 0x639   : > { %5689 = vmatprep.subr.bf16.mxu0 %v12360_v55 }
 0x63b   : > { %5790 = vmatpush2.bf16.msra.mxu1 %v12367_v4 }
 0x63c   : > { %5690 = vmatpush2.bf16.msra.mxu0 %v12358_v48  ;;  %5791 = vmatprep.subr.bf16.mxu1 %v12372_v29 }
 0x63d   : > { %5691 = vmatprep.subr.bf16.mxu0 %v12366_v35 }
 0x63f   : > { %5792 = vmatpush2.bf16.msra.mxu1 %v12370_v53 }
 0x640   : > { %5692 = vmatpush2.bf16.msra.mxu0 %v12364_v38  ;;  %5793 = vmatprep.subr.bf16.mxu1 %v12375_v27 }
 0x641   : > { %5832 = vmatprep.subr.bf16.mxu0 %v12378_v23 }
 0x643   : > { %5694 = vmatmul.mubr.bf16.vlgmr.msra.gmra.mxu0 %v14142_v12  ;;  %5794 = vmatpush2.bf16.msra.mxu1 %v12373_v60 }
 0x644   : > { %5703 = vmatprep.mubr.bf16.mxu0 %v14148_v6  ;;  %5795 = vmatprep.subr.bf16.mxu1 %v12381_v50 }
 0x645   : > { %5833 = vmatpush1.bf16.msra.mxu0 %v12376_v37 }
 0x646   : > { %5834 = vmatprep.subr.bf16.mxu0 %v12384_v42 }
 0x647   : > { %5796 = vmatpush2.bf16.msra.mxu1 %v12379_v59 }
 0x648   : > { %5797 = vmatprep.subr.bf16.mxu1 %v12387_v30 }
 0x649   : > { %5835 = vmatpush1.bf16.msra.mxu0 %v12382_v57 }
 0x64b   : > { %5704 = vmatmul.mubr.bf16.gmra.mxu0 %v14152_v43  ;;  %5798 = vmatpush2.bf16.msra.mxu1 %v12385_v58 }
 0x64c   : > { %5852 = vmatprep.mubr.bf16.mxu0 %v14177_v46 }
 0x64e   : > { %5800 = vmatmul.mubr.bf16.vlgmr.msra.gmra.mxu1 %v14142_v12 }
 0x64f   : > { %5809 = vmatprep.mubr.bf16.mxu1 %v14148_v6 }
 0x653   : > { %11414 = vmatmul.mubr.msk.bf16.vlgmr.msra.gmra.mxu0 %vm3972_vm9, %v14146_v13 }
 0x654   : > { %5862 = vmatprep.mubr.bf16.mxu0 %v14177_v46 }
 0x656   : > { %5810 = vmatmul.mubr.bf16.gmra.mxu1 %v14152_v43 }
 0x657   : > { %8555 = vmatprep.mubr.bf16.mxu1 %v14177_v46 }
 0x65b   : > { %11415 = vmatmul.mubr.msk.bf16.gmra.mxu0 %vm3972_vm9, %v14158_v10 }
 0x66e   : > { %v5377_v54 = vpop.f32.mrf.mxu1 }
 0x670   : > { %v5379_v51 = vpop.f32.mrf.mxu1 }
 0x672   : > { %v5381_v62 = vpop.f32.mrf.mxu1 }
 0x673   : > { %v5430_v52 = vpop.f32.mrf.mxu0 }
 0x674   : > { %v5383_v24 = vpop.f32.mrf.mxu1  ;;  %v5431_v40 = vadd.f32 %v5430_v52, %v5377_v54 }
 0x675   : > { %v5432_v12 = vpop.f32.mrf.mxu0 }
 0x676   : > { %v5433_v6 = vadd.f32 %v5432_v12, %v5379_v51  ;;  %v5387_v0 = vpop.f32.mrf.mxu1 }
 0x677   : > { %v5434_v14 = vpop.f32.mrf.mxu0 }
 0x678   : > { %v11740_v13 = vpack.c.bf16 %v5433_v6, %v5431_v40  ;;  %v5389_v33 = vpop.f32.mrf.mxu1  ;;  %v5435_v43 = vadd.f32 %v5434_v14, %v5381_v62 }
 0x679   : > { %v5436_v49 = vpop.f32.mrf.mxu0 }
 0x67a   : > { %6036 = vst [vmem:[#allocation6] sm:$0xff] %v11740_v13  ;;  %v5437_v7 = vadd.f32 %v5436_v49, %v5383_v24  ;;  %6441 = vrot.lane.b32.xlu0 %v11740_v13, %s12558_s29  ;;  %v5391_v2 = vpop.f32.mrf.mxu1 }
 0x67b   : > { %v5440_v10 = vpop.f32.mrf.mxu0 }
 0x67c   : > { %v11745_v11 = vpack.c.bf16 %v5437_v7, %v5435_v43  ;;  %v5441_v15 = vadd.f32 %v5440_v10, %v5387_v0  ;;  %v5393_v19 = vpop.f32.mrf.mxu1 }
 0x67d   : > { %v5442_v20 = vpop.f32.mrf.mxu0 }
 0x67e   : > { %6042 = vst [vmem:[#allocation6 + $0x24] sm:$0xff] %v11745_v11  ;;  %v5443_v31 = vadd.f32 %v5442_v20, %v5389_v33  ;;  %7313 = vrot.lane.b32.xlu0 %v11740_v13, %s12559_s19  ;;  %v5536_v32 = vpop.f32.mrf.mxu1 }
 0x67f   : > { %v5444_v22 = vpop.f32.mrf.mxu0 }
 0x680   : > { %v14206_v16 = vpack.c.bf16 %v5443_v31, %v5441_v15  ;;  %v5445_v1 = vadd.f32 %v5444_v22, %v5391_v2  ;;  %v5538_v56 = vpop.f32.mrf.mxu1 }
 0x681   : > { %v5446_v44 = vpop.f32.mrf.mxu0 }
 0x682   : > { %6047 = vst [vmem:[#allocation6 + $0x48] sm:$0xff] %v14206_v16  ;;  %v5447_v9 = vadd.f32 %v5446_v44, %v5393_v19  ;;  %6269 = vrot.lane.b32.xlu0 %v11740_v13, %s12553_s16  ;;  %v5540_v25 = vpop.f32.mrf.mxu1 }
 0x684   : > { %v14210_v5 = vpack.c.bf16 %v5447_v9, %v5445_v1  ;;  %v5542_v41 = vpop.f32.mrf.mxu1 }
 0x686   : > { %6052 = vst [vmem:[#allocation6 + $0x6c] sm:$0xff] %v14210_v5  ;;  %6097 = vrot.lane.b32.xlu0 %v11740_v13, %s12548_s11  ;;  %v5546_v34 = vpop.f32.mrf.mxu1 }
 0x688   : > { %v5548_v21 = vpop.f32.mrf.mxu1 }
 0x68a   : > { %7136 = vrot.lane.b32.xlu0 %v11740_v13, %s12560_s20  ;;  %v5550_v8 = vpop.f32.mrf.mxu1 }
 0x68c   : > { %v5552_v35 = vpop.f32.mrf.mxu1 }
 0x68e   : > { %6959 = vrot.lane.b32.xlu0 %v11740_v13, %s12561_s21 }
 0x692   : > { %6787 = vrot.lane.b32.xlu0 %v11740_v13, %s12550_s13 }
 0x696   : > { %6614 = vrot.lane.b32.xlu0 %v11740_v13, %s12562_s22 }
 0x69a   : > { %6451 = vrot.lane.b32.xlu0 %v11745_v11, %s12558_s29 }
 0x69e   : > { %7323 = vrot.lane.b32.xlu0 %v11745_v11, %s12559_s19 }
 0x6a2   : > { %6279 = vrot.lane.b32.xlu0 %v11745_v11, %s12553_s16 }
 0x6a6   : > { %6107 = vrot.lane.b32.xlu0 %v11745_v11, %s12548_s11 }
 0x6aa   : > { %7146 = vrot.lane.b32.xlu0 %v11745_v11, %s12560_s20 }
 0x6ae   : > { %6969 = vrot.lane.b32.xlu0 %v11745_v11, %s12561_s21 }
 0x6b2   : > { %6797 = vrot.lane.b32.xlu0 %v11745_v11, %s12550_s13 }
 0x6b3   : > { %v5483_v36 = vpop.f32.mrf.mxu0 }
 0x6b4   : > { %v5537_v28 = vadd.f32 %v5536_v32, %v5483_v36 }
 0x6b5   : > { %v5485_v46 = vpop.f32.mrf.mxu0 }
 0x6b6   : > { %v5539_v18 = vadd.f32 %v5538_v56, %v5485_v46  ;;  %6624 = vrot.lane.b32.xlu0 %v11745_v11, %s12562_s22 }
 0x6b7   : > { %v5487_v39 = vpop.f32.mrf.mxu0 }
 0x6b8   : > { %v14237_v26 = vpack.c.bf16 %v5539_v18, %v5537_v28  ;;  %v5541_v4 = vadd.f32 %v5540_v25, %v5487_v39 }
 0x6b9   : > { %v5489_v55 = vpop.f32.mrf.mxu0 }
 0x6ba   : > { %6037 = vst [vmem:[#allocation6 + $0x8] sm:$0xff] %v14237_v26  ;;  %v5543_v48 = vadd.f32 %v5542_v41, %v5489_v55  ;;  %6443 = vrot.lane.b32.xlu1 %v14237_v26, %s12558_s29  ;;  %6461 = vrot.lane.b32.xlu0 %v14206_v16, %s12558_s29 }
 0x6bb   : > { %v5493_v29 = vpop.f32.mrf.mxu0 }
 0x6bc   : > { %v14244_v53 = vpack.c.bf16 %v5543_v48, %v5541_v4  ;;  %v5547_v27 = vadd.f32 %v5546_v34, %v5493_v29 }
 0x6bd   : > { %v5495_v38 = vpop.f32.mrf.mxu0 }
 0x6be   : > { %6043 = vst [vmem:[#allocation6 + $0x2c] sm:$0xff] %v14244_v53  ;;  %v5549_v23 = vadd.f32 %v5548_v21, %v5495_v38  ;;  %v5589_v60 = vpop.f32.mrf.mxu1  ;;  %7315 = vrot.lane.b32.xlu1 %v14237_v26, %s12559_s19  ;;  %7333 = vrot.lane.b32.xlu0 %v14206_v16, %s12559_s19 }
 0x6bf   : > { %v5497_v50 = vpop.f32.mrf.mxu0 }
 0x6c0   : > { %v14251_v37 = vpack.c.bf16 %v5549_v23, %v5547_v27  ;;  %v5591_v42 = vpop.f32.mrf.mxu1  ;;  %v5551_v30 = vadd.f32 %v5550_v8, %v5497_v50 }
 0x6c1   : > { %v5499_v59 = vpop.f32.mrf.mxu0 }
 0x6c2   : > { %6048 = vst [vmem:[#allocation6 + $0x50] sm:$0xff] %v14251_v37  ;;  %v5553_v57 = vadd.f32 %v5552_v35, %v5499_v59  ;;  %v5593_v58 = vpop.f32.mrf.mxu1  ;;  %6271 = vrot.lane.b32.xlu1 %v14237_v26, %s12553_s16  ;;  %6289 = vrot.lane.b32.xlu0 %v14206_v16, %s12553_s16 }
 0x6c3   : > { %v5642_v54 = vpop.f32.mrf.mxu0 }
 0x6c4   : > { %v14258_v51 = vpack.c.bf16 %v5553_v57, %v5551_v30  ;;  %v5595_v62 = vpop.f32.mrf.mxu1  ;;  %v5643_v24 = vadd.f32 %v5642_v54, %v5589_v60 }
 0x6c5   : > { %v5644_v52 = vpop.f32.mrf.mxu0 }
 0x6c6   : > { %6053 = vst [vmem:[#allocation6 + $0x74] sm:$0xff] %v14258_v51  ;;  %v5645_v12 = vadd.f32 %v5644_v52, %v5591_v42  ;;  %v5599_v40 = vpop.f32.mrf.mxu1  ;;  %6099 = vrot.lane.b32.xlu1 %v14237_v26, %s12548_s11  ;;  %6117 = vrot.lane.b32.xlu0 %v14206_v16, %s12548_s11 }
 0x6c7   : > { %v5646_v6 = vpop.f32.mrf.mxu0 }
 0x6c8   : > { %v14265_v0 = vpack.c.bf16 %v5645_v12, %v5643_v24  ;;  %v5601_v13 = vpop.f32.mrf.mxu1  ;;  %v5647_v49 = vadd.f32 %v5646_v6, %v5593_v58 }
 0x6c9   : > { %v5648_v14 = vpop.f32.mrf.mxu0 }
 0x6ca   : > { %6038 = vst [vmem:[#allocation6 + $0x10] sm:$0xff] %v14265_v0  ;;  %v5649_v33 = vadd.f32 %v5648_v14, %v5595_v62  ;;  %7138 = vrot.lane.b32.xlu1 %v14237_v26, %s12560_s20  ;;  %7156 = vrot.lane.b32.xlu0 %v14206_v16, %s12560_s20  ;;  %v5603_v11 = vpop.f32.mrf.mxu1 }
 0x6cb   : > { %v5652_v43 = vpop.f32.mrf.mxu0 }
 0x6cc   : > { %v14272_v7 = vpack.c.bf16 %v5649_v33, %v5647_v49  ;;  %v5653_v20 = vadd.f32 %v5652_v43, %v5599_v40  ;;  %v5605_v44 = vpop.f32.mrf.mxu1 }
 0x6cd   : > { %v5654_v10 = vpop.f32.mrf.mxu0 }
 0x6ce   : > { %6044 = vst [vmem:[#allocation6 + $0x34] sm:$0xff] %v14272_v7  ;;  %v5655_v2 = vadd.f32 %v5654_v10, %v5601_v13  ;;  %6961 = vrot.lane.b32.xlu1 %v14237_v26, %s12561_s21  ;;  %6979 = vrot.lane.b32.xlu0 %v14206_v16, %s12561_s21  ;;  %v5748_v32 = vpop.f32.mrf.mxu1 }
 0x6cf   : > { %v5656_v15 = vpop.f32.mrf.mxu0 }
 0x6d0   : > { %v14279_v31 = vpack.c.bf16 %v5655_v2, %v5653_v20  ;;  %v5657_v19 = vadd.f32 %v5656_v15, %v5603_v11  ;;  %v5750_v25 = vpop.f32.mrf.mxu1 }
 0x6d1   : > { %v5658_v22 = vpop.f32.mrf.mxu0 }
 0x6d2   : > { %6049 = vst [vmem:[#allocation6 + $0x58] sm:$0xff] %v14279_v31  ;;  %v5659_v1 = vadd.f32 %v5658_v22, %v5605_v44  ;;  %6789 = vrot.lane.b32.xlu1 %v14237_v26, %s12550_s13  ;;  %6807 = vrot.lane.b32.xlu0 %v14206_v16, %s12550_s13  ;;  %v5752_v34 = vpop.f32.mrf.mxu1 }
 0x6d4   : > { %v14286_v9 = vpack.c.bf16 %v5659_v1, %v5657_v19  ;;  %v5754_v21 = vpop.f32.mrf.mxu1 }
 0x6d6   : > { %6054 = vst [vmem:[#allocation6 + $0x7c] sm:$0xff] %v14286_v9  ;;  %6616 = vrot.lane.b32.xlu1 %v14237_v26, %s12562_s22  ;;  %6634 = vrot.lane.b32.xlu0 %v14206_v16, %s12562_s22  ;;  %v5758_v28 = vpop.f32.mrf.mxu1 }
 0x6d8   : > { %v5760_v39 = vpop.f32.mrf.mxu1 }
 0x6da   : > { %6453 = vrot.lane.b32.xlu1 %v14244_v53, %s12558_s29  ;;  %6471 = vrot.lane.b32.xlu0 %v14210_v5, %s12558_s29  ;;  %v5762_v29 = vpop.f32.mrf.mxu1 }
 0x6dc   : > { %v5764_v50 = vpop.f32.mrf.mxu1 }
 0x6de   : > { %7325 = vrot.lane.b32.xlu1 %v14244_v53, %s12559_s19  ;;  %7343 = vrot.lane.b32.xlu0 %v14210_v5, %s12559_s19 }
 0x6e2   : > { %6281 = vrot.lane.b32.xlu1 %v14244_v53, %s12553_s16  ;;  %6299 = vrot.lane.b32.xlu0 %v14210_v5, %s12553_s16 }
 0x6e6   : > { %6109 = vrot.lane.b32.xlu1 %v14244_v53, %s12548_s11  ;;  %6127 = vrot.lane.b32.xlu0 %v14210_v5, %s12548_s11 }
 0x6ea   : > { %7148 = vrot.lane.b32.xlu1 %v14244_v53, %s12560_s20  ;;  %7166 = vrot.lane.b32.xlu0 %v14210_v5, %s12560_s20 }
 0x6ec   : > { %v14313_v16 = vpop.permute.xlu0 %6441 }
 0x6ee   : > { %6971 = vrot.lane.b32.xlu1 %v14244_v53, %s12561_s21  ;;  %6989 = vrot.lane.b32.xlu0 %v14210_v5, %s12561_s21 }
 0x6f0   : > { %v14319_v56 = vpop.permute.xlu0 %7313 }
 0x6f2   : > { %6799 = vrot.lane.b32.xlu1 %v14244_v53, %s12550_s13  ;;  %6817 = vrot.lane.b32.xlu0 %v14210_v5, %s12550_s13 }
 0x6f4   : > { %v14325_v41 = vpop.permute.xlu0 %6269 }
 0x6f6   : > { %6626 = vrot.lane.b32.xlu1 %v14244_v53, %s12562_s22  ;;  %6644 = vrot.lane.b32.xlu0 %v14210_v5, %s12562_s22 }
 0x6f8   : > { %v14331_v36 = vpop.permute.xlu0 %6097 }
 0x6fa   : > { %6463 = vrot.lane.b32.xlu1 %v14251_v37, %s12558_s29  ;;  %6445 = vrot.lane.b32.xlu0 %v14265_v0, %s12558_s29 }
 0x6fc   : > { %v14337_v46 = vpop.permute.xlu0 %7136 }
 0x6fe   : > { %7335 = vrot.lane.b32.xlu1 %v14251_v37, %s12559_s19  ;;  %6273 = vrot.lane.b32.xlu0 %v14265_v0, %s12553_s16 }
 0x700   : > { %v14343_v5 = vpop.permute.xlu0 %6959 }
 0x702   : > { %6291 = vrot.lane.b32.xlu1 %v14251_v37, %s12553_s16  ;;  %6101 = vrot.lane.b32.xlu0 %v14265_v0, %s12548_s11 }
 0x703   : > { %v5695_v18 = vpop.f32.mrf.mxu0 }
 0x704   : > { %v14349_v8 = vpop.permute.xlu0 %6787  ;;  %v5749_v55 = vadd.f32 %v5748_v32, %v5695_v18 }
 0x705   : > { %v5697_v26 = vpop.f32.mrf.mxu0 }
 0x706   : > { %v5751_v4 = vadd.f32 %v5750_v25, %v5697_v26  ;;  %6119 = vrot.lane.b32.xlu1 %v14251_v37, %s12548_s11  ;;  %7140 = vrot.lane.b32.xlu0 %v14265_v0, %s12560_s20 }
 0x707   : > { %v5699_v48 = vpop.f32.mrf.mxu0 }
 0x708   : > { %v14355_v35 = vpack.c.bf16 %v5751_v4, %v5749_v55  ;;  %v14357_v53 = vpop.permute.xlu0 %6614  ;;  %v5753_v27 = vadd.f32 %v5752_v34, %v5699_v48 }
 0x709   : > { %v5701_v38 = vpop.f32.mrf.mxu0 }
 0x70a   : > { %5996 = vst [vmem:[#allocation4 + $0x18] sm:$0xff] %v14355_v35  ;;  %6039 = vst [vmem:[#allocation6 + $0x18] sm:$0xff] %v14355_v35  ;;  %v5755_v23 = vadd.f32 %v5754_v21, %v5701_v38  ;;  %7158 = vrot.lane.b32.xlu1 %v14251_v37, %s12560_s20  ;;  %6963 = vrot.lane.b32.xlu0 %v14265_v0, %s12561_s21 }
 0x70b   : > { %v5705_v60 = vpop.f32.mrf.mxu0 }
 0x70c   : > { %v14365_v42 = vpack.c.bf16 %v5755_v23, %v5753_v27  ;;  %v14367_v59 = vpop.permute.xlu0 %6451  ;;  %v5759_v57 = vadd.f32 %v5758_v28, %v5705_v60 }
 0x70d   : > { %v5707_v30 = vpop.f32.mrf.mxu0 }
 0x70e   : > { %6004 = vst [vmem:[#allocation4 + $0x40] sm:$0xff] %v14365_v42  ;;  %6045 = vst [vmem:[#allocation6 + $0x3c] sm:$0xff] %v14365_v42  ;;  %v5761_v58 = vadd.f32 %v5760_v39, %v5707_v30  ;;  %v5801_v54 = vpop.f32.mrf.mxu1  ;;  %6981 = vrot.lane.b32.xlu1 %v14251_v37, %s12561_s21  ;;  %6791 = vrot.lane.b32.xlu0 %v14265_v0, %s12550_s13 }
 0x70f   : > { %v5709_v62 = vpop.f32.mrf.mxu0 }
 0x710   : > { %v14375_v52 = vpack.c.bf16 %v5761_v58, %v5759_v57  ;;  %v5803_v24 = vpop.f32.mrf.mxu1  ;;  %v14377_v12 = vpop.permute.xlu0 %7323  ;;  %v5763_v6 = vadd.f32 %v5762_v29, %v5709_v62 }
 0x711   : > { %v5711_v40 = vpop.f32.mrf.mxu0 }
 0x712   : > { %6050 = vst [vmem:[#allocation6 + $0x60] sm:$0xff] %v14375_v52  ;;  %v5765_v14 = vadd.f32 %v5764_v50, %v5711_v40  ;;  %v5805_v13 = vpop.f32.mrf.mxu1  ;;  %6809 = vrot.lane.b32.xlu1 %v14251_v37, %s12550_s13  ;;  %7317 = vrot.lane.b32.xlu0 %v14265_v0, %s12559_s19 }
 0x713   : > { %v5854_v49 = vpop.f32.mrf.mxu0 }
 0x714   : > { %v14384_v33 = vpack.c.bf16 %v5765_v14, %v5763_v6  ;;  %v5807_v43 = vpop.f32.mrf.mxu1  ;;  %v14386_v10 = vpop.permute.xlu0 %6279  ;;  %v5855_v20 = vadd.f32 %v5854_v49, %v5801_v54  ;;  %v7353_v14 = vrot.slane %v14319_v56, 4 }
 0x715   : > { %v5856_v11 = vpop.f32.mrf.mxu0 }
 0x716   : > { %6014 = vst [vmem:[#allocation4 + $0x90] sm:$0xff] %v14384_v33  ;;  %6055 = vst [vmem:[#allocation6 + $0x84] sm:$0xff] %v14384_v33  ;;  %v5857_v2 = vadd.f32 %v5856_v11, %v5803_v24  ;;  %v5811_v15 = vpop.f32.mrf.mxu1  ;;  %6636 = vrot.lane.b32.xlu1 %v14251_v37, %s12562_s22  ;;  %6618 = vrot.lane.b32.xlu0 %v14265_v0, %s12562_s22 }
 0x717   : > { %v5858_v22 = vpop.f32.mrf.mxu0 }
 0x718   : > { %v11744_v44 = vpack.c.bf16 %v5857_v2, %v5855_v20  ;;  %v14394_v19 = vpop.permute.xlu0 %6107  ;;  %v5813_v32 = vpop.f32.mrf.mxu1  ;;  %v5859_v25 = vadd.f32 %v5858_v22, %v5805_v13 }
 0x719   : > { %v5860_v1 = vpop.f32.mrf.mxu0 }
 0x71a   : > { %6000 = vst.msk [vmem:[#allocation4 + $0x20] sm:$0xff] %vm14219_vm4, %v11744_v44  ;;  %v5861_v34 = vadd.f32 %v5860_v1, %v5807_v43  ;;  %6473 = vrot.lane.b32.xlu1 %v14258_v51, %s12558_s29  ;;  %6465 = vrot.lane.b32.xlu0 %v14279_v31, %s12558_s29  ;;  %v5815_v18 = vpop.f32.mrf.mxu1  ;;  %v7176_v44 = vrot.slane %v14337_v46, 4 }
 0x71b   : > { %v5864_v37 = vpop.f32.mrf.mxu0 }
 0x71c   : > { %v11749_v21 = vpack.c.bf16 %v5861_v34, %v5859_v25  ;;  %v14402_v0 = vpop.permute.xlu0 %7146  ;;  %v5865_v39 = vadd.f32 %v5864_v37, %v5811_v15  ;;  %v5817_v27 = vpop.f32.mrf.mxu1  ;;  %v6999_v34 = vrot.slane %v14343_v5, 4 }
 0x71d   : > { %v5866_v28 = vpop.f32.mrf.mxu0 }
 0x71e   : > { %6005 = vst.msk [vmem:[#allocation4 + $0x48] sm:$0xff] %vm14219_vm4, %v11749_v21  ;;  %v5867_v26 = vadd.f32 %v5866_v28, %v5813_v32  ;;  %7345 = vrot.lane.b32.xlu1 %v14258_v51, %s12559_s19  ;;  %6293 = vrot.lane.b32.xlu0 %v14279_v31, %s12553_s16 }
 0x71f   : > { %v5868_v55 = vpop.f32.mrf.mxu0 }
 0x720   : > { %v11754_v4 = vpack.c.bf16 %v5867_v26, %v5865_v39  ;;  %v14410_v48 = vpop.permute.xlu0 %6969  ;;  %v5869_v23 = vadd.f32 %v5868_v55, %v5815_v18  ;;  %v6827_v39 = vrot.slane %v14349_v8, 4 }
 0x721   : > { %v6020_v29 = vld [vmem:[#allocation4 + $0x20] sm:$0xf]  ;;  %v5870_v38 = vpop.f32.mrf.mxu0  ;;  %v7004_v3 = vrot.slane %v14410_v48, 4 }
 0x722   : > { %6010 = vst.msk [vmem:[#allocation4 + $0x70] sm:$0xff] %vm14219_vm4, %v11754_v4  ;;  %v5871_v60 = vadd.f32 %v5870_v38, %v5817_v27  ;;  %6301 = vrot.lane.b32.xlu1 %v14258_v51, %s12553_s16  ;;  %6121 = vrot.lane.b32.xlu0 %v14279_v31, %s12548_s11  ;;  %v6654_v38 = vrot.slane %v14357_v53, 4 }
 0x723   : > { %6041 = vst.msk [vmem:[#allocation6 + $0x20] sm:$0xf] %vm6040_vm5, %v6020_v29 }
 0x724   : > { %v11759_v50 = vpack.c.bf16 %v5871_v60, %v5869_v23  ;;  %v14419_v30 = vpop.permute.xlu0 %6797 }
 0x725   : > { %v6025_v57 = vld [vmem:[#allocation4 + $0x48] sm:$0xf] }
 0x726   : > { %6015 = vst.msk [vmem:[#allocation4 + $0x98] sm:$0xff] %vm14219_vm4, %v11759_v50  ;;  %6129 = vrot.lane.b32.xlu1 %v14258_v51, %s12548_s11  ;;  %7160 = vrot.lane.b32.xlu0 %v14279_v31, %s12560_s20 }
 0x727   : > { %6046 = vst.msk [vmem:[#allocation6 + $0x44] sm:$0xf] %vm6040_vm5, %v6025_v57 }
 0x728   : > { %v14428_v58 = vpop.permute.xlu0 %6624 }
 0x729   : > { %17246 = vst [vmem:[#allocation10_spill] sm:$0xff] %v14428_v58  ;;  %v6030_v54 = vld [vmem:[#allocation4 + $0x70] sm:$0xf]  ;;  %v14730_v58 = vld [vmem:[#allocation4 + $0x20] sm:$0xff] }
 0x72a   : > { %7168 = vrot.lane.b32.xlu1 %v14258_v51, %s12560_s20  ;;  %6983 = vrot.lane.b32.xlu0 %v14279_v31, %s12561_s21  ;;  %6051 = vst.msk [vmem:[#allocation6 + $0x68] sm:$0xf] %vm6040_vm5, %v6030_v54 }
 0x72c   : > { %v14435_v47 = vpop.permute.xlu1 %6443  ;;  %v14437_v62 = vpop.permute.xlu0 %6461 }
 0x72d   : > { %v6035_v24 = vld [vmem:[#allocation4 + $0x98] sm:$0xf] }
 0x72e   : > { %6991 = vrot.lane.b32.xlu1 %v14258_v51, %s12561_s21  ;;  %6811 = vrot.lane.b32.xlu0 %v14279_v31, %s12550_s13  ;;  %6056 = vst.msk [vmem:[#allocation6 + $0x8c] sm:$0xf] %vm6040_vm5, %v6035_v24  ;;  %v7358_v24 = vrot.slane %v14377_v12, 4 }
 0x730   : > { %v14444_v40 = vpop.permute.xlu1 %7315  ;;  %v14446_v6 = vpop.permute.xlu0 %7333 }
 0x731   : > { %v17097_v13 = vrot.slane %v14444_v40, 4 }
 0x732   : > { %6819 = vrot.lane.b32.xlu1 %v14258_v51, %s12550_s13  ;;  %7337 = vrot.lane.b32.xlu0 %v14279_v31, %s12559_s19 }
 0x733   : > { %v7373_v49 = vsel %vm810_vm3, %v7353_v14, %v17097_v13  ;;  %v6405_v13 = vld [vmem:[#allocation4 + $0x20] sm:$0xf] }
 0x734   : > { %v14459_v43 = vsel %vm7374_vm7, %v14319_v56, %v7373_v49  ;;  %v14461_v11 = vpop.permute.xlu1 %6271  ;;  %v14463_v20 = vpop.permute.xlu0 %6289 }
 0x735   : > { %7430 = vst [vmem:[#allocation6 + $0x480] sm:$0xff] %v14459_v43 }
 0x736   : > { %6646 = vrot.lane.b32.xlu1 %v14258_v51, %s12562_s22  ;;  %6638 = vrot.lane.b32.xlu0 %v14279_v31, %s12562_s22 }
 0x738   : > { %v14470_v2 = vpop.permute.xlu1 %6099  ;;  %v14472_v15 = vpop.permute.xlu0 %6117 }
 0x73a   : > { %6455 = vrot.lane.b32.xlu1 %v14272_v7, %s12558_s29  ;;  %6447 = vrot.lane.b32.xlu0 %v14355_v35, %s12558_s29 }
 0x73c   : > { %v14478_v56 = vpop.permute.xlu1 %7138  ;;  %v14480_v22 = vpop.permute.xlu0 %7156 }
 0x73d   : > { %v17101_v51 = vrot.slane %v14478_v56, 4 }
 0x73e   : > { %6283 = vrot.lane.b32.xlu1 %v14272_v7, %s12553_s16  ;;  %7319 = vrot.lane.b32.xlu0 %v14355_v35, %s12559_s19 }
 0x73f   : > { %v7196_v31 = vsel %vm810_vm3, %v7176_v44, %v17101_v51  ;;  %v6233_v51 = vld [vmem:[#allocation4 + $0x20] sm:$0xf] }
 0x740   : > { %v14493_v1 = vsel %vm7197_vm10, %v14337_v46, %v7196_v31  ;;  %v14495_v32 = vpop.permute.xlu1 %6961  ;;  %v14497_v25 = vpop.permute.xlu0 %6979 }
 0x741   : > { %v17100_v37 = vrot.slane %v14495_v32, 4 }
 0x742   : > { %6111 = vrot.lane.b32.xlu1 %v14272_v7, %s12548_s11  ;;  %6275 = vrot.lane.b32.xlu0 %v14355_v35, %s12553_s16 }
 0x743   : > { %v7019_v46 = vsel %vm810_vm3, %v6999_v34, %v17100_v37 }
 0x744   : > { %v14510_v21 = vsel %vm7020_vm12, %v14343_v5, %v7019_v46  ;;  %v14512_v28 = vpop.permute.xlu1 %6789  ;;  %v14514_v18 = vpop.permute.xlu0 %6807 }
 0x745   : > { %17247 = vst [vmem:[#allocation13_spill] sm:$0xff] %v14510_v21  ;;  %v17099_v26 = vrot.slane %v14512_v28, 4 }
 0x746   : > { %7150 = vrot.lane.b32.xlu1 %v14272_v7, %s12560_s20  ;;  %6103 = vrot.lane.b32.xlu0 %v14355_v35, %s12548_s11 }
 0x747   : > { %v6847_v55 = vsel %vm810_vm3, %v6827_v39, %v17099_v26 }
 0x748   : > { %v6848_v5 = vsel %vm1457_vm8, %v14349_v8, %v6847_v55  ;;  %v14527_v4 = vpop.permute.xlu1 %6616  ;;  %v14529_v29 = vpop.permute.xlu0 %6634 }
 0x749   : > { %6899 = vst [vmem:[#allocation6 + $0x2d0] sm:$0xff] %v6848_v5  ;;  %v17095_v27 = vrot.slane %v14527_v4, 4 }
 0x74a   : > { %6973 = vrot.lane.b32.xlu1 %v14272_v7, %s12561_s21  ;;  %7142 = vrot.lane.b32.xlu0 %v14355_v35, %s12560_s20 }
 0x74b   : > { %v6674_v8 = vsel %vm810_vm3, %v6654_v38, %v17095_v27  ;;  %v7181_v38 = vrot.slane %v14402_v0, 4 }
 0x74c   : > { %v6676_v23 = vsel %vm6675_vm14, %v14357_v53, %v6674_v8  ;;  %v14542_v60 = vpop.permute.xlu1 %6453  ;;  %v14544_v50 = vpop.permute.xlu0 %6471  ;;  %v14596_v8 = vld [vmem:[%s17077_s3 + $0x4] ss:$12 sps:$4 sm:$0xff]  }
 0x74d   : > { %6727 = vst [vmem:[#allocation6 + $0x240] sm:$0xff] %v6676_v23  ;;  %8512 = vmatprep.mubr.bf16.mxu0 %v14596_v8 }
 0x74e   : > { %6801 = vrot.lane.b32.xlu1 %v14272_v7, %s12550_s13  ;;  %6965 = vrot.lane.b32.xlu0 %v14355_v35, %s12561_s21 }
 0x750   : > { %v14550_v57 = vpop.permute.xlu1 %7325  ;;  %v14552_v54 = vpop.permute.xlu0 %7343 }
 0x751   : > { %17248 = vst [vmem:[#allocation14_spill] sm:$0xff] %v14550_v57  ;;  %v17093_v14 = vrot.slane %v14550_v57, 4 }
 0x752   : > { %7327 = vrot.lane.b32.xlu1 %v14272_v7, %s12559_s19  ;;  %6467 = vrot.lane.b32.xlu0 %v14375_v52, %s12558_s29 }
 0x753   : > { %v7383_v53 = vsel %vm810_vm3, %v7358_v24, %v17093_v14 }
 0x754   : > { %v14565_v49 = vsel %vm7374_vm7, %v14377_v12, %v7383_v53  ;;  %v14567_v44 = vpop.permute.xlu1 %6281  ;;  %v14569_v31 = vpop.permute.xlu0 %6299 }
 0x756   : > { %6628 = vrot.lane.b32.xlu1 %v14272_v7, %s12562_s22  ;;  %7339 = vrot.lane.b32.xlu0 %v14375_v52, %s12559_s19 }
 0x758   : > { %v14579_v39 = vpop.permute.xlu1 %6109  ;;  %v14581_v12 = vpop.permute.xlu0 %6127 }
 0x75a   : > { %6475 = vrot.lane.b32.xlu1 %v14286_v9, %s12558_s29  ;;  %6295 = vrot.lane.b32.xlu0 %v14375_v52, %s12553_s16 }
 0x75c   : > { %v14587_v55 = vpop.permute.xlu1 %7148  ;;  %v14589_v5 = vpop.permute.xlu0 %7166 }
 0x75d   : > { %v17094_v7 = vrot.slane %v14587_v55, 4 }
 0x75e   : > { %6303 = vrot.lane.b32.xlu1 %v14286_v9, %s12553_s16  ;;  %6123 = vrot.lane.b32.xlu0 %v14375_v52, %s12548_s11 }
 0x75f   : > { %v7206_v23 = vsel %vm810_vm3, %v7181_v38, %v17094_v7  ;;  %v6832_v38 = vrot.slane %v14419_v30, 4 }
 0x760   : > { %v14608_v24 = vsel %vm7197_vm10, %v14402_v0, %v7206_v23  ;;  %v14610_v53 = vpop.permute.xlu1 %6971  ;;  %v14612_v45 = vpop.permute.xlu0 %6989 }
 0x761   : > { %17249 = vst [vmem:[#allocation15_spill] sm:$0xff] %v14610_v53  ;;  %v17096_v63 = vrot.slane %v14610_v53, 4  ;;  %v7009_v53 = vrot.slane %v14497_v25, 4 }
 0x762   : > { %6131 = vrot.lane.b32.xlu1 %v14286_v9, %s12548_s11  ;;  %7162 = vrot.lane.b32.xlu0 %v14375_v52, %s12560_s20 }
 0x763   : > { %v7029_v0 = vsel %vm810_vm3, %v7004_v3, %v17096_v63 }
 0x764   : > { %v14629_v23 = vsel %vm7020_vm12, %v14410_v48, %v7029_v0  ;;  %v14631_v7 = vpop.permute.xlu1 %6799  ;;  %v14633_v14 = vpop.permute.xlu0 %6817 }
 0x765   : > { %17250 = vst [vmem:[#allocation16_spill] sm:$0xff] %v14629_v23  ;;  %17251 = vst [vmem:[#allocation17_spill] sm:$0xff] %v14631_v7  ;;  %v17098_v34 = vrot.slane %v14631_v7, 4  ;;  %v17115_v7 = vrot.slane %v14470_v2, 4 }
 0x766   : > { %7170 = vrot.lane.b32.xlu1 %v14286_v9, %s12560_s20  ;;  %6985 = vrot.lane.b32.xlu0 %v14375_v52, %s12561_s21 }
 0x767   : > { %v6855_v3 = vsel %vm810_vm3, %v6832_v38, %v17098_v34  ;;  %v17113_v34 = vrot.slane %v14461_v11, 4 }
 0x768   : > { %v14650_v48 = vsel %vm1457_vm8, %v14419_v30, %v6855_v3  ;;  %v14652_v0 = vpop.permute.xlu1 %6626  ;;  %v14654_v46 = vpop.permute.xlu0 %6644  ;;  %v7363_v3 = vrot.slane %v14446_v6, 4 }
 0x769   : > { %17252 = vst [vmem:[#allocation18_spill] sm:$0xff] %v14650_v48  ;;  %17253 = vst [vmem:[#allocation19_spill] sm:$0xff] %v14652_v0 }
 0x76a   : > { %6993 = vrot.lane.b32.xlu1 %v14286_v9, %s12561_s21  ;;  %6813 = vrot.lane.b32.xlu0 %v14375_v52, %s12550_s13 }
 0x76c   : > { %v14660_v63 = vpop.permute.xlu1 %6463  ;;  %v14662_v27 = vpop.permute.xlu0 %6445 }
 0x76e   : > { %6821 = vrot.lane.b32.xlu1 %v14286_v9, %s12550_s13  ;;  %6449 = vrot.lane.b32.xlu0 %v6405_v13, %s12558_s29 }
 0x770   : > { %v14667_v30 = vpop.permute.xlu1 %7335  ;;  %v14669_v38 = vpop.permute.xlu0 %6273 }
 0x771   : > { %17254 = vst [vmem:[#allocation20_spill] sm:$0xff] %v14669_v38  ;;  %v17111_v26 = vrot.slane %v14667_v30, 4  ;;  %v17112_v37 = vrot.slane %v14669_v38, 4 }
 0x772   : > { %7347 = vrot.lane.b32.xlu1 %v14286_v9, %s12559_s19  ;;  %6277 = vrot.lane.b32.xlu0 %v6233_v51, %s12553_s16 }
 0x773   : > { %v7392_v13 = vsel %vm810_vm3, %v7363_v3, %v17111_v26  ;;  %v6331_v17 = vsel %vm810_vm3, %v17113_v34, %v17112_v37  ;;  %v6061_v26 = vld [vmem:[#allocation4 + $0x20] sm:$0xf]  ;;  %v6415_v34 = vld [vmem:[#allocation4 + $0x70] sm:$0xf] }
 0x774   : > { %v14688_v61 = vsel %vm7374_vm7, %v14446_v6, %v7392_v13  ;;  %v6332_v57 = vsel %vm941_vm11, %v14461_v11, %v6331_v17  ;;  %v14692_v48 = vpop.permute.xlu1 %6291  ;;  %v14694_v51 = vpop.permute.xlu0 %6101 }
 0x775   : > { %17255 = vst [vmem:[#allocation21_spill] sm:$0xff] %v14694_v51  ;;  %6382 = vst [vmem:[#allocation6 + $0x128] sm:$0xff] %v6332_v57  ;;  %v17114_v3 = vrot.slane %v14694_v51, 4 }
 0x776   : > { %6648 = vrot.lane.b32.xlu1 %v14286_v9, %s12562_s22  ;;  %6105 = vrot.lane.b32.xlu0 %v6061_v26, %s12548_s11  ;;  %v17257_v9 = vrot.slane %v14478_v56, 4 }
 0x777   : > { %v6159_v17 = vsel %vm810_vm3, %v17115_v7, %v17114_v3  ;;  %v7186_v7 = vrot.slane %v14480_v22, 4 }
 0x778   : > { %v6160_v6 = vsel %vm812_vm6, %v14470_v2, %v6159_v17  ;;  %v14708_v13 = vpop.permute.xlu1 %6119  ;;  %v14710_v57 = vpop.permute.xlu0 %7140 }
 0x779   : > { %17256 = vst [vmem:[#allocation22_spill] sm:$0xff] %v14710_v57  ;;  %6210 = vst [vmem:[#allocation6 + $0x98] sm:$0xff] %v6160_v6  ;;  %v17119_v37 = vrot.slane %v14710_v57, 4 }
 0x77a   : > { %6457 = vrot.lane.b32.xlu1 %v14365_v42, %s12558_s29  ;;  %6469 = vrot.lane.b32.xlu0 %v6415_v34, %s12558_s29 }
 0x77b   : > { %v7199_v26 = vsel %vm810_vm3, %v17257_v9, %v17119_v37  ;;  %v17259_v9 = vrot.slane %v14495_v32, 4 }
 0x77c   : > { %v7200_v17 = vsel %vm7197_vm10, %v14478_v56, %v7199_v26  ;;  %v14723_v3 = vpop.permute.xlu1 %7158  ;;  %v14725_v6 = vpop.permute.xlu0 %6963 }
 0x77d   : > { %17258 = vst [vmem:[#allocation23_spill] sm:$0xff] %v14725_v6  ;;  %7254 = vst [vmem:[#allocation6 + $0x3f8] sm:$0xff] %v7200_v17  ;;  %v17125_v38 = vrot.slane %v14723_v3, 4  ;;  %v17128_v34 = vrot.slane %v14725_v6, 4  ;;  %v6243_v6 = vld [vmem:[#allocation4 + $0x70] sm:$0xf] }
 0x77e   : > { %7329 = vrot.lane.b32.xlu1 %v14365_v42, %s12559_s19  ;;  %7144 = vrot.lane.b32.xlu0 %v14730_v58, %s12560_s20 }
 0x77f   : > { %v7215_v56 = vsel %vm810_vm3, %v7186_v7, %v17125_v38  ;;  %v7022_v26 = vsel %vm810_vm3, %v17259_v9, %v17128_v34  ;;  %v6837_v34 = vrot.slane %v14514_v18, 4 }
 0x780   : > { %v14746_v17 = vsel %vm7197_vm10, %v14480_v22, %v7215_v56  ;;  %v7023_v37 = vsel %vm7020_vm12, %v14495_v32, %v7022_v26  ;;  %v14750_v0 = vpop.permute.xlu1 %6981  ;;  %v14752_v57 = vpop.permute.xlu0 %6791  ;;  %v17261_v32 = vrot.slane %v14512_v28, 4 }
 0x781   : > { %17260 = vst [vmem:[#allocation24_spill] sm:$0xff] %v14752_v57  ;;  %7077 = vst [vmem:[#allocation6 + $0x368] sm:$0xff] %v7023_v37  ;;  %v17130_v7 = vrot.slane %v14750_v0, 4  ;;  %v17129_v38 = vrot.slane %v14752_v57, 4 }
 0x782   : > { %6285 = vrot.lane.b32.xlu1 %v14365_v42, %s12553_s16  ;;  %6297 = vrot.lane.b32.xlu0 %v6243_v6, %s12553_s16 }
 0x783   : > { %v7038_v22 = vsel %vm810_vm3, %v7009_v53, %v17130_v7  ;;  %v6849_v37 = vsel %vm810_vm3, %v17261_v32, %v17129_v38  ;;  %v6071_v38 = vld [vmem:[#allocation4 + $0x70] sm:$0xf] }
 0x784   : > { %v14770_v56 = vsel %vm7020_vm12, %v14497_v25, %v7038_v22  ;;  %v6850_v9 = vsel %vm1457_vm8, %v14512_v28, %v6849_v37  ;;  %v14774_v26 = vpop.permute.xlu1 %6809  ;;  %v14776_v6 = vpop.permute.xlu0 %7317  ;;  %v17262_v28 = vrot.slane %v14444_v40, 4  ;;  %v14808_v37 = vld [vmem:[#allocation4 + $0x70] sm:$0xff] }
 0x785   : > { %7086 = vst [vmem:[#allocation6 + $0x3a8] sm:$0xff] %v14770_v56  ;;  %6900 = vst [vmem:[#allocation6 + $0x2d8] sm:$0xff] %v6850_v9  ;;  %v17133_v53 = vrot.slane %v14774_v26, 4  ;;  %v17134_v32 = vrot.slane %v14776_v6, 4 }
 0x786   : > { %6113 = vrot.lane.b32.xlu1 %v14365_v42, %s12548_s11  ;;  %6125 = vrot.lane.b32.xlu0 %v6071_v38, %s12548_s11 }
 0x787   : > { %v6863_v25 = vsel %vm810_vm3, %v6837_v34, %v17133_v53  ;;  %v7376_v22 = vsel %vm810_vm3, %v17262_v28, %v17134_v32  ;;  %v6664_v34 = vrot.slane %v14529_v29, 4 }
 0x788   : > { %v14796_v9 = vsel %vm1457_vm8, %v14514_v18, %v6863_v25  ;;  %v7377_v7 = vsel %vm7374_vm7, %v14444_v40, %v7376_v22  ;;  %v14800_v38 = vpop.permute.xlu1 %6636  ;;  %v14802_v57 = vpop.permute.xlu0 %6618  ;;  %v6486_v18 = vrot.slane %v14367_v59, 4  ;;  %v6491_v25 = vrot.slane %v14437_v62, 4 }
 0x789   : > { %17263 = vst [vmem:[#allocation25_spill] sm:$0xff] %v14796_v9  ;;  %17264 = vst [vmem:[#allocation26_spill] sm:$0xff] %v14802_v57  ;;  %v17142_v28 = vrot.slane %v14800_v38, 4  ;;  %v17145_v32 = vrot.slane %v14802_v57, 4  ;;  %v17265_v22 = vrot.slane %v14527_v4, 4  ;;  %v17266_v9 = vrot.slane %v14542_v60, 4 }
 0x78a   : > { %7431 = vst [vmem:[#allocation6 + $0x488] sm:$0xff] %v7377_v7  ;;  %7152 = vrot.lane.b32.xlu1 %v14365_v42, %s12560_s20  ;;  %7164 = vrot.lane.b32.xlu0 %v14808_v37, %s12560_s20  ;;  %v6496_v57 = vrot.slane %v14544_v50, 4 }
 0x78b   : > { %v6691_v7 = vsel %vm810_vm3, %v6664_v34, %v17142_v28  ;;  %v6677_v53 = vsel %vm810_vm3, %v17265_v22, %v17145_v32  ;;  %v6510_v23 = vsel %vm810_vm3, %v6486_v18, %v17266_v9  ;;  %v6481_v28 = vrot.slane %v14313_v16, 4 }
 0x78c   : > { %v14830_v21 = vsel %vm6675_vm14, %v14529_v29, %v6691_v7  ;;  %v6678_v40 = vsel %vm6675_vm14, %v14527_v4, %v6677_v53  ;;  %v14834_v51 = vpop.permute.xlu1 %6473  ;;  %v14836_v34 = vpop.permute.xlu0 %6465  ;;  %v17267_v22 = vrot.slane %v14660_v63, 4  ;;  %v17268_v4 = vrot.slane %v14435_v47, 4 }
 0x78d   : > { %6728 = vst [vmem:[#allocation6 + $0x248] sm:$0xff] %v6678_v40  ;;  %v17146_v9 = vrot.slane %v14834_v51, 4  ;;  %v6511_v53 = vsel %vm6502_vm15, %v14367_v59, %v6510_v23  ;;  %v7368_v40 = vrot.slane %v14552_v54, 4 }
 0x78e   : > { %v6518_v32 = vsel %vm810_vm3, %v6491_v25, %v17267_v22  ;;  %6975 = vrot.lane.b32.xlu1 %v14365_v42, %s12561_s21  ;;  %6793 = vrot.lane.b32.xlu0 %v14355_v35, %s12550_s13  ;;  %v6501_v29 = vsel %vm810_vm3, %v6481_v28, %v17268_v4  ;;  %v17150_v25 = vrot.slane %v14567_v44, 4  ;;  %v6314_v4 = vrot.slane %v14386_v10, 4 }
 0x78f   : > { %v6526_v18 = vsel %vm810_vm3, %v6496_v57, %v17146_v9  ;;  %v6519_v42 = vsel %vm6502_vm15, %v14437_v62, %v6518_v32  ;;  %v6503_v9 = vsel %vm6502_vm15, %v14313_v16, %v6501_v29  ;;  %v6319_v62 = vrot.slane %v14463_v20, 4 }
 0x790   : > { %v6527_v35 = vsel %vm6502_vm15, %v14544_v50, %v6526_v18  ;;  %v14862_v7 = vpop.permute.xlu1 %7345  ;;  %v14864_v28 = vpop.permute.xlu0 %6293  ;;  %v11494_v32 = vcombine.high %v6503_v9, %v6511_v53  ;;  %v6309_v18 = vrot.slane %v14325_v41, 4  ;;  %v6337_v16 = vsel %vm810_vm3, %v6314_v4, %v17150_v25 }
 0x791   : > { %17269 = vst [vmem:[#allocation27_spill] sm:$0xff] %v14862_v7  ;;  %v17147_v23 = vrot.slane %v14862_v7, 4  ;;  %v11503_v22 = vcombine.high %v6519_v42, %v6527_v35  ;;  %v11502_v57 = vcombine.low %v6519_v42, %v6527_v35  ;;  %v6324_v29 = vrot.slane %v14569_v31, 4 }
 0x792   : > { %6477 = vrot.lane.b32.xlu1 %v14384_v33, %s12558_s29  ;;  %6987 = vrot.lane.b32.xlu0 %v14808_v37, %s12561_s21  ;;  %v17271_v25 = vrot.slane %v14461_v11, 4  ;;  %v17159_v11 = vrot.slane %v14579_v39, 4 }
 0x793   : > { %v7401_v50 = vsel %vm810_vm3, %v7368_v40, %v17147_v23  ;;  %8480 = vmatprep.subr.bf16.mxu0 %v11503_v22  ;;  %v17270_v40 = vrot.slane %v14692_v48, 4 }
 0x794   : > { %v7402_v42 = vsel %vm7374_vm7, %v14552_v54, %v7401_v50  ;;  %v14886_v35 = vpop.permute.xlu1 %6301  ;;  %v14888_v59 = vpop.permute.xlu0 %6121  ;;  %8481 = vmatpush1.bf16.msra.mxu0 %v11502_v57  ;;  %v6329_v54 = vsel %vm810_vm3, %v6309_v18, %v17271_v25  ;;  %v11493_v57 = vcombine.low %v6503_v9, %v6511_v53  ;;  %v6338_v50 = vsel %vm941_vm11, %v14386_v10, %v6337_v16 }
 0x795   : > { %v6345_v22 = vsel %vm810_vm3, %v6319_v62, %v17270_v40  ;;  %v17170_v23 = vrot.slane %v14886_v35, 4  ;;  %8482 = vmatprep.subr.bf16.mxu0 %v11494_v32  ;;  %v11592_v7 = vcombine.low %v14688_v61, %v7402_v42  ;;  %v11593_v4 = vcombine.high %v14688_v61, %v7402_v42 }
 0x796   : > { %7349 = vrot.lane.b32.xlu1 %v14384_v33, %s12559_s19  ;;  %6640 = vrot.lane.b32.xlu0 %v14375_v52, %s12562_s22  ;;  %v6147_v62 = vrot.slane %v14472_v15, 4  ;;  %v17169_v32 = vrot.slane %v14708_v13, 4  ;;  %v6152_v25 = vrot.slane %v14581_v12, 4  ;;  %v6346_v52 = vsel %vm941_vm11, %v14463_v20, %v6345_v22 }
 0x797   : > { %v6353_v61 = vsel %vm810_vm3, %v6324_v29, %v17170_v23  ;;  %8535 = vmatprep.subr.bf16.mxu1 %v11593_v4  ;;  %v17272_v29 = vcombine.high %v14459_v43, %v14565_v49  ;;  %v6142_v20 = vrot.slane %v14394_v19, 4  ;;  %v17273_v4 = vrot.slane %v14723_v3, 4 }
 0x798   : > { %v6354_v9 = vsel %vm941_vm11, %v14569_v31, %v6353_v61  ;;  %v14916_v53 = vpop.permute.xlu1 %6129  ;;  %v14918_v10 = vpop.permute.xlu0 %7160  ;;  %8483 = vmatpush1.bf16.msra.mxu0 %v11493_v57  ;;  %8536 = vmatpush1.bf16.msra.mxu1 %v11592_v7  ;;  %v6330_v31 = vsel %vm941_vm11, %v14325_v41, %v6329_v54  ;;  %v6173_v7 = vsel %vm810_vm3, %v6147_v62, %v17169_v32  ;;  %v14946_v57 = vld [vmem:[%s17077_s3 + $0x8] ss:$12 sps:$4 sm:$0xff]   ;;  %v6137_v61 = vrot.slane %v14331_v36, 4 }
 0x799   : > { %v17165_v18 = vrot.slane %v14916_v53, 4  ;;  %v17164_v16 = vrot.slane %v14918_v10, 4  ;;  %8537 = vmatprep.subr.bf16.mxu1 %v17272_v29  ;;  %v11485_v42 = vcombine.high %v6346_v52, %v6354_v9  ;;  %v11484_v40 = vcombine.low %v6346_v52, %v6354_v9  ;;  %v17305_v32 = vld [vmem:[#allocation23_spill] sm:$0xff] }
 0x79a   : > { %6305 = vrot.lane.b32.xlu1 %v14384_v33, %s12553_s16  ;;  %6967 = vrot.lane.b32.xlu0 %v14730_v58, %s12561_s21  ;;  %v11476_v54 = vcombine.high %v6330_v31, %v6338_v50  ;;  %v17274_v29 = vcombine.low %v14459_v43, %v14565_v49  ;;  %v11475_v43 = vcombine.low %v6330_v31, %v6338_v50  ;;  %v17275_v49 = vrot.slane %v14470_v2, 4 }
 0x79b   : > { %v6181_v22 = vsel %vm810_vm3, %v6152_v25, %v17165_v18  ;;  %v7217_v41 = vsel %vm810_vm3, %v17273_v4, %v17164_v16  ;;  %8484 = vmatprep.subr.bf16.mxu0 %v11485_v42  ;;  %v6165_v42 = vsel %vm810_vm3, %v6142_v20, %v17159_v11  ;;  %v7191_v4 = vrot.slane %v14589_v5, 4  ;;  %v15210_v18 = vld [vmem:[%s17082_s8 + $0x8] sm:$0xff] }
 0x79c   : > { %v6182_v62 = vsel %vm812_vm6, %v14581_v12, %v6181_v22  ;;  %v14953_v25 = vsel %vm7197_vm10, %v14723_v3, %v7217_v41  ;;  %v14955_v52 = vpop.permute.xlu1 %7168  ;;  %v14957_v9 = vpop.permute.xlu0 %6983  ;;  %8485 = vmatpush1.bf16.msra.mxu0 %v11484_v40  ;;  %8538 = vmatpush1.bf16.msra.mxu1 %v17274_v29  ;;  %v6577_v22 = vld [vmem:[#allocation4 + $0x18] sm:$0xff]  ;;  %v6174_v40 = vsel %vm812_vm6, %v14472_v15, %v6173_v7 }
 0x79d   : > { %7264 = vst [vmem:[#allocation6 + $0x440] sm:$0xff] %v14953_v25  ;;  %v17163_v12 = vrot.slane %v14955_v52, 4  ;;  %v17162_v3 = vrot.slane %v14957_v9, 4  ;;  %8486 = vmatprep.subr.bf16.mxu0 %v11476_v54  ;;  %v6157_v20 = vsel %vm810_vm3, %v6137_v61, %v17275_v49  ;;  %v17276_v54 = vrot.slane %v14750_v0, 4 }
 0x79e   : > { %6133 = vrot.lane.b32.xlu1 %v14384_v33, %s12548_s11  ;;  %6620 = vrot.lane.b32.xlu0 %v6577_v22, %s12562_s22  ;;  %v11467_v7 = vcombine.high %v6174_v40, %v6182_v62  ;;  %v6166_v50 = vsel %vm812_vm6, %v14394_v19, %v6165_v42  ;;  %v6761_v42 = vld [vmem:[#allocation4 + $0x70] sm:$0xf]  ;;  %v11466_v22 = vcombine.low %v6174_v40, %v6182_v62 }
 0x79f   : > { %v7224_v41 = vsel %vm810_vm3, %v7191_v4, %v17163_v12  ;;  %v7040_v15 = vsel %vm810_vm3, %v17276_v54, %v17162_v3  ;;  %11601 = vmatmul.mubr.msk.bf16.vlgmr.msra.gmra.mxu1 %vm3972_vm9, %v14946_v57  ;;  %v7014_v4 = vrot.slane %v14612_v45, 4  ;;  %v17296_v3 = vld [vmem:[#allocation22_spill] sm:$0xff] }
 0x7a0   : > { %v14991_v2 = vsel %vm7197_vm10, %v14589_v5, %v7224_v41  ;;  %v14995_v31 = vsel %vm7020_vm12, %v14750_v0, %v7040_v15  ;;  %v14997_v61 = vpop.permute.xlu1 %6991  ;;  %v14999_v29 = vpop.permute.xlu0 %6811  ;;  %8487 = vmatpush1.bf16.msra.mxu0 %v11475_v43  ;;  %8598 = vmatprep.mubr.bf16.mxu1 %v14596_v8  ;;  %v6158_v0 = vsel %vm812_vm6, %v14331_v36, %v6157_v20  ;;  %v17277_v43 = vrot.slane %v14774_v26, 4  ;;  %v15035_v15 = vld [vmem:[#allocation4 + $0x90] sm:$0xff] }
 0x7a1   : > { %7087 = vst [vmem:[#allocation6 + $0x3b0] sm:$0xff] %v14995_v31  ;;  %v17153_v19 = vrot.slane %v14997_v61, 4  ;;  %v17152_v5 = vrot.slane %v14999_v29, 4  ;;  %8488 = vmatprep.subr.bf16.mxu0 %v11467_v7  ;;  %v11458_v41 = vcombine.high %v6158_v0, %v6166_v50  ;;  %v6842_v20 = vrot.slane %v14633_v14, 4 }
 0x7a2   : > { %7172 = vrot.lane.b32.xlu1 %v14384_v33, %s12560_s20  ;;  %6815 = vrot.lane.b32.xlu0 %v6761_v42, %s12550_s13  ;;  %v17297_v12 = vrot.slane %v17296_v3, 4 }
 0x7a3   : > { %v7047_v8 = vsel %vm810_vm3, %v7014_v4, %v17153_v19  ;;  %v6865_v49 = vsel %vm810_vm3, %v17277_v43, %v17152_v5  ;;  %v17278_v4 = vrot.slane %v14667_v30, 4 }
 0x7a4   : > { %v15021_v36 = vsel %vm7020_vm12, %v14612_v45, %v7047_v8  ;;  %v15025_v33 = vsel %vm1457_vm8, %v14774_v26, %v6865_v49  ;;  %v15027_v62 = vpop.permute.xlu1 %6819  ;;  %v15029_v40 = vpop.permute.xlu0 %7337  ;;  %8489 = vmatpush1.bf16.msra.mxu0 %v11466_v22  ;;  %v11457_v26 = vcombine.low %v6158_v0, %v6166_v50  ;;  %v12388_v22 = vld [vmem:[#allocation6 + $0x4c] ss:$36 sps:$4 sm:$0xff]   ;;  %v6669_v0 = vrot.slane %v14654_v46, 4 }
 0x7a5   : > { %7091 = vst [vmem:[#allocation6 + $0x3cc] sm:$0xff] %v15021_v36  ;;  %6910 = vst [vmem:[#allocation6 + $0x320] sm:$0xff] %v15025_v33  ;;  %v17151_v54 = vrot.slane %v15027_v62, 4  ;;  %v17171_v45 = vrot.slane %v15029_v40, 4  ;;  %8490 = vmatprep.subr.bf16.mxu0 %v11458_v41  ;;  %v17155_v49 = vrot.slane %v14662_v27, 4 }
 0x7a6   : > { %6995 = vrot.lane.b32.xlu1 %v15035_v15, %s12561_s21  ;;  %7341 = vrot.lane.b32.xlu0 %v14808_v37, %s12559_s19 }
 0x7a7   : > { %v6871_v7 = vsel %vm810_vm3, %v6842_v20, %v17151_v54  ;;  %v7394_v42 = vsel %vm810_vm3, %v17278_v4, %v17171_v45  ;;  %v6751_v20 = vld [vmem:[#allocation4 + $0x20] sm:$0xf]  ;;  %v17280_v4 = vrot.slane %v14800_v38, 4  ;;  %v12391_v54 = vld [vmem:[#allocation6 + $0x4] ss:$36 sps:$4 sm:$0xff]  }
 0x7a8   : > { %v15052_v8 = vsel %vm1457_vm8, %v14633_v14, %v6871_v7  ;;  %v15056_v43 = vsel %vm7374_vm7, %v14667_v30, %v7394_v42  ;;  %v15058_v37 = vpop.permute.xlu1 %6646  ;;  %v15060_v50 = vpop.permute.xlu0 %6638  ;;  %8491 = vmatpush1.bf16.msra.mxu0 %v11457_v26  ;;  %v12563_v7 = vmov 4   ;;  %v12390_v30 = vld [vmem:[#allocation6 + $0x48] ss:$36 sps:$4 sm:$0xff]   ;;  %v17302_v45 = vld [vmem:[#allocation10_spill] sm:$0xff] }
 0x7a9   : > { %17279 = vst [vmem:[#allocation28_spill] sm:$0xff] %v15060_v50  ;;  %7441 = vst [vmem:[#allocation6 + $0x4d0] sm:$0xff] %v15056_v43  ;;  %v17157_v41 = vrot.slane %v15058_v37, 4  ;;  %v17154_v14 = vrot.slane %v15060_v50, 4  ;;  %8492 = vmatprep.subr.bf16.mxu0 %v12388_v22  ;;  %12003 = vset.pattern.permute.xlu0 %v12563_v7 }
 0x7aa   : > { %6823 = vrot.lane.b32.xlu1 %v15035_v15, %s12550_s13  ;;  %6795 = vrot.lane.b32.xlu0 %v6751_v20, %s12550_s13 }
 0x7ab   : > { %v6699_v26 = vsel %vm810_vm3, %v6669_v0, %v17157_v41  ;;  %v6693_v42 = vsel %vm810_vm3, %v17280_v4, %v17154_v14  ;;  %12004 = vset.pattern.permute.xlu1 %v12563_v7  ;;  %v17281_v0 = vrot.slane %v14435_v47, 4  ;;  %v6410_v7 = vld [vmem:[#allocation4 + $0x48] sm:$0xf] }
 0x7ac   : > { %v15080_v22 = vsel %vm6675_vm14, %v14654_v46, %v6699_v26  ;;  %v15084_v20 = vsel %vm6675_vm14, %v14800_v38, %v6693_v42  ;;  %v15086_v5 = vpop.permute.xlu1 %6455  ;;  %v15088_v19 = vpop.permute.xlu0 %6447  ;;  %8493 = vmatpush1.bf16.msra.mxu0 %v12390_v30  ;;  %v12393_v38 = vld [vmem:[#allocation6] ss:$36 sps:$4 sm:$0xff]   ;;  %v17282_v30 = vrot.slane %v14542_v60, 4  ;;  %v11575_v42 = vcombine.high %v14746_v17, %v14991_v2  ;;  %v6238_v14 = vld [vmem:[#allocation4 + $0x48] sm:$0xf] }
 0x7ad   : > { %v6504_v4 = vsel %vm810_vm3, %v17281_v0, %v17155_v49  ;;  %6738 = vst [vmem:[#allocation6 + $0x290] sm:$0xff] %v15084_v20  ;;  %v17156_v46 = vrot.slane %v15086_v5, 4  ;;  %8494 = vmatprep.subr.bf16.mxu0 %v12391_v54 }
 0x7ae   : > { %6459 = vrot.lane.b32.xlu1 %v6410_v7, %s12558_s29  ;;  %7321 = vrot.lane.b32.xlu0 %v14730_v58, %s12559_s19  ;;  %v15109_v0 = vsel %vm6502_vm15, %v14435_v47, %v6504_v4  ;;  %v17284_v4 = vrot.slane %v14776_v6, 4 }
 0x7af   : > { %v6512_v26 = vsel %vm810_vm3, %v17282_v30, %v17156_v46  ;;  %v6588_v30 = vld [vmem:[#allocation4 + $0x70] sm:$0xf]  ;;  %v17301_v46 = vld [vmem:[#allocation19_spill] sm:$0xff] }
 0x7b0   : > { %v15113_v54 = vsel %vm6502_vm15, %v14542_v60, %v6512_v26  ;;  %v15115_v7 = vpop.permute.xlu1 %6283  ;;  %v15117_v58 = vpop.permute.xlu0 %7319  ;;  %8495 = vmatpush1.bf16.msra.mxu0 %v12393_v38  ;;  %v11574_v60 = vcombine.low %v14746_v17, %v14991_v2  ;;  %v17285_v17 = vcombine.high %v14493_v1, %v14608_v24  ;;  %v11557_v2 = vcombine.high %v14770_v56, %v15021_v36 }
 0x7b1   : > { %17283 = vst [vmem:[#allocation29_spill] sm:$0xff] %v15117_v58  ;;  %v17158_v49 = vrot.slane %v15117_v58, 4  ;;  %8496 = vmatprep.subr.bf16.mxu0 %v11575_v42  ;;  %v17307_v58 = vld [vmem:[#allocation18_spill] sm:$0xff] }
 0x7b2   : > { %6287 = vrot.lane.b32.xlu1 %v6238_v14, %s12553_s16  ;;  %6642 = vrot.lane.b32.xlu0 %v6588_v30, %s12562_s22  ;;  %v6066_v14 = vld [vmem:[#allocation4 + $0x48] sm:$0xf]  ;;  %v6578_v30 = vld [vmem:[#allocation4 + $0x20] sm:$0xf] }
 0x7b3   : > { %v7378_v38 = vsel %vm810_vm3, %v17284_v4, %v17158_v49 }
 0x7b4   : > { %v7379_v26 = vsel %vm7374_vm7, %v14776_v6, %v7378_v38  ;;  %v15135_v42 = vpop.permute.xlu1 %6111  ;;  %v15137_v41 = vpop.permute.xlu0 %6275  ;;  %8497 = vmatpush2.bf16.msra.mxu0 %v11574_v60  ;;  %v17287_v60 = vcombine.low %v14493_v1, %v14608_v24  ;;  %v17288_v1 = vrot.slane %v14587_v55, 4 }
 0x7b5   : > { %7432 = vst [vmem:[#allocation6 + $0x490] sm:$0xff] %v7379_v26  ;;  %8498 = vmatprep.subr.bf16.mxu0 %v17285_v17  ;;  %v6420_v26 = vld [vmem:[#allocation4 + $0x98] sm:$0xf] }
 0x7b6   : > { %6115 = vrot.lane.b32.xlu1 %v6066_v14, %s12548_s11  ;;  %6622 = vrot.lane.b32.xlu0 %v6578_v30, %s12562_s22  ;;  %v11556_v14 = vcombine.low %v14770_v56, %v15021_v36  ;;  %v15161_v30 = vld [vmem:[%s17082_s8] sm:$0xff] }
 0x7b8   : > { %v15146_v6 = vpop.permute.xlu1 %7150  ;;  %v15148_v4 = vpop.permute.xlu0 %6103  ;;  %8499 = vmatpush2.bf16.msra.mxu0 %v17287_v60 }
 0x7b9   : > { %17286 = vst [vmem:[#allocation30_spill] sm:$0xff] %v15148_v4  ;;  %v17160_v38 = vrot.slane %v15146_v6, 4  ;;  %v17161_v17 = vrot.slane %v15148_v4, 4  ;;  %8500 = vmatprep.subr.bf16.mxu0 %v11557_v2  ;;  %v17289_v2 = vld [vmem:[#allocation21_spill] sm:$0xff]  ;;  %v17306_v4 = vrot.slane %v17305_v32, 4 }
 0x7ba   : > { %6479 = vrot.lane.b32.xlu1 %v6420_v26, %s12558_s29  ;;  %8907 = vperm.xlu0 %12003, %v15161_v30   ;;  %v17290_v60 = vrot.slane %v17289_v2, 4 }
 0x7bb   : > { %v7208_v24 = vsel %vm810_vm3, %v17288_v1, %v17160_v38  ;;  %v15186_v38 = vld [vmem:[#allocation4 + $0x48] sm:$0xff] }
 0x7bc   : > { %v6161_v26 = vsel %vm810_vm3, %v17290_v60, %v17161_v17  ;;  %v15176_v56 = vsel %vm7197_vm10, %v14587_v55, %v7208_v24  ;;  %v15180_v49 = vpop.permute.xlu1 %6973  ;;  %v15182_v11 = vpop.permute.xlu0 %7142  ;;  %8501 = vmatpush2.bf16.msra.mxu0 %v11556_v14  ;;  %v17291_v17 = vld [vmem:[#allocation13_spill] sm:$0xff]  ;;  %v17292_v55 = vld [vmem:[#allocation16_spill] sm:$0xff]  ;;  %v17294_v14 = vld [vmem:[#allocation15_spill] sm:$0xff] }
 0x7bd   : > { %v6162_v36 = vsel %vm812_vm6, %v17289_v2, %v6161_v26  ;;  %7259 = vst [vmem:[#allocation6 + $0x41c] sm:$0xff] %v15176_v56  ;;  %v17167_v1 = vrot.slane %v15180_v49, 4  ;;  %v17168_v60 = vrot.slane %v15182_v11, 4  ;;  %v17293_v24 = vcombine.high %v17291_v17, %v17292_v55 }
 0x7be   : > { %6211 = vst [vmem:[#allocation6 + $0xa0] sm:$0xff] %v6162_v36  ;;  %7154 = vrot.lane.b32.xlu1 %v15186_v38, %s12560_s20  ;;  %v17166_v2 = vmov 5   ;;  %v17295_v26 = vrot.slane %v17294_v14, 4 }
 0x7bf   : > { %8502 = vmatprep.subr.bf16.mxu0 %v17293_v24  ;;  %12006 = vset.pattern.permute.xlu0 %v17166_v2  ;;  %v7201_v47 = vsel %vm810_vm3, %v17297_v12, %v17168_v60  ;;  %v17298_v24 = vld [vmem:[#allocation25_spill] sm:$0xff]  ;;  %v17300_v60 = vcombine.low %v17291_v17, %v17292_v55  ;;  %v6659_v17 = vrot.slane %v17302_v45, 4 }
 0x7c0   : > { %v7031_v36 = vsel %vm810_vm3, %v17295_v26, %v17167_v1  ;;  %v11539_v16 = vcombine.high %v17298_v24, %v15052_v8  ;;  %8937 = vperm.xlu0 %12006, %v15210_v18   ;;  %v7202_v26 = vsel %vm7197_vm10, %v17296_v3, %v7201_v47  ;;  %v15219_v1 = vpop.permute.xlu1 %6801  ;;  %v15221_v12 = vpop.permute.xlu0 %6965  ;;  %v11538_v3 = vcombine.low %v17298_v24, %v15052_v8  ;;  %v7554_v47 = vld [vmem:[#allocation6 + $0x2d0] sm:$0xff] }
 0x7c1   : > { %v15215_v2 = vsel %vm7020_vm12, %v17294_v14, %v7031_v36  ;;  %17299 = vst [vmem:[#allocation21_spill] sm:$0xff] %v15219_v1  ;;  %8503 = vmatpush2.bf16.msra.mxu0 %v17300_v60  ;;  %7255 = vst [vmem:[#allocation6 + $0x400] sm:$0xff] %v7202_v26  ;;  %v17180_v23 = vrot.slane %v15219_v1, 4  ;;  %v6248_v14 = vld [vmem:[#allocation4 + $0x98] sm:$0xf]  ;;  %v17181_v36 = vrot.slane %v15221_v12, 4 }
 0x7c2   : > { %7082 = vst [vmem:[#allocation6 + $0x38c] sm:$0xff] %v15215_v2  ;;  %8504 = vmatprep.subr.bf16.mxu0 %v11539_v16  ;;  %6307 = vrot.lane.b32.xlu1 %v6248_v14, %s12553_s16  ;;  %v17303_v60 = vld [vmem:[#allocation17_spill] sm:$0xff]  ;;  %v11530_v14 = vcombine.high %v7554_v47, %v17307_v58 }
 0x7c3   : > { %v17304_v55 = vrot.slane %v17303_v60, 4  ;;  %v7024_v16 = vsel %vm810_vm3, %v17306_v4, %v17181_v36  ;;  %v6755_v36 = vld [vmem:[#allocation4 + $0x40] sm:$0xff] }
 0x7c4   : > { %v7025_v24 = vsel %vm7020_vm12, %v17305_v32, %v7024_v16  ;;  %v15251_v1 = vpop.permute.xlu1 %7327  ;;  %v15253_v50 = vpop.permute.xlu0 %6467  ;;  %v11529_v32 = vcombine.low %v7554_v47, %v17307_v58  ;;  %v6076_v47 = vld [vmem:[#allocation4 + $0x98] sm:$0xf] }
 0x7c5   : > { %v6857_v26 = vsel %vm810_vm3, %v17304_v55, %v17180_v23  ;;  %8505 = vmatpush2.bf16.msra.mxu0 %v11538_v3  ;;  %v17308_v55 = vrot.slane %v17301_v46, 4  ;;  %7078 = vst [vmem:[#allocation6 + $0x370] sm:$0xff] %v7025_v24  ;;  %v17182_v4 = vrot.slane %v15251_v1, 4 }
 0x7c6   : > { %v15247_v8 = vsel %vm1457_vm8, %v17303_v60, %v6857_v26  ;;  %8506 = vmatprep.subr.bf16.mxu0 %v11530_v14  ;;  %6803 = vrot.lane.b32.xlu1 %v6755_v36, %s12550_s13  ;;  %v17309_v60 = vld [vmem:[#allocation14_spill] sm:$0xff] }
 0x7c7   : > { %v6683_v23 = vsel %vm810_vm3, %v6659_v17, %v17308_v55  ;;  %6905 = vst [vmem:[#allocation6 + $0x2fc] sm:$0xff] %v15247_v8  ;;  %v17310_v26 = vrot.slane %v17309_v60, 4  ;;  %v11521_v17 = vcombine.high %v14830_v21, %v15080_v22 }
 0x7c8   : > { %v6684_v16 = vsel %vm6675_vm14, %v17302_v45, %v6683_v23  ;;  %v15275_v14 = vpop.permute.xlu1 %6628  ;;  %v15277_v55 = vpop.permute.xlu0 %7339  ;;  %v11520_v23 = vcombine.low %v14830_v21, %v15080_v22  ;;  %v7534_v45 = vld [vmem:[#allocation6 + $0x240] sm:$0xff]  ;;  %v17315_v21 = vrot.slane %v14660_v63, 4 }
 0x7c9   : > { %v7385_v3 = vsel %vm810_vm3, %v17310_v26, %v17182_v4  ;;  %17311 = vst [vmem:[#allocation13_spill] sm:$0xff] %v15277_v55  ;;  %8507 = vmatpush2.bf16.msra.mxu0 %v11529_v32  ;;  %v17185_v26 = vrot.slane %v15277_v55, 4 }
 0x7ca   : > { %v15273_v24 = vsel %vm7374_vm7, %v17309_v60, %v7385_v3  ;;  %8508 = vmatprep.subr.bf16.mxu0 %v11521_v17  ;;  %6135 = vrot.lane.b32.xlu1 %v6076_v47, %s12548_s11  ;;  %v17312_v60 = vrot.slane %v15029_v40, 4  ;;  %v11512_v3 = vcombine.high %v7534_v45, %v6684_v16  ;;  %v17314_v47 = vrot.slane %v14836_v34, 4 }
 0x7cb   : > { %7436 = vst [vmem:[#allocation6 + $0x4ac] sm:$0xff] %v15273_v24 }
 0x7cc   : > { %v7396_v32 = vsel %vm810_vm3, %v17312_v60, %v17185_v26  ;;  %v15294_v58 = vpop.permute.xlu1 %6475  ;;  %v15296_v17 = vpop.permute.xlu0 %6295  ;;  %v6520_v22 = vsel %vm810_vm3, %v17315_v21, %v17314_v47  ;;  %v11511_v60 = vcombine.low %v7534_v45, %v6684_v16  ;;  %v15315_v26 = vld [vmem:[%s17077_s3] ss:$12 sps:$4 sm:$0xff]   ;;  %v17189_v47 = vrot.slane %v14888_v59, 4 }
 0x7cd   : > { %v15292_v4 = vsel %vm7374_vm7, %v15029_v40, %v7396_v32  ;;  %8509 = vmatpush2.bf16.msra.mxu0 %v11520_v23  ;;  %v17186_v55 = vrot.slane %v15294_v58, 4  ;;  %v17316_v32 = vrot.slane %v14834_v51, 4  ;;  %17317 = vst [vmem:[#allocation15_spill] sm:$0xff] %v15315_v26 }
 0x7ce   : > { %17313 = vst [vmem:[#allocation16_spill] sm:$0xff] %v15292_v4  ;;  %8510 = vmatprep.subr.bf16.mxu0 %v11512_v3  ;;  %6650 = vrot.lane.b32.xlu1 %v15035_v15, %s12562_s22  ;;  %v6521_v3 = vsel %vm6502_vm15, %v14660_v63, %v6520_v22  ;;  %v17318_v63 = vrot.slane %v14864_v28, 4  ;;  %v17319_v22 = vrot.slane %v14692_v48, 4 }
 0x7cf   : > { %v6528_v23 = vsel %vm810_vm3, %v17316_v32, %v17186_v55 }
 0x7d0   : > { %v6529_v15 = vsel %vm6502_vm15, %v14834_v51, %v6528_v23  ;;  %v15322_v16 = vpop.permute.xlu1 %6303  ;;  %v15324_v45 = vpop.permute.xlu0 %6123  ;;  %v6347_v51 = vsel %vm810_vm3, %v17319_v22, %v17318_v63  ;;  %v17320_v23 = vrot.slane %v14886_v35, 4  ;;  %v15352_v22 = vld [vmem:[#allocation5] sm:$0xff] }
 0x7d1   : > { %8511 = vmatpush2.bf16.msra.mxu0 %v11511_v60  ;;  %v17188_v32 = vrot.slane %v15322_v16, 4  ;;  %v11505_v55 = vcombine.high %v6521_v3, %v6529_v15  ;;  %v11504_v40 = vcombine.low %v6521_v3, %v6529_v15  ;;  %v17321_v3 = vrot.slane %v14708_v13, 4  ;;  %17322 = vst [vmem:[#allocation22_spill] sm:$0xff] %v15352_v22 }
 0x7d2   : > { %6977 = vrot.lane.b32.xlu1 %v15186_v38, %s12561_s21 }
 0x7d3   : > { %v6355_v60 = vsel %vm810_vm3, %v17320_v23, %v17188_v32  ;;  %8566 = vmatprep.subr.bf16.mxu1 %v11505_v55  ;;  %v6175_v15 = vsel %vm810_vm3, %v17321_v3, %v17189_v47  ;;  %v17323_v55 = vrot.slane %v15115_v7, 4  ;;  %v17324_v23 = vrot.slane %v14567_v44, 4 }
 0x7d4   : > { %8513 = vmatmul.mubr.bf16.vlgmr.msra.gmra.mxu0 %v15315_v26  ;;  %v6356_v21 = vsel %vm941_vm11, %v14886_v35, %v6355_v60  ;;  %v15348_v4 = vpop.permute.xlu1 %6131  ;;  %v15350_v63 = vpop.permute.xlu0 %7162  ;;  %8567 = vmatpush1.bf16.msra.mxu1 %v11504_v40  ;;  %v17325_v35 = vcombine.high %v15109_v0, %v15113_v54  ;;  %v6348_v40 = vsel %vm941_vm11, %v14692_v48, %v6347_v51 }
 0x7d5   : > { %8641 = vmatprep.mubr.bf16.mxu0 %v15352_v22  ;;  %v6339_v32 = vsel %vm810_vm3, %v17324_v23, %v17323_v55  ;;  %v17192_v3 = vrot.slane %v15348_v4, 4  ;;  %v17193_v47 = vrot.slane %v15350_v63, 4  ;;  %v6176_v60 = vsel %vm812_vm6, %v14708_v13, %v6175_v15 }
 0x7d6   : > { %8568 = vmatprep.subr.bf16.mxu1 %v17325_v35  ;;  %6630 = vrot.lane.b32.xlu1 %v6755_v36, %s12562_s22  ;;  %v17326_v55 = vrot.slane %v14916_v53, 4  ;;  %v17327_v22 = vrot.slane %v14918_v10, 4  ;;  %v11487_v26 = vcombine.high %v6348_v40, %v6356_v21  ;;  %v6340_v48 = vsel %vm941_vm11, %v14567_v44, %v6339_v32  ;;  %v15397_v44 = vld [vmem:[#allocation4 + $0x98] sm:$0xff] }
 0x7d7   : > { %v17195_v36 = vrot.slane %v15135_v42, 4 }
 0x7d8   : > { %v6183_v23 = vsel %vm810_vm3, %v17326_v55, %v17192_v3  ;;  %v7219_v35 = vsel %vm810_vm3, %v17327_v22, %v17193_v47  ;;  %v15389_v15 = vpop.permute.xlu1 %7170  ;;  %v15391_v55 = vpop.permute.xlu0 %6985  ;;  %v17328_v22 = vcombine.low %v15109_v0, %v15113_v54  ;;  %v17329_v47 = vrot.slane %v14955_v52, 4 }
 0x7d9   : > { %v6184_v13 = vsel %vm812_vm6, %v14916_v53, %v6183_v23  ;;  %v15387_v51 = vsel %vm7197_vm10, %v14918_v10, %v7219_v35  ;;  %v17194_v3 = vrot.slane %v15389_v15, 4  ;;  %v17196_v32 = vrot.slane %v15391_v55, 4  ;;  %v7495_v35 = vld [vmem:[#allocation6 + $0x128] sm:$0xff] }
 0x7da   : > { %8569 = vmatpush1.bf16.msra.mxu1 %v17328_v22  ;;  %v11469_v53 = vcombine.high %v6176_v60, %v6184_v13  ;;  %v11468_v23 = vcombine.low %v6176_v60, %v6184_v13  ;;  %7174 = vrot.lane.b32.xlu1 %v15397_v44, %s12560_s20  ;;  %v11486_v10 = vcombine.low %v6348_v40, %v6356_v21  ;;  %v17330_v54 = vrot.slane %v14957_v9, 4 }
 0x7db   : > { %8570 = vmatprep.subr.bf16.mxu1 %v11487_v26  ;;  %v7226_v0 = vsel %vm810_vm3, %v17329_v47, %v17194_v3  ;;  %v11478_v26 = vcombine.high %v7495_v35, %v6340_v48  ;;  %v17332_v47 = vrot.slane %v14579_v39, 4 }
 0x7dc   : > { %v7042_v22 = vsel %vm810_vm3, %v17330_v54, %v17196_v32  ;;  %v15414_v60 = vsel %vm7197_vm10, %v14955_v52, %v7226_v0  ;;  %v15420_v40 = vpop.permute.xlu1 %6993  ;;  %v15422_v13 = vpop.permute.xlu0 %6813  ;;  %v6756_v0 = vld [vmem:[#allocation4 + $0x48] sm:$0xf] }
 0x7dd   : > { %v15418_v21 = vsel %vm7020_vm12, %v14957_v9, %v7042_v22  ;;  %v6167_v54 = vsel %vm810_vm3, %v17332_v47, %v17195_v36  ;;  %7269 = vst [vmem:[#allocation6 + $0x464] sm:$0xff] %v15414_v60  ;;  %v17198_v52 = vrot.slane %v15420_v40, 4  ;;  %v17199_v3 = vrot.slane %v15422_v13, 4 }
 0x7de   : > { %17331 = vst [vmem:[#allocation25_spill] sm:$0xff] %v15418_v21  ;;  %8571 = vmatpush1.bf16.msra.mxu1 %v11486_v10  ;;  %6805 = vrot.lane.b32.xlu1 %v6756_v0, %s12550_s13  ;;  %v11477_v9 = vcombine.low %v7495_v35, %v6340_v48  ;;  %v17333_v10 = vrot.slane %v14997_v61, 4  ;;  %v17334_v47 = vrot.slane %v14999_v29, 4  ;;  %v6168_v32 = vsel %vm812_vm6, %v14579_v39, %v6167_v54  ;;  %v7475_v39 = vld [vmem:[#allocation6 + $0x98] sm:$0xff] }
 0x7df   : > { %8572 = vmatprep.subr.bf16.mxu1 %v11478_v26 }
 0x7e0   : > { %v7049_v22 = vsel %vm810_vm3, %v17333_v10, %v17198_v52  ;;  %v6867_v36 = vsel %vm810_vm3, %v17334_v47, %v17199_v3  ;;  %v15453_v35 = vpop.permute.xlu1 %6821  ;;  %v15455_v0 = vpop.permute.xlu0 %6449  ;;  %v6766_v47 = vld [vmem:[#allocation4 + $0x98] sm:$0xf]  ;;  %v7470_v52 = vld [vmem:[#allocation6 + $0x74] sm:$0xff] }
 0x7e1   : > { %v15447_v26 = vsel %vm7020_vm12, %v14997_v61, %v7049_v22  ;;  %v15451_v48 = vsel %vm1457_vm8, %v14999_v29, %v6867_v36  ;;  %v17197_v10 = vrot.slane %v15453_v35, 4  ;;  %6558 = vst.msk [vmem:[#allocation6 + $0x1d0] sm:$0xf] %vm6040_vm5, %v15455_v0  ;;  %v17336_v61 = vrot.slane %v15027_v62, 4 }
 0x7e2   : > { %17335 = vst [vmem:[#allocation19_spill] sm:$0xff] %v15451_v48  ;;  %8573 = vmatpush1.bf16.msra.mxu1 %v11477_v9  ;;  %7092 = vst [vmem:[#allocation6 + $0x3d4] sm:$0xff] %v15447_v26  ;;  %6997 = vrot.lane.b32.xlu1 %v15397_v44, %s12561_s21  ;;  %v11460_v36 = vcombine.high %v7475_v39, %v6168_v32 }
 0x7e3   : > { %8574 = vmatprep.subr.bf16.mxu1 %v11469_v53  ;;  %v6873_v29 = vsel %vm810_vm3, %v17336_v61, %v17197_v10  ;;  %v11459_v61 = vcombine.low %v7475_v39, %v6168_v32  ;;  %v7465_v32 = vld [vmem:[#allocation6 + $0x50] sm:$0xff] }
 0x7e4   : > { %v15470_v54 = vsel %vm1457_vm8, %v15027_v62, %v6873_v29  ;;  %v15472_v9 = vpop.permute.xlu1 %7347  ;;  %v15474_v22 = vpop.permute.xlu0 %6277  ;;  %v17338_v62 = vld [vmem:[#allocation27_spill] sm:$0xff] }
 0x7e5   : > { %17337 = vst [vmem:[#allocation10_spill] sm:$0xff] %v15474_v22  ;;  %6915 = vst [vmem:[#allocation6 + $0x344] sm:$0xff] %v15470_v54  ;;  %v17202_v53 = vrot.slane %v15472_v9, 4  ;;  %v17339_v29 = vrot.slane %v17338_v62, 4 }
 0x7e6   : > { %8575 = vmatpush1.bf16.msra.mxu1 %v11468_v23  ;;  %6385 = vst.msk [vmem:[#allocation6 + $0x140] sm:$0xf] %vm6040_vm5, %v15474_v22  ;;  %6825 = vrot.lane.b32.xlu1 %v6766_v47, %s12550_s13  ;;  %v12398_v23 = vld [vmem:[#allocation6 + $0x54] ss:$36 sps:$4 sm:$0xff]  }
 0x7e7   : > { %8576 = vmatprep.subr.bf16.mxu1 %v11460_v36  ;;  %v7403_v10 = vsel %vm810_vm3, %v17339_v29, %v17202_v53  ;;  %v7460_v53 = vld [vmem:[#allocation6 + $0x2c] sm:$0xff] }
 0x7e8   : > { %v7404_v3 = vsel %vm7374_vm7, %v17338_v62, %v7403_v10  ;;  %v15488_v48 = vpop.permute.xlu1 %6648  ;;  %v15490_v21 = vpop.permute.xlu0 %6105  ;;  %v11450_v10 = vcombine.low %v7465_v32, %v7470_v52  ;;  %v7615_v62 = vld [vmem:[#allocation6 + $0x488] sm:$0xff] }
 0x7e9   : > { %17340 = vst [vmem:[#allocation17_spill] sm:$0xff] %v15490_v21  ;;  %7446 = vst [vmem:[#allocation6 + $0x4f4] sm:$0xff] %v7404_v3  ;;  %v17206_v36 = vrot.slane %v15488_v48, 4  ;;  %v11594_v39 = vcombine.low %v15056_v43, %v7404_v3  ;;  %v11595_v47 = vcombine.high %v15056_v43, %v7404_v3  ;;  %v11585_v32 = vcombine.low %v7615_v62, %v15273_v24 }
 0x7ea   : > { %8577 = vmatpush1.bf16.msra.mxu1 %v11459_v61  ;;  %6213 = vst.msk [vmem:[#allocation6 + $0xb0] sm:$0xf] %vm6040_vm5, %v15490_v21  ;;  %7351 = vrot.lane.b32.xlu1 %v15397_v44, %s12559_s19  ;;  %v17341_v61 = vrot.slane %v15058_v37, 4  ;;  %v12400_v21 = vld [vmem:[#allocation6 + $0xc] ss:$36 sps:$4 sm:$0xff]  }
 0x7eb   : > { %8578 = vmatprep.subr.bf16.mxu1 %v12398_v23  ;;  %8621 = vmatprep.subr.bf16.mxu0 %v11595_v47  ;;  %v11586_v23 = vcombine.high %v7615_v62, %v15273_v24  ;;  %v7455_v44 = vld [vmem:[#allocation6 + $0x8] sm:$0xff]  ;;  %v11577_v47 = vcombine.high %v14953_v25, %v15414_v60  ;;  %v7595_v24 = vld [vmem:[#allocation6 + $0x3f8] sm:$0xff] }
 0x7ec   : > { %v6701_v29 = vsel %vm810_vm3, %v17341_v61, %v17206_v36  ;;  %v15509_v43 = vpop.permute.xlu1 %6457  ;;  %v15511_v3 = vpop.permute.xlu0 %6469  ;;  %8622 = vmatpush1.bf16.msra.mxu0 %v11594_v39  ;;  %v11441_v39 = vcombine.low %v7455_v44, %v7460_v53  ;;  %v17343_v53 = vrot.slane %v15251_v1, 4  ;;  %v17344_v44 = vrot.slane %v15182_v11, 4 }
 0x7ed   : > { %v15507_v22 = vsel %vm6675_vm14, %v15058_v37, %v6701_v29  ;;  %6568 = vst.msk [vmem:[#allocation6 + $0x218] sm:$0xf] %vm6040_vm5, %v15511_v3  ;;  %8623 = vmatprep.subr.bf16.mxu0 %v11586_v23  ;;  %v6593_v29 = vld [vmem:[#allocation4 + $0x98] sm:$0xf]  ;;  %v11541_v36 = vcombine.high %v15025_v33, %v15470_v54 }
 0x7ee   : > { %8579 = vmatpush1.bf16.msra.mxu1 %v11450_v10  ;;  %6743 = vst [vmem:[#allocation6 + $0x2b4] sm:$0xff] %v15507_v22  ;;  %7331 = vrot.lane.b32.xlu1 %v15186_v38, %s12559_s19  ;;  %v11576_v38 = vcombine.low %v14953_v25, %v15414_v60 }
 0x7ef   : > { %8580 = vmatprep.subr.bf16.mxu1 %v12400_v21 }
 0x7f0   : > { %v15525_v10 = vpop.permute.xlu1 %7329  ;;  %v7145_v61 = vpop.permute.xlu0 %7144  ;;  %8624 = vmatpush1.bf16.msra.mxu0 %v11585_v32 }
 0x7f1   : > { %17342 = vst [vmem:[#allocation23_spill] sm:$0xff] %v15525_v10  ;;  %v17205_v21 = vrot.slane %v15525_v10, 4  ;;  %v7180_v23 = vrot.slane %v7145_v61, 4 }
 0x7f2   : > { %8581 = vmatpush1.bf16.msra.mxu1 %v11441_v39  ;;  %6652 = vrot.lane.b32.xlu1 %v6593_v29, %s12562_s22 }
 0x7f3   : > { %8582 = vmatprep.subr.bf16.mxu1 %v11577_v47  ;;  %v7387_v62 = vsel %vm810_vm3, %v17343_v53, %v17205_v21  ;;  %v7203_v32 = vsel %vm810_vm3, %v17344_v44, %v7180_v23  ;;  %v7205_v39 = vsel %vm7197_vm10, %v7145_v61, %v7180_v23  ;;  %v11568_v47 = vcombine.high %v7595_v24, %v15176_v56  ;;  %v15559_v61 = vld [vmem:[%s17077_s3 + $0x4] ss:$12 sps:$4 sm:$0xff]   ;;  %v7575_v44 = vld [vmem:[#allocation6 + $0x368] sm:$0xff] }
 0x7f4   : > { %11602 = vmatmul.mubr.msk.bf16.vlgmr.msra.gmra.mxu0 %vm3972_vm9, %v14946_v57  ;;  %v15545_v25 = vsel %vm7374_vm7, %v15251_v1, %v7387_v62  ;;  %v15549_v60 = vsel %vm7197_vm10, %v15182_v11, %v7203_v32  ;;  %7257 = vst.msk [vmem:[#allocation6 + $0x410] sm:$0xf] %vm6040_vm5, %v7205_v39  ;;  %v15552_v29 = vpop.permute.xlu1 %6285  ;;  %v15554_v53 = vpop.permute.xlu0 %6297  ;;  %v6583_v57 = vld [vmem:[#allocation4 + $0x48] sm:$0xf]  ;;  %v11567_v11 = vcombine.low %v7595_v24, %v15176_v56 }
 0x7f5   : > { %8684 = vmatprep.mubr.bf16.mxu0 %v15559_v61  ;;  %6395 = vst.msk [vmem:[#allocation6 + $0x188] sm:$0xf] %vm6040_vm5, %v15554_v53  ;;  %v11559_v1 = vcombine.high %v14995_v31, %v15447_v26  ;;  %v11558_v62 = vcombine.low %v14995_v31, %v15447_v26  ;;  %v11550_v56 = vcombine.high %v7575_v44, %v15215_v2  ;;  %v17345_v31 = vmov 5  }
 0x7f6   : > { %8583 = vmatpush2.bf16.msra.mxu1 %v11576_v38  ;;  %6632 = vrot.lane.b32.xlu1 %v6583_v57, %s12562_s22  ;;  %v17208_v57 = vrot.slane %v15253_v50, 4 }
 0x7f7   : > { %8584 = vmatprep.subr.bf16.mxu1 %v11568_v47 }
 0x7f8   : > { %v15568_v23 = vpop.permute.xlu1 %6113  ;;  %v15570_v38 = vpop.permute.xlu0 %6125 }
 0x7f9   : > { %6223 = vst.msk [vmem:[#allocation6 + $0xf8] sm:$0xf] %vm6040_vm5, %v15570_v38 }
 0x7fa   : > { %8585 = vmatpush2.bf16.msra.mxu1 %v11567_v11  ;;  %8911 = vperm.xlu1 %12004, %v15210_v18   ;;  %v17209_v11 = vrot.slane %v15275_v14, 4  ;;  %v17346_v18 = vrot.slane %v15146_v6, 4 }
 0x7fb   : > { %8586 = vmatprep.subr.bf16.mxu1 %v11559_v1  ;;  %v11549_v1 = vcombine.low %v7575_v44, %v15215_v2 }
 0x7fc   : > { %v15578_v24 = vpop.permute.xlu1 %7152  ;;  %v7165_v32 = vpop.permute.xlu0 %7164 }
 0x7fd   : > { %v17207_v39 = vrot.slane %v15578_v24, 4  ;;  %v7190_v47 = vrot.slane %v7165_v32, 4 }
 0x7fe   : > { %8587 = vmatpush2.bf16.msra.mxu1 %v11558_v62  ;;  %12005 = vset.pattern.permute.xlu1 %v17345_v31  ;;  %v17347_v62 = vrot.slane %v15350_v63, 4 }
 0x7ff   : > { %8588 = vmatprep.subr.bf16.mxu1 %v11550_v56  ;;  %v7210_v26 = vsel %vm810_vm3, %v17346_v18, %v17207_v39  ;;  %v7223_v56 = vsel %vm7197_vm10, %v7165_v32, %v7190_v47  ;;  %8933 = vperm.xlu1 %12005, %v15161_v30   ;;  %v17212_v32 = vrot.slane %v15088_v19, 4 }
 0x800   : > { %v7221_v21 = vsel %vm810_vm3, %v17347_v62, %v7190_v47  ;;  %v15599_v2 = vsel %vm7197_vm10, %v15146_v6, %v7210_v26  ;;  %7267 = vst.msk [vmem:[#allocation6 + $0x458] sm:$0xf] %vm6040_vm5, %v7223_v56  ;;  %v15606_v31 = vpop.permute.xlu1 %6975  ;;  %v15608_v18 = vpop.permute.xlu0 %6793  ;;  %v17213_v47 = vrot.slane %v15509_v43, 4  ;;  %v7555_v26 = vld [vmem:[#allocation6 + $0x2d8] sm:$0xff]  ;;  %v17348_v62 = vrot.slane %v14836_v34, 4 }
 0x801   : > { %v15603_v44 = vsel %vm7197_vm10, %v15350_v63, %v7221_v21  ;;  %v17210_v30 = vrot.slane %v15606_v31, 4  ;;  %v17211_v6 = vrot.slane %v15608_v18, 4  ;;  %v11540_v63 = vcombine.low %v15025_v33, %v15470_v54  ;;  %v17351_v54 = vld [vmem:[#allocation24_spill] sm:$0xff] }
 0x802   : > { %8589 = vmatpush2.bf16.msra.mxu1 %v11549_v1  ;;  %v11532_v21 = vcombine.high %v7555_v26, %v15247_v8  ;;  %v6522_v1 = vsel %vm810_vm3, %v17348_v62, %v17208_v57  ;;  %v17349_v56 = vrot.slane %v17301_v46, 4  ;;  %v17352_v52 = vrot.slane %v17351_v54, 4 }
 0x803   : > { %8590 = vmatprep.subr.bf16.mxu1 %v11541_v36  ;;  %v17350_v36 = vrot.slane %v15180_v49, 4 }
 0x804   : > { %v6685_v39 = vsel %vm810_vm3, %v17349_v56, %v17209_v11  ;;  %v6851_v37 = vsel %vm810_vm3, %v17352_v52, %v17211_v6  ;;  %v15645_v56 = vpop.permute.xlu1 %6477  ;;  %v6988_v11 = vpop.permute.xlu0 %6987  ;;  %v17354_v52 = vrot.slane %v15086_v5, 4 }
 0x805   : > { %v7033_v33 = vsel %vm810_vm3, %v17350_v36, %v17210_v30  ;;  %v15643_v57 = vsel %vm1457_vm8, %v17351_v54, %v6851_v37  ;;  %v17353_v36 = vrot.slane %v14662_v27, 4  ;;  %v7013_v37 = vrot.slane %v6988_v11, 4 }
 0x806   : > { %v15639_v62 = vsel %vm7020_vm12, %v15180_v49, %v7033_v33  ;;  %8591 = vmatpush2.bf16.msra.mxu1 %v11540_v63  ;;  %v6514_v49 = vsel %vm810_vm3, %v17354_v52, %v17213_v47  ;;  %v17217_v33 = vrot.slane %v15645_v56, 4  ;;  %v6523_v63 = vsel %vm6502_vm15, %v14836_v34, %v6522_v1 }
 0x807   : > { %v6506_v30 = vsel %vm810_vm3, %v17353_v36, %v17212_v32  ;;  %8592 = vmatprep.subr.bf16.mxu1 %v11532_v21  ;;  %v6686_v6 = vsel %vm6675_vm14, %v17301_v46, %v6685_v39  ;;  %v11531_v36 = vcombine.low %v7555_v26, %v15247_v8  ;;  %v17216_v32 = vrot.slane %v15296_v17, 4 }
 0x808   : > { %v17355_v52 = vrot.slane %v15294_v58, 4  ;;  %v17356_v21 = vrot.slane %v15391_v55, 4  ;;  %v7046_v10 = vsel %vm7020_vm12, %v6988_v11, %v7013_v37  ;;  %v6515_v34 = vsel %vm6502_vm15, %v15086_v5, %v6514_v49  ;;  %v15684_v26 = vpop.permute.xlu1 %7349  ;;  %v15686_v1 = vpop.permute.xlu0 %6640 }
 0x809   : > { %v17220_v46 = vrot.slane %v15552_v29, 4  ;;  %7090 = vst.msk [vmem:[#allocation6 + $0x3c8] sm:$0xf] %vm6040_vm5, %v7046_v10  ;;  %17357 = vst [vmem:[#allocation18_spill] sm:$0xff] %v15684_v26  ;;  %v17218_v11 = vrot.slane %v15684_v26, 4  ;;  %v17219_v5 = vrot.slane %v15686_v1, 4  ;;  %v17358_v49 = vcombine.high %v15084_v20, %v15507_v22 }
 0x80a   : > { %v6530_v47 = vsel %vm810_vm3, %v17355_v52, %v17217_v33  ;;  %v7044_v54 = vsel %vm810_vm3, %v17356_v21, %v7013_v37  ;;  %8593 = vmatpush2.bf16.msra.mxu1 %v11531_v36  ;;  %v7535_v37 = vld [vmem:[#allocation6 + $0x248] sm:$0xff]  ;;  %v17360_v52 = vrot.slane %v15472_v9, 4 }
 0x80b   : > { %v6531_v8 = vsel %vm6502_vm15, %v15294_v58, %v6530_v47  ;;  %v15681_v39 = vsel %vm7020_vm12, %v15391_v55, %v7044_v54  ;;  %8594 = vmatprep.subr.bf16.mxu1 %v17358_v49  ;;  %v6507_v55 = vsel %vm6502_vm15, %v14662_v27, %v6506_v30  ;;  %v11514_v10 = vcombine.high %v7535_v37, %v6686_v6 }
 0x80c   : > { %v11507_v58 = vcombine.high %v6523_v63, %v6531_v8  ;;  %v11506_v47 = vcombine.low %v6523_v63, %v6531_v8  ;;  %v17359_v54 = vrot.slane %v14864_v28, 4  ;;  %v7405_v21 = vsel %vm810_vm3, %v17360_v52, %v17218_v11  ;;  %v17361_v63 = vld [vmem:[#allocation28_spill] sm:$0xff]  ;;  %v6968_v33 = vpop.permute.xlu0 %6967 }
 0x80d   : > { %v17362_v8 = vrot.slane %v17361_v63, 4  ;;  %v11498_v27 = vcombine.high %v6507_v55, %v6515_v34  ;;  %v7406_v30 = vsel %vm7374_vm7, %v15472_v9, %v7405_v21  ;;  %v17363_v52 = vcombine.low %v15084_v20, %v15507_v22 }
 0x80e   : > { %v6349_v36 = vsel %vm810_vm3, %v17359_v54, %v17216_v32  ;;  %8652 = vmatprep.subr.bf16.mxu0 %v11507_v58  ;;  %v15716_v32 = vpop.permute.xlu1 %6305  ;;  %v17364_v11 = vrot.slane %v15137_v41, 4  ;;  %v17367_v9 = vrot.slane %v15115_v7, 4  ;;  %v6150_v22 = vrot.slane %v15324_v45, 4 }
 0x80f   : > { %v6695_v49 = vsel %vm810_vm3, %v17362_v8, %v17219_v5  ;;  %8595 = vmatpush2.bf16.msra.mxu1 %v17363_v52  ;;  %8653 = vmatpush1.bf16.msra.mxu0 %v11506_v47  ;;  %v17365_v8 = vld [vmem:[#allocation20_spill] sm:$0xff]  ;;  %v6350_v20 = vsel %vm941_vm11, %v14864_v28, %v6349_v36  ;;  %v11513_v47 = vcombine.low %v7535_v37, %v6686_v6 }
 0x810   : > { %v15714_v54 = vsel %vm6675_vm14, %v17361_v63, %v6695_v49  ;;  %v17366_v58 = vrot.slane %v17365_v8, 4  ;;  %v6341_v21 = vsel %vm810_vm3, %v17367_v9, %v17220_v46  ;;  %v6327_v63 = vrot.slane %v15716_v32, 4  ;;  %8596 = vmatprep.subr.bf16.mxu1 %v11514_v10  ;;  %8654 = vmatprep.subr.bf16.mxu0 %v11498_v27  ;;  %v17370_v27 = vld [vmem:[#allocation16_spill] sm:$0xff] }
 0x811   : > { %v7003_v49 = vrot.slane %v6968_v33, 4  ;;  %v11497_v52 = vcombine.low %v6507_v55, %v6515_v34  ;;  %v17369_v9 = vrot.slane %v15221_v12, 4  ;;  %v11597_v26 = vcombine.high %v17370_v27, %v7406_v30  ;;  %v15756_v55 = vpop.permute.xlu0 %6620 }
 0x812   : > { %v6333_v5 = vsel %vm810_vm3, %v17366_v58, %v17364_v11  ;;  %v17368_v11 = vrot.slane %v15322_v16, 4  ;;  %v6342_v28 = vsel %vm941_vm11, %v15115_v7, %v6341_v21  ;;  %v15754_v37 = vpop.permute.xlu1 %6133 }
 0x813   : > { %v7026_v46 = vsel %vm810_vm3, %v17369_v9, %v7003_v49  ;;  %v7028_v10 = vsel %vm7020_vm12, %v6968_v33, %v7003_v49  ;;  %8597 = vmatpush2.bf16.msra.mxu1 %v11513_v47  ;;  %8655 = vmatpush1.bf16.msra.mxu0 %v11497_v52  ;;  %v6145_v33 = vrot.slane %v15568_v23, 4  ;;  %v6155_v36 = vrot.slane %v15754_v37, 4  ;;  %v7616_v47 = vld [vmem:[#allocation6 + $0x490] sm:$0xff] }
 0x814   : > { %v6357_v58 = vsel %vm810_vm3, %v17368_v11, %v6327_v63  ;;  %v15751_v34 = vsel %vm7020_vm12, %v15221_v12, %v7026_v46  ;;  %7080 = vst.msk [vmem:[#allocation6 + $0x380] sm:$0xf] %vm6040_vm5, %v7028_v10  ;;  %8707 = vmatprep.subr.bf16.mxu1 %v11597_v26  ;;  %v17371_v12 = vrot.slane %v14888_v59, 4  ;;  %v11596_v49 = vcombine.low %v17370_v27, %v7406_v30  ;;  %v17373_v11 = vld [vmem:[#allocation15_spill] sm:$0xff] }
 0x815   : > { %v6358_v6 = vsel %vm941_vm11, %v15322_v16, %v6357_v58  ;;  %v6334_v16 = vsel %vm941_vm11, %v17365_v8, %v6333_v5  ;;  %v17372_v52 = vrot.slane %v15348_v4, 4  ;;  %v11588_v5 = vcombine.high %v7616_v47, %v15545_v25  ;;  %v6816_v9 = vpop.permute.xlu0 %6815 }
 0x816   : > { %v11489_v7 = vcombine.high %v6350_v20, %v6358_v6  ;;  %v11488_v21 = vcombine.low %v6350_v20, %v6358_v6  ;;  %v6177_v46 = vsel %vm810_vm3, %v17371_v12, %v6150_v22  ;;  %8599 = vmatmul.mubr.bf16.vlgmr.msra.gmra.mxu1 %v17373_v11  ;;  %v11480_v20 = vcombine.high %v6334_v16, %v6342_v28  ;;  %v15777_v58 = vpop.permute.xlu1 %7172  ;;  %v17375_v12 = vld [vmem:[#allocation22_spill] sm:$0xff] }
 0x817   : > { %v6185_v26 = vsel %vm810_vm3, %v17372_v52, %v6155_v36  ;;  %8708 = vmatpush1.bf16.msra.mxu1 %v11596_v49  ;;  %v17374_v30 = vrot.slane %v15135_v42, 4  ;;  %v7194_v27 = vrot.slane %v15777_v58, 4  ;;  %v6841_v6 = vrot.slane %v6816_v9, 4  ;;  %6913 = vst.msk [vmem:[#allocation6 + $0x338] sm:$0xf] %vm6040_vm5, %v6816_v9  ;;  %8727 = vmatprep.mubr.bf16.mxu1 %v17375_v12 }
 0x818   : > { %8656 = vmatprep.subr.bf16.mxu0 %v11489_v7  ;;  %v6186_v8 = vsel %vm812_vm6, %v15348_v4, %v6185_v26  ;;  %8709 = vmatprep.subr.bf16.mxu1 %v11588_v5  ;;  %v6178_v4 = vsel %vm812_vm6, %v14888_v59, %v6177_v46  ;;  %v11587_v7 = vcombine.low %v7616_v47, %v15545_v25  ;;  %v17376_v49 = vrot.slane %v15389_v15, 4 }
 0x819   : > { %8657 = vmatpush1.bf16.msra.mxu0 %v11488_v21  ;;  %v6169_v10 = vsel %vm810_vm3, %v17374_v30, %v6145_v33  ;;  %v11479_v21 = vcombine.low %v6334_v16, %v6342_v28  ;;  %v17377_v26 = vrot.slane %v15422_v13, 4  ;;  %v7342_v16 = vpop.permute.xlu0 %7341  ;;  %v11470_v9 = vcombine.low %v6178_v4, %v6186_v8  ;;  %v7476_v30 = vld [vmem:[#allocation6 + $0xa0] sm:$0xff] }
 0x81a   : > { %8658 = vmatprep.subr.bf16.mxu0 %v11480_v20  ;;  %v7228_v52 = vsel %vm810_vm3, %v17376_v49, %v7194_v27  ;;  %v11471_v20 = vcombine.high %v6178_v4, %v6186_v8  ;;  %v6170_v5 = vsel %vm812_vm6, %v15135_v42, %v6169_v10  ;;  %v15808_v28 = vpop.permute.xlu1 %6995  ;;  %v7367_v47 = vrot.slane %v7342_v16, 4  ;;  %v17379_v10 = vld [vmem:[#allocation13_spill] sm:$0xff] }
 0x81b   : > { %v6869_v11 = vsel %vm810_vm3, %v17377_v26, %v6841_v6  ;;  %v15802_v59 = vsel %vm7197_vm10, %v15389_v15, %v7228_v52  ;;  %8710 = vmatpush1.bf16.msra.mxu1 %v11587_v7  ;;  %v7017_v46 = vrot.slane %v15808_v28, 4  ;;  %v17378_v42 = vrot.slane %v15420_v40, 4  ;;  %v15823_v7 = vld [vmem:[%s17077_s3 + $0x8] ss:$12 sps:$4 sm:$0xff]  }
 0x81c   : > { %v15806_v25 = vsel %vm1457_vm8, %v15422_v13, %v6869_v11  ;;  %v17380_v13 = vrot.slane %v17379_v10, 4  ;;  %v7400_v12 = vsel %vm7374_vm7, %v7342_v16, %v7367_v47 }
 0x81d   : > { %8659 = vmatpush1.bf16.msra.mxu0 %v11479_v21  ;;  %v7051_v15 = vsel %vm810_vm3, %v17378_v42, %v7017_v46  ;;  %v11462_v21 = vcombine.high %v7476_v30, %v6170_v5  ;;  %7444 = vst.msk [vmem:[#allocation6 + $0x4e8] sm:$0xf] %vm6040_vm5, %v7400_v12  ;;  %v6796_v52 = vpop.permute.xlu0 %6795  ;;  %v7466_v12 = vld [vmem:[#allocation6 + $0x58] sm:$0xff] }
 0x81e   : > { %8660 = vmatprep.subr.bf16.mxu0 %v11471_v20  ;;  %v7398_v6 = vsel %vm810_vm3, %v17380_v13, %v7367_v47  ;;  %11603 = vmatmul.mubr.msk.bf16.vlgmr.msra.gmra.mxu1 %vm3972_vm9, %v15823_v7  ;;  %v15829_v8 = vsel %vm7020_vm12, %v15420_v40, %v7051_v15  ;;  %v15836_v49 = vpop.permute.xlu1 %6823  ;;  %v6831_v11 = vrot.slane %v6796_v52, 4  ;;  %6903 = vst.msk [vmem:[#allocation6 + $0x2f0] sm:$0xf] %vm6040_vm5, %v6796_v52  ;;  %v17381_v20 = vrot.slane %v15453_v35, 4  ;;  %v12402_v15 = vld [vmem:[#allocation6 + $0x5c] ss:$36 sps:$4 sm:$0xff]  }
 0x81f   : > { %v15833_v4 = vsel %vm7374_vm7, %v17379_v10, %v7398_v6  ;;  %8770 = vmatprep.mubr.bf16.mxu1 %v15559_v61  ;;  %v6845_v26 = vrot.slane %v15836_v49, 4  ;;  %v11461_v40 = vcombine.low %v7476_v30, %v6170_v5  ;;  %v17382_v47 = vrot.slane %v15608_v18, 4  ;;  %v17383_v52 = vld [vmem:[#allocation29_spill] sm:$0xff] }
 0x821   : > { %8661 = vmatpush1.bf16.msra.mxu0 %v11470_v9  ;;  %v6875_v16 = vsel %vm810_vm3, %v17381_v20, %v6845_v26  ;;  %v6853_v42 = vsel %vm810_vm3, %v17382_v47, %v6831_v11  ;;  %v7471_v9 = vld [vmem:[#allocation6 + $0x7c] sm:$0xff]  ;;  %v7322_v30 = vpop.permute.xlu0 %7321  ;;  %v17384_v11 = vrot.slane %v17383_v52, 4  ;;  %v12404_v47 = vld [vmem:[#allocation6 + $0x14] ss:$36 sps:$4 sm:$0xff]  }
 0x822   : > { %8662 = vmatprep.subr.bf16.mxu0 %v11462_v21  ;;  %v15851_v10 = vsel %vm1457_vm8, %v15453_v35, %v6875_v16  ;;  %v15855_v13 = vsel %vm1457_vm8, %v15608_v18, %v6853_v42  ;;  %v6460_v5 = vpop.permute.xlu1 %6459  ;;  %v7357_v6 = vrot.slane %v7322_v30, 4  ;;  %v11452_v21 = vcombine.low %v7466_v12, %v7471_v9  ;;  %v7461_v16 = vld [vmem:[#allocation6 + $0x34] sm:$0xff] }
 0x823   : > { %6563 = vst.msk [vmem:[#allocation6 + $0x1f4] sm:$0xf] %vm6040_vm5, %v6460_v5 }
 0x824   : > { %v7380_v20 = vsel %vm810_vm3, %v17384_v11, %v7357_v6  ;;  %v7382_v35 = vsel %vm7374_vm7, %v7322_v30, %v7357_v6  ;;  %v17385_v6 = vrot.slane %v15686_v1, 4 }
 0x825   : > { %8663 = vmatpush1.bf16.msra.mxu0 %v11461_v40  ;;  %v15864_v18 = vsel %vm7374_vm7, %v17383_v52, %v7380_v20  ;;  %7434 = vst.msk [vmem:[#allocation6 + $0x4a0] sm:$0xf] %vm6040_vm5, %v7382_v35  ;;  %v6643_v42 = vpop.permute.xlu0 %6642  ;;  %v11579_v52 = vcombine.high %v15387_v51, %v15802_v59  ;;  %v6495_v35 = vrot.slane %v15511_v3, 4  ;;  %v17386_v3 = vrot.slane %v15253_v50, 4 }
 0x826   : > { %8664 = vmatprep.subr.bf16.mxu0 %v12402_v15  ;;  %v15867_v40 = vpop.permute.xlu1 %6287  ;;  %v6668_v9 = vrot.slane %v6643_v42, 4  ;;  %6741 = vst.msk [vmem:[#allocation6 + $0x2a8] sm:$0xf] %vm6040_vm5, %v6643_v42  ;;  %v7456_v15 = vld [vmem:[#allocation6 + $0x10] sm:$0xff]  ;;  %v6485_v42 = vrot.slane %v15455_v0, 4  ;;  %v17388_v0 = vrot.slane %v15088_v19, 4 }
 0x827   : > { %6390 = vst.msk [vmem:[#allocation6 + $0x164] sm:$0xf] %vm6040_vm5, %v15867_v40  ;;  %v11443_v30 = vcombine.low %v7456_v15, %v7461_v16  ;;  %v11578_v16 = vcombine.low %v15387_v51, %v15802_v59 }
 0x828   : > { %v6697_v12 = vsel %vm810_vm3, %v17385_v6, %v6668_v9  ;;  %v6508_v59 = vsel %vm810_vm3, %v17388_v0, %v6485_v42  ;;  %v6318_v42 = vrot.slane %v15867_v40, 4 }
 0x829   : > { %8665 = vmatpush1.bf16.msra.mxu0 %v11452_v21  ;;  %v15879_v11 = vsel %vm6675_vm14, %v15686_v1, %v6697_v12  ;;  %v15883_v20 = vpop.permute.xlu0 %6622  ;;  %v7596_v1 = vld [vmem:[#allocation6 + $0x400] sm:$0xff] }
 0x82a   : > { %8666 = vmatprep.subr.bf16.mxu0 %v12404_v47  ;;  %v15881_v21 = vpop.permute.xlu1 %6115  ;;  %v6490_v47 = vrot.slane %v6460_v5, 4  ;;  %6731 = vst.msk [vmem:[#allocation6 + $0x260] sm:$0xf] %vm6040_vm5, %v15883_v20  ;;  %v11570_v9 = vcombine.high %v7596_v1, %v15599_v2  ;;  %v6524_v5 = vsel %vm810_vm3, %v17386_v3, %v6495_v35  ;;  %v11569_v51 = vcombine.low %v7596_v1, %v15599_v2  ;;  %v17390_v35 = vld [vmem:[#allocation25_spill] sm:$0xff] }
 0x82b   : > { %6218 = vst.msk [vmem:[#allocation6 + $0xd4] sm:$0xf] %vm6040_vm5, %v15881_v21  ;;  %v11561_v3 = vcombine.high %v17390_v35, %v15829_v8 }
 0x82d   : > { %8667 = vmatpush1.bf16.msra.mxu0 %v11443_v30  ;;  %v17387_v30 = vrot.slane %v15509_v43, 4 }
 0x82e   : > { %8668 = vmatprep.subr.bf16.mxu0 %v11579_v52  ;;  %v6480_v15 = vpop.permute.xlu1 %6479  ;;  %v17389_v52 = vrot.slane %v15645_v56, 4 }
 0x82f   : > { %v6516_v6 = vsel %vm810_vm3, %v17387_v30, %v6490_v47  ;;  %v6500_v12 = vrot.slane %v6480_v15, 4  ;;  %6573 = vst.msk [vmem:[#allocation6 + $0x23c] sm:$0xf] %vm6040_vm5, %v6480_v15  ;;  %v6525_v47 = vsel %vm6502_vm15, %v15253_v50, %v6524_v5  ;;  %v6323_v30 = vrot.slane %v15554_v53, 4  ;;  %v17391_v50 = vld [vmem:[#allocation10_spill] sm:$0xff] }
 0x830   : > { %v6313_v5 = vrot.slane %v17391_v50, 4  ;;  %v11560_v53 = vcombine.low %v17390_v35, %v15829_v8  ;;  %v17393_v8 = vrot.slane %v15296_v17, 4  ;;  %v17394_v35 = vrot.slane %v15552_v29, 4 }
 0x831   : > { %8669 = vmatpush2.bf16.msra.mxu0 %v11578_v16  ;;  %v6532_v16 = vsel %vm810_vm3, %v17389_v52, %v6500_v12  ;;  %v6509_v52 = vsel %vm6502_vm15, %v15088_v19, %v6508_v59 }
 0x832   : > { %8670 = vmatprep.subr.bf16.mxu0 %v11570_v9  ;;  %v6517_v9 = vsel %vm6502_vm15, %v15509_v43, %v6516_v6  ;;  %v6533_v2 = vsel %vm6502_vm15, %v15645_v56, %v6532_v16  ;;  %v7155_v1 = vpop.permute.xlu1 %7154  ;;  %v7576_v43 = vld [vmem:[#allocation6 + $0x370] sm:$0xff]  ;;  %v17392_v6 = vrot.slane %v15578_v24, 4  ;;  %v6351_v59 = vsel %vm810_vm3, %v17393_v8, %v6323_v30 }
 0x833   : > { %v7185_v15 = vrot.slane %v7155_v1, 4  ;;  %v11509_v12 = vcombine.high %v6525_v47, %v6533_v2  ;;  %v11508_v0 = vcombine.low %v6525_v47, %v6533_v2  ;;  %v11552_v40 = vcombine.high %v7576_v43, %v15639_v62 }
 0x834   : > { %v11500_v16 = vcombine.high %v6509_v52, %v6517_v9  ;;  %v6343_v47 = vsel %vm810_vm3, %v17394_v35, %v6318_v42  ;;  %v6352_v42 = vsel %vm941_vm11, %v15296_v17, %v6351_v59 }
 0x835   : > { %8671 = vmatpush2.bf16.msra.mxu0 %v11569_v51  ;;  %v7212_v56 = vsel %vm810_vm3, %v17392_v6, %v7185_v15  ;;  %v7214_v51 = vsel %vm7197_vm10, %v7155_v1, %v7185_v15  ;;  %8738 = vmatprep.subr.bf16.mxu1 %v11509_v12  ;;  %v11499_v1 = vcombine.low %v6509_v52, %v6517_v9  ;;  %v17395_v15 = vrot.slane %v15137_v41, 4 }
 0x836   : > { %8672 = vmatprep.subr.bf16.mxu0 %v11561_v3  ;;  %v15930_v3 = vsel %vm7197_vm10, %v15578_v24, %v7212_v56  ;;  %7262 = vst.msk [vmem:[#allocation6 + $0x434] sm:$0xf] %vm6040_vm5, %v7214_v51  ;;  %v6308_v19 = vpop.permute.xlu1 %6307  ;;  %8739 = vmatpush1.bf16.msra.mxu1 %v11508_v0  ;;  %v11551_v24 = vcombine.low %v7576_v43, %v15639_v62  ;;  %v17396_v0 = vld [vmem:[#allocation19_spill] sm:$0xff] }
 0x837   : > { %v6328_v2 = vrot.slane %v6308_v19, 4  ;;  %6400 = vst.msk [vmem:[#allocation6 + $0x1ac] sm:$0xf] %vm6040_vm5, %v6308_v19  ;;  %8740 = vmatprep.subr.bf16.mxu1 %v11500_v16  ;;  %v6335_v12 = vsel %vm810_vm3, %v17395_v15, %v6313_v5  ;;  %v11543_v50 = vcombine.high %v17396_v0, %v15851_v10  ;;  %v6344_v62 = vsel %vm941_vm11, %v15552_v29, %v6343_v47 }
 0x838   : > { %v6336_v17 = vsel %vm941_vm11, %v15137_v41, %v6335_v12  ;;  %v11542_v29 = vcombine.low %v17396_v0, %v15851_v10 }
 0x839   : > { %8673 = vmatpush2.bf16.msra.mxu0 %v11560_v53  ;;  %v6359_v30 = vsel %vm810_vm3, %v6327_v63, %v6328_v2  ;;  %v6151_v53 = vrot.slane %v15570_v38, 4  ;;  %v6146_v63 = vrot.slane %v15881_v21, 4  ;;  %v17397_v38 = vld [vmem:[#allocation17_spill] sm:$0xff]  ;;  %v11482_v21 = vcombine.high %v6336_v17, %v6344_v62 }
 0x83a   : > { %8674 = vmatprep.subr.bf16.mxu0 %v11552_v40  ;;  %v6360_v9 = vsel %vm941_vm11, %v15716_v32, %v6359_v30  ;;  %v15956_v52 = vpop.permute.xlu1 %6803  ;;  %8741 = vmatpush1.bf16.msra.mxu1 %v11499_v1  ;;  %v6141_v56 = vrot.slane %v17397_v38, 4  ;;  %v17398_v32 = vld [vmem:[#allocation21_spill] sm:$0xff]  ;;  %v11481_v47 = vcombine.low %v6336_v17, %v6344_v62  ;;  %v6657_v62 = vrot.slane %v15756_v55, 4 }
 0x83b   : > { %v6835_v5 = vrot.slane %v15956_v52, 4  ;;  %v11491_v43 = vcombine.high %v6352_v42, %v6360_v9  ;;  %v11490_v6 = vcombine.low %v6352_v42, %v6360_v9  ;;  %v17399_v51 = vrot.slane %v17398_v32, 4 }
 0x83c   : > { %v6179_v16 = vsel %vm810_vm3, %v6150_v22, %v6151_v53  ;;  %v6171_v10 = vsel %vm810_vm3, %v6145_v33, %v6146_v63  ;;  %v17400_v22 = vld [vmem:[#allocation30_spill] sm:$0xff]  ;;  %v17403_v17 = vrot.slane %v15606_v31, 4 }
 0x83d   : > { %8675 = vmatpush2.bf16.msra.mxu0 %v11551_v24  ;;  %v6859_v40 = vsel %vm810_vm3, %v17399_v51, %v6835_v5  ;;  %8742 = vmatprep.subr.bf16.mxu1 %v11491_v43  ;;  %v17401_v2 = vrot.slane %v17400_v22, 4  ;;  %v6180_v33 = vsel %vm812_vm6, %v15324_v45, %v6179_v16  ;;  %v6172_v15 = vsel %vm812_vm6, %v15568_v23, %v6171_v10 }
 0x83e   : > { %8676 = vmatprep.subr.bf16.mxu0 %v11543_v50  ;;  %v6860_v41 = vsel %vm1457_vm8, %v17398_v32, %v6859_v40  ;;  %v6136_v19 = vpop.permute.xlu1 %6135  ;;  %8743 = vmatpush1.bf16.msra.mxu1 %v11490_v6  ;;  %v17402_v45 = vrot.slane %v15488_v48, 4 }
 0x83f   : > { %v6156_v8 = vrot.slane %v6136_v19, 4  ;;  %6228 = vst.msk [vmem:[#allocation6 + $0x11c] sm:$0xf] %vm6040_vm5, %v6136_v19  ;;  %8744 = vmatprep.subr.bf16.mxu1 %v11482_v21  ;;  %v11533_v59 = vcombine.low %v15643_v57, %v6860_v41  ;;  %v11534_v35 = vcombine.high %v15643_v57, %v6860_v41  ;;  %v6163_v24 = vsel %vm810_vm3, %v17401_v2, %v6141_v56  ;;  %v7472_v56 = vld [vmem:[#allocation6 + $0x84] sm:$0xff] }
 0x840   : > { %v7467_v41 = vld [vmem:[#allocation6 + $0x60] sm:$0xff] }
 0x841   : > { %8677 = vmatpush2.bf16.msra.mxu0 %v11542_v29  ;;  %v6187_v1 = vsel %vm810_vm3, %v6155_v36, %v6156_v8  ;;  %v6164_v36 = vsel %vm812_vm6, %v17400_v22, %v6163_v24  ;;  %v11454_v19 = vcombine.low %v7467_v41, %v7472_v56  ;;  %v7462_v8 = vld [vmem:[#allocation6 + $0x3c] sm:$0xff] }
 0x842   : > { %8678 = vmatprep.subr.bf16.mxu0 %v11534_v35  ;;  %v6188_v12 = vsel %vm812_vm6, %v15754_v37, %v6187_v1  ;;  %v15993_v57 = vpop.permute.xlu1 %6650  ;;  %8745 = vmatpush1.bf16.msra.mxu1 %v11481_v47  ;;  %v11464_v42 = vcombine.high %v6164_v36, %v6172_v15  ;;  %v11463_v6 = vcombine.low %v6164_v36, %v6172_v15  ;;  %v7457_v24 = vld [vmem:[#allocation6 + $0x18] sm:$0xff] }
 0x843   : > { %v6672_v30 = vrot.slane %v15993_v57, 4  ;;  %v11473_v0 = vcombine.high %v6180_v33, %v6188_v12  ;;  %v11472_v50 = vcombine.low %v6180_v33, %v6188_v12  ;;  %v11445_v15 = vcombine.low %v7457_v24, %v7462_v8 }
 0x845   : > { %8679 = vmatpush2.bf16.msra.mxu0 %v11533_v59  ;;  %v6703_v23 = vsel %vm810_vm3, %v17402_v45, %v6672_v30  ;;  %8746 = vmatprep.subr.bf16.mxu1 %v11473_v0  ;;  %v12408_v59 = vld [vmem:[#allocation6 + $0x1c] ss:$36 sps:$4 sm:$0xff]  }
 0x846   : > { %v6704_v37 = vsel %vm6675_vm14, %v15488_v48, %v6703_v23  ;;  %v6978_v53 = vpop.permute.xlu1 %6977  ;;  %8747 = vmatpush1.bf16.msra.mxu1 %v11472_v50  ;;  %v12406_v48 = vld [vmem:[#allocation6 + $0x64] ss:$36 sps:$4 sm:$0xff]  }
 0x847   : > { %v7008_v9 = vrot.slane %v6978_v53, 4  ;;  %8748 = vmatprep.subr.bf16.mxu1 %v11464_v42  ;;  %v11524_v63 = vcombine.low %v15714_v54, %v6704_v37  ;;  %v11525_v43 = vcombine.high %v15714_v54, %v6704_v37  ;;  %v17404_v54 = vld [vmem:[#allocation26_spill] sm:$0xff]  ;;  %v11572_v42 = vcombine.high %v15549_v60, %v15930_v3 }
 0x848   : > { %v17405_v40 = vrot.slane %v17404_v54, 4 }
 0x849   : > { %v7035_v29 = vsel %vm810_vm3, %v17403_v17, %v7008_v9  ;;  %v7037_v38 = vsel %vm7020_vm12, %v6978_v53, %v7008_v9  ;;  %8680 = vmatprep.subr.bf16.mxu0 %v11525_v43  ;;  %v11571_v9 = vcombine.low %v15549_v60, %v15930_v3 }
 0x84a   : > { %v16014_v32 = vsel %vm7020_vm12, %v15606_v31, %v7035_v29  ;;  %7085 = vst.msk [vmem:[#allocation6 + $0x3a4] sm:$0xf] %vm6040_vm5, %v7037_v38  ;;  %v16017_v51 = vpop.permute.xlu1 %6630  ;;  %8681 = vmatpush2.bf16.msra.mxu0 %v11524_v63  ;;  %8749 = vmatpush1.bf16.msra.mxu1 %v11463_v6  ;;  %v6679_v21 = vsel %vm810_vm3, %v17405_v40, %v6657_v62  ;;  %v17406_v31 = vrot.slane %v15275_v14, 4 }
 0x84b   : > { %v6662_v16 = vrot.slane %v16017_v51, 4  ;;  %8750 = vmatprep.subr.bf16.mxu1 %v12406_v48  ;;  %v6680_v35 = vsel %vm6675_vm14, %v17404_v54, %v6679_v21  ;;  %v11554_v3 = vcombine.high %v15751_v34, %v16014_v32  ;;  %v11553_v48 = vcombine.low %v15751_v34, %v16014_v32  ;;  %v17407_v54 = vld [vmem:[#allocation18_spill] sm:$0xff] }
 0x84d   : > { %v6687_v10 = vsel %vm810_vm3, %v17406_v31, %v6662_v16 }
 0x84e   : > { %v6688_v47 = vsel %vm6675_vm14, %v15275_v14, %v6687_v10  ;;  %v7175_v22 = vpop.permute.xlu1 %7174  ;;  %8751 = vmatpush1.bf16.msra.mxu1 %v11454_v19  ;;  %v17409_v10 = vld [vmem:[#allocation23_spill] sm:$0xff] }
 0x84f   : > { %v7195_v2 = vrot.slane %v7175_v22, 4  ;;  %8752 = vmatprep.subr.bf16.mxu1 %v12408_v59  ;;  %v11516_v1 = vcombine.high %v6680_v35, %v6688_v47  ;;  %v11515_v33 = vcombine.low %v6680_v35, %v6688_v47  ;;  %v17410_v8 = vrot.slane %v17409_v10, 4 }
 0x851   : > { %v7230_v12 = vsel %vm810_vm3, %v7194_v27, %v7195_v2  ;;  %v7232_v0 = vsel %vm7197_vm10, %v7175_v22, %v7195_v2  ;;  %8682 = vmatprep.subr.bf16.mxu0 %v11516_v1 }
 0x852   : > { %v7231_v50 = vsel %vm7197_vm10, %v15777_v58, %v7230_v12  ;;  %7272 = vst.msk [vmem:[#allocation6 + $0x47c] sm:$0xf] %vm6040_vm5, %v7232_v0  ;;  %v6806_v14 = vpop.permute.xlu1 %6805  ;;  %8683 = vmatpush2.bf16.msra.mxu0 %v11515_v33  ;;  %8753 = vmatpush1.bf16.msra.mxu1 %v11445_v15  ;;  %v16050_v58 = vld [vmem:[%s17077_s3] ss:$12 sps:$4 sm:$0xff]  }
 0x853   : > { %v6836_v36 = vrot.slane %v6806_v14, 4  ;;  %6908 = vst.msk [vmem:[#allocation6 + $0x314] sm:$0xf] %vm6040_vm5, %v6806_v14  ;;  %v11580_v45 = vcombine.low %v15603_v44, %v7231_v50  ;;  %v11581_v23 = vcombine.high %v15603_v44, %v7231_v50  ;;  %v16057_v44 = vld [vmem:[#allocation5] sm:$0xff] }
 0x855   : > { %v6861_v27 = vsel %vm810_vm3, %v6835_v5, %v6836_v36  ;;  %8685 = vmatmul.mubr.bf16.vlgmr.msra.gmra.mxu0 %v16050_v58  ;;  %8754 = vmatprep.subr.bf16.mxu1 %v11581_v23  ;;  %v12412_v36 = vld [vmem:[#allocation6 + $0x410] ss:$36 sps:$4 sm:$0xff]  }
 0x856   : > { %v6862_v37 = vsel %vm1457_vm8, %v15956_v52, %v6861_v27  ;;  %v6998_v53 = vpop.permute.xlu1 %6997  ;;  %8755 = vmatpush2.bf16.msra.mxu1 %v11580_v45  ;;  %8813 = vmatprep.mubr.bf16.mxu0 %v16057_v44  ;;  %v12413_v27 = vld [vmem:[#allocation6 + $0x1d0] ss:$36 sps:$4 sm:$0xff]  }
 0x857   : > { %v7018_v5 = vrot.slane %v6998_v53, 4  ;;  %8756 = vmatprep.subr.bf16.mxu1 %v11572_v42  ;;  %v11536_v47 = vcombine.high %v15855_v13, %v6862_v37  ;;  %v11535_v33 = vcombine.low %v15855_v13, %v6862_v37  ;;  %v12415_v42 = vld [vmem:[#allocation6 + $0x188] ss:$36 sps:$4 sm:$0xff]  }
 0x859   : > { %v7053_v63 = vsel %vm810_vm3, %v7017_v46, %v7018_v5  ;;  %v7055_v43 = vsel %vm7020_vm12, %v6998_v53, %v7018_v5  ;;  %v12410_v12 = vld [vmem:[#allocation6 + $0x458] ss:$36 sps:$4 sm:$0xff]  }
 0x85a   : > { %v7054_v52 = vsel %vm7020_vm12, %v15808_v28, %v7053_v63  ;;  %7095 = vst.msk [vmem:[#allocation6 + $0x3ec] sm:$0xf] %vm6040_vm5, %v7055_v43  ;;  %v6826_v6 = vpop.permute.xlu1 %6825  ;;  %8757 = vmatpush2.bf16.msra.mxu1 %v11571_v9  ;;  %v12419_v53 = vld [vmem:[#allocation6 + $0xf8] ss:$36 sps:$4 sm:$0xff]   ;;  %v12420_v5 = vld [vmem:[#allocation6 + $0x2f0] ss:$36 sps:$4 sm:$0xff]  }
 0x85b   : > { %v6846_v17 = vrot.slane %v6826_v6, 4  ;;  %6918 = vst.msk [vmem:[#allocation6 + $0x35c] sm:$0xf] %vm6040_vm5, %v6826_v6  ;;  %v11562_v29 = vcombine.low %v15681_v39, %v7054_v52  ;;  %v11563_v60 = vcombine.high %v15681_v39, %v7054_v52  ;;  %v17408_v39 = vrot.slane %v17407_v54, 4  ;;  %v12423_v63 = vld [vmem:[#allocation6 + $0x68] ss:$36 sps:$4 sm:$0xff]  }
 0x85c   : > { %v12425_v52 = vld [vmem:[#allocation6 + $0x20] ss:$36 sps:$4 sm:$0xff]   ;;  %v12565_v6 = vmov 0.0  }
 0x85d   : > { %v6877_v46 = vsel %vm810_vm3, %v6845_v26, %v6846_v17  ;;  %8758 = vmatprep.subr.bf16.mxu1 %v11563_v60 }
 0x85e   : > { %v6878_v28 = vsel %vm1457_vm8, %v15836_v49, %v6877_v46  ;;  %v7352_v38 = vpop.permute.xlu1 %7351  ;;  %8759 = vmatpush2.bf16.msra.mxu1 %v11562_v29 }
 0x85f   : > { %v7372_v56 = vrot.slane %v7352_v38, 4  ;;  %8760 = vmatprep.subr.bf16.mxu1 %v11554_v3  ;;  %v11545_v21 = vcombine.high %v15806_v25, %v6878_v28  ;;  %v11544_v32 = vcombine.low %v15806_v25, %v6878_v28  ;;  %v8557_v29 = vpop.f32.mrf.mxu1  ;;  %v16130_v28 = vpop.permute.xlu0 %8907 }
 0x861   : > { %v7407_v40 = vsel %vm810_vm3, %v17408_v39, %v7372_v56  ;;  %v7409_v26 = vsel %vm7374_vm7, %v7352_v38, %v7372_v56  ;;  %v8559_v46 = vpop.f32.mrf.mxu1  ;;  %v16139_v39 = vld [vmem:[%s17081_s7 + $0x1] ss:$2 sm:$0xff] }
 0x862   : > { %v7408_v41 = vsel %vm7374_vm7, %v17407_v54, %v7407_v40  ;;  %7449 = vst.msk [vmem:[#allocation6 + $0x50c] sm:$0xf] %vm6040_vm5, %v7409_v26  ;;  %v7332_v49 = vpop.permute.xlu1 %7331  ;;  %8761 = vmatpush2.bf16.msra.mxu1 %v11553_v48  ;;  %v12418_v37 = vld [vmem:[#allocation6 + $0x338] ss:$36 sps:$4 sm:$0xff]  }
 0x863   : > { %v7362_v19 = vrot.slane %v7332_v49, 4  ;;  %8762 = vmatprep.subr.bf16.mxu1 %v11545_v21  ;;  %v11598_v31 = vcombine.low %v15833_v4, %v7408_v41  ;;  %v11599_v34 = vcombine.high %v15833_v4, %v7408_v41  ;;  %v6658_v4 = vrot.slane %v15883_v20, 4  ;;  %v8561_v56 = vpop.f32.mrf.mxu1 }
 0x865   : > { %v7389_v59 = vsel %vm810_vm3, %v17410_v8, %v7362_v19  ;;  %v7391_v35 = vsel %vm7374_vm7, %v7332_v49, %v7362_v19  ;;  %8793 = vmatprep.subr.bf16.mxu0 %v11599_v34  ;;  %v6681_v50 = vsel %vm810_vm3, %v6657_v62, %v6658_v4  ;;  %v8563_v41 = vpop.f32.mrf.mxu1  ;;  %v17412_v8 = vld [vmem:[#allocation11_spill] sm:$0xff] }
 0x866   : > { %v7390_v22 = vsel %vm7374_vm7, %v17409_v10, %v7389_v59  ;;  %7439 = vst.msk [vmem:[#allocation6 + $0x4c4] sm:$0xf] %vm6040_vm5, %v7391_v35  ;;  %v6653_v2 = vpop.permute.xlu1 %6652  ;;  %8763 = vmatpush2.bf16.msra.mxu1 %v11544_v32  ;;  %8794 = vmatpush1.bf16.msra.mxu0 %v11598_v31  ;;  %v6682_v62 = vsel %vm6675_vm14, %v15756_v55, %v6681_v50  ;;  %v12416_v55 = vld [vmem:[#allocation6 + $0x380] ss:$36 sps:$4 sm:$0xff]   ;;  %v17411_v31 = vld [vmem:[#allocation12_spill] sm:$0xff]  ;;  %v16146_v10 = vpop.permute.xlu0 %8937  ;;  %v17413_v59 = vsub.s32 1, %v17412_v8 }
 0x867   : > { %v6673_v25 = vrot.slane %v6653_v2, 4  ;;  %6746 = vst.msk [vmem:[#allocation6 + $0x2cc] sm:$0xf] %vm6040_vm5, %v6653_v2  ;;  %8764 = vmatprep.subr.bf16.mxu1 %v11536_v47  ;;  %v11589_v24 = vcombine.low %v15864_v18, %v7390_v22  ;;  %v11590_v1 = vcombine.high %v15864_v18, %v7390_v22  ;;  %v8991_v34 = vrot.slane %v16139_v39, %v17411_v31 }
 0x868   : > { %v8995_v35 = vrot.slane %v16139_v39, %v17413_v59 }
 0x869   : > { %v6705_v15 = vsel %vm810_vm3, %v6672_v30, %v6673_v25  ;;  %8795 = vmatprep.subr.bf16.mxu0 %v11590_v1  ;;  %v12411_v30 = vld [vmem:[#allocation6 + $0x218] ss:$36 sps:$4 sm:$0xff]   ;;  %v12426_v17 = vld [vmem:[#allocation6 + $0x4e8] ss:$36 sps:$4 sm:$0xff]  }
 0x86a   : > { %v6706_v0 = vsel %vm6675_vm14, %v15993_v57, %v6705_v15  ;;  %v6633_v20 = vpop.permute.xlu1 %6632  ;;  %8765 = vmatpush2.bf16.msra.mxu1 %v11535_v33  ;;  %8796 = vmatpush1.bf16.msra.mxu0 %v11589_v24 }
 0x86b   : > { %v6663_v14 = vrot.slane %v6633_v20, 4  ;;  %6736 = vst.msk [vmem:[#allocation6 + $0x284] sm:$0xf] %vm6040_vm5, %v6633_v20  ;;  %11872 = vmatprep.subr.bf16.mxu0 %v12410_v12  ;;  %v11526_v13 = vcombine.low %v15879_v11, %v6706_v0  ;;  %v11527_v18 = vcombine.high %v15879_v11, %v6706_v0 }
 0x86d   : > { %v6689_v57 = vsel %vm810_vm3, %v6662_v16, %v6663_v14  ;;  %8766 = vmatprep.subr.bf16.mxu1 %v11527_v18  ;;  %11604 = vmatmul.mubr.msk.bf16.vlgmr.msra.gmra.mxu0 %vm3972_vm9, %v15823_v7  ;;  %v12414_v16 = vld [vmem:[#allocation6 + $0x3c8] ss:$36 sps:$4 sm:$0xff]   ;;  %v12427_v60 = vld [vmem:[#allocation6 + $0x4a0] ss:$36 sps:$4 sm:$0xff]  }
 0x86e   : > { %v6690_v45 = vsel %vm6675_vm14, %v16017_v51, %v6689_v57  ;;  %8767 = vmatpush2.bf16.msra.mxu1 %v11526_v13  ;;  %11873 = vmatpush3.bf16.msra.mxu0 %v12411_v30  ;;  %v12417_v51 = vld [vmem:[#allocation6 + $0x140] ss:$36 sps:$4 sm:$0xff]   ;;  %v12422_v9 = vld [vmem:[#allocation6 + $0x2a8] ss:$36 sps:$4 sm:$0xff]  }
 0x86f   : > { %11874 = vmatprep.subr.bf16.mxu0 %v12412_v36  ;;  %v11518_v11 = vcombine.high %v6682_v62, %v6690_v45  ;;  %v11517_v23 = vcombine.low %v6682_v62, %v6690_v45  ;;  %8856 = vmatprep.mubr.bf16.mxu0 %v15559_v61  ;;  %v12421_v61 = vld [vmem:[#allocation6 + $0xb0] ss:$36 sps:$4 sm:$0xff]  }
 0x871   : > { %8768 = vmatprep.subr.bf16.mxu1 %v11518_v11 }
 0x872   : > { %8769 = vmatpush2.bf16.msra.mxu1 %v11517_v23  ;;  %11875 = vmatpush3.bf16.msra.mxu0 %v12413_v27  ;;  %v12424_v43 = vld [vmem:[#allocation6 + $0x260] ss:$36 sps:$4 sm:$0xff]   ;;  %v9002_v23 = vsub.s32 3, %v17412_v8 }
 0x873   : > { %11876 = vmatprep.subr.bf16.mxu0 %v12414_v16 }
 0x875   : > { %8771 = vmatmul.mubr.bf16.vlgmr.msra.gmra.mxu1 %v16050_v58  ;;  %v16128_v3 = vpop.permute.xlu1 %8911 }
 0x876   : > { %11877 = vmatpush3.bf16.msra.mxu0 %v12415_v42 }
 0x877   : > { %11878 = vmatprep.subr.bf16.mxu0 %v12416_v55 }
 0x87a   : > { %11879 = vmatpush3.bf16.msra.mxu0 %v12417_v51 }
 0x87b   : > { %11880 = vmatprep.subr.bf16.mxu0 %v12418_v37  ;;  %v17414_v37 = vsub.s32 2, %v17412_v8 }
 0x87e   : > { %11881 = vmatpush3.bf16.msra.mxu0 %v12419_v53  ;;  %v8999_v53 = vrot.slane %v16139_v39, %v17414_v37 }
 0x87f   : > { %11882 = vmatprep.subr.bf16.mxu0 %v12420_v5 }
 0x882   : > { %11883 = vmatpush3.bf16.msra.mxu0 %v12421_v61 }
 0x883   : > { %11884 = vmatprep.subr.bf16.mxu0 %v12422_v9  ;;  %v9003_v9 = vrot.slane %v16139_v39, %v9002_v23 }
 0x886   : > { %11885 = vmatpush3.bf16.msra.mxu0 %v12423_v63 }
 0x887   : > { %11886 = vmatprep.subr.bf16.mxu0 %v12424_v43 }
 0x88a   : > { %11887 = vmatpush3.bf16.msra.mxu0 %v12425_v52 }
 0x88b   : > { %11933 = vmatprep.subr.bf16.mxu0 %v12565_v6 }
 0x88d   : > { %8857 = vmatmul.mubr.bf16.vlgmr.msra.gmra.mxu0 %v16050_v58  ;;  %v16134_v58 = vpop.permute.xlu1 %8933 }
 0x88e   : > { %11934 = vmatpush3.bf16.msra.mxu0 %v12426_v17  ;;  %11937 = vmatprep.mubr.msk.bf16.mxu0 %vm12566_vm1, %v12565_v6  ;;  %vm9158_vm1 = vcmask 805888  }
 0x88f   : > { %11935 = vmatprep.subr.bf16.mxu0 %v12565_v6 }
 0x892   : > { %11936 = vmatpush3.bf16.msra.mxu0 %v12427_v60 }
 0x894   : > { %v8514_v38 = vpop.f32.mrf.mxu0 }
 0x895   : > { %11938 = vmatmul.mubr.msk.bf16.vlgmr.msra.gmra.mxu0 %vm3972_vm9, %v15823_v7  ;;  %v8558_v48 = vadd.f32 %v8557_v29, %v8514_v38  ;;  %vm9152_vm9 = vcmask 1043736  }
 0x896   : > { %v8516_v54 = vpop.f32.mrf.mxu0  ;;  %vm16178_vm4 = vmor %vm3035_vm13, %vm9152_vm9  ;;  %vm10394_vm13 = vcmask 130048  }
 0x897   : > { %v8560_v40 = vadd.f32 %v8559_v46, %v8516_v54  ;;  %v8914_v26 = vmul.f32 %v16130_v28, %v8558_v48 }
 0x898   : > { %v8518_v21 = vpop.f32.mrf.mxu0 }
 0x899   : > { %v8562_v49 = vadd.f32 %v8561_v56, %v8518_v21  ;;  %v8915_v19 = vmul.f32 %v16130_v28, %v8560_v40  ;;  %v8940_v7 = vadd.f32 %v16134_v58, %v8914_v26 }
 0x89a   : > { %v8520_v32 = vpop.f32.mrf.mxu0 }
 0x89b   : > { %v8564_v47 = vadd.f32 %v8563_v41, %v8520_v32  ;;  %v8941_v22 = vadd.f32 %v16134_v58, %v8915_v19  ;;  %v8958_v2 = vmax.f32 %v8940_v7, 0.0  ;;  %v8923_v4 = vmul.f32 %v16128_v3, %v8562_v49 }
 0x89d   : > { %v8924_v25 = vmul.f32 %v16128_v3, %v8564_v47  ;;  %v8959_v24 = vmax.f32 %v8941_v22, 0.0  ;;  %v9033_v1 = vmul.f32 %v8991_v34, %v8958_v2  ;;  %v8949_v33 = vadd.f32 %v16146_v10, %v8923_v4 }
 0x89e   : > { %v9006_v47 = vsub.s32 4, %v17412_v8  ;;  %v9010_v2 = vsub.s32 5, %v17412_v8 }
 0x89f   : > { %v9034_v15 = vmul.f32 %v8995_v35, %v8959_v24  ;;  %v8950_v12 = vadd.f32 %v16146_v10, %v8924_v25  ;;  %v8967_v0 = vmax.f32 %v8949_v33, 0.0 }
 0x8a1   : > { %v11760_v20 = vpack.c.bf16 %v9034_v15, %v9033_v1  ;;  %v8968_v50 = vmax.f32 %v8950_v12, 0.0  ;;  %v9042_v14 = vmul.f32 %v8991_v34, %v8967_v0 }
 0x8a3   : > { %9097 = vrot.lane.b32.xlu1 %v11760_v20, %s12567_s12  ;;  %v9043_v13 = vmul.f32 %v8995_v35, %v8968_v50 }
 0x8a5   : > { %v11765_v18 = vpack.c.bf16 %v9043_v13, %v9042_v14  ;;  %v9007_v13 = vrot.slane %v16139_v39, %v9006_v47 }
 0x8a7   : > { %9107 = vrot.lane.b32.xlu0 %v11765_v18, %s12567_s12  ;;  %v9011_v18 = vrot.slane %v16139_v39, %v9010_v2 }
 0x8b4   : > { %v8643_v30 = vpop.f32.mrf.mxu0 }
 0x8b6   : > { %v8645_v57 = vpop.f32.mrf.mxu0 }
 0x8b8   : > { %v8647_v62 = vpop.f32.mrf.mxu0 }
 0x8ba   : > { %v8649_v55 = vpop.f32.mrf.mxu0 }
 0x8d6   : > { %v8600_v36 = vpop.f32.mrf.mxu1 }
 0x8d7   : > { %v8644_v45 = vadd.f32 %v8643_v30, %v8600_v36 }
 0x8d8   : > { %v8602_v11 = vpop.f32.mrf.mxu1 }
 0x8d9   : > { %v8916_v27 = vmul.f32 %v16130_v28, %v8644_v45  ;;  %v8646_v16 = vadd.f32 %v8645_v57, %v8602_v11 }
 0x8da   : > { %v8604_v42 = vpop.f32.mrf.mxu1 }
 0x8db   : > { %v8942_v51 = vadd.f32 %v16134_v58, %v8916_v27  ;;  %v8917_v5 = vmul.f32 %v16130_v28, %v8646_v16  ;;  %v8648_v61 = vadd.f32 %v8647_v62, %v8604_v42 }
 0x8dc   : > { %v8606_v63 = vpop.f32.mrf.mxu1 }
 0x8dd   : > { %v8960_v43 = vmax.f32 %v8942_v51, 0.0  ;;  %v8943_v52 = vadd.f32 %v16134_v58, %v8917_v5  ;;  %v8925_v6 = vmul.f32 %v16128_v3, %v8648_v61  ;;  %v8650_v17 = vadd.f32 %v8649_v55, %v8606_v63 }
 0x8de   : > { %v8729_v19 = vpop.f32.mrf.mxu1 }
 0x8df   : > { %v9035_v29 = vmul.f32 %v8999_v53, %v8960_v43  ;;  %v8961_v60 = vmax.f32 %v8943_v52, 0.0  ;;  %v8951_v46 = vadd.f32 %v16146_v10, %v8925_v6  ;;  %v8926_v38 = vmul.f32 %v16128_v3, %v8650_v17 }
 0x8e0   : > { %v8731_v7 = vpop.f32.mrf.mxu1 }
 0x8e1   : > { %v9036_v56 = vmul.f32 %v9003_v9, %v8961_v60  ;;  %v8969_v48 = vmax.f32 %v8951_v46, 0.0  ;;  %v8952_v54 = vadd.f32 %v16146_v10, %v8926_v38 }
 0x8e2   : > { %v8733_v35 = vpop.f32.mrf.mxu1 }
 0x8e3   : > { %v9044_v40 = vmul.f32 %v8999_v53, %v8969_v48  ;;  %v8970_v26 = vmax.f32 %v8952_v54, 0.0  ;;  %v11761_v21 = vpack.c.bf16 %v9036_v56, %v9035_v29  ;;  %v9014_v56 = vsub.s32 6, %v17412_v8 }
 0x8e4   : > { %v8735_v14 = vpop.f32.mrf.mxu1  ;;  %v9018_v54 = vsub.s32 7, %v17412_v8 }
 0x8e5   : > { %v9045_v41 = vmul.f32 %v9003_v9, %v8970_v26  ;;  %9099 = vrot.lane.b32.xlu1 %v11761_v21, %s12567_s12 }
 0x8e7   : > { %v11766_v49 = vpack.c.bf16 %v9045_v41, %v9044_v40 }
 0x8e9   : > { %9109 = vrot.lane.b32.xlu1 %v11766_v49, %s12567_s12 }
 0x915   : > { %v8686_v34 = vpop.f32.mrf.mxu0  ;;  %v16173_v59 = vpop.permute.xlu1 %9097 }
 0x916   : > { %v8730_v32 = vadd.f32 %v8729_v19, %v8686_v34  ;;  %v9117_v25 = vrot.slane %v16173_v59, 4  ;;  %v9015_v34 = vrot.slane %v16139_v39, %v9014_v56 }
 0x917   : > { %v8688_v22 = vpop.f32.mrf.mxu0 }
 0x918   : > { %v8918_v24 = vmul.f32 %v16130_v28, %v8730_v32  ;;  %v8732_v1 = vadd.f32 %v8731_v7, %v8688_v22  ;;  %v9126_v15 = vsel %vm9125_vm2, %v9117_v25, %v16173_v59  ;;  %v9019_v32 = vrot.slane %v16139_v39, %v9018_v54 }
 0x919   : > { %v8690_v33 = vpop.f32.mrf.mxu0  ;;  %9154 = vst.msk [vmem:[#allocation5] sm:$0xff] %vm16178_vm4, %v9126_v15  ;;  %v16192_v50 = vpop.permute.xlu0 %9107 }
 0x91a   : > { %v8944_v12 = vadd.f32 %v16134_v58, %v8918_v24  ;;  %v8919_v0 = vmul.f32 %v16130_v28, %v8732_v1  ;;  %v8734_v20 = vadd.f32 %v8733_v35, %v8690_v33  ;;  %v9121_v57 = vrot.slane %v16192_v50, 4 }
 0x91b   : > { %v8692_v30 = vpop.f32.mrf.mxu0 }
 0x91c   : > { %v8962_v36 = vmax.f32 %v8944_v12, 0.0  ;;  %v8945_v62 = vadd.f32 %v16134_v58, %v8919_v0  ;;  %v8927_v45 = vmul.f32 %v16128_v3, %v8734_v20  ;;  %v8736_v11 = vadd.f32 %v8735_v14, %v8692_v30 }
 0x91d   : > { %v9134_v23 = vsel %vm9125_vm2, %v9121_v57, %v16192_v50 }
 0x91e   : > { %v8963_v27 = vmax.f32 %v8945_v62, 0.0  ;;  %v8953_v16 = vadd.f32 %v16146_v10, %v8927_v45  ;;  %v8928_v42 = vmul.f32 %v16128_v3, %v8736_v11  ;;  %9160 = vst.msk [vmem:[#allocation5 + $0x28] sm:$0xff] %vm16178_vm4, %v9134_v23  ;;  %v9037_v55 = vmul.f32 %v9007_v13, %v8962_v36 }
 0x920   : > { %v9038_v51 = vmul.f32 %v9011_v18, %v8963_v27  ;;  %v8971_v37 = vmax.f32 %v8953_v16, 0.0  ;;  %v8954_v53 = vadd.f32 %v16146_v10, %v8928_v42  ;;  %v16208_v5 = vld [vmem:[#allocation5] sm:$0xff] }
 0x921   : > { %9175 = vst [vmem:[#allocation6] sm:$0xff] %v16208_v5 }
 0x922   : > { %v8972_v61 = vmax.f32 %v8954_v53, 0.0  ;;  %v11762_v9 = vpack.c.bf16 %v9038_v51, %v9037_v55  ;;  %v9046_v63 = vmul.f32 %v9007_v13, %v8971_v37  ;;  %v10995_v55 = vld [vmem:[%s17081_s7 + $0x11] ss:$2 sm:$0x1] }
 0x924   : > { %v9047_v43 = vmul.f32 %v9011_v18, %v8972_v61  ;;  %9101 = vrot.lane.b32.xlu0 %v11762_v9, %s12567_s12 }
 0x925   : > { %v16212_v52 = vld [vmem:[#allocation5 + $0x28] sm:$0xff] }
 0x926   : > { %9180 = vst [vmem:[#allocation6 + $0x24] sm:$0xff] %v16212_v52  ;;  %v11767_v6 = vpack.c.bf16 %v9047_v43, %v9046_v63 }
 0x928   : > { %9111 = vrot.lane.b32.xlu1 %v11767_v6, %s12567_s12  ;;  %v9023_v6 = vrot.slane %v10995_v55, %v17411_v31 }
 0x92d   : > { %v8815_v17 = vpop.f32.mrf.mxu0 }
 0x92f   : > { %v8817_v29 = vpop.f32.mrf.mxu0 }
 0x931   : > { %v8819_v38 = vpop.f32.mrf.mxu0 }
 0x933   : > { %v8821_v7 = vpop.f32.mrf.mxu0 }
 0x935   : > { %v8772_v60 = vpop.f32.mrf.mxu1 }
 0x936   : > { %v8816_v46 = vadd.f32 %v8815_v17, %v8772_v60 }
 0x937   : > { %v8774_v48 = vpop.f32.mrf.mxu1 }
 0x938   : > { %v8920_v40 = vmul.f32 %v16130_v28, %v8816_v46  ;;  %v8818_v26 = vadd.f32 %v8817_v29, %v8774_v48 }
 0x939   : > { %v8776_v21 = vpop.f32.mrf.mxu1 }
 0x93a   : > { %v8946_v41 = vadd.f32 %v16134_v58, %v8920_v40  ;;  %v8921_v49 = vmul.f32 %v16130_v28, %v8818_v26  ;;  %v8820_v19 = vadd.f32 %v8819_v38, %v8776_v21 }
 0x93b   : > { %v8778_v35 = vpop.f32.mrf.mxu1 }
 0x93c   : > { %v8964_v47 = vmax.f32 %v8946_v41, 0.0  ;;  %v8947_v22 = vadd.f32 %v16134_v58, %v8921_v49  ;;  %v8929_v2 = vmul.f32 %v16128_v3, %v8820_v19  ;;  %v8822_v4 = vadd.f32 %v8821_v7, %v8778_v35 }
 0x93e   : > { %v8965_v24 = vmax.f32 %v8947_v22, 0.0  ;;  %v8955_v1 = vadd.f32 %v16146_v10, %v8929_v2  ;;  %v8930_v33 = vmul.f32 %v16128_v3, %v8822_v4  ;;  %v9039_v15 = vmul.f32 %v9015_v34, %v8964_v47 }
 0x940   : > { %v9040_v12 = vmul.f32 %v9019_v32, %v8965_v24  ;;  %v8973_v0 = vmax.f32 %v8955_v1, 0.0  ;;  %v8956_v20 = vadd.f32 %v16146_v10, %v8930_v33  ;;  %v16322_v24 = vld [vmem:[%s17078_s4 + $0x4] ss:$8 sps:$4 sm:$0xff]  }
 0x941   : > { %11699 = vmatprep.mubr.msk.bf16.mxu0 %vm10394_vm13, %v16322_v24  ;;  %11700 = vmatprep.mubr.msk.bf16.mxu1 %vm10394_vm13, %v16322_v24 }
 0x942   : > { %v8974_v14 = vmax.f32 %v8956_v20, 0.0  ;;  %v11763_v13 = vpack.c.bf16 %v9040_v12, %v9039_v15  ;;  %v9048_v39 = vmul.f32 %v9015_v34, %v8973_v0 }
 0x944   : > { %v9049_v18 = vmul.f32 %v9019_v32, %v8974_v14  ;;  %9103 = vrot.lane.b32.xlu0 %v11763_v13, %s12567_s12 }
 0x946   : > { %v11768_v30 = vpack.c.bf16 %v9049_v18, %v9048_v39 }
 0x948   : > { %9113 = vrot.lane.b32.xlu1 %v11768_v30, %s12567_s12 }
 0x94d   : > { %v11888_v36 = vpop.f32.mrf.mxu0 }
 0x94f   : > { %v11889_v62 = vpop.f32.mrf.mxu0 }
 0x950   : > { %v11890_v23 = vadd.f32 %v11889_v62, %v11888_v36 }
 0x951   : > { %v11891_v45 = vpop.f32.mrf.mxu0 }
 0x953   : > { %v11892_v11 = vpop.f32.mrf.mxu0 }
 0x954   : > { %v11893_v53 = vadd.f32 %v11892_v11, %v11891_v45 }
 0x955   : > { %v8899_v27 = vpop.f32.mrf.mxu0 }
 0x956   : > { %v8900_v16 = vadd.f32 %v11890_v23, %v8899_v27 }
 0x957   : > { %v9100_v42 = vpop.permute.xlu1 %9099  ;;  %v11939_v37 = vpop.f32.mrf.mxu0 }
 0x958   : > { %v9118_v51 = vrot.slane %v9100_v42, 4  ;;  %v8922_v61 = vmul.f32 %v16130_v28, %v8900_v16 }
 0x959   : > { %v8902_v63 = vpop.f32.mrf.mxu0 }
 0x95a   : > { %v9127_v9 = vsel %vm810_vm3, %v9117_v25, %v9118_v51  ;;  %v8948_v43 = vadd.f32 %v16134_v58, %v8922_v61  ;;  %v8903_v29 = vadd.f32 %v11893_v53, %v8902_v63 }
 0x95b   : > { %v9128_v17 = vsel %vm9125_vm2, %v9127_v9, %v9100_v42  ;;  %v9110_v60 = vpop.permute.xlu1 %9109  ;;  %v11940_v38 = vpop.f32.mrf.mxu0 }
 0x95c   : > { %9176 = vst [vmem:[#allocation6 + $0x8] sm:$0xff] %v9128_v17  ;;  %v9122_v46 = vrot.slane %v9110_v60, 4  ;;  %v8966_v56 = vmax.f32 %v8948_v43, 0.0  ;;  %v8931_v48 = vmul.f32 %v16128_v3, %v8903_v29 }
 0x95e   : > { %v9135_v28 = vsel %vm810_vm3, %v9121_v57, %v9122_v46  ;;  %v9041_v59 = vmul.f32 %v9023_v6, %v8966_v56  ;;  %v8957_v25 = vadd.f32 %v16146_v10, %v8931_v48 }
 0x95f   : > { %v9136_v58 = vsel %vm9125_vm2, %v9135_v28, %v9110_v60 }
 0x960   : > { %9181 = vst [vmem:[#allocation6 + $0x2c] sm:$0xff] %v9136_v58  ;;  %v8975_v31 = vmax.f32 %v8957_v25, 0.0  ;;  %v11764_v54 = vpack.c.bf16 %v9041_v59, %v9041_v59 }
 0x962   : > { %v9050_v40 = vmul.f32 %v9023_v6, %v8975_v31  ;;  %9105 = vrot.lane.b32.xlu0 %v11764_v54, %s12567_s12 }
 0x964   : > { %v11769_v26 = vpack.c.bf16 %v9050_v40, %v9050_v40 }
 0x966   : > { %9115 = vrot.lane.b32.xlu1 %v11769_v26, %s12567_s12  ;;  %9723 = vrot.lane.b32.xlu0 %v16208_v5, %s12560_s20 }
 0x96a   : > { %9725 = vrot.lane.b32.xlu1 %v9128_v17, %s12560_s20  ;;  %9635 = vrot.lane.b32.xlu0 %v16208_v5, %s12561_s21 }
 0x96e   : > { %9637 = vrot.lane.b32.xlu1 %v9128_v17, %s12561_s21  ;;  %9549 = vrot.lane.b32.xlu0 %v16208_v5, %s12550_s13 }
 0x972   : > { %9551 = vrot.lane.b32.xlu1 %v9128_v17, %s12550_s13  ;;  %9463 = vrot.lane.b32.xlu0 %v16208_v5, %s12562_s22 }
 0x976   : > { %9465 = vrot.lane.b32.xlu1 %v9128_v17, %s12562_s22  ;;  %9377 = vrot.lane.b32.xlu0 %v16208_v5, %s12558_s29 }
 0x97a   : > { %9379 = vrot.lane.b32.xlu1 %v9128_v17, %s12558_s29  ;;  %9291 = vrot.lane.b32.xlu0 %v16208_v5, %s12553_s16 }
 0x97e   : > { %9293 = vrot.lane.b32.xlu1 %v9128_v17, %s12553_s16  ;;  %9205 = vrot.lane.b32.xlu0 %v16208_v5, %s12548_s11 }
 0x982   : > { %9207 = vrot.lane.b32.xlu1 %v9128_v17, %s12548_s11  ;;  %9811 = vrot.lane.b32.xlu0 %v16208_v5, %s12559_s19 }
 0x986   : > { %9813 = vrot.lane.b32.xlu1 %v9128_v17, %s12559_s19  ;;  %9733 = vrot.lane.b32.xlu0 %v16212_v52, %s12560_s20 }
 0x98a   : > { %9735 = vrot.lane.b32.xlu1 %v9136_v58, %s12560_s20  ;;  %9645 = vrot.lane.b32.xlu0 %v16212_v52, %s12561_s21 }
 0x98e   : > { %9647 = vrot.lane.b32.xlu1 %v9136_v58, %s12561_s21  ;;  %9559 = vrot.lane.b32.xlu0 %v16212_v52, %s12550_s13 }
 0x992   : > { %9561 = vrot.lane.b32.xlu1 %v9136_v58, %s12550_s13  ;;  %9473 = vrot.lane.b32.xlu0 %v16212_v52, %s12562_s22 }
 0x996   : > { %9475 = vrot.lane.b32.xlu1 %v9136_v58, %s12562_s22  ;;  %9387 = vrot.lane.b32.xlu0 %v16212_v52, %s12558_s29  ;;  %v9102_v3 = vpop.permute.xlu0 %9101 }
 0x997   : > { %v9119_v10 = vrot.slane %v9102_v3, 4 }
 0x999   : > { %v9129_v50 = vsel %vm810_vm3, %v9118_v51, %v9119_v10 }
 0x99a   : > { %v9130_v57 = vsel %vm9125_vm2, %v9129_v50, %v9102_v3  ;;  %v9112_v21 = vpop.permute.xlu1 %9111  ;;  %9389 = vrot.lane.b32.xlu1 %v9136_v58, %s12558_s29  ;;  %9301 = vrot.lane.b32.xlu0 %v16212_v52, %s12553_s16 }
 0x99b   : > { %9177 = vst [vmem:[#allocation6 + $0x10] sm:$0xff] %v9130_v57  ;;  %v9123_v41 = vrot.slane %v9112_v21, 4 }
 0x99d   : > { %v9137_v49 = vsel %vm810_vm3, %v9122_v46, %v9123_v41 }
 0x99e   : > { %v9138_v19 = vsel %vm9125_vm2, %v9137_v49, %v9112_v21  ;;  %9303 = vrot.lane.b32.xlu1 %v9136_v58, %s12553_s16  ;;  %9215 = vrot.lane.b32.xlu0 %v16212_v52, %s12548_s11 }
 0x99f   : > { %9182 = vst [vmem:[#allocation6 + $0x34] sm:$0xff] %v9138_v19 }
 0x9a2   : > { %9217 = vrot.lane.b32.xlu1 %v9136_v58, %s12548_s11  ;;  %9821 = vrot.lane.b32.xlu0 %v16212_v52, %s12559_s19 }
 0x9a6   : > { %9823 = vrot.lane.b32.xlu1 %v9136_v58, %s12559_s19  ;;  %9727 = vrot.lane.b32.xlu0 %v9130_v57, %s12560_s20 }
 0x9aa   : > { %9737 = vrot.lane.b32.xlu1 %v9138_v19, %s12560_s20  ;;  %9639 = vrot.lane.b32.xlu0 %v9130_v57, %s12561_s21 }
 0x9ae   : > { %9649 = vrot.lane.b32.xlu1 %v9138_v19, %s12561_s21  ;;  %9553 = vrot.lane.b32.xlu0 %v9130_v57, %s12550_s13 }
 0x9b2   : > { %9563 = vrot.lane.b32.xlu1 %v9138_v19, %s12550_s13  ;;  %9467 = vrot.lane.b32.xlu0 %v9130_v57, %s12562_s22 }
 0x9b6   : > { %9477 = vrot.lane.b32.xlu1 %v9138_v19, %s12562_s22  ;;  %9381 = vrot.lane.b32.xlu0 %v9130_v57, %s12558_s29  ;;  %v9104_v7 = vpop.permute.xlu0 %9103 }
 0x9b7   : > { %v9120_v34 = vrot.slane %v9104_v7, 4 }
 0x9b9   : > { %v9131_v32 = vsel %vm810_vm3, %v9119_v10, %v9120_v34 }
 0x9ba   : > { %v9132_v35 = vsel %vm9125_vm2, %v9131_v32, %v9104_v7  ;;  %v9114_v47 = vpop.permute.xlu1 %9113  ;;  %9391 = vrot.lane.b32.xlu1 %v9138_v19, %s12558_s29  ;;  %9295 = vrot.lane.b32.xlu0 %v9130_v57, %s12553_s16 }
 0x9bb   : > { %9178 = vst [vmem:[#allocation6 + $0x18] sm:$0xff] %v9132_v35  ;;  %v9124_v22 = vrot.slane %v9114_v47, 4 }
 0x9bd   : > { %v9139_v2 = vsel %vm810_vm3, %v9123_v41, %v9124_v22 }
 0x9be   : > { %v9140_v4 = vsel %vm9125_vm2, %v9139_v2, %v9114_v47  ;;  %9305 = vrot.lane.b32.xlu1 %v9138_v19, %s12553_s16  ;;  %9209 = vrot.lane.b32.xlu0 %v9130_v57, %s12548_s11 }
 0x9bf   : > { %9183 = vst [vmem:[#allocation6 + $0x3c] sm:$0xff] %v9140_v4 }
 0x9c2   : > { %9219 = vrot.lane.b32.xlu1 %v9138_v19, %s12548_s11  ;;  %9815 = vrot.lane.b32.xlu0 %v9130_v57, %s12559_s19 }
 0x9c6   : > { %9825 = vrot.lane.b32.xlu1 %v9138_v19, %s12559_s19  ;;  %9729 = vrot.lane.b32.xlu0 %v9132_v35, %s12560_s20 }
 0x9ca   : > { %9739 = vrot.lane.b32.xlu1 %v9140_v4, %s12560_s20  ;;  %9641 = vrot.lane.b32.xlu0 %v9132_v35, %s12561_s21 }
 0x9ce   : > { %9651 = vrot.lane.b32.xlu1 %v9140_v4, %s12561_s21  ;;  %9555 = vrot.lane.b32.xlu0 %v9132_v35, %s12550_s13 }
 0x9d2   : > { %9565 = vrot.lane.b32.xlu1 %v9140_v4, %s12550_s13  ;;  %9469 = vrot.lane.b32.xlu0 %v9132_v35, %s12562_s22 }
 0x9d4   : > { %v9106_v1 = vpop.permute.xlu0 %9105 }
 0x9d5   : > { %v9133_v33 = vsel %vm9125_vm2, %v9120_v34, %v9106_v1 }
 0x9d6   : > { %9159 = vst.msk [vmem:[#allocation5 + $0x20] sm:$0xf] %vm9158_vm1, %v9133_v33  ;;  %9479 = vrot.lane.b32.xlu1 %v9140_v4, %s12562_s22  ;;  %9383 = vrot.lane.b32.xlu0 %v9132_v35, %s12558_s29 }
 0x9d8   : > { %v9116_v15 = vpop.permute.xlu1 %9115  ;;  %v9724_v12 = vpop.permute.xlu0 %9723 }
 0x9d9   : > { %v9141_v0 = vsel %vm9125_vm2, %v9124_v22, %v9116_v15  ;;  %v9743_v39 = vrot.slane %v9724_v12, 4 }
 0x9da   : > { %9164 = vst.msk [vmem:[#allocation5 + $0x48] sm:$0xf] %vm9158_vm1, %v9141_v0  ;;  %9393 = vrot.lane.b32.xlu1 %v9140_v4, %s12558_s29  ;;  %9297 = vrot.lane.b32.xlu0 %v9132_v35, %s12553_s16 }
 0x9dc   : > { %v16342_v20 = vpop.permute.xlu1 %9725  ;;  %v9636_v14 = vpop.permute.xlu0 %9635 }
 0x9dd   : > { %v9169_v13 = vld [vmem:[#allocation5 + $0x20] sm:$0xf]  ;;  %v9744_v18 = vrot.slane %v16342_v20, 4  ;;  %v9655_v23 = vrot.slane %v9636_v14, 4 }
 0x9de   : > { %9179 = vst.msk [vmem:[#allocation6 + $0x20] sm:$0xf] %vm6040_vm5, %v9169_v13  ;;  %9307 = vrot.lane.b32.xlu1 %v9140_v4, %s12553_s16  ;;  %9211 = vrot.lane.b32.xlu0 %v9132_v35, %s12548_s11  ;;  %v16369_v61 = vld [vmem:[#allocation5 + $0x20] sm:$0xff] }
 0x9df   : > { %v9753_v30 = vsel %vm810_vm3, %v9743_v39, %v9744_v18  ;;  %v9533_v25 = vld [vmem:[#allocation5 + $0x20] sm:$0xf] }
 0x9e0   : > { %v16352_v36 = vsel %vm7197_vm10, %v9724_v12, %v9753_v30  ;;  %v16354_v62 = vpop.permute.xlu1 %9637  ;;  %v9550_v45 = vpop.permute.xlu0 %9549  ;;  %v9447_v50 = vld [vmem:[#allocation5 + $0x20] sm:$0xf] }
 0x9e1   : > { %v9174_v11 = vld [vmem:[#allocation5 + $0x48] sm:$0xf]  ;;  %v9656_v27 = vrot.slane %v16354_v62, 4  ;;  %v9569_v37 = vrot.slane %v9550_v45, 4  ;;  %v9361_v32 = vld [vmem:[#allocation5 + $0x20] sm:$0xf] }
 0x9e2   : > { %9184 = vst.msk [vmem:[#allocation6 + $0x44] sm:$0xf] %vm6040_vm5, %v9174_v11  ;;  %9221 = vrot.lane.b32.xlu1 %v9140_v4, %s12548_s11  ;;  %9817 = vrot.lane.b32.xlu0 %v9132_v35, %s12559_s19  ;;  %v16383_v60 = vld [vmem:[#allocation5 + $0x48] sm:$0xff]  ;;  %v9275_v15 = vld [vmem:[#allocation5 + $0x20] sm:$0xf] }
 0x9e3   : > { %v9665_v16 = vsel %vm810_vm3, %v9655_v23, %v9656_v27  ;;  %v9538_v10 = vld [vmem:[#allocation5 + $0x48] sm:$0xf]  ;;  %v9189_v39 = vld [vmem:[#allocation5 + $0x20] sm:$0xf] }
 0x9e4   : > { %v16364_v42 = vsel %vm7020_vm12, %v9636_v14, %v9665_v16  ;;  %v16366_v55 = vpop.permute.xlu1 %9551  ;;  %v9464_v51 = vpop.permute.xlu0 %9463  ;;  %v9452_v34 = vld [vmem:[#allocation5 + $0x48] sm:$0xf]  ;;  %v12568_v16 = vmov 6  }
 0x9e5   : > { %v9570_v53 = vrot.slane %v16366_v55, 4  ;;  %v9483_v17 = vrot.slane %v9464_v51, 4  ;;  %v9366_v33 = vld [vmem:[#allocation5 + $0x48] sm:$0xf]  ;;  %12008 = vset.pattern.permute.xlu1 %v12568_v16  ;;  %12007 = vset.pattern.permute.xlu0 %v12568_v16  ;;  %v351_v16 = vld [vmem:[%s17082_s8] sm:$0x1] }
 0x9e6   : > { %9827 = vrot.lane.b32.xlu1 %v9140_v4, %s12559_s19  ;;  %9731 = vrot.lane.b32.xlu0 %v16369_v61, %s12560_s20  ;;  %v9280_v11 = vld [vmem:[#allocation5 + $0x48] sm:$0xf] }
 0x9e7   : > { %v9579_v9 = vsel %vm810_vm3, %v9569_v37, %v9570_v53 }
 0x9e8   : > { %v16378_v63 = vsel %vm1457_vm8, %v9550_v45, %v9579_v9  ;;  %v16380_v43 = vpop.permute.xlu1 %9465  ;;  %v9378_v6 = vpop.permute.xlu0 %9377 }
 0x9e9   : > { %v9484_v29 = vrot.slane %v16380_v43, 4  ;;  %v9397_v28 = vrot.slane %v9378_v6, 4 }
 0x9ea   : > { %9741 = vrot.lane.b32.xlu1 %v16383_v60, %s12560_s20  ;;  %9643 = vrot.lane.b32.xlu0 %v16369_v61, %s12561_s21 }
 0x9eb   : > { %v9493_v46 = vsel %vm810_vm3, %v9483_v17, %v9484_v29 }
 0x9ec   : > { %v16393_v38 = vsel %vm6675_vm14, %v9464_v51, %v9493_v46  ;;  %v16395_v56 = vpop.permute.xlu1 %9379  ;;  %v9292_v48 = vpop.permute.xlu0 %9291  ;;  %v9194_v46 = vld [vmem:[#allocation5 + $0x48] sm:$0xf] }
 0x9ed   : > { %9519 = vst [vmem:[#allocation6 + $0x120] sm:$0xff] %v16393_v38  ;;  %v9398_v59 = vrot.slane %v16395_v56, 4  ;;  %v9311_v26 = vrot.slane %v9292_v48, 4 }
 0x9ee   : > { %9653 = vrot.lane.b32.xlu1 %v16383_v60, %s12561_s21  ;;  %9557 = vrot.lane.b32.xlu0 %v9533_v25, %s12550_s13 }
 0x9ef   : > { %v9407_v58 = vsel %vm810_vm3, %v9397_v28, %v9398_v59 }
 0x9f0   : > { %v16406_v31 = vsel %vm6502_vm15, %v9378_v6, %v9407_v58  ;;  %v16408_v54 = vpop.permute.xlu1 %9293  ;;  %v9206_v40 = vpop.permute.xlu0 %9205 }
 0x9f1   : > { %9433 = vst [vmem:[#allocation6 + $0xd8] sm:$0xff] %v16406_v31  ;;  %v9312_v3 = vrot.slane %v16408_v54, 4  ;;  %v9225_v19 = vrot.slane %v9206_v40, 4 }
 0x9f2   : > { %9567 = vrot.lane.b32.xlu1 %v9538_v10, %s12550_s13  ;;  %9471 = vrot.lane.b32.xlu0 %v9447_v50, %s12562_s22 }
 0x9f3   : > { %v9321_v57 = vsel %vm810_vm3, %v9311_v26, %v9312_v3 }
 0x9f4   : > { %v16418_v21 = vsel %vm941_vm11, %v9292_v48, %v9321_v57  ;;  %v16420_v41 = vpop.permute.xlu1 %9207  ;;  %v9812_v49 = vpop.permute.xlu0 %9811 }
 0x9f5   : > { %9347 = vst [vmem:[#allocation6 + $0x90] sm:$0xff] %v16418_v21  ;;  %v9226_v7 = vrot.slane %v16420_v41, 4  ;;  %v9831_v4 = vrot.slane %v9812_v49, 4 }
 0x9f6   : > { %9481 = vrot.lane.b32.xlu1 %v9452_v34, %s12562_s22  ;;  %9385 = vrot.lane.b32.xlu0 %v9361_v32, %s12558_s29 }
 0x9f7   : > { %v9235_v35 = vsel %vm810_vm3, %v9225_v19, %v9226_v7 }
 0x9f8   : > { %v16430_v47 = vsel %vm812_vm6, %v9206_v40, %v9235_v35  ;;  %v16432_v22 = vpop.permute.xlu1 %9813  ;;  %v9734_v2 = vpop.permute.xlu0 %9733 }
 0x9f9   : > { %9261 = vst [vmem:[#allocation6 + $0x48] sm:$0xff] %v16430_v47  ;;  %v9832_v1 = vrot.slane %v16432_v22, 4  ;;  %v9748_v30 = vrot.slane %v9734_v2, 4 }
 0x9fa   : > { %9395 = vrot.lane.b32.xlu1 %v9366_v33, %s12558_s29  ;;  %9299 = vrot.lane.b32.xlu0 %v9275_v15, %s12553_s16  ;;  %v12569_v33 = vmov 7  }
 0x9fb   : > { %v9841_v12 = vsel %vm810_vm3, %v9831_v4, %v9832_v1  ;;  %v12502_v4 = vld [vmem:[%s17082_s8 + $0x8] sm:$0xff] }
 0x9fc   : > { %v16442_v0 = vsel %vm7374_vm7, %v9812_v49, %v9841_v12  ;;  %v16444_v14 = vpop.permute.xlu1 %9735  ;;  %v9646_v13 = vpop.permute.xlu0 %9645 }
 0x9fd   : > { %9869 = vst [vmem:[#allocation6 + $0x240] sm:$0xff] %v16442_v0  ;;  %v9749_v45 = vrot.slane %v16444_v14, 4  ;;  %v9660_v6 = vrot.slane %v9646_v13, 4 }
 0x9fe   : > { %9309 = vrot.lane.b32.xlu1 %v9280_v11, %s12553_s16  ;;  %9213 = vrot.lane.b32.xlu0 %v9189_v39, %s12548_s11 }
 0x9ff   : > { %v9762_v23 = vsel %vm810_vm3, %v9748_v30, %v9749_v45 }
 0xa00   : > { %v9763_v51 = vsel %vm7197_vm10, %v9734_v2, %v9762_v23  ;;  %v16454_v37 = vpop.permute.xlu1 %9647  ;;  %v9560_v9 = vpop.permute.xlu0 %9559 }
 0xa01   : > { %v9661_v17 = vrot.slane %v16454_v37, 4  ;;  %v11681_v48 = vcombine.low %v16352_v36, %v9763_v51  ;;  %v11682_v28 = vcombine.high %v16352_v36, %v9763_v51  ;;  %v9574_v10 = vrot.slane %v9560_v9, 4 }
 0xa02   : > { %9223 = vrot.lane.b32.xlu1 %v9194_v46, %s12548_s11  ;;  %9819 = vrot.lane.b32.xlu0 %v16369_v61, %s12559_s19  ;;  %v12501_v61 = vld [vmem:[%s17082_s8] sm:$0xff] }
 0xa03   : > { %v9674_v25 = vsel %vm810_vm3, %v9660_v6, %v9661_v17  ;;  %10398 = vmatprep.subr.bf16.mxu0 %v11682_v28 }
 0xa04   : > { %v9675_v58 = vsel %vm7020_vm12, %v9646_v13, %v9674_v25  ;;  %v16466_v40 = vpop.permute.xlu1 %9561  ;;  %v9474_v26 = vpop.permute.xlu0 %9473  ;;  %10399 = vmatpush1.bf16.msra.mxu0 %v11681_v48  ;;  %v12570_v48 = vmov 9  }
 0xa05   : > { %v9575_v50 = vrot.slane %v16466_v40, 4  ;;  %v11672_v36 = vcombine.low %v16364_v42, %v9675_v58  ;;  %v11673_v57 = vcombine.high %v16364_v42, %v9675_v58  ;;  %v9488_v42 = vrot.slane %v9474_v26, 4 }
 0xa06   : > { %9829 = vrot.lane.b32.xlu1 %v16383_v60, %s12559_s19  ;;  %10612 = vperm.xlu0 %12007, %v12501_v61  }
 0xa07   : > { %v9587_v49 = vsel %vm810_vm3, %v9574_v10, %v9575_v50  ;;  %10400 = vmatprep.subr.bf16.mxu0 %v11673_v57  ;;  %v12571_v10 = vmov 8  }
 0xa08   : > { %v9588_v19 = vsel %vm1457_vm8, %v9560_v9, %v9587_v49  ;;  %v16480_v34 = vpop.permute.xlu1 %9475  ;;  %v9388_v32 = vpop.permute.xlu0 %9387  ;;  %10401 = vmatpush1.bf16.msra.mxu0 %v11672_v36 }
 0xa09   : > { %v9489_v35 = vrot.slane %v16480_v34, 4  ;;  %v11663_v60 = vcombine.low %v16378_v63, %v9588_v19  ;;  %v11664_v2 = vcombine.high %v16378_v63, %v9588_v19  ;;  %v9402_v13 = vrot.slane %v9388_v32, 4 }
 0xa0a   : > { %10616 = vperm.xlu1 %12008, %v12502_v4   ;;  %12010 = vset.pattern.permute.xlu0 %v12569_v33 }
 0xa0b   : > { %v9501_v15 = vsel %vm810_vm3, %v9488_v42, %v9489_v35  ;;  %10402 = vmatprep.subr.bf16.mxu0 %v11664_v2  ;;  %10642 = vperm.xlu0 %12010, %v12502_v4  }
 0xa0c   : > { %v9502_v12 = vsel %vm6675_vm14, %v9474_v26, %v9501_v15  ;;  %v16492_v39 = vpop.permute.xlu1 %9389  ;;  %v9302_v30 = vpop.permute.xlu0 %9301  ;;  %10403 = vmatpush1.bf16.msra.mxu0 %v11663_v60 }
 0xa0d   : > { %v9403_v63 = vrot.slane %v16492_v39, 4  ;;  %v11654_v11 = vcombine.low %v16393_v38, %v9502_v12  ;;  %v11655_v23 = vcombine.high %v16393_v38, %v9502_v12  ;;  %v9316_v38 = vrot.slane %v9302_v30, 4 }
 0xa0e   : > { %12009 = vset.pattern.permute.xlu1 %v12569_v33 }
 0xa0f   : > { %v9415_v51 = vsel %vm810_vm3, %v9402_v13, %v9403_v63  ;;  %10404 = vmatprep.subr.bf16.mxu0 %v11655_v23  ;;  %10638 = vperm.xlu1 %12009, %v12501_v61  }
 0xa10   : > { %v9416_v9 = vsel %vm6502_vm15, %v9388_v32, %v9415_v51  ;;  %v16504_v6 = vpop.permute.xlu1 %9303  ;;  %v9216_v46 = vpop.permute.xlu0 %9215  ;;  %10405 = vmatpush1.bf16.msra.mxu0 %v11654_v11  ;;  %12012 = vset.pattern.permute.xlu0 %v12570_v48 }
 0xa11   : > { %9438 = vst [vmem:[#allocation6 + $0xfc] sm:$0xff] %v9416_v9  ;;  %v9317_v28 = vrot.slane %v16504_v6, 4  ;;  %v11645_v25 = vcombine.low %v16406_v31, %v9416_v9  ;;  %v11646_v58 = vcombine.high %v16406_v31, %v9416_v9  ;;  %10774 = vperm.xlu0 %12012, %v351_v16   ;;  %v9230_v19 = vrot.slane %v9216_v46, 4 }
 0xa13   : > { %v9329_v26 = vsel %vm810_vm3, %v9316_v38, %v9317_v28  ;;  %10406 = vmatprep.subr.bf16.mxu0 %v11646_v58  ;;  %12011 = vset.pattern.permute.xlu1 %v12571_v10 }
 0xa14   : > { %v9330_v36 = vsel %vm941_vm11, %v9302_v30, %v9329_v26  ;;  %v16513_v57 = vpop.permute.xlu1 %9217  ;;  %v9822_v49 = vpop.permute.xlu0 %9821  ;;  %10407 = vmatpush1.bf16.msra.mxu0 %v11645_v25  ;;  %10682 = vperm.xlu1 %12011, %v12501_v61  }
 0xa15   : > { %9352 = vst [vmem:[#allocation6 + $0xb4] sm:$0xff] %v9330_v36  ;;  %v9231_v32 = vrot.slane %v16513_v57, 4  ;;  %v11636_v31 = vcombine.low %v16418_v21, %v9330_v36  ;;  %v11637_v42 = vcombine.high %v16418_v21, %v9330_v36  ;;  %v9836_v33 = vrot.slane %v9822_v49, 4 }
 0xa17   : > { %v9243_v60 = vsel %vm810_vm3, %v9230_v19, %v9231_v32  ;;  %10408 = vmatprep.subr.bf16.mxu0 %v11637_v42  ;;  %v16586_v19 = vld [vmem:[%s17078_s4] ss:$8 sps:$4 sm:$0xff]  }
 0xa18   : > { %v9244_v2 = vsel %vm812_vm6, %v9216_v46, %v9243_v60  ;;  %v16522_v15 = vpop.permute.xlu1 %9823  ;;  %v16524_v12 = vpop.permute.xlu0 %9727  ;;  %10409 = vmatpush1.bf16.msra.mxu0 %v11636_v31  ;;  %10686 = vperm.xlu1 %12011, %v12502_v4   ;;  %v11619_v4 = vcombine.high %v16208_v5, %v16212_v52 }
 0xa19   : > { %9266 = vst [vmem:[#allocation6 + $0x6c] sm:$0xff] %v9244_v2  ;;  %v9837_v61 = vrot.slane %v16522_v15, 4  ;;  %v9745_v13 = vrot.slane %v16524_v12, 4  ;;  %v11627_v21 = vcombine.low %v16430_v47, %v9244_v2  ;;  %v11628_v30 = vcombine.high %v16430_v47, %v9244_v2 }
 0xa1b   : > { %v9850_v11 = vsel %vm810_vm3, %v9836_v33, %v9837_v61  ;;  %v9755_v23 = vsel %vm810_vm3, %v9744_v18, %v9745_v13  ;;  %10410 = vmatprep.subr.bf16.mxu0 %v11628_v30  ;;  %v11618_v18 = vcombine.low %v16208_v5, %v16212_v52 }
 0xa1c   : > { %v9851_v16 = vsel %vm7374_vm7, %v9822_v49, %v9850_v11  ;;  %v9756_v51 = vsel %vm7197_vm10, %v16342_v20, %v9755_v23  ;;  %v16543_v47 = vpop.permute.xlu1 %9737  ;;  %v16545_v9 = vpop.permute.xlu0 %9639  ;;  %10411 = vmatpush1.bf16.msra.mxu0 %v11627_v21 }
 0xa1d   : > { %9782 = vst [vmem:[#allocation6 + $0x200] sm:$0xff] %v9756_v51  ;;  %v9750_v46 = vrot.slane %v16543_v47, 4  ;;  %v9657_v48 = vrot.slane %v16545_v9, 4  ;;  %10412 = vmatprep.subr.bf16.mxu0 %v11619_v4  ;;  %v11691_v25 = vcombine.high %v16442_v0, %v9851_v16  ;;  %v11690_v49 = vcombine.low %v16442_v0, %v9851_v16 }
 0xa1f   : > { %v9764_v20 = vsel %vm810_vm3, %v9749_v45, %v9750_v46  ;;  %v9667_v38 = vsel %vm810_vm3, %v9656_v27, %v9657_v48 }
 0xa20   : > { %v9765_v58 = vsel %vm7197_vm10, %v16444_v14, %v9764_v20  ;;  %v9668_v5 = vsel %vm7020_vm12, %v16354_v62, %v9667_v38  ;;  %v16566_v52 = vpop.permute.xlu1 %9649  ;;  %v16568_v26 = vpop.permute.xlu0 %9553  ;;  %10413 = vmatpush1.bf16.msra.mxu0 %v11618_v18 }
 0xa21   : > { %9787 = vst [vmem:[#allocation6 + $0x224] sm:$0xff] %v9765_v58  ;;  %9694 = vst [vmem:[#allocation6 + $0x1b8] sm:$0xff] %v9668_v5  ;;  %v9662_v45 = vrot.slane %v16566_v52, 4  ;;  %v9571_v10 = vrot.slane %v16568_v26, 4  ;;  %10428 = vmatprep.subr.bf16.mxu0 %v11691_v25  ;;  %v11683_v27 = vcombine.low %v9756_v51, %v9765_v58  ;;  %v11684_v36 = vcombine.high %v9756_v51, %v9765_v58 }
 0xa23   : > { %v9676_v62 = vsel %vm810_vm3, %v9661_v17, %v9662_v45  ;;  %v9581_v14 = vsel %vm810_vm3, %v9570_v53, %v9571_v10  ;;  %10441 = vmatprep.subr.bf16.mxu1 %v11684_v36 }
 0xa24   : > { %v9677_v0 = vsel %vm7020_vm12, %v16454_v37, %v9676_v62  ;;  %v9582_v31 = vsel %vm1457_vm8, %v16366_v55, %v9581_v14  ;;  %v16592_v42 = vpop.permute.xlu1 %9563  ;;  %v16594_v17 = vpop.permute.xlu0 %9467  ;;  %10429 = vmatpush2.bf16.msra.mxu0 %v11690_v49  ;;  %10442 = vmatpush1.bf16.msra.mxu1 %v11683_v27 }
 0xa25   : > { %9699 = vst [vmem:[#allocation6 + $0x1dc] sm:$0xff] %v9677_v0  ;;  %9606 = vst [vmem:[#allocation6 + $0x170] sm:$0xff] %v9582_v31  ;;  %v9576_v53 = vrot.slane %v16592_v42, 4  ;;  %v9485_v60 = vrot.slane %v16594_v17, 4  ;;  %v11674_v2 = vcombine.low %v9668_v5, %v9677_v0  ;;  %v11675_v33 = vcombine.high %v9668_v5, %v9677_v0 }
 0xa27   : > { %v9589_v55 = vsel %vm810_vm3, %v9575_v50, %v9576_v53  ;;  %v9495_v37 = vsel %vm810_vm3, %v9484_v29, %v9485_v60  ;;  %10443 = vmatprep.subr.bf16.mxu1 %v11675_v33  ;;  %10431 = vmatmul.mubr.bf16.vlgmr.msra.gmra.mxu0 %v16586_v19 }
 0xa28   : > { %v9590_v21 = vsel %vm1457_vm8, %v16466_v40, %v9589_v55  ;;  %v9496_v30 = vsel %vm6675_vm14, %v16380_v43, %v9495_v37  ;;  %v16613_v11 = vpop.permute.xlu1 %9477  ;;  %v16615_v23 = vpop.permute.xlu0 %9381  ;;  %10444 = vmatpush1.bf16.msra.mxu1 %v11674_v2  ;;  %11701 = vmatprep.mubr.msk.bf16.mxu0 %vm10394_vm13, %v16322_v24 }
 0xa29   : > { %9611 = vst [vmem:[#allocation6 + $0x194] sm:$0xff] %v9590_v21  ;;  %9520 = vst [vmem:[#allocation6 + $0x128] sm:$0xff] %v9496_v30  ;;  %v9490_v29 = vrot.slane %v16613_v11, 4  ;;  %v9399_v50 = vrot.slane %v16615_v23, 4  ;;  %v11665_v4 = vcombine.low %v9582_v31, %v9590_v21  ;;  %v11666_v16 = vcombine.high %v9582_v31, %v9590_v21 }
 0xa2b   : > { %v9503_v43 = vsel %vm810_vm3, %v9489_v35, %v9490_v29  ;;  %v9409_v40 = vsel %vm810_vm3, %v9398_v59, %v9399_v50  ;;  %10445 = vmatprep.subr.bf16.mxu1 %v11666_v16 }
 0xa2c   : > { %v9504_v51 = vsel %vm6675_vm14, %v16480_v34, %v9503_v43  ;;  %v9410_v18 = vsel %vm6502_vm15, %v16395_v56, %v9409_v40  ;;  %v16635_v20 = vpop.permute.xlu1 %9391  ;;  %v16637_v38 = vpop.permute.xlu0 %9295  ;;  %10446 = vmatpush1.bf16.msra.mxu1 %v11665_v4 }
 0xa2d   : > { %9525 = vst [vmem:[#allocation6 + $0x14c] sm:$0xff] %v9504_v51  ;;  %9434 = vst [vmem:[#allocation6 + $0xe0] sm:$0xff] %v9410_v18  ;;  %v9404_v35 = vrot.slane %v16635_v20, 4  ;;  %v9313_v25 = vrot.slane %v16637_v38, 4  ;;  %v11656_v58 = vcombine.low %v9496_v30, %v9504_v51  ;;  %v11657_v59 = vcombine.high %v9496_v30, %v9504_v51  ;;  %v12433_v51 = vld [vmem:[#allocation6 + $0xc] ss:$36 sps:$4 sm:$0xff]  }
 0xa2f   : > { %v9417_v34 = vsel %vm810_vm3, %v9403_v63, %v9404_v35  ;;  %v9323_v56 = vsel %vm810_vm3, %v9312_v3, %v9313_v25  ;;  %10447 = vmatprep.subr.bf16.mxu1 %v11657_v59 }
 0xa30   : > { %v9418_v5 = vsel %vm6502_vm15, %v16492_v39, %v9417_v34  ;;  %v9324_v27 = vsel %vm941_vm11, %v16408_v54, %v9323_v56  ;;  %v16655_v36 = vpop.permute.xlu1 %9305  ;;  %v16657_v49 = vpop.permute.xlu0 %9209  ;;  %10448 = vmatpush1.bf16.msra.mxu1 %v11656_v58 }
 0xa31   : > { %9439 = vst [vmem:[#allocation6 + $0x104] sm:$0xff] %v9418_v5  ;;  %9348 = vst [vmem:[#allocation6 + $0x98] sm:$0xff] %v9324_v27  ;;  %v9318_v63 = vrot.slane %v16655_v36, 4  ;;  %v9227_v62 = vrot.slane %v16657_v49, 4  ;;  %v11647_v14 = vcombine.low %v9410_v18, %v9418_v5  ;;  %v11648_v3 = vcombine.high %v9410_v18, %v9418_v5 }
 0xa33   : > { %v9331_v39 = vsel %vm810_vm3, %v9317_v28, %v9318_v63  ;;  %v9237_v54 = vsel %vm810_vm3, %v9226_v7, %v9227_v62  ;;  %10449 = vmatprep.subr.bf16.mxu1 %v11648_v3 }
 0xa34   : > { %v9332_v0 = vsel %vm941_vm11, %v16504_v6, %v9331_v39  ;;  %v9238_v31 = vsel %vm812_vm6, %v16420_v41, %v9237_v54  ;;  %v16675_v2 = vpop.permute.xlu1 %9219  ;;  %v16677_v33 = vpop.permute.xlu0 %9815  ;;  %10450 = vmatpush1.bf16.msra.mxu1 %v11647_v14 }
 0xa35   : > { %9353 = vst [vmem:[#allocation6 + $0xbc] sm:$0xff] %v9332_v0  ;;  %9262 = vst [vmem:[#allocation6 + $0x50] sm:$0xff] %v9238_v31  ;;  %v9232_v28 = vrot.slane %v16675_v2, 4  ;;  %v9833_v55 = vrot.slane %v16677_v33, 4  ;;  %v11638_v37 = vcombine.low %v9324_v27, %v9332_v0  ;;  %v11639_v7 = vcombine.high %v9324_v27, %v9332_v0 }
 0xa37   : > { %v9245_v6 = vsel %vm810_vm3, %v9231_v32, %v9232_v28  ;;  %v9843_v41 = vsel %vm810_vm3, %v9832_v1, %v9833_v55  ;;  %10451 = vmatprep.subr.bf16.mxu1 %v11639_v7 }
 0xa38   : > { %v9246_v21 = vsel %vm812_vm6, %v16513_v57, %v9245_v6  ;;  %v9844_v30 = vsel %vm7374_vm7, %v16432_v22, %v9843_v41  ;;  %v16695_v4 = vpop.permute.xlu1 %9825  ;;  %v16697_v16 = vpop.permute.xlu0 %9729  ;;  %10452 = vmatpush1.bf16.msra.mxu1 %v11638_v37 }
 0xa39   : > { %9267 = vst [vmem:[#allocation6 + $0x74] sm:$0xff] %v9246_v21  ;;  %9870 = vst [vmem:[#allocation6 + $0x248] sm:$0xff] %v9844_v30  ;;  %v9838_v32 = vrot.slane %v16695_v4, 4  ;;  %v9746_v43 = vrot.slane %v16697_v16, 4  ;;  %v11629_v40 = vcombine.low %v9238_v31, %v9246_v21  ;;  %v11630_v1 = vcombine.high %v9238_v31, %v9246_v21 }
 0xa3b   : > { %v9852_v57 = vsel %vm810_vm3, %v9837_v61, %v9838_v32  ;;  %v9757_v22 = vsel %vm810_vm3, %v9745_v13, %v9746_v43  ;;  %10453 = vmatprep.subr.bf16.mxu1 %v11630_v1  ;;  %v12431_v13 = vld [vmem:[#allocation6 + $0x8] ss:$36 sps:$4 sm:$0xff]  }
 0xa3c   : > { %v9853_v18 = vsel %vm7374_vm7, %v16522_v15, %v9852_v57  ;;  %v9758_v58 = vsel %vm7197_vm10, %v16524_v12, %v9757_v22  ;;  %v16715_v59 = vpop.permute.xlu1 %9739  ;;  %v16717_v34 = vpop.permute.xlu0 %9641  ;;  %10454 = vmatpush1.bf16.msra.mxu1 %v11629_v40 }
 0xa3d   : > { %9875 = vst [vmem:[#allocation6 + $0x26c] sm:$0xff] %v9853_v18  ;;  %v9751_v61 = vrot.slane %v16715_v59, 4  ;;  %v9658_v56 = vrot.slane %v16717_v34, 4  ;;  %10455 = vmatprep.subr.bf16.mxu1 %v12433_v51  ;;  %v11693_v5 = vcombine.high %v9844_v30, %v9853_v18 }
 0xa3f   : > { %v9766_v15 = vsel %vm810_vm3, %v9750_v46, %v9751_v61  ;;  %v9669_v12 = vsel %vm810_vm3, %v9657_v48, %v9658_v56  ;;  %v11692_v48 = vcombine.low %v9844_v30, %v9853_v18 }
 0xa40   : > { %v9767_v27 = vsel %vm7197_vm10, %v16543_v47, %v9766_v15  ;;  %v9670_v14 = vsel %vm7020_vm12, %v16545_v9, %v9669_v12  ;;  %v16735_v3 = vpop.permute.xlu1 %9651  ;;  %v16737_v39 = vpop.permute.xlu0 %9555  ;;  %10456 = vmatpush1.bf16.msra.mxu1 %v12431_v13 }
 0xa41   : > { %v9663_v46 = vrot.slane %v16735_v3, 4  ;;  %v9572_v54 = vrot.slane %v16737_v39, 4  ;;  %10471 = vmatprep.subr.bf16.mxu1 %v11693_v5  ;;  %v11685_v0 = vcombine.low %v9758_v58, %v9767_v27  ;;  %v11686_v31 = vcombine.high %v9758_v58, %v9767_v27 }
 0xa43   : > { %v9678_v47 = vsel %vm810_vm3, %v9662_v45, %v9663_v46  ;;  %v9583_v9 = vsel %vm810_vm3, %v9571_v10, %v9572_v54  ;;  %10484 = vmatprep.subr.bf16.mxu0 %v11686_v31 }
 0xa44   : > { %v9679_v37 = vsel %vm7020_vm12, %v16566_v52, %v9678_v47  ;;  %v9584_v7 = vsel %vm1457_vm8, %v16568_v26, %v9583_v9  ;;  %v16755_v6 = vpop.permute.xlu1 %9565  ;;  %v16757_v41 = vpop.permute.xlu0 %9469  ;;  %10472 = vmatpush2.bf16.msra.mxu1 %v11692_v48  ;;  %10485 = vmatpush1.bf16.msra.mxu0 %v11685_v0 }
 0xa45   : > { %v9577_v45 = vrot.slane %v16755_v6, 4  ;;  %v9486_v21 = vrot.slane %v16757_v41, 4  ;;  %v11676_v30 = vcombine.low %v9670_v14, %v9679_v37  ;;  %v11677_v40 = vcombine.high %v9670_v14, %v9679_v37 }
 0xa47   : > { %v9591_v52 = vsel %vm810_vm3, %v9576_v53, %v9577_v45  ;;  %v9497_v26 = vsel %vm810_vm3, %v9485_v60, %v9486_v21  ;;  %10474 = vmatmul.mubr.bf16.vlgmr.msra.gmra.mxu1 %v16586_v19  ;;  %10486 = vmatprep.subr.bf16.mxu0 %v11677_v40 }
 0xa48   : > { %v9592_v10 = vsel %vm1457_vm8, %v16592_v42, %v9591_v52  ;;  %v9498_v1 = vsel %vm6675_vm14, %v16594_v17, %v9497_v26  ;;  %v16776_v57 = vpop.permute.xlu1 %9479  ;;  %v16778_v22 = vpop.permute.xlu0 %9383  ;;  %10487 = vmatpush1.bf16.msra.mxu0 %v11676_v30  ;;  %11702 = vmatprep.mubr.msk.bf16.mxu1 %vm10394_vm13, %v16322_v24 }
 0xa49   : > { %v9491_v53 = vrot.slane %v16776_v57, 4  ;;  %v9400_v60 = vrot.slane %v16778_v22, 4  ;;  %v11667_v51 = vcombine.low %v9584_v7, %v9592_v10  ;;  %v11668_v18 = vcombine.high %v9584_v7, %v9592_v10 }
 0xa4b   : > { %v9505_v42 = vsel %vm810_vm3, %v9490_v29, %v9491_v53  ;;  %v9411_v17 = vsel %vm810_vm3, %v9399_v50, %v9400_v60  ;;  %10488 = vmatprep.subr.bf16.mxu0 %v11668_v18 }
 0xa4c   : > { %v9506_v24 = vsel %vm6675_vm14, %v16613_v11, %v9505_v42  ;;  %v9412_v58 = vsel %vm6502_vm15, %v16615_v23, %v9411_v17  ;;  %v16798_v13 = vpop.permute.xlu1 %9393  ;;  %v16800_v15 = vpop.permute.xlu0 %9297  ;;  %10489 = vmatpush1.bf16.msra.mxu0 %v11667_v51 }
 0xa4d   : > { %v9405_v29 = vrot.slane %v16798_v13, 4  ;;  %v9314_v12 = vrot.slane %v16800_v15, 4  ;;  %v11658_v5 = vcombine.low %v9498_v1, %v9506_v24  ;;  %v11659_v27 = vcombine.high %v9498_v1, %v9506_v24  ;;  %v12436_v24 = vld [vmem:[#allocation6 + $0x14] ss:$36 sps:$4 sm:$0xff]  }
 0xa4f   : > { %v9419_v11 = vsel %vm810_vm3, %v9404_v35, %v9405_v29  ;;  %v9325_v23 = vsel %vm810_vm3, %v9313_v25, %v9314_v12  ;;  %10490 = vmatprep.subr.bf16.mxu0 %v11659_v27 }
 0xa50   : > { %v9420_v50 = vsel %vm6502_vm15, %v16635_v20, %v9419_v11  ;;  %v9326_v14 = vsel %vm941_vm11, %v16637_v38, %v9325_v23  ;;  %v16818_v0 = vpop.permute.xlu1 %9307  ;;  %v16820_v31 = vpop.permute.xlu0 %9211  ;;  %10491 = vmatpush1.bf16.msra.mxu0 %v11658_v5 }
 0xa51   : > { %9349 = vst [vmem:[#allocation6 + $0xa0] sm:$0xff] %v9326_v14  ;;  %v9319_v35 = vrot.slane %v16818_v0, 4  ;;  %v9228_v48 = vrot.slane %v16820_v31, 4  ;;  %v11649_v47 = vcombine.low %v9412_v58, %v9420_v50  ;;  %v11650_v9 = vcombine.high %v9412_v58, %v9420_v50  ;;  %v12434_v50 = vld [vmem:[#allocation6 + $0x10] ss:$36 sps:$4 sm:$0xff]  }
 0xa53   : > { %v9333_v20 = vsel %vm810_vm3, %v9318_v63, %v9319_v35  ;;  %v9239_v38 = vsel %vm810_vm3, %v9227_v62, %v9228_v48  ;;  %10492 = vmatprep.subr.bf16.mxu0 %v11650_v9 }
 0xa54   : > { %v9334_v25 = vsel %vm941_vm11, %v16655_v36, %v9333_v20  ;;  %v9240_v37 = vsel %vm812_vm6, %v16657_v49, %v9239_v38  ;;  %v16838_v7 = vpop.permute.xlu1 %9221  ;;  %v16840_v30 = vpop.permute.xlu0 %9817  ;;  %10493 = vmatpush1.bf16.msra.mxu0 %v11649_v47 }
 0xa55   : > { %9263 = vst [vmem:[#allocation6 + $0x58] sm:$0xff] %v9240_v37  ;;  %v9233_v63 = vrot.slane %v16838_v7, 4  ;;  %v9834_v40 = vrot.slane %v16840_v30, 4  ;;  %v11640_v52 = vcombine.low %v9326_v14, %v9334_v25  ;;  %v11641_v26 = vcombine.high %v9326_v14, %v9334_v25 }
 0xa57   : > { %v9247_v36 = vsel %vm810_vm3, %v9232_v28, %v9233_v63  ;;  %v9845_v49 = vsel %vm810_vm3, %v9833_v55, %v9834_v40  ;;  %10494 = vmatprep.subr.bf16.mxu0 %v11641_v26 }
 0xa58   : > { %v9248_v62 = vsel %vm812_vm6, %v16675_v2, %v9247_v36  ;;  %v9846_v10 = vsel %vm7374_vm7, %v16677_v33, %v9845_v49  ;;  %v16858_v1 = vpop.permute.xlu1 %9827  ;;  %v9732_v51 = vpop.permute.xlu0 %9731  ;;  %10495 = vmatpush1.bf16.msra.mxu0 %v11640_v52 }
 0xa59   : > { %9268 = vst [vmem:[#allocation6 + $0x7c] sm:$0xff] %v9248_v62  ;;  %v9839_v28 = vrot.slane %v16858_v1, 4  ;;  %v9747_v18 = vrot.slane %v9732_v51, 4  ;;  %v11631_v42 = vcombine.low %v9240_v37, %v9248_v62  ;;  %v11632_v17 = vcombine.high %v9240_v37, %v9248_v62 }
 0xa5b   : > { %v9854_v55 = vsel %vm810_vm3, %v9838_v32, %v9839_v28  ;;  %v9759_v2 = vsel %vm810_vm3, %v9746_v43, %v9747_v18  ;;  %v9761_v33 = vsel %vm7197_vm10, %v9732_v51, %v9747_v18  ;;  %10496 = vmatprep.subr.bf16.mxu0 %v11632_v17 }
 0xa5c   : > { %v9855_v58 = vsel %vm7374_vm7, %v16695_v4, %v9854_v55  ;;  %v9760_v5 = vsel %vm7197_vm10, %v16697_v16, %v9759_v2  ;;  %9785 = vst.msk [vmem:[#allocation6 + $0x218] sm:$0xf] %vm6040_vm5, %v9761_v33  ;;  %v9742_v27 = vpop.permute.xlu1 %9741  ;;  %v9644_v11 = vpop.permute.xlu0 %9643  ;;  %10497 = vmatpush1.bf16.msra.mxu0 %v11631_v42 }
 0xa5d   : > { %v9752_v32 = vrot.slane %v9742_v27, 4  ;;  %v9659_v23 = vrot.slane %v9644_v11, 4  ;;  %10498 = vmatprep.subr.bf16.mxu0 %v12436_v24  ;;  %v11695_v43 = vcombine.high %v9846_v10, %v9855_v58  ;;  %v11694_v26 = vcombine.low %v9846_v10, %v9855_v58 }
 0xa5f   : > { %v9768_v14 = vsel %vm810_vm3, %v9751_v61, %v9752_v32  ;;  %v9770_v47 = vsel %vm7197_vm10, %v9742_v27, %v9752_v32  ;;  %v9671_v4 = vsel %vm810_vm3, %v9658_v56, %v9659_v23  ;;  %v9673_v16 = vsel %vm7020_vm12, %v9644_v11, %v9659_v23 }
 0xa60   : > { %v9769_v9 = vsel %vm7197_vm10, %v16715_v59, %v9768_v14  ;;  %9790 = vst.msk [vmem:[#allocation6 + $0x23c] sm:$0xf] %vm6040_vm5, %v9770_v47  ;;  %v9672_v20 = vsel %vm7020_vm12, %v16717_v34, %v9671_v4  ;;  %9697 = vst.msk [vmem:[#allocation6 + $0x1d0] sm:$0xf] %vm6040_vm5, %v9673_v16  ;;  %v9654_v38 = vpop.permute.xlu1 %9653  ;;  %v9558_v61 = vpop.permute.xlu0 %9557  ;;  %10499 = vmatpush1.bf16.msra.mxu0 %v12434_v50 }
 0xa61   : > { %v9664_v25 = vrot.slane %v9654_v38, 4  ;;  %v9573_v37 = vrot.slane %v9558_v61, 4  ;;  %9609 = vst.msk [vmem:[#allocation6 + $0x188] sm:$0xf] %vm6040_vm5, %v9558_v61  ;;  %10514 = vmatprep.subr.bf16.mxu0 %v11695_v43  ;;  %v11687_v56 = vcombine.low %v9760_v5, %v9769_v9  ;;  %v11688_v52 = vcombine.high %v9760_v5, %v9769_v9 }
 0xa63   : > { %v9680_v59 = vsel %vm810_vm3, %v9663_v46, %v9664_v25  ;;  %v9682_v36 = vsel %vm7020_vm12, %v9654_v38, %v9664_v25  ;;  %v9585_v34 = vsel %vm810_vm3, %v9572_v54, %v9573_v37  ;;  %10527 = vmatprep.subr.bf16.mxu1 %v11688_v52 }
 0xa64   : > { %v9681_v49 = vsel %vm7020_vm12, %v16735_v3, %v9680_v59  ;;  %9702 = vst.msk [vmem:[#allocation6 + $0x1f4] sm:$0xf] %vm6040_vm5, %v9682_v36  ;;  %v9586_v62 = vsel %vm1457_vm8, %v16737_v39, %v9585_v34  ;;  %v9568_v10 = vpop.permute.xlu1 %9567  ;;  %v9472_v51 = vpop.permute.xlu0 %9471  ;;  %10515 = vmatpush2.bf16.msra.mxu0 %v11694_v26  ;;  %10528 = vmatpush1.bf16.msra.mxu1 %v11687_v56 }
 0xa65   : > { %v9578_v46 = vrot.slane %v9568_v10, 4  ;;  %9614 = vst.msk [vmem:[#allocation6 + $0x1ac] sm:$0xf] %vm6040_vm5, %v9568_v10  ;;  %v9487_v18 = vrot.slane %v9472_v51, 4  ;;  %9523 = vst.msk [vmem:[#allocation6 + $0x140] sm:$0xf] %vm6040_vm5, %v9472_v51  ;;  %v11678_v54 = vcombine.low %v9672_v20, %v9681_v49  ;;  %v11679_v42 = vcombine.high %v9672_v20, %v9681_v49  ;;  %10570 = vmatprep.subr.bf16.mxu0 %v16057_v44 }
 0xa67   : > { %v9593_v3 = vsel %vm810_vm3, %v9577_v45, %v9578_v46  ;;  %v9499_v39 = vsel %vm810_vm3, %v9486_v21, %v9487_v18  ;;  %10517 = vmatmul.mubr.bf16.vlgmr.msra.gmra.mxu0 %v16586_v19  ;;  %10529 = vmatprep.subr.bf16.mxu1 %v11679_v42  ;;  %v12437_v17 = vld [vmem:[#allocation6 + $0x218] ss:$36 sps:$4 sm:$0xff]   ;;  %v12503_v45 = vld [vmem:[%s17078_s4 + $0x4] ss:$8 sps:$4 sm:$0xff]  }
 0xa68   : > { %v9594_v55 = vsel %vm1457_vm8, %v16755_v6, %v9593_v3  ;;  %v9500_v2 = vsel %vm6675_vm14, %v16757_v41, %v9499_v39  ;;  %v9482_v33 = vpop.permute.xlu1 %9481  ;;  %v9386_v24 = vpop.permute.xlu0 %9385  ;;  %10530 = vmatpush1.bf16.msra.mxu1 %v11678_v54  ;;  %11703 = vmatprep.mubr.msk.bf16.mxu0 %vm10394_vm13, %v12503_v45  ;;  %v12443_v39 = vld [vmem:[#allocation6 + $0x18] ss:$36 sps:$4 sm:$0xff]  }
 0xa69   : > { %v9492_v21 = vrot.slane %v9482_v33, 4  ;;  %9528 = vst.msk [vmem:[#allocation6 + $0x164] sm:$0xf] %vm6040_vm5, %v9482_v33  ;;  %v9401_v58 = vrot.slane %v9386_v24, 4  ;;  %9437 = vst.msk [vmem:[#allocation6 + $0xf8] sm:$0xf] %vm6040_vm5, %v9386_v24  ;;  %10571 = vmatpush1.bf16.msra.mxu0 %v12437_v17  ;;  %v11669_v6 = vcombine.low %v9586_v62, %v9594_v55  ;;  %v11670_v5 = vcombine.high %v9586_v62, %v9594_v55 }
 0xa6a   : > { %10572 = vmatprep.subr.bf16.mxu0 %v16057_v44 }
 0xa6b   : > { %v9507_v41 = vsel %vm810_vm3, %v9491_v53, %v9492_v21  ;;  %v9413_v27 = vsel %vm810_vm3, %v9400_v60, %v9401_v58  ;;  %10531 = vmatprep.subr.bf16.mxu1 %v11670_v5  ;;  %v12438_v11 = vld [vmem:[#allocation6 + $0x1d0] ss:$36 sps:$4 sm:$0xff]  }
 0xa6c   : > { %v9508_v32 = vsel %vm6675_vm14, %v16776_v57, %v9507_v41  ;;  %v9414_v23 = vsel %vm6502_vm15, %v16778_v22, %v9413_v27  ;;  %v9396_v50 = vpop.permute.xlu1 %9395  ;;  %v9300_v43 = vpop.permute.xlu0 %9299  ;;  %10532 = vmatpush1.bf16.msra.mxu1 %v11669_v6  ;;  %v12439_v4 = vld [vmem:[#allocation6 + $0x188] ss:$36 sps:$4 sm:$0xff]  }
 0xa6d   : > { %v9406_v14 = vrot.slane %v9396_v50, 4  ;;  %9442 = vst.msk [vmem:[#allocation6 + $0x11c] sm:$0xf] %vm6040_vm5, %v9396_v50  ;;  %v9315_v47 = vrot.slane %v9300_v43, 4  ;;  %9351 = vst.msk [vmem:[#allocation6 + $0xb0] sm:$0xf] %vm6040_vm5, %v9300_v43  ;;  %10573 = vmatpush1.bf16.msra.mxu0 %v12438_v11  ;;  %v11660_v53 = vcombine.low %v9500_v2, %v9508_v32  ;;  %v11661_v60 = vcombine.high %v9500_v2, %v9508_v32 }
 0xa6e   : > { %10574 = vmatprep.subr.bf16.mxu0 %v16057_v44  ;;  %v12447_v2 = vld [vmem:[#allocation6 + $0x20] ss:$36 sps:$4 sm:$0xff]  }
 0xa6f   : > { %v9421_v57 = vsel %vm810_vm3, %v9405_v29, %v9406_v14  ;;  %v9327_v22 = vsel %vm810_vm3, %v9314_v12, %v9315_v47  ;;  %10533 = vmatprep.subr.bf16.mxu1 %v11661_v60 }
 0xa70   : > { %v9422_v16 = vsel %vm6502_vm15, %v16798_v13, %v9421_v57  ;;  %v9328_v9 = vsel %vm941_vm11, %v16800_v15, %v9327_v22  ;;  %v9310_v20 = vpop.permute.xlu1 %9309  ;;  %v9214_v38 = vpop.permute.xlu0 %9213  ;;  %10534 = vmatpush1.bf16.msra.mxu1 %v11660_v53  ;;  %v12440_v37 = vld [vmem:[#allocation6 + $0x140] ss:$36 sps:$4 sm:$0xff]  }
 0xa71   : > { %v9320_v61 = vrot.slane %v9310_v20, 4  ;;  %9356 = vst.msk [vmem:[#allocation6 + $0xd4] sm:$0xf] %vm6040_vm5, %v9310_v20  ;;  %v9229_v25 = vrot.slane %v9214_v38, 4  ;;  %9265 = vst.msk [vmem:[#allocation6 + $0x68] sm:$0xf] %vm6040_vm5, %v9214_v38  ;;  %10575 = vmatpush1.bf16.msra.mxu0 %v12439_v4  ;;  %v11651_v29 = vcombine.low %v9414_v23, %v9422_v16  ;;  %v11652_v12 = vcombine.high %v9414_v23, %v9422_v16 }
 0xa72   : > { %10576 = vmatprep.subr.bf16.mxu0 %v16057_v44 }
 0xa73   : > { %v9335_v13 = vsel %vm810_vm3, %v9319_v35, %v9320_v61  ;;  %v9241_v15 = vsel %vm810_vm3, %v9228_v48, %v9229_v25  ;;  %10535 = vmatprep.subr.bf16.mxu1 %v11652_v12 }
 0xa74   : > { %v9336_v56 = vsel %vm941_vm11, %v16818_v0, %v9335_v13  ;;  %v9242_v52 = vsel %vm812_vm6, %v16820_v31, %v9241_v15  ;;  %v9224_v26 = vpop.permute.xlu1 %9223  ;;  %v9820_v59 = vpop.permute.xlu0 %9819  ;;  %10536 = vmatpush1.bf16.msra.mxu1 %v11651_v29  ;;  %v12441_v62 = vld [vmem:[#allocation6 + $0xf8] ss:$36 sps:$4 sm:$0xff]  }
 0xa75   : > { %9264 = vst [vmem:[#allocation6 + $0x60] sm:$0xff] %v9242_v52  ;;  %v9234_v36 = vrot.slane %v9224_v26, 4  ;;  %9270 = vst.msk [vmem:[#allocation6 + $0x8c] sm:$0xf] %vm6040_vm5, %v9224_v26  ;;  %v9835_v35 = vrot.slane %v9820_v59, 4  ;;  %10577 = vmatpush1.bf16.msra.mxu0 %v12440_v37  ;;  %v11642_v34 = vcombine.low %v9328_v9, %v9336_v56  ;;  %v11643_v49 = vcombine.high %v9328_v9, %v9336_v56 }
 0xa76   : > { %10578 = vmatprep.subr.bf16.mxu0 %v16057_v44 }
 0xa77   : > { %v9249_v0 = vsel %vm810_vm3, %v9233_v63, %v9234_v36  ;;  %v9847_v31 = vsel %vm810_vm3, %v9834_v40, %v9835_v35  ;;  %v9849_v48 = vsel %vm7374_vm7, %v9820_v59, %v9835_v35  ;;  %10537 = vmatprep.subr.bf16.mxu1 %v11643_v49 }
 0xa78   : > { %v9250_v10 = vsel %vm812_vm6, %v16838_v7, %v9249_v0  ;;  %v9848_v51 = vsel %vm7374_vm7, %v16840_v30, %v9847_v31  ;;  %9873 = vst.msk [vmem:[#allocation6 + $0x260] sm:$0xf] %vm6040_vm5, %v9849_v48  ;;  %v9830_v46 = vpop.permute.xlu1 %9829  ;;  %10538 = vmatpush1.bf16.msra.mxu1 %v11642_v34  ;;  %v12442_v42 = vld [vmem:[#allocation6 + $0xb0] ss:$36 sps:$4 sm:$0xff]   ;;  %v12445_v30 = vld [vmem:[#allocation6 + $0x1c] ss:$36 sps:$4 sm:$0xff]  }
 0xa79   : > { %9269 = vst [vmem:[#allocation6 + $0x84] sm:$0xff] %v9250_v10  ;;  %v9840_v63 = vrot.slane %v9830_v46, 4  ;;  %10579 = vmatpush1.bf16.msra.mxu0 %v12441_v62  ;;  %v11633_v18 = vcombine.low %v9242_v52, %v9250_v10  ;;  %v11634_v54 = vcombine.high %v9242_v52, %v9250_v10 }
 0xa7a   : > { %10580 = vmatprep.subr.bf16.mxu0 %v16057_v44 }
 0xa7b   : > { %v9856_v40 = vsel %vm810_vm3, %v9839_v28, %v9840_v63  ;;  %v9858_v7 = vsel %vm7374_vm7, %v9830_v46, %v9840_v63  ;;  %10539 = vmatprep.subr.bf16.mxu1 %v11634_v54 }
 0xa7c   : > { %v9857_v3 = vsel %vm7374_vm7, %v16858_v1, %v9856_v40  ;;  %9878 = vst.msk [vmem:[#allocation6 + $0x284] sm:$0xf] %vm6040_vm5, %v9858_v7  ;;  %10540 = vmatpush1.bf16.msra.mxu1 %v11633_v18  ;;  %v12446_v17 = vld [vmem:[#allocation6 + $0x68] ss:$36 sps:$4 sm:$0xff]  }
 0xa7d   : > { %10581 = vmatpush1.bf16.msra.mxu0 %v12442_v42  ;;  %10541 = vmatprep.subr.bf16.mxu1 %v12445_v30  ;;  %v11697_v55 = vcombine.high %v9848_v51, %v9857_v3  ;;  %v11696_v28 = vcombine.low %v9848_v51, %v9857_v3 }
 0xa7e   : > { %10582 = vmatprep.subr.bf16.mxu0 %v16057_v44 }
 0xa80   : > { %10542 = vmatpush1.bf16.msra.mxu1 %v12443_v39 }
 0xa81   : > { %10583 = vmatpush1.bf16.msra.mxu0 %v12446_v17  ;;  %10557 = vmatprep.subr.bf16.mxu1 %v11697_v55  ;;  %v16988_v6 = vpop.permute.xlu0 %10612 }
 0xa82   : > { %10584 = vmatprep.subr.bf16.mxu0 %v16057_v44 }
 0xa83   : > { %v12448_v1 = vld [vmem:[#allocation6 + $0x260] ss:$36 sps:$4 sm:$0xff]  }
 0xa84   : > { %10558 = vmatpush2.bf16.msra.mxu1 %v11696_v28 }
 0xa85   : > { %10585 = vmatpush1.bf16.msra.mxu0 %v12447_v2  ;;  %v16986_v45 = vpop.permute.xlu1 %10616 }
 0xa86   : > { %10600 = vmatprep.subr.bf16.mxu0 %v16057_v44  ;;  %v16994_v32 = vpop.permute.xlu0 %10642 }
 0xa87   : > { %10560 = vmatmul.mubr.bf16.vlgmr.msra.gmra.mxu1 %v16586_v19 }
 0xa89   : > { %10601 = vmatpush2.bf16.msra.mxu0 %v12448_v1 }
 0xa8a   : > { %v16990_v5 = vpop.permute.xlu1 %10638 }
 0xa8c   : > { %10603 = vmatmul.mubr.bf16.vlgmr.msra.gmra.mxu0 %v16586_v19 }
 0xa8f   : > { %v16998_v14 = vpop.permute.xlu1 %10682 }
 0xa93   : > { %v17010_v15 = vpop.permute.xlu1 %10686 }
 0xae7   : > { %v10432_v24 = vpop.f32.mrf.mxu0 }
 0xae8   : > { %v10619_v11 = vmul.f32 %v16988_v6, %v10432_v24 }
 0xae9   : > { %v10434_v58 = vpop.f32.mrf.mxu0 }
 0xaea   : > { %v10645_v47 = vadd.f32 %v16990_v5, %v10619_v11  ;;  %v10620_v4 = vmul.f32 %v16988_v6, %v10434_v58 }
 0xaeb   : > { %v10436_v27 = vpop.f32.mrf.mxu0 }
 0xaec   : > { %v10628_v44 = vmul.f32 %v16986_v45, %v10436_v27  ;;  %v10663_v61 = vmax.f32 %v10645_v47, 0.0  ;;  %v10646_v56 = vadd.f32 %v16990_v5, %v10620_v4 }
 0xaed   : > { %v10438_v19 = vpop.f32.mrf.mxu0 }
 0xaee   : > { %v10654_v53 = vadd.f32 %v16994_v32, %v10628_v44  ;;  %v10629_v16 = vmul.f32 %v16986_v45, %v10438_v19  ;;  %v10689_v0 = vmul.f32 %v16998_v14, %v10663_v61  ;;  %v10664_v46 = vmax.f32 %v10646_v56, 0.0 }
 0xaf0   : > { %v10672_v25 = vmax.f32 %v10654_v53, 0.0  ;;  %v10655_v52 = vadd.f32 %v16994_v32, %v10629_v16  ;;  %v10690_v17 = vmul.f32 %v16998_v14, %v10664_v46 }
 0xaf2   : > { %v10698_v31 = vmul.f32 %v17010_v15, %v10672_v25  ;;  %v10673_v63 = vmax.f32 %v10655_v52, 0.0 }
 0xaf4   : > { %v10707_v42 = vadd.f32 %v10698_v31, %v10689_v0  ;;  %v10699_v55 = vmul.f32 %v17010_v15, %v10673_v63 }
 0xaf6   : > { %v10708_v24 = vrot.slane %v10707_v42, 4 }
 0xaf8   : > { %v10709_v19 = vadd.f32 %v10708_v24, %v10707_v42 }
 0xb07   : > { %v10475_v33 = vpop.f32.mrf.mxu1 }
 0xb08   : > { %v10621_v50 = vmul.f32 %v16988_v6, %v10475_v33 }
 0xb09   : > { %v10477_v21 = vpop.f32.mrf.mxu1 }
 0xb0a   : > { %v10622_v60 = vmul.f32 %v16988_v6, %v10477_v21  ;;  %v10647_v9 = vadd.f32 %v16990_v5, %v10621_v50 }
 0xb0b   : > { %v10479_v41 = vpop.f32.mrf.mxu1 }
 0xb0c   : > { %v10630_v43 = vmul.f32 %v16986_v45, %v10479_v41  ;;  %v10648_v29 = vadd.f32 %v16990_v5, %v10622_v60  ;;  %v10665_v37 = vmax.f32 %v10647_v9, 0.0  ;;  %v10714_v41 = vadd.f32 %v10699_v55, %v10690_v17 }
 0xb0d   : > { %v10481_v23 = vpop.f32.mrf.mxu1 }
 0xb0e   : > { %v10631_v57 = vmul.f32 %v16986_v45, %v10481_v23  ;;  %v10656_v20 = vadd.f32 %v16994_v32, %v10630_v43  ;;  %v10666_v48 = vmax.f32 %v10648_v29, 0.0  ;;  %v10691_v51 = vmul.f32 %v16998_v14, %v10665_v37 }
 0xb0f   : > { %v10715_v47 = vrot.slane %v10714_v41, 4 }
 0xb10   : > { %v10657_v12 = vadd.f32 %v16994_v32, %v10631_v57  ;;  %v10674_v26 = vmax.f32 %v10656_v20, 0.0  ;;  %v10692_v30 = vmul.f32 %v16998_v14, %v10666_v48 }
 0xb11   : > { %v10716_v16 = vadd.f32 %v10715_v47, %v10714_v41 }
 0xb12   : > { %v10675_v62 = vmax.f32 %v10657_v12, 0.0  ;;  %v10700_v18 = vmul.f32 %v17010_v15, %v10674_v26 }
 0xb13   : > { %v10717_v12 = vrot.slane %v10716_v16, 2 }
 0xb14   : > { %v10701_v3 = vmul.f32 %v17010_v15, %v10675_v62  ;;  %v10721_v28 = vadd.f32 %v10700_v18, %v10691_v51  ;;  %v17037_v51 = vpop.permute.xlu0 %10774 }
 0xb16   : > { %v10728_v21 = vadd.f32 %v10701_v3, %v10692_v30  ;;  %v10722_v27 = vrot.slane %v10721_v28, 4 }
 0xb18   : > { %v10729_v50 = vrot.slane %v10728_v21, 4  ;;  %v10723_v53 = vadd.f32 %v10722_v27, %v10721_v28 }
 0xb1a   : > { %v10730_v57 = vadd.f32 %v10729_v50, %v10728_v21  ;;  %v10724_v9 = vrot.slane %v10723_v53, 2 }
 0xb1c   : > { %v10725_v29 = vadd.f32 %v10724_v9, %v10723_v53 }
 0xb27   : > { %v10518_v22 = vpop.f32.mrf.mxu0 }
 0xb28   : > { %v10623_v36 = vmul.f32 %v16988_v6, %v10518_v22  ;;  %v10710_v22 = vrot.slane %v10709_v19, 2 }
 0xb29   : > { %v10520_v38 = vpop.f32.mrf.mxu0 }
 0xb2a   : > { %v10624_v35 = vmul.f32 %v16988_v6, %v10520_v38  ;;  %v10649_v54 = vadd.f32 %v16990_v5, %v10623_v36  ;;  %v10731_v38 = vrot.slane %v10730_v57, 2  ;;  %v10711_v61 = vadd.f32 %v10710_v22, %v10709_v19 }
 0xb2b   : > { %v10522_v13 = vpop.f32.mrf.mxu0  ;;  %v10726_v36 = vrot.slane %v10725_v29, 1 }
 0xb2c   : > { %v10632_v34 = vmul.f32 %v16986_v45, %v10522_v13  ;;  %v10650_v40 = vadd.f32 %v16990_v5, %v10624_v35  ;;  %v10667_v2 = vmax.f32 %v10649_v54, 0.0  ;;  %v10732_v37 = vadd.f32 %v10731_v38, %v10730_v57 }
 0xb2d   : > { %v10524_v59 = vpop.f32.mrf.mxu0  ;;  %v10712_v56 = vrot.slane %v10711_v61, 1  ;;  %v10718_v35 = vadd.f32 %v10717_v12, %v10716_v16 }
 0xb2e   : > { %v10633_v49 = vmul.f32 %v16986_v45, %v10524_v59  ;;  %v10658_v7 = vadd.f32 %v16994_v32, %v10632_v34  ;;  %v10668_v1 = vmax.f32 %v10650_v40, 0.0  ;;  %v10693_v44 = vmul.f32 %v16998_v14, %v10667_v2 }
 0xb2f   : > { %v10733_v48 = vrot.slane %v10732_v37, 1  ;;  %v10713_v62 = vadd.f32 %v10712_v56, %v10711_v61  ;;  %v10727_v40 = vadd.f32 %v10726_v36, %v10725_v29 }
 0xb30   : > { %v10659_v10 = vadd.f32 %v16994_v32, %v10633_v49  ;;  %v10676_v33 = vmax.f32 %v10658_v7, 0.0  ;;  %v10694_v11 = vmul.f32 %v16998_v14, %v10668_v1  ;;  %v10719_v7 = vrot.slane %v10718_v35, 1 }
 0xb31   : > { %v10734_v2 = vadd.f32 %v10733_v48, %v10732_v37  ;;  %v10777_v1 = vadd.f32 %v17037_v51, %v10713_v62 }
 0xb32   : > { %v10677_v39 = vmax.f32 %v10659_v10, 0.0  ;;  %v10702_v23 = vmul.f32 %v17010_v15, %v10676_v33 }
 0xb34   : > { %v10703_v58 = vmul.f32 %v17010_v15, %v10677_v39  ;;  %v10735_v60 = vadd.f32 %v10702_v23, %v10693_v44  ;;  %v10779_v44 = vadd.f32 %v17037_v51, %v10727_v40 }
 0xb36   : > { %v10742_v43 = vadd.f32 %v10703_v58, %v10694_v11  ;;  %v10736_v20 = vrot.slane %v10735_v60, 4 }
 0xb38   : > { %v10743_v4 = vrot.slane %v10742_v43, 4  ;;  %v10737_v13 = vadd.f32 %v10736_v20, %v10735_v60  ;;  %v11704_v60 = vmul.f32 -1.442695, %v10777_v1  ;;  %v11706_v20 = vmul.f32 -1.442695, %v10779_v44 }
 0xb3a   : > { %v10744_v25 = vadd.f32 %v10743_v4, %v10742_v43  ;;  %v10738_v49 = vrot.slane %v10737_v13, 2  ;;  %12449 = vpow2.f32 %v11704_v60  ;;  %v12572_v60 = vmov 1966171168  }
 0xb3b   : > { %12451 = vpow2.f32 %v11706_v20 }
 0xb3c   : > { %v10745_v26 = vrot.slane %v10744_v25, 2  ;;  %v10739_v3 = vadd.f32 %v10738_v49, %v10737_v13 }
 0xb3e   : > { %v10746_v46 = vadd.f32 %v10745_v26, %v10744_v25  ;;  %v10740_v19 = vrot.slane %v10739_v3, 1 }
 0xb40   : > { %v10747_v24 = vrot.slane %v10746_v46, 1  ;;  %v10741_v25 = vadd.f32 %v10740_v19, %v10739_v3 }
 0xb42   : > { %v10748_v22 = vadd.f32 %v10747_v24, %v10746_v46 }
 0xb47   : > { %v10561_v52 = vpop.f32.mrf.mxu1 }
 0xb48   : > { %v10625_v59 = vmul.f32 %v16988_v6, %v10561_v52 }
 0xb49   : > { %v10563_v34 = vpop.f32.mrf.mxu1 }
 0xb4a   : > { %v10651_v0 = vadd.f32 %v16990_v5, %v10625_v59  ;;  %v10626_v31 = vmul.f32 %v16988_v6, %v10563_v34 }
 0xb4b   : > { %v10565_v10 = vpop.f32.mrf.mxu1 }
 0xb4c   : > { %v10652_v63 = vadd.f32 %v16990_v5, %v10626_v31  ;;  %v10634_v18 = vmul.f32 %v16986_v45, %v10565_v10  ;;  %v10604_v54 = vpop.f32.mrf.mxu0  ;;  %v10669_v39 = vmax.f32 %v10651_v0, 0.0 }
 0xb4d   : > { %v10627_v42 = vmul.f32 %v16988_v6, %v10604_v54  ;;  %v10567_v30 = vpop.f32.mrf.mxu1  ;;  %v10720_v6 = vadd.f32 %v10719_v7, %v10718_v35 }
 0xb4e   : > { %v10660_v17 = vadd.f32 %v16994_v32, %v10634_v18  ;;  %v10635_v55 = vmul.f32 %v16986_v45, %v10567_v30  ;;  %v10606_v28 = vpop.f32.mrf.mxu0  ;;  %v10670_v21 = vmax.f32 %v10652_v63, 0.0  ;;  %v10695_v50 = vmul.f32 %v16998_v14, %v10669_v39 }
 0xb4f   : > { %v10653_v33 = vadd.f32 %v16990_v5, %v10627_v42  ;;  %v10780_v5 = vadd.f32 %v17037_v51, %v10734_v2 }
 0xb50   : > { %v10678_v58 = vmax.f32 %v10660_v17, 0.0  ;;  %v10661_v41 = vadd.f32 %v16994_v32, %v10635_v55  ;;  %v10607_v27 = vpop.f32.mrf.mxu0  ;;  %v10696_v4 = vmul.f32 %v16998_v14, %v10670_v21  ;;  %v12450_v55 = vpop.eup %12449 }
 0xb51   : > { %v10671_v11 = vmax.f32 %v10653_v33, 0.0  ;;  %v10636_v23 = vmul.f32 %v16986_v45, %v10607_v27  ;;  %v10778_v45 = vadd.f32 %v17037_v51, %v10720_v6  ;;  %v11707_v13 = vmul.f32 -1.442695, %v10780_v5  ;;  %v12452_v28 = vpop.eup %12451 }
 0xb52   : > { %v10704_v43 = vmul.f32 %v17010_v15, %v10678_v58  ;;  %v10679_v47 = vmax.f32 %v10661_v41, 0.0  ;;  %v10609_v53 = vpop.f32.mrf.mxu0  ;;  %v10815_v41 = vadd.f32 1.0, %v12452_v28  ;;  %v10813_v44 = vadd.f32 1.0, %v12450_v55 }
 0xb53   : > { %v10662_v57 = vadd.f32 %v16994_v32, %v10636_v23  ;;  %v10697_v38 = vmul.f32 %v16998_v14, %v10671_v11  ;;  %v10782_v32 = vadd.f32 %v17037_v51, %v10748_v22  ;;  %v11705_v26 = vmul.f32 -1.442695, %v10778_v45 }
 0xb54   : > { %v10749_v16 = vadd.f32 %v10704_v43, %v10695_v50  ;;  %v10705_v9 = vmul.f32 %v17010_v15, %v10679_v47  ;;  %v10781_v14 = vadd.f32 %v17037_v51, %v10741_v25  ;;  %12453 = vpow2.f32 %v11707_v13 }
 0xb55   : > { %v10680_v61 = vmax.f32 %v10662_v57, 0.0  ;;  %v10763_v59 = vsel %vm449_vm0, %v10697_v38, 0.0  ;;  %v11709_v0 = vmul.f32 -1.442695, %v10782_v32  ;;  %12455 = vpow2.f32 %v11705_v26 }
 0xb56   : > { %v10750_v29 = vrot.slane %v10749_v16, 4  ;;  %v10756_v12 = vadd.f32 %v10705_v9, %v10696_v4  ;;  %v11708_v62 = vmul.f32 -1.442695, %v10781_v14  ;;  %v10854_v57 = vunpack.c.l.s4 %v12572_v60 }
 0xb57   : > { %v10706_v37 = vmul.f32 %v17010_v15, %v10680_v61  ;;  %12457 = vpow2.f32 %v11709_v0 }
 0xb58   : > { %v10751_v56 = vadd.f32 %v10750_v29, %v10749_v16  ;;  %v10757_v52 = vrot.slane %v10756_v12, 4  ;;  %12459 = vpow2.f32 %v11708_v62  ;;  %v10855_v45 = vunpack.c.0.s8 %v10854_v57 }
 0xb59   : > { %v10764_v36 = vsel %vm449_vm0, %v10706_v37, 0.0 }
 0xb5a   : > { %v10752_v35 = vrot.slane %v10751_v56, 2  ;;  %v10758_v34 = vadd.f32 %v10757_v52, %v10756_v12  ;;  %v10765_v49 = vadd.f32 %v10764_v36, %v10763_v59  ;;  %v10858_v25 = vsub.s32 %v10855_v45, %v17412_v8 }
 0xb5b   : > { %v17417_v8 = vlaneseq }
 0xb5c   : > { %v10753_v31 = vadd.f32 %v10752_v35, %v10751_v56  ;;  %v10759_v15 = vrot.slane %v10758_v34, 2  ;;  %v10766_v48 = vrot.slane %v10765_v49, 4 }
 0xb5d   : > { %vm10917_vm0 = vcmp.lt.s32.totalorder %v17417_v8, 64 }
 0xb5e   : > { %v10754_v10 = vrot.slane %v10753_v31, 1  ;;  %v10760_v46 = vadd.f32 %v10759_v15, %v10758_v34  ;;  %v10767_v63 = vadd.f32 %v10766_v48, %v10765_v49 }
 0xb60   : > { %v10755_v18 = vadd.f32 %v10754_v10, %v10753_v31  ;;  %v10761_v54 = vrot.slane %v10760_v46, 1  ;;  %v10768_v40 = vrot.slane %v10767_v63, 2 }
 0xb61   : > { %v12454_v33 = vpop.eup %12453 }
 0xb62   : > { %v10783_v7 = vadd.f32 %v17037_v51, %v10755_v18  ;;  %v10762_v42 = vadd.f32 %v10761_v54, %v10760_v46  ;;  %v10769_v30 = vadd.f32 %v10768_v40, %v10767_v63  ;;  %v12456_v21 = vpop.eup %12455  ;;  %v10816_v27 = vadd.f32 1.0, %v12454_v33 }
 0xb63   : > { %v10814_v11 = vadd.f32 1.0, %v12456_v21 }
 0xb64   : > { %v11710_v3 = vmul.f32 -1.442695, %v10783_v7  ;;  %v10784_v39 = vadd.f32 %v17037_v51, %v10762_v42  ;;  %v10770_v17 = vrot.slane %v10769_v30, 1  ;;  %v12458_v6 = vpop.eup %12457 }
 0xb65   : > { %v12460_v23 = vpop.eup %12459  ;;  %v10818_v19 = vadd.f32 1.0, %v12458_v6 }
 0xb66   : > { %12461 = vpow2.f32 %v11710_v3  ;;  %v11711_v2 = vmul.f32 -1.442695, %v10784_v39  ;;  %v10771_v1 = vadd.f32 %v10770_v17, %v10769_v30  ;;  %v10817_v50 = vadd.f32 1.0, %v12460_v23 }
 0xb68   : > { %12463 = vpow2.f32 %v11711_v2  ;;  %v10785_v24 = vadd.f32 %v17037_v51, %v10771_v1 }
 0xb6a   : > { %v11712_v58 = vmul.f32 -1.442695, %v10785_v24 }
 0xb6c   : > { %12465 = vpow2.f32 %v11712_v58 }
 0xb6d   : > { %12467 = vrcp.f32 %v10815_v41 }
 0xb6e   : > { %12469 = vrcp.f32 %v10816_v27 }
 0xb6f   : > { %12471 = vrcp.f32 %v10813_v44 }
 0xb70   : > { %12473 = vrcp.f32 %v10814_v11 }
 0xb71   : > { %12475 = vrcp.f32 %v10818_v19 }
 0xb72   : > { %12477 = vrcp.f32 %v10817_v50 }
 0xb73   : > { %v12462_v43 = vpop.eup %12461 }
 0xb74   : > { %v10819_v47 = vadd.f32 1.0, %v12462_v43 }
 0xb75   : > { %v12464_v53 = vpop.eup %12463 }
 0xb76   : > { %v10820_v51 = vadd.f32 1.0, %v12464_v53  ;;  %12479 = vrcp.f32 %v10819_v47 }
 0xb78   : > { %12481 = vrcp.f32 %v10820_v51 }
 0xb79   : > { %v12466_v5 = vpop.eup %12465 }
 0xb7a   : > { %v10821_v22 = vadd.f32 1.0, %v12466_v5  ;;  %v12468_v4 = vpop.eup %12467 }
 0xb7b   : > { %v12470_v16 = vpop.eup %12469 }
 0xb7c   : > { %12483 = vrcp.f32 %v10821_v22  ;;  %v12472_v9 = vpop.eup %12471  ;;  %v10850_v38 = vcombine.low %v12468_v4, %v12470_v16 }
 0xb7d   : > { %v12474_v20 = vpop.eup %12473 }
 0xb7e   : > { %v12476_v61 = vpop.eup %12475  ;;  %v10849_v29 = vcombine.low %v12472_v9, %v12474_v20  ;;  %v10866_v37 = vrot.slane %v10850_v38, %v10858_v25 }
 0xb7f   : > { %v12478_v12 = vpop.eup %12477 }
 0xb80   : > { %v10851_v32 = vcombine.low %v12478_v12, %v12476_v61  ;;  %v10859_v52 = vrot.slane %v10849_v29, %v10858_v25 }
 0xb82   : > { %v10881_v59 = vcombine.low %v10859_v52, %v10866_v37  ;;  %v10873_v36 = vrot.slane %v10851_v32, %v10858_v25 }
 0xb83   : > { %v12480_v13 = vpop.eup %12479 }
 0xb84   : > { %v10889_v0 = vrot.slane %v10881_v59, %v10858_v25 }
 0xb85   : > { %v12482_v56 = vpop.eup %12481 }
 0xb86   : > { %v10852_v26 = vcombine.low %v12480_v13, %v12482_v56 }
 0xb88   : > { %v10880_v14 = vrot.slane %v10852_v26, %v10858_v25 }
 0xb89   : > { %v12484_v35 = vpop.eup %12483 }
 0xb8a   : > { %v10882_v34 = vcombine.low %v10873_v36, %v10880_v14  ;;  %v10904_v49 = vrot.slane %v12484_v35, %v10858_v25 }
 0xb8c   : > { %v10896_v31 = vrot.slane %v10882_v34, %v10858_v25  ;;  %v10911_v15 = vrot.slane %v10904_v49, %v10858_v25 }
 0xb8e   : > { %v10897_v48 = vcombine.low %v10889_v0, %v10896_v31  ;;  %10919 = vst.msk [vmem:[%s345_s18 + $0x8] sm:$0x1] %vm10917_vm0, %v10911_v15 }
 0xb90   : > { %10914 = vst [vmem:[%s345_s18] sm:$0xff] %v10897_v48 }
 0xb91 PF: > { %s20_s30 = sadd.s32 1, %s12540_s30  }
 0xb92   : > { %p17_p1 = scmp.ge.s32.totalorder %s20_s30, 4  }
 0xb94   :  { %19 = sbr.rel (!%p17_p1) target bundleno = 1 (0x1), region = 93 }
 0xb99   :  { %10939 = vsyncpa [#allocation8], 1 }
 0xb9a   :  { %10941 = vsyncpa [#allocation8 + $0x1], 1 }

</bundles_post_ra>
